<compile_context>
chip_gen: v7x
topology: tpu7x:2x2x1
jax: 0.10.0
libtpu: 0.0.40
codegen_flags: <defaults>
</compile_context>

<pallas_src>
import functools
import numpy as np
import jax
import jax.numpy as jnp
from jax.experimental import pallas as pl
from jax.experimental.pallas import tpu as pltpu


# --------------------------------------------------------------------------------------
# small helpers
# --------------------------------------------------------------------------------------
_M_TILES = (512, 256, 128, 64, 32, 16, 8)
_N_TILES = (512, 256, 128)          # lane axis: multiples of 128
_K_TILES = (512, 256, 128)


def _pick_tile(dim, candidates, min_steps=1):
    """Largest candidate tile dividing `dim` (preferring >= min_steps grid steps)."""
    fallback = None
    for c in candidates:
        if c <= dim and dim % c == 0:
            if dim // c >= min_steps:
                return c
            if fallback is None:
                fallback = c
    return fallback if fallback is not None else dim


def _mosaic_params(dim_sem, bytes_hint):
    """Dimension semantics + an explicit scoped-VMEM limit sized from the block bytes."""
    limit = int(min(max(3 * bytes_hint + (2 << 20), 32 << 20), 64 << 20))
    return pltpu.CompilerParams(dimension_semantics=dim_sem, vmem_limit_bytes=limit)


# TODO(synk): lax.erf lowering inside Mosaic kernels is not guaranteed; exact-erf GELU is
# evaluated with an f32-accurate polynomial (Abramowitz&Stegun 7.1.26, |err| <= 1.5e-7).
def _erf_approx(x):
    a = jnp.abs(x)
    t = 1.0 / (1.0 + 0.3275911 * a)
    poly = t * (0.254829592 + t * (-0.284496736 + t * (1.421413741
               + t * (-1.453152027 + t * 1.061405429))))
    y = 1.0 - poly * jnp.exp(-a * a)
    return jnp.where(x >= 0, y, -y)


def _gelu_exact(x):
    return 0.5 * x * (1.0 + _erf_approx(x * 0.7071067811865476))


def _layernorm_val(x, gamma, beta, eps):
    mu = jnp.mean(x, axis=-1, keepdims=True)
    var = jnp.mean(jnp.square(x - mu), axis=-1, keepdims=True)
    return (x - mu) * jax.lax.rsqrt(var + eps) * gamma + beta


# --------------------------------------------------------------------------------------
# Tiled matmul kernels (bf16 MXU operands, f32 accumulator, optional fused residual)
# --------------------------------------------------------------------------------------
def _matmul_kernel(x_ref, w_ref, b_ref, o_ref, acc_ref):
    @pl.when(pl.program_id(2) == 0)
    def _():
        acc_ref[...] = jnp.zeros_like(acc_ref)

    acc_ref[...] += jnp.dot(x_ref[...].astype(jnp.bfloat16), w_ref[...],
                            preferred_element_type=jnp.float32)

    @pl.when(pl.program_id(2) == pl.num_programs(2) - 1)
    def _():
        o_ref[...] = (acc_ref[...] + b_ref[...]).astype(o_ref.dtype)


def _matmul_res_kernel(x_ref, w_ref, b_ref, r_ref, o_ref, acc_ref):
    @pl.when(pl.program_id(2) == 0)
    def _():
        acc_ref[...] = jnp.zeros_like(acc_ref)

    acc_ref[...] += jnp.dot(x_ref[...].astype(jnp.bfloat16), w_ref[...],
                            preferred_element_type=jnp.float32)

    @pl.when(pl.program_id(2) == pl.num_programs(2) - 1)
    def _():
        o_ref[...] = (acc_ref[...] + b_ref[...]
                      + r_ref[...].astype(jnp.float32)).astype(o_ref.dtype)


def pallas_linear(x, w, b, residual=None):
    """y = x @ w + b (+ residual).  x:(M,K) w:(K,N) b:(N,)  residual:(M,N)|None."""
    M, K = x.shape
    N = w.shape[1]
    tm = _pick_tile(M, _M_TILES, min_steps=2)
    tn = _pick_tile(N, _N_TILES)
    tk = _pick_tile(K, _K_TILES)
    grid = (M // tm, N // tn, K // tk)

    x_spec = pl.BlockSpec((tm, tk), lambda i, j, k: (i, k))
    w_spec = pl.BlockSpec((tk, tn), lambda i, j, k: (k, j))
    b_spec = pl.BlockSpec((1, tn), lambda i, j, k: (0, j))
    o_spec = pl.BlockSpec((tm, tn), lambda i, j, k: (i, j))
    scratch = [pltpu.VMEM((tm, tn), jnp.float32)]
    bytes_hint = tm * tk * 4 + tk * tn * 2 + tn * 4 + tm * tn * 8
    if residual is not None:
        bytes_hint += tm * tn * 4
    cp = _mosaic_params(("parallel", "parallel", "arbitrary"), bytes_hint)
    out_shape = jax.ShapeDtypeStruct((M, N), x.dtype)
    w_bf = w.astype(jnp.bfloat16)

    if residual is None:
        return pl.pallas_call(
            _matmul_kernel, out_shape=out_shape, grid=grid,
            in_specs=[x_spec, w_spec, b_spec], out_specs=o_spec,
            scratch_shapes=scratch, compiler_params=cp,
        )(x, w_bf, b.reshape(1, N))

    r_spec = pl.BlockSpec((tm, tn), lambda i, j, k: (i, j))
    return pl.pallas_call(
        _matmul_res_kernel, out_shape=out_shape, grid=grid,
        in_specs=[x_spec, w_spec, b_spec, r_spec], out_specs=o_spec,
        scratch_shapes=scratch, compiler_params=cp,
    )(x, w_bf, b.reshape(1, N), residual)


# --------------------------------------------------------------------------------------
# Fused LayerNorm -> Linear (LN cached across the output-tile axis)
# --------------------------------------------------------------------------------------
def _ln_matmul_kernel(x_ref, g_ref, beta_ref, w_ref, b_ref, o_ref, xn_ref, *, eps):
    @pl.when(pl.program_id(1) == 0)
    def _():
        x = x_ref[...].astype(jnp.float32)
        xn_ref[...] = _layernorm_val(x, g_ref[...], beta_ref[...], eps).astype(xn_ref.dtype)

    y = jnp.dot(xn_ref[...], w_ref[...], preferred_element_type=jnp.float32) + b_ref[...]
    o_ref[...] = y.astype(o_ref.dtype)


def pallas_ln_linear(x, gamma, beta, w, b, eps=1e-5):
    """y = LayerNorm(x) @ w + b.  x:(M,K) w:(K,N)."""
    M, K = x.shape
    N = w.shape[1]
    tm = _pick_tile(M, _M_TILES, min_steps=2)
    tn = _pick_tile(N, _N_TILES)
    grid = (M // tm, N // tn)
    bytes_hint = tm * K * 4 + 2 * K * 4 + K * tn * 2 + tn * 4 + tm * tn * 4 + tm * K * 2
    kern = functools.partial(_ln_matmul_kernel, eps=eps)
    return pl.pallas_call(
        kern,
        out_shape=jax.ShapeDtypeStruct((M, N), x.dtype),
        grid=grid,
        in_specs=[
            pl.BlockSpec((tm, K), lambda i, j: (i, 0)),
            pl.BlockSpec((1, K), lambda i, j: (0, 0)),
            pl.BlockSpec((1, K), lambda i, j: (0, 0)),
            pl.BlockSpec((K, tn), lambda i, j: (0, j)),
            pl.BlockSpec((1, tn), lambda i, j: (0, j)),
        ],
        out_specs=pl.BlockSpec((tm, tn), lambda i, j: (i, j)),
        scratch_shapes=[pltpu.VMEM((tm, K), jnp.bfloat16)],
        compiler_params=_mosaic_params(("parallel", "arbitrary"), bytes_hint),
    )(x, gamma.reshape(1, K), beta.reshape(1, K), w.astype(jnp.bfloat16), b.reshape(1, N))


# --------------------------------------------------------------------------------------
# Fused Linear -> LayerNorm (patch embed: proj + patch_norm, K-axis accumulation)
# --------------------------------------------------------------------------------------
def _matmul_ln_kernel(x_ref, w_ref, b_ref, g_ref, beta_ref, o_ref, acc_ref, *, eps):
    @pl.when(pl.program_id(1) == 0)
    def _():
        acc_ref[...] = jnp.zeros_like(acc_ref)

    acc_ref[...] += jnp.dot(x_ref[...].astype(jnp.bfloat16), w_ref[...],
                            preferred_element_type=jnp.float32)

    @pl.when(pl.program_id(1) == pl.num_programs(1) - 1)
    def _():
        y = acc_ref[...] + b_ref[...]
        o_ref[...] = _layernorm_val(y, g_ref[...], beta_ref[...], eps).astype(o_ref.dtype)


def pallas_linear_ln(x, w, b, gamma, beta, eps=1e-5):
    """y = LayerNorm(x @ w + b).  x:(M,K) w:(K,N)  (N is the full normalized dim)."""
    M, K = x.shape
    N = w.shape[1]
    tm = _pick_tile(M, _M_TILES, min_steps=2)
    tk = _pick_tile(K, _K_TILES)
    grid = (M // tm, K // tk)
    bytes_hint = tm * tk * 4 + tk * N * 2 + 3 * N * 4 + tm * N * 8
    kern = functools.partial(_matmul_ln_kernel, eps=eps)
    return pl.pallas_call(
        kern,
        out_shape=jax.ShapeDtypeStruct((M, N), x.dtype),
        grid=grid,
        in_specs=[
            pl.BlockSpec((tm, tk), lambda i, k: (i, k)),
            pl.BlockSpec((tk, N), lambda i, k: (k, 0)),
            pl.BlockSpec((1, N), lambda i, k: (0, 0)),
            pl.BlockSpec((1, N), lambda i, k: (0, 0)),
            pl.BlockSpec((1, N), lambda i, k: (0, 0)),
        ],
        out_specs=pl.BlockSpec((tm, N), lambda i, k: (i, 0)),
        scratch_shapes=[pltpu.VMEM((tm, N), jnp.float32)],
        compiler_params=_mosaic_params(("parallel", "arbitrary"), bytes_hint),
    )(x, w.astype(jnp.bfloat16), b.reshape(1, N), gamma.reshape(1, N), beta.reshape(1, N))


# --------------------------------------------------------------------------------------
# Fused residual + LayerNorm + fc1 + GELU + fc2 (hidden never leaves VMEM, LN cached)
# --------------------------------------------------------------------------------------
def _mlp_kernel(x_ref, g_ref, beta_ref, w1_ref, b1_ref, w2_ref, b2_ref, o_ref,
                acc_ref, xn_ref, *, eps):
    @pl.when(pl.program_id(1) == 0)
    def _():
        x = x_ref[...].astype(jnp.float32)
        xn_ref[...] = _layernorm_val(x, g_ref[...], beta_ref[...], eps).astype(xn_ref.dtype)
        acc_ref[...] = jnp.zeros_like(acc_ref)

    h = jnp.dot(xn_ref[...], w1_ref[...], preferred_element_type=jnp.float32) + b1_ref[...]
    h = _gelu_exact(h)
    acc_ref[...] += jnp.dot(h.astype(jnp.bfloat16), w2_ref[...],
                            preferred_element_type=jnp.float32)

    @pl.when(pl.program_id(1) == pl.num_programs(1) - 1)
    def _():
        o_ref[...] = (x_ref[...].astype(jnp.float32) + acc_ref[...]
                      + b2_ref[...]).astype(o_ref.dtype)


def pallas_mlp(x, gamma, beta, w1, b1, w2, b2, eps=1e-5):
    """y = x + fc2(GELU(fc1(LayerNorm(x)))).  x:(M,C) w1:(C,Hh) w2:(Hh,C)."""
    M, C = x.shape
    Hh = w1.shape[1]
    tm = _pick_tile(M, _M_TILES, min_steps=2)
    th = _pick_tile(Hh, _N_TILES)
    grid = (M // tm, Hh // th)
    bytes_hint = (tm * C * 4 + 2 * C * 4 + C * th * 2 + th * 4 + th * C * 2 + C * 4
                  + tm * C * 8 + tm * C * 2 + tm * th * 4)
    kern = functools.partial(_mlp_kernel, eps=eps)
    return pl.pallas_call(
        kern,
        out_shape=jax.ShapeDtypeStruct((M, C), x.dtype),
        grid=grid,
        in_specs=[
            pl.BlockSpec((tm, C), lambda i, h: (i, 0)),
            pl.BlockSpec((1, C), lambda i, h: (0, 0)),
            pl.BlockSpec((1, C), lambda i, h: (0, 0)),
            pl.BlockSpec((C, th), lambda i, h: (0, h)),
            pl.BlockSpec((1, th), lambda i, h: (0, h)),
            pl.BlockSpec((th, C), lambda i, h: (h, 0)),
            pl.BlockSpec((1, C), lambda i, h: (0, 0)),
        ],
        out_specs=pl.BlockSpec((tm, C), lambda i, h: (i, 0)),
        scratch_shapes=[pltpu.VMEM((tm, C), jnp.float32),
                        pltpu.VMEM((tm, C), jnp.bfloat16)],
        compiler_params=_mosaic_params(("parallel", "arbitrary"), bytes_hint),
    )(x, gamma.reshape(1, C), beta.reshape(1, C),
      w1.astype(jnp.bfloat16), b1.reshape(1, Hh),
      w2.astype(jnp.bfloat16), b2.reshape(1, C))


# --------------------------------------------------------------------------------------
# Window attention core: Wb windows per grid step, heads sliced in-kernel, per-head
# outputs written straight into the lane slice of o_ref (no concat), bf16 MXU operands.
# --------------------------------------------------------------------------------------
def _attn_body(qkv_ref, bias_ref, mask, o_ref, num_heads, scale):
    Wb, N, C3 = qkv_ref.shape
    C = C3 // 3
    hd = C // num_heads
    qkv = qkv_ref[...]                                         # (Wb, N, 3C) f32
    for h in range(num_heads):                                 # static unroll over heads
        qh = qkv[:, :, h * hd:(h + 1) * hd].astype(jnp.bfloat16)
        kh = qkv[:, :, C + h * hd:C + (h + 1) * hd].astype(jnp.bfloat16)
        vh = qkv[:, :, 2 * C + h * hd:2 * C + (h + 1) * hd].astype(jnp.bfloat16)
        s = jnp.einsum("wqd,wkd->wqk", qh, kh,
                       preferred_element_type=jnp.float32) * scale
        s = s + bias_ref[h][None, :, :].astype(jnp.float32)
        if mask is not None:
            s = s + mask                                       # (Wb, N, N)
        s = s - jnp.max(s, axis=-1, keepdims=True)
        p = jnp.exp(s)
        p = p * pl.reciprocal(jnp.sum(p, axis=-1, keepdims=True), approx=True)
        out_h = jnp.einsum("wqk,wkd->wqd", p.astype(jnp.bfloat16), vh,
                           preferred_element_type=jnp.float32)
        o_ref[:, :, h * hd:(h + 1) * hd] = out_h.astype(o_ref.dtype)


def _wattn_kernel(qkv_ref, bias_ref, o_ref, *, num_heads, scale):
    _attn_body(qkv_ref, bias_ref, None, o_ref, num_heads, scale)


def _wattn_mask_kernel(qkv_ref, bias_ref, mask_ref, o_ref, *, num_heads, scale):
    _attn_body(qkv_ref, bias_ref, mask_ref[...].astype(jnp.float32), o_ref,
               num_heads, scale)


def _pick_window_batch(B_, nW, per_window_bytes, budget=8 << 20):
    cands = [c for c in (64, 32, 16, 8, 4, 2, 1) if c <= B_]
    best = 1
    for c in cands:
        if B_ % c:
            continue
        if nW is not None and not (nW % c == 0 or c % nW == 0):
            continue
        if c * per_window_bytes > budget:
            continue
        best = c
        break
    if B_ // best < 2:                  # keep >=2 grid steps so both v7x TCs get work
        for c in cands:
            if c >= best or B_ % c:
                continue
            if nW is not None and not (nW % c == 0 or c % nW == 0):
                continue
            if B_ // c >= 2:
                best = c
                break
    return best


def pallas_window_attention(qkv_windows, rel_bias, mask, num_heads, scale):
    """qkv_windows:(B_,N,3C)  rel_bias:(nh,N,N)  mask:(nW,N,N)|None  -> (B_,N,C)."""
    B_, N, C3 = qkv_windows.shape
    C = C3 // 3
    nW = None if mask is None else mask.shape[0]
    per_win = 4 * N * (3 * C + C + 3 * N)            # qkv-in + out + score/mask live
    Wb = _pick_window_batch(B_, nW, per_win)
    grid = (B_ // Wb,)
    bytes_hint = Wb * per_win + num_heads * N * N * 4

    qkv_spec = pl.BlockSpec((Wb, N, C3), lambda b: (b, 0, 0))
    bias_spec = pl.BlockSpec((num_heads, N, N), lambda b: (0, 0, 0))
    out_spec = pl.BlockSpec((Wb, N, C), lambda b: (b, 0, 0))
    cp = _mosaic_params(("parallel",), bytes_hint)
    out_shape = jax.ShapeDtypeStruct((B_, N, C), qkv_windows.dtype)

    if mask is None:
        kern = functools.partial(_wattn_kernel, num_heads=num_heads, scale=scale)
        return pl.pallas_call(
            kern, out_shape=out_shape, grid=grid,
            in_specs=[qkv_spec, bias_spec], out_specs=out_spec, compiler_params=cp,
        )(qkv_windows, rel_bias)

    if Wb >= nW:
        mask_arg = jnp.tile(mask, (Wb // nW, 1, 1)) if Wb > nW else mask
        mask_spec = pl.BlockSpec((Wb, N, N), lambda b: (0, 0, 0))
    else:
        nblk = nW // Wb
        mask_arg = mask
        mask_spec = pl.BlockSpec((Wb, N, N), lambda b: (b % nblk, 0, 0))

    kern = functools.partial(_wattn_mask_kernel, num_heads=num_heads, scale=scale)
    return pl.pallas_call(
        kern, out_shape=out_shape, grid=grid,
        in_specs=[qkv_spec, bias_spec, mask_spec], out_specs=out_spec,
        compiler_params=cp,
    )(qkv_windows, rel_bias, mask_arg)


# --------------------------------------------------------------------------------------
# Fused final LayerNorm + mean-pool
# --------------------------------------------------------------------------------------
def _ln_meanpool_kernel(x_ref, g_ref, b_ref, o_ref, *, eps):
    x = x_ref[...].astype(jnp.float32)                        # (bb, L, C)
    xn = _layernorm_val(x, g_ref[...], b_ref[...], eps)
    o_ref[...] = jnp.mean(xn, axis=1).astype(o_ref.dtype)


def pallas_ln_meanpool(x, gamma, beta, eps=1e-5):
    """Final norm + AdaptiveAvgPool1d(1).  x:(B,L,C) -> (B,C)."""
    B, L, C = x.shape
    bb = _pick_tile(B, (32, 16, 8, 4, 2))
    kern = functools.partial(_ln_meanpool_kernel, eps=eps)
    bytes_hint = bb * L * C * 8 + 2 * C * 4 + bb * C * 4
    return pl.pallas_call(
        kern,
        out_shape=jax.ShapeDtypeStruct((B, C), x.dtype),
        grid=(B // bb,),
        in_specs=[pl.BlockSpec((bb, L, C), lambda i: (i, 0, 0)),
                  pl.BlockSpec((1, C), lambda i: (0, 0)),
                  pl.BlockSpec((1, C), lambda i: (0, 0))],
        out_specs=pl.BlockSpec((bb, C), lambda i: (i, 0)),
        compiler_params=_mosaic_params(("parallel",), bytes_hint),
    )(x, gamma.reshape(1, C), beta.reshape(1, C))


# --------------------------------------------------------------------------------------
# Swin helpers (plain-JAX glue: reshapes, rolls, padding, masks)
# --------------------------------------------------------------------------------------
def window_partition(x, ws):
    B, H, W, C = x.shape
    x = x.reshape(B, H // ws, ws, W // ws, ws, C)
    return x.transpose(0, 1, 3, 2, 4, 5).reshape(-1, ws, ws, C)


def window_reverse(windows, ws, H, W):
    B = windows.shape[0] // (H * W // ws // ws)
    x = windows.reshape(B, H // ws, W // ws, ws, ws, -1)
    return x.transpose(0, 1, 3, 2, 4, 5).reshape(B, H, W, -1)


def relative_position_index(ws):
    coords = np.stack(np.meshgrid(np.arange(ws), np.arange(ws), indexing="ij"))
    cf = coords.reshape(2, -1)
    rel = cf[:, :, None] - cf[:, None, :]
    rel = rel.transpose(1, 2, 0).astype(np.int64)
    rel[:, :, 0] += ws - 1
    rel[:, :, 1] += ws - 1
    rel[:, :, 0] *= 2 * ws - 1
    return rel.sum(-1)                               # (N, N)


def create_mask(H, W, window_size, shift_size):
    Hp = int(np.ceil(H / window_size)) * window_size
    Wp = int(np.ceil(W / window_size)) * window_size
    img_mask = np.zeros((1, Hp, Wp, 1), np.float32)
    slices = (slice(0, -window_size),
              slice(-window_size, -shift_size),
              slice(-shift_size, None))
    cnt = 0
    for h in slices:
        for w in slices:
            img_mask[:, h, w, :] = cnt
            cnt += 1
    mw = img_mask.reshape(1, Hp // window_size, window_size, Wp // window_size,
                          window_size, 1)
    mw = mw.transpose(0, 1, 3, 2, 4, 5).reshape(-1, window_size * window_size)
    attn_mask = mw[:, None, :] - mw[:, :, None]
    attn_mask = np.where(attn_mask != 0, -100.0, 0.0).astype(np.float32)
    return jnp.asarray(attn_mask)                    # (nW, N, N)


# --------------------------------------------------------------------------------------
# Modules (forward only; parameters passed explicitly)
# --------------------------------------------------------------------------------------
def swin_block(x, H, W, p, num_heads, window_size, shift_size, attn_mask, rel_idx):
    B, L, C = x.shape
    hd = C // num_heads
    scale = hd ** (-0.5)
    ws = window_size
    N = ws * ws
    shortcut = x.reshape(B * L, C)

    # fused LayerNorm -> QKV projection; tokens stay lane-dense on 3C
    qkv = pallas_ln_linear(shortcut, p["norm1_g"], p["norm1_b"], p["qkv_w"], p["qkv_b"])
    qkv = qkv.reshape(B, H, W, 3 * C)

    pad_r = (ws - W % ws) % ws
    pad_b = (ws - H % ws) % ws
    if pad_r > 0 or pad_b > 0:
        qkv = jnp.pad(qkv, ((0, 0), (0, pad_b), (0, pad_r), (0, 0)))
        # In the reference, padded tokens are zeros AFTER norm1, so their qkv == qkv bias.
        if pad_b > 0:
            qkv = qkv.at[:, H:, :, :].set(p["qkv_b"])
        if pad_r > 0:
            qkv = qkv.at[:, :, W:, :].set(p["qkv_b"])
    Hp, Wp = H + pad_b, W + pad_r

    if shift_size > 0:
        qkv = jnp.roll(qkv, shift=(-shift_size, -shift_size), axis=(1, 2))
        mask = attn_mask
    else:
        mask = None

    qkv_win = window_partition(qkv, ws).reshape(-1, N, 3 * C)        # (B_, N, 3C)

    rel_bias = p["rel_table"][rel_idx.reshape(-1)]                   # (N*N, nh)
    rel_bias = rel_bias.reshape(N, N, num_heads).transpose(2, 0, 1)  # (nh, N, N)

    attn = pallas_window_attention(qkv_win, rel_bias, mask, num_heads, scale)
    attn = attn.reshape(-1, ws, ws, C)
    shifted = window_reverse(attn, ws, Hp, Wp)
    if shift_size > 0:
        shifted = jnp.roll(shifted, shift=(shift_size, shift_size), axis=(1, 2))
    if pad_r > 0 or pad_b > 0:
        shifted = shifted[:, :H, :W, :]
    attn_tokens = shifted.reshape(B * L, C)

    # attention output projection with the first residual fused in the epilogue
    x = pallas_linear(attn_tokens, p["proj_w"], p["proj_b"], residual=shortcut)

    # fused residual + norm2 + fc1 + GELU + fc2 (DropPath/Dropout are identity in eval)
    x = pallas_mlp(x, p["norm2_g"], p["norm2_b"],
                   p["fc1_w"], p["fc1_b"], p["fc2_w"], p["fc2_b"])
    return x.reshape(B, L, C)


def patch_merging(x, H, W, p):
    B, L, C = x.shape
    x = x.reshape(B, H, W, C)
    if H % 2 == 1 or W % 2 == 1:
        x = jnp.pad(x, ((0, 0), (0, H % 2), (0, W % 2), (0, 0)))
    x0 = x[:, 0::2, 0::2, :]
    x1 = x[:, 1::2, 0::2, :]
    x2 = x[:, 0::2, 1::2, :]
    x3 = x[:, 1::2, 1::2, :]
    x = jnp.concatenate([x0, x1, x2, x3], -1)
    Bn, Hn, Wn, Cn = x.shape
    x = x.reshape(Bn * Hn * Wn, 4 * C)
    # fused norm -> reduction (reduction Linear has no bias)
    x = pallas_ln_linear(x, p["norm_g"], p["norm_b"], p["red_w"],
                         jnp.zeros((2 * C,), x.dtype))
    return x.reshape(B, Hn * Wn, 2 * C)


def patch_embed(x, p, patch_size, embed_dim):
    # x: NCHW, strided conv (kernel == stride == patch_size) as patch-flatten + matmul,
    # with the patch_norm LayerNorm fused into the same kernel.
    B, C, H, W = x.shape
    ps = patch_size
    if H % ps != 0 or W % ps != 0:
        x = jnp.pad(x, ((0, 0), (0, 0), (0, (ps - H % ps) % ps), (0, (ps - W % ps) % ps)))
        B, C, H, W = x.shape
    Hn, Wn = H // ps, W // ps
    patches = x.reshape(B, C, Hn, ps, Wn, ps).transpose(0, 2, 4, 1, 3, 5)
    patches = patches.reshape(B * Hn * Wn, C * ps * ps)
    y = pallas_linear_ln(patches, p["proj_w"], p["proj_b"], p["norm_g"], p["norm_b"])
    return y.reshape(B, Hn * Wn, embed_dim), Hn, Wn


def swin_forward(x, params, cfg):
    x, H, W = patch_embed(x, params["patch_embed"], cfg["patch_size"], cfg["embed_dim"])
    # pos_drop: identity (drop_rate = 0)
    rel_idx = relative_position_index(cfg["window_size"])
    ws = cfg["window_size"]
    shift = ws // 2
    for i_layer, layer in enumerate(params["layers"]):
        attn_mask = create_mask(H, W, ws, shift)        # per-layer constant (host side)
        nh = cfg["num_heads"][i_layer]
        for d, blk in enumerate(layer["blocks"]):
            s = 0 if d % 2 == 0 else shift
            x = swin_block(x, H, W, blk, nh, ws, s, attn_mask, rel_idx)
        if "downsample" in layer:
            x = patch_merging(x, H, W, layer["downsample"])
            H, W = (H + 1) // 2, (W + 1) // 2
    x = pallas_ln_meanpool(x, params["norm_g"], params["norm_b"])   # (B, num_features)
    x = pallas_linear(x, params["head_w"], params["head_b"])        # classification head
    return x


# --------------------------------------------------------------------------------------
# Deterministic parameter initialization (shapes follow the PyTorch __init__)
# --------------------------------------------------------------------------------------
class KeyGen:
    def __init__(self, key):
        self.key = key

    def __call__(self):
        self.key, sub = jax.random.split(self.key)
        return sub


def trunc_normal(key, shape, std=0.02):
    return jax.random.truncated_normal(key, -2.0, 2.0, shape, jnp.float32) * std


def init_params(kg, cfg):
    ps, in_c, ed = cfg["patch_size"], cfg["in_chans"], cfg["embed_dim"]
    depths, num_heads, ws = cfg["depths"], cfg["num_heads"], cfg["window_size"]
    mlp_ratio, num_classes = cfg["mlp_ratio"], cfg["num_classes"]
    num_layers = len(depths)

    zeros = lambda n: jnp.zeros((n,), jnp.float32)
    ones = lambda n: jnp.ones((n,), jnp.float32)

    params = {
        "patch_embed": {
            "proj_w": trunc_normal(kg(), (in_c * ps * ps, ed)),
            "proj_b": zeros(ed),
            "norm_g": ones(ed),
            "norm_b": zeros(ed),
        }
    }
    layers = []
    for i_layer in range(num_layers):
        dim = ed * (2 ** i_layer)
        hidden = int(dim * mlp_ratio)
        nh = num_heads[i_layer]
        blocks = []
        for _ in range(depths[i_layer]):
            blocks.append({
                "norm1_g": ones(dim), "norm1_b": zeros(dim),
                "qkv_w": trunc_normal(kg(), (dim, 3 * dim)), "qkv_b": zeros(3 * dim),
                "proj_w": trunc_normal(kg(), (dim, dim)), "proj_b": zeros(dim),
                "rel_table": trunc_normal(kg(), ((2 * ws - 1) * (2 * ws - 1), nh)),
                "norm2_g": ones(dim), "norm2_b": zeros(dim),
                "fc1_w": trunc_normal(kg(), (dim, hidden)), "fc1_b": zeros(hidden),
                "fc2_w": trunc_normal(kg(), (hidden, dim)), "fc2_b": zeros(dim),
            })
        layer = {"blocks": blocks}
        if i_layer < num_layers - 1:
            layer["downsample"] = {
                "norm_g": ones(4 * dim), "norm_b": zeros(4 * dim),
                "red_w": trunc_normal(kg(), (4 * dim, 2 * dim)),
            }
        layers.append(layer)
    params["layers"] = layers

    num_features = ed * (2 ** (num_layers - 1))
    params["norm_g"] = ones(num_features)
    params["norm_b"] = zeros(num_features)
    params["head_w"] = trunc_normal(kg(), (num_features, num_classes))
    params["head_b"] = zeros(num_classes)
    return params


# --------------------------------------------------------------------------------------
if __name__ == "__main__":
    cfg = dict(
        patch_size=4,
        in_chans=3,
        num_classes=10,
        embed_dim=16,
        depths=(2, 2),
        num_heads=(2, 4),
        window_size=4,
        mlp_ratio=4.0,
    )

    root = jax.random.PRNGKey(0)
    k_params, k_input = jax.random.split(root)
    params = init_params(KeyGen(k_params), cfg)

    # NCHW input, like the PyTorch module.
    x = jax.random.normal(k_input, (2, 3, 32, 32), jnp.float32)

    fwd = jax.jit(functools.partial(swin_forward, cfg=cfg))
    logits = fwd(x, params)
    jax.block_until_ready(logits)

    assert logits.shape == (2, cfg["num_classes"]), logits.shape
    assert bool(jnp.all(jnp.isfinite(logits)))
    print("KERNEL_OK")
</pallas_src>

<mosaic_0001>
module attributes {stable_mosaic.version = 11 : i64} {
  func.func @_ln_matmul_kernel(%arg0: i32, %arg1: i32, %arg2: memref<64x16xf32, #tpu.memory_space<vmem>>, %arg3: memref<1x16xf32, #tpu.memory_space<vmem>>, %arg4: memref<1x16xf32, #tpu.memory_space<vmem>>, %arg5: memref<16x48xbf16, #tpu.memory_space<vmem>>, %arg6: memref<1x48xf32, #tpu.memory_space<vmem>>, %arg7: memref<64x48xf32, #tpu.memory_space<vmem>>, %arg8: memref<64x16xbf16, #tpu.memory_space<vmem>>) attributes {dimension_semantics = [#tpu.dimension_semantics<parallel>, #tpu.dimension_semantics<arbitrary>], iteration_bounds = array<i64: 2, 1>, scalar_prefetch = 0 : i64, scratch_operands = 1 : i64, tpu.core_type = #tpu.core_type<tc>, window_params = [{transform_indices = @transform_0, window_bounds = array<i64: 64, 16>}, {pipeline_mode = #tpu.pipeline_mode<synchronous>, transform_indices = @transform_1, window_bounds = array<i64: 1, 16>}, {pipeline_mode = #tpu.pipeline_mode<synchronous>, transform_indices = @transform_2, window_bounds = array<i64: 1, 16>}, {transform_indices = @transform_3, window_bounds = array<i64: 16, 48>}, {transform_indices = @transform_4, window_bounds = array<i64: 1, 48>}, {transform_indices = @transform_5, window_bounds = array<i64: 64, 48>}]} {
    %c0_i32 = arith.constant 0 : i32
    %0 = arith.cmpi eq, %arg1, %c0_i32 : i32
    %1 = arith.extui %0 : i1 to i32
    %c0_i32_0 = arith.constant 0 : i32
    %2 = arith.cmpi ne, %1, %c0_i32_0 : i32
    scf.if %2 {
      %c0_8 = arith.constant 0 : index
      %c0_9 = arith.constant 0 : index
      %10 = vector.load %arg2[%c0_8, %c0_9] : memref<64x16xf32, #tpu.memory_space<vmem>>, vector<64x16xf32>
      %c0_10 = arith.constant 0 : index
      %c0_11 = arith.constant 0 : index
      %11 = vector.load %arg3[%c0_10, %c0_11] : memref<1x16xf32, #tpu.memory_space<vmem>>, vector<1x16xf32>
      %c0_12 = arith.constant 0 : index
      %c0_13 = arith.constant 0 : index
      %12 = vector.load %arg4[%c0_12, %c0_13] : memref<1x16xf32, #tpu.memory_space<vmem>>, vector<1x16xf32>
      %cst_14 = arith.constant dense<0.000000e+00> : vector<64xf32>
      %13 = vector.multi_reduction <add>, %10, %cst_14 [1] : vector<64x16xf32> to vector<64xf32>
      %14 = vector.shape_cast %13 : vector<64xf32> to vector<64x1xf32>
      %cst_15 = arith.constant 1.600000e+01 : f32
      %15 = vector.broadcast %cst_15 : f32 to vector<64x1xf32>
      %16 = arith.divf %14, %15 : vector<64x1xf32>
      %17 = vector.broadcast %16 : vector<64x1xf32> to vector<64x16xf32>
      %18 = arith.subf %10, %17 : vector<64x16xf32>
      %19 = arith.mulf %18, %18 : vector<64x16xf32>
      %cst_16 = arith.constant dense<0.000000e+00> : vector<64xf32>
      %20 = vector.multi_reduction <add>, %19, %cst_16 [1] : vector<64x16xf32> to vector<64xf32>
      %21 = vector.shape_cast %20 : vector<64xf32> to vector<64x1xf32>
      %cst_17 = arith.constant 1.600000e+01 : f32
      %22 = vector.broadcast %cst_17 : f32 to vector<64x1xf32>
      %23 = arith.divf %21, %22 : vector<64x1xf32>
      %24 = vector.broadcast %16 : vector<64x1xf32> to vector<64x16xf32>
      %25 = arith.subf %10, %24 : vector<64x16xf32>
      %cst_18 = arith.constant 9.99999974E-6 : f32
      %26 = vector.broadcast %cst_18 : f32 to vector<64x1xf32>
      %27 = arith.addf %23, %26 : vector<64x1xf32>
      %28 = math.rsqrt %27 : vector<64x1xf32>
      %29 = vector.broadcast %28 : vector<64x1xf32> to vector<64x16xf32>
      %30 = arith.mulf %25, %29 : vector<64x16xf32>
      %31 = vector.broadcast %11 : vector<1x16xf32> to vector<64x16xf32>
      %32 = arith.mulf %30, %31 : vector<64x16xf32>
      %33 = vector.broadcast %12 : vector<1x16xf32> to vector<64x16xf32>
      %34 = arith.addf %32, %33 : vector<64x16xf32>
      %35 = arith.truncf %34 : vector<64x16xf32> to vector<64x16xbf16>
      %c0_19 = arith.constant 0 : index
      %c0_20 = arith.constant 0 : index
      %36 = vector.load %arg8[%c0_19, %c0_20] : memref<64x16xbf16, #tpu.memory_space<vmem>>, vector<64x16xbf16>
      tpu.vector_store %arg8[%c0_19, %c0_20], %35 {strides = array<i32>} : memref<64x16xbf16, #tpu.memory_space<vmem>>, vector<64x16xbf16>,
    } else {
    }
    %c0 = arith.constant 0 : index
    %c0_1 = arith.constant 0 : index
    %3 = vector.load %arg8[%c0, %c0_1] : memref<64x16xbf16, #tpu.memory_space<vmem>>, vector<64x16xbf16>
    %c0_2 = arith.constant 0 : index
    %c0_3 = arith.constant 0 : index
    %4 = vector.load %arg5[%c0_2, %c0_3] : memref<16x48xbf16, #tpu.memory_space<vmem>>, vector<16x48xbf16>
    %cst = arith.constant dense<0.000000e+00> : vector<64x48xf32>
    %5 = tpu.matmul %3, %4, %cst {dimension_numbers = #tpu.dot_dimension_numbers<[1], [0], [0], [1], [0, 0, 1, 1], [], []>} : vector<64x16xbf16>, vector<16x48xbf16>, vector<64x48xf32> -> vector<64x48xf32>
    %c0_4 = arith.constant 0 : index
    %c0_5 = arith.constant 0 : index
    %6 = vector.load %arg6[%c0_4, %c0_5] : memref<1x48xf32, #tpu.memory_space<vmem>>, vector<1x48xf32>
    %7 = vector.broadcast %6 : vector<1x48xf32> to vector<64x48xf32>
    %8 = arith.addf %5, %7 : vector<64x48xf32>
    %c0_6 = arith.constant 0 : index
    %c0_7 = arith.constant 0 : index
    %9 = vector.load %arg7[%c0_6, %c0_7] : memref<64x48xf32, #tpu.memory_space<vmem>>, vector<64x48xf32>
    tpu.vector_store %arg7[%c0_6, %c0_7], %8 {strides = array<i32>} : memref<64x48xf32, #tpu.memory_space<vmem>>, vector<64x48xf32>,
    return
  }
  func.func @transform_0(%arg0: i32, %arg1: i32) -> (i32, i32) {
    %c0_i32 = arith.constant 0 : i32
    %c0_i32_0 = arith.constant 0 : i32
    return %arg0, %c0_i32 : i32, i32
  }
  func.func @transform_1(%arg0: i32, %arg1: i32) -> (i32, i32) {
    %c0_i32 = arith.constant 0 : i32
    %c0_i32_0 = arith.constant 0 : i32
    %c0_i32_1 = arith.constant 0 : i32
    return %c0_i32, %c0_i32_0 : i32, i32
  }
  func.func @transform_2(%arg0: i32, %arg1: i32) -> (i32, i32) {
    %c0_i32 = arith.constant 0 : i32
    %c0_i32_0 = arith.constant 0 : i32
    %c0_i32_1 = arith.constant 0 : i32
    return %c0_i32, %c0_i32_0 : i32, i32
  }
  func.func @transform_3(%arg0: i32, %arg1: i32) -> (i32, i32) {
    %c0_i32 = arith.constant 0 : i32
    %c0_i32_0 = arith.constant 0 : i32
    return %c0_i32, %arg1 : i32, i32
  }
  func.func @transform_4(%arg0: i32, %arg1: i32) -> (i32, i32) {
    %c0_i32 = arith.constant 0 : i32
    %c0_i32_0 = arith.constant 0 : i32
    return %c0_i32, %arg1 : i32, i32
  }
  func.func @transform_5(%arg0: i32, %arg1: i32) -> (i32, i32) {
    %c0_i32 = arith.constant 0 : i32
    return %arg0, %arg1 : i32, i32
  }
}

module attributes {stable_mosaic.version = 11 : i64} {
  func.func @_matmul_ln_kernel(%arg0: i32, %arg1: i32, %arg2: memref<64x48xf32, #tpu.memory_space<vmem>>, %arg3: memref<48x16xbf16, #tpu.memory_space<vmem>>, %arg4: memref<1x16xf32, #tpu.memory_space<vmem>>, %arg5: memref<1x16xf32, #tpu.memory_space<vmem>>, %arg6: memref<1x16xf32, #tpu.memory_space<vmem>>, %arg7: memref<64x16xf32, #tpu.memory_space<vmem>>, %arg8: memref<64x16xf32, #tpu.memory_space<vmem>>) attributes {dimension_semantics = [#tpu.dimension_semantics<parallel>, #tpu.dimension_semantics<arbitrary>], iteration_bounds = array<i64: 2, 1>, scalar_prefetch = 0 : i64, scratch_operands = 1 : i64, tpu.core_type = #tpu.core_type<tc>, window_params = [{transform_indices = @transform_0, window_bounds = array<i64: 64, 48>}, {transform_indices = @transform_1, window_bounds = array<i64: 48, 16>}, {pipeline_mode = #tpu.pipeline_mode<synchronous>, transform_indices = @transform_2, window_bounds = array<i64: 1, 16>}, {pipeline_mode = #tpu.pipeline_mode<synchronous>, transform_indices = @transform_3, window_bounds = array<i64: 1, 16>}, {pipeline_mode = #tpu.pipeline_mode<synchronous>, transform_indices = @transform_4, window_bounds = array<i64: 1, 16>}, {transform_indices = @transform_5, window_bounds = array<i64: 64, 16>}]} {
    %c0_i32 = arith.constant 0 : i32
    %0 = arith.cmpi eq, %arg1, %c0_i32 : i32
    %1 = arith.extui %0 : i1 to i32
    %c0_i32_0 = arith.constant 0 : i32
    %2 = arith.cmpi ne, %1, %c0_i32_0 : i32
    scf.if %2 {
      %cst_10 = arith.constant 0.000000e+00 : f32
      %13 = vector.broadcast %cst_10 : f32 to vector<64x16xf32>
      %c0_11 = arith.constant 0 : index
      %c0_12 = arith.constant 0 : index
      %14 = vector.load %arg8[%c0_11, %c0_12] : memref<64x16xf32, #tpu.memory_space<vmem>>, vector<64x16xf32>
      tpu.vector_store %arg8[%c0_11, %c0_12], %13 {strides = array<i32>} : memref<64x16xf32, #tpu.memory_space<vmem>>, vector<64x16xf32>,
    } else {
    }
    %c0 = arith.constant 0 : index
    %c0_1 = arith.constant 0 : index
    %3 = vector.load %arg8[%c0, %c0_1] : memref<64x16xf32, #tpu.memory_space<vmem>>, vector<64x16xf32>
    %c0_2 = arith.constant 0 : index
    %c0_3 = arith.constant 0 : index
    %4 = vector.load %arg2[%c0_2, %c0_3] : memref<64x48xf32, #tpu.memory_space<vmem>>, vector<64x48xf32>
    %5 = arith.truncf %4 : vector<64x48xf32> to vector<64x48xbf16>
    %c0_4 = arith.constant 0 : index
    %c0_5 = arith.constant 0 : index
    %6 = vector.load %arg3[%c0_4, %c0_5] : memref<48x16xbf16, #tpu.memory_space<vmem>>, vector<48x16xbf16>
    %cst = arith.constant dense<0.000000e+00> : vector<64x16xf32>
    %7 = tpu.matmul %5, %6, %cst {dimension_numbers = #tpu.dot_dimension_numbers<[1], [0], [0], [1], [0, 0, 1, 1], [], []>} : vector<64x48xbf16>, vector<48x16xbf16>, vector<64x16xf32> -> vector<64x16xf32>
    %8 = arith.addf %3, %7 : vector<64x16xf32>
    %c0_6 = arith.constant 0 : index
    %c0_7 = arith.constant 0 : index
    %9 = vector.load %arg8[%c0_6, %c0_7] : memref<64x16xf32, #tpu.memory_space<vmem>>, vector<64x16xf32>
    tpu.vector_store %arg8[%c0_6, %c0_7], %8 {strides = array<i32>} : memref<64x16xf32, #tpu.memory_space<vmem>>, vector<64x16xf32>,
    %c0_i32_8 = arith.constant 0 : i32
    %10 = arith.cmpi eq, %arg1, %c0_i32_8 : i32
    %11 = arith.extui %10 : i1 to i32
    %c0_i32_9 = arith.constant 0 : i32
    %12 = arith.cmpi ne, %11, %c0_i32_9 : i32
    scf.if %12 {
      %c0_10 = arith.constant 0 : index
      %c0_11 = arith.constant 0 : index
      %13 = vector.load %arg8[%c0_10, %c0_11] : memref<64x16xf32, #tpu.memory_space<vmem>>, vector<64x16xf32>
      %c0_12 = arith.constant 0 : index
      %c0_13 = arith.constant 0 : index
      %14 = vector.load %arg4[%c0_12, %c0_13] : memref<1x16xf32, #tpu.memory_space<vmem>>, vector<1x16xf32>
      %15 = vector.broadcast %14 : vector<1x16xf32> to vector<64x16xf32>
      %16 = arith.addf %13, %15 : vector<64x16xf32>
      %c0_14 = arith.constant 0 : index
      %c0_15 = arith.constant 0 : index
      %17 = vector.load %arg5[%c0_14, %c0_15] : memref<1x16xf32, #tpu.memory_space<vmem>>, vector<1x16xf32>
      %c0_16 = arith.constant 0 : index
      %c0_17 = arith.constant 0 : index
      %18 = vector.load %arg6[%c0_16, %c0_17] : memref<1x16xf32, #tpu.memory_space<vmem>>, vector<1x16xf32>
      %cst_18 = arith.constant dense<0.000000e+00> : vector<64xf32>
      %19 = vector.multi_reduction <add>, %16, %cst_18 [1] : vector<64x16xf32> to vector<64xf32>
      %20 = vector.shape_cast %19 : vector<64xf32> to vector<64x1xf32>
      %cst_19 = arith.constant 1.600000e+01 : f32
      %21 = vector.broadcast %cst_19 : f32 to vector<64x1xf32>
      %22 = arith.divf %20, %21 : vector<64x1xf32>
      %23 = vector.broadcast %22 : vector<64x1xf32> to vector<64x16xf32>
      %24 = arith.subf %16, %23 : vector<64x16xf32>
      %25 = arith.mulf %24, %24 : vector<64x16xf32>
      %cst_20 = arith.constant dense<0.000000e+00> : vector<64xf32>
      %26 = vector.multi_reduction <add>, %25, %cst_20 [1] : vector<64x16xf32> to vector<64xf32>
      %27 = vector.shape_cast %26 : vector<64xf32> to vector<64x1xf32>
      %cst_21 = arith.constant 1.600000e+01 : f32
      %28 = vector.broadcast %cst_21 : f32 to vector<64x1xf32>
      %29 = arith.divf %27, %28 : vector<64x1xf32>
      %30 = vector.broadcast %22 : vector<64x1xf32> to vector<64x16xf32>
      %31 = arith.subf %16, %30 : vector<64x16xf32>
      %cst_22 = arith.constant 9.99999974E-6 : f32
      %32 = vector.broadcast %cst_22 : f32 to vector<64x1xf32>
      %33 = arith.addf %29, %32 : vector<64x1xf32>
      %34 = math.rsqrt %33 : vector<64x1xf32>
      %35 = vector.broadcast %34 : vector<64x1xf32> to vector<64x16xf32>
      %36 = arith.mulf %31, %35 : vector<64x16xf32>
      %37 = vector.broadcast %17 : vector<1x16xf32> to vector<64x16xf32>
      %38 = arith.mulf %36, %37 : vector<64x16xf32>
      %39 = vector.broadcast %18 : vector<1x16xf32> to vector<64x16xf32>
      %40 = arith.addf %38, %39 : vector<64x16xf32>
      %c0_23 = arith.constant 0 : index
      %c0_24 = arith.constant 0 : index
      %41 = vector.load %arg7[%c0_23, %c0_24] : memref<64x16xf32, #tpu.memory_space<vmem>>, vector<64x16xf32>
      tpu.vector_store %arg7[%c0_23, %c0_24], %40 {strides = array<i32>} : memref<64x16xf32, #tpu.memory_space<vmem>>, vector<64x16xf32>,
    } else {
    }
    return
  }
  func.func @transform_0(%arg0: i32, %arg1: i32) -> (i32, i32) {
    %c0_i32 = arith.constant 0 : i32
    return %arg0, %arg1 : i32, i32
  }
  func.func @transform_1(%arg0: i32, %arg1: i32) -> (i32, i32) {
    %c0_i32 = arith.constant 0 : i32
    %c0_i32_0 = arith.constant 0 : i32
    return %arg1, %c0_i32 : i32, i32
  }
  func.func @transform_2(%arg0: i32, %arg1: i32) -> (i32, i32) {
    %c0_i32 = arith.constant 0 : i32
    %c0_i32_0 = arith.constant 0 : i32
    %c0_i32_1 = arith.constant 0 : i32
    return %c0_i32, %c0_i32_0 : i32, i32
  }
  func.func @transform_3(%arg0: i32, %arg1: i32) -> (i32, i32) {
    %c0_i32 = arith.constant 0 : i32
    %c0_i32_0 = arith.constant 0 : i32
    %c0_i32_1 = arith.constant 0 : i32
    return %c0_i32, %c0_i32_0 : i32, i32
  }
  func.func @transform_4(%arg0: i32, %arg1: i32) -> (i32, i32) {
    %c0_i32 = arith.constant 0 : i32
    %c0_i32_0 = arith.constant 0 : i32
    %c0_i32_1 = arith.constant 0 : i32
    return %c0_i32, %c0_i32_0 : i32, i32
  }
  func.func @transform_5(%arg0: i32, %arg1: i32) -> (i32, i32) {
    %c0_i32 = arith.constant 0 : i32
    %c0_i32_0 = arith.constant 0 : i32
    return %arg0, %c0_i32 : i32, i32
  }
}

module attributes {stable_mosaic.version = 11 : i64} {
  func.func @_wattn_kernel(%arg0: i32, %arg1: memref<4x16x48xf32, #tpu.memory_space<vmem>>, %arg2: memref<2x16x16xf32, #tpu.memory_space<vmem>>, %arg3: memref<4x16x16xf32, #tpu.memory_space<vmem>>) attributes {dimension_semantics = [#tpu.dimension_semantics<parallel>], iteration_bounds = array<i64: 2>, scalar_prefetch = 0 : i64, scratch_operands = 0 : i64, tpu.core_type = #tpu.core_type<tc>, window_params = [{transform_indices = @transform_0, window_bounds = array<i64: 4, 16, 48>}, {pipeline_mode = #tpu.pipeline_mode<synchronous>, transform_indices = @transform_1, window_bounds = array<i64: 2, 16, 16>}, {transform_indices = @transform_2, window_bounds = array<i64: 4, 16, 16>}]} {
    %c0 = arith.constant 0 : index
    %c0_0 = arith.constant 0 : index
    %c0_1 = arith.constant 0 : index
    %0 = vector.load %arg1[%c0, %c0_0, %c0_1] : memref<4x16x48xf32, #tpu.memory_space<vmem>>, vector<4x16x48xf32>
    %1 = vector.extract_strided_slice %0 {offsets = [0, 0, 0], sizes = [4, 16, 8], strides = [1, 1, 1]} : vector<4x16x48xf32> to vector<4x16x8xf32>
    %2 = arith.truncf %1 : vector<4x16x8xf32> to vector<4x16x8xbf16>
    %3 = vector.extract_strided_slice %0 {offsets = [0, 0, 16], sizes = [4, 16, 8], strides = [1, 1, 1]} : vector<4x16x48xf32> to vector<4x16x8xf32>
    %4 = arith.truncf %3 : vector<4x16x8xf32> to vector<4x16x8xbf16>
    %5 = vector.extract_strided_slice %0 {offsets = [0, 0, 32], sizes = [4, 16, 8], strides = [1, 1, 1]} : vector<4x16x48xf32> to vector<4x16x8xf32>
    %6 = arith.truncf %5 : vector<4x16x8xf32> to vector<4x16x8xbf16>
    "tpu.trace_start"() <{level = 10 : i32, message = "wqd,wkd->wqk"}> : () -> ()
    %cst = arith.constant dense<0.000000e+00> : vector<4x16x16xf32>
    %7 = tpu.matmul %2, %4, %cst {dimension_numbers = #tpu.dot_dimension_numbers<[2], [2], [1], [1], [0, 0, 0, 1, 1, 1], [0], [0]>} : vector<4x16x8xbf16>, vector<4x16x8xbf16>, vector<4x16x16xf32> -> vector<4x16x16xf32>
    "tpu.trace_stop"() : () -> ()
    %cst_2 = arith.constant 0.353553385 : f32
    %8 = vector.broadcast %cst_2 : f32 to vector<4x16x16xf32>
    %9 = arith.mulf %7, %8 : vector<4x16x16xf32>
    %c0_3 = arith.constant 0 : index
    %c0_4 = arith.constant 0 : index
    %c0_5 = arith.constant 0 : index
    %10 = vector.load %arg2[%c0_3, %c0_4, %c0_5] : memref<2x16x16xf32, #tpu.memory_space<vmem>>, vector<1x16x16xf32>
    %11 = vector.shape_cast %10 : vector<1x16x16xf32> to vector<16x16xf32>
    %12 = vector.shape_cast %11 : vector<16x16xf32> to vector<1x16x16xf32>
    %13 = vector.broadcast %12 : vector<1x16x16xf32> to vector<4x16x16xf32>
    %14 = arith.addf %9, %13 : vector<4x16x16xf32>
    %cst_6 = arith.constant dense<0xFF800000> : vector<4x16xf32>
    %15 = vector.multi_reduction <maximumf>, %14, %cst_6 [2] : vector<4x16x16xf32> to vector<4x16xf32>
    %16 = vector.shape_cast %15 : vector<4x16xf32> to vector<4x16x1xf32>
    %17 = vector.broadcast %16 : vector<4x16x1xf32> to vector<4x16x16xf32>
    %18 = arith.subf %14, %17 : vector<4x16x16xf32>
    %19 = math.exp %18 : vector<4x16x16xf32>
    %cst_7 = arith.constant dense<0.000000e+00> : vector<4x16xf32>
    %20 = vector.multi_reduction <add>, %19, %cst_7 [2] : vector<4x16x16xf32> to vector<4x16xf32>
    %21 = vector.shape_cast %20 : vector<4x16xf32> to vector<4x16x1xf32>
    %22 = tpu.reciprocal %21 {approx = true} : vector<4x16x1xf32> -> vector<4x16x1xf32>
    %23 = vector.broadcast %22 : vector<4x16x1xf32> to vector<4x16x16xf32>
    %24 = arith.mulf %19, %23 : vector<4x16x16xf32>
    %25 = arith.truncf %24 : vector<4x16x16xf32> to vector<4x16x16xbf16>
    "tpu.trace_start"() <{level = 10 : i32, message = "wqk,wkd->wqd"}> : () -> ()
    %cst_8 = arith.constant dense<0.000000e+00> : vector<4x16x8xf32>
    %26 = tpu.matmul %25, %6, %cst_8 {dimension_numbers = #tpu.dot_dimension_numbers<[2], [1], [1], [2], [0, 0, 0, 1, 1, 2], [0], [0]>} : vector<4x16x16xbf16>, vector<4x16x8xbf16>, vector<4x16x8xf32> -> vector<4x16x8xf32>
    "tpu.trace_stop"() : () -> ()
    %c0_9 = arith.constant 0 : index
    %c0_10 = arith.constant 0 : index
    %c0_11 = arith.constant 0 : index
    %27 = vector.load %arg3[%c0_9, %c0_10, %c0_11] : memref<4x16x16xf32, #tpu.memory_space<vmem>>, vector<4x16x8xf32>
    tpu.vector_store %arg3[%c0_9, %c0_10, %c0_11], %26 {strides = array<i32>} : memref<4x16x16xf32, #tpu.memory_space<vmem>>, vector<4x16x8xf32>,
    %28 = vector.extract_strided_slice %0 {offsets = [0, 0, 8], sizes = [4, 16, 8], strides = [1, 1, 1]} : vector<4x16x48xf32> to vector<4x16x8xf32>
    %29 = arith.truncf %28 : vector<4x16x8xf32> to vector<4x16x8xbf16>
    %30 = vector.extract_strided_slice %0 {offsets = [0, 0, 24], sizes = [4, 16, 8], strides = [1, 1, 1]} : vector<4x16x48xf32> to vector<4x16x8xf32>
    %31 = arith.truncf %30 : vector<4x16x8xf32> to vector<4x16x8xbf16>
    %32 = vector.extract_strided_slice %0 {offsets = [0, 0, 40], sizes = [4, 16, 8], strides = [1, 1, 1]} : vector<4x16x48xf32> to vector<4x16x8xf32>
    %33 = arith.truncf %32 : vector<4x16x8xf32> to vector<4x16x8xbf16>
    "tpu.trace_start"() <{level = 10 : i32, message = "wqd,wkd->wqk"}> : () -> ()
    %cst_12 = arith.constant dense<0.000000e+00> : vector<4x16x16xf32>
    %34 = tpu.matmul %29, %31, %cst_12 {dimension_numbers = #tpu.dot_dimension_numbers<[2], [2], [1], [1], [0, 0, 0, 1, 1, 1], [0], [0]>} : vector<4x16x8xbf16>, vector<4x16x8xbf16>, vector<4x16x16xf32> -> vector<4x16x16xf32>
    "tpu.trace_stop"() : () -> ()
    %cst_13 = arith.constant 0.353553385 : f32
    %35 = vector.broadcast %cst_13 : f32 to vector<4x16x16xf32>
    %36 = arith.mulf %34, %35 : vector<4x16x16xf32>
    %c1 = arith.constant 1 : index
    %c0_14 = arith.constant 0 : index
    %c0_15 = arith.constant 0 : index
    %37 = vector.load %arg2[%c1, %c0_14, %c0_15] : memref<2x16x16xf32, #tpu.memory_space<vmem>>, vector<1x16x16xf32>
    %38 = vector.shape_cast %37 : vector<1x16x16xf32> to vector<16x16xf32>
    %39 = vector.shape_cast %38 : vector<16x16xf32> to vector<1x16x16xf32>
    %40 = vector.broadcast %39 : vector<1x16x16xf32> to vector<4x16x16xf32>
    %41 = arith.addf %36, %40 : vector<4x16x16xf32>
    %cst_16 = arith.constant dense<0xFF800000> : vector<4x16xf32>
    %42 = vector.multi_reduction <maximumf>, %41, %cst_16 [2] : vector<4x16x16xf32> to vector<4x16xf32>
    %43 = vector.shape_cast %42 : vector<4x16xf32> to vector<4x16x1xf32>
    %44 = vector.broadcast %43 : vector<4x16x1xf32> to vector<4x16x16xf32>
    %45 = arith.subf %41, %44 : vector<4x16x16xf32>
    %46 = math.exp %45 : vector<4x16x16xf32>
    %cst_17 = arith.constant dense<0.000000e+00> : vector<4x16xf32>
    %47 = vector.multi_reduction <add>, %46, %cst_17 [2] : vector<4x16x16xf32> to vector<4x16xf32>
    %48 = vector.shape_cast %47 : vector<4x16xf32> to vector<4x16x1xf32>
    %49 = tpu.reciprocal %48 {approx = true} : vector<4x16x1xf32> -> vector<4x16x1xf32>
    %50 = vector.broadcast %49 : vector<4x16x1xf32> to vector<4x16x16xf32>
    %51 = arith.mulf %46, %50 : vector<4x16x16xf32>
    %52 = arith.truncf %51 : vector<4x16x16xf32> to vector<4x16x16xbf16>
    "tpu.trace_start"() <{level = 10 : i32, message = "wqk,wkd->wqd"}> : () -> ()
    %cst_18 = arith.constant dense<0.000000e+00> : vector<4x16x8xf32>
    %53 = tpu.matmul %52, %33, %cst_18 {dimension_numbers = #tpu.dot_dimension_numbers<[2], [1], [1], [2], [0, 0, 0, 1, 1, 2], [0], [0]>} : vector<4x16x16xbf16>, vector<4x16x8xbf16>, vector<4x16x8xf32> -> vector<4x16x8xf32>
    "tpu.trace_stop"() : () -> ()
    %c0_19 = arith.constant 0 : index
    %c0_20 = arith.constant 0 : index
    %c8 = arith.constant 8 : index
    %54 = vector.load %arg3[%c0_19, %c0_20, %c8] : memref<4x16x16xf32, #tpu.memory_space<vmem>>, vector<4x16x8xf32>
    tpu.vector_store %arg3[%c0_19, %c0_20, %c8], %53 {strides = array<i32>} : memref<4x16x16xf32, #tpu.memory_space<vmem>>, vector<4x16x8xf32>,
    return
  }
  func.func @transform_0(%arg0: i32) -> (i32, i32, i32) {
    %c0_i32 = arith.constant 0 : i32
    %c0_i32_0 = arith.constant 0 : i32
    %c0_i32_1 = arith.constant 0 : i32
    return %arg0, %c0_i32, %c0_i32_0 : i32, i32, i32
  }
  func.func @transform_1(%arg0: i32) -> (i32, i32, i32) {
    %c0_i32 = arith.constant 0 : i32
    %c0_i32_0 = arith.constant 0 : i32
    %c0_i32_1 = arith.constant 0 : i32
    %c0_i32_2 = arith.constant 0 : i32
    return %c0_i32, %c0_i32_0, %c0_i32_1 : i32, i32, i32
  }
  func.func @transform_2(%arg0: i32) -> (i32, i32, i32) {
    %c0_i32 = arith.constant 0 : i32
    %c0_i32_0 = arith.constant 0 : i32
    %c0_i32_1 = arith.constant 0 : i32
    return %arg0, %c0_i32, %c0_i32_0 : i32, i32, i32
  }
}

module attributes {stable_mosaic.version = 11 : i64} {
  func.func @_mlp_kernel(%arg0: i32, %arg1: i32, %arg2: memref<64x16xf32, #tpu.memory_space<vmem>>, %arg3: memref<1x16xf32, #tpu.memory_space<vmem>>, %arg4: memref<1x16xf32, #tpu.memory_space<vmem>>, %arg5: memref<16x64xbf16, #tpu.memory_space<vmem>>, %arg6: memref<1x64xf32, #tpu.memory_space<vmem>>, %arg7: memref<64x16xbf16, #tpu.memory_space<vmem>>, %arg8: memref<1x16xf32, #tpu.memory_space<vmem>>, %arg9: memref<64x16xf32, #tpu.memory_space<vmem>>, %arg10: memref<64x16xf32, #tpu.memory_space<vmem>>, %arg11: memref<64x16xbf16, #tpu.memory_space<vmem>>) attributes {dimension_semantics = [#tpu.dimension_semantics<parallel>, #tpu.dimension_semantics<arbitrary>], iteration_bounds = array<i64: 2, 1>, scalar_prefetch = 0 : i64, scratch_operands = 2 : i64, tpu.core_type = #tpu.core_type<tc>, window_params = [{transform_indices = @transform_0, window_bounds = array<i64: 64, 16>}, {pipeline_mode = #tpu.pipeline_mode<synchronous>, transform_indices = @transform_1, window_bounds = array<i64: 1, 16>}, {pipeline_mode = #tpu.pipeline_mode<synchronous>, transform_indices = @transform_2, window_bounds = array<i64: 1, 16>}, {transform_indices = @transform_3, window_bounds = array<i64: 16, 64>}, {transform_indices = @transform_4, window_bounds = array<i64: 1, 64>}, {transform_indices = @transform_5, window_bounds = array<i64: 64, 16>}, {pipeline_mode = #tpu.pipeline_mode<synchronous>, transform_indices = @transform_6, window_bounds = array<i64: 1, 16>}, {transform_indices = @transform_7, window_bounds = array<i64: 64, 16>}]} {
    %c0_i32 = arith.constant 0 : i32
    %0 = arith.cmpi eq, %arg1, %c0_i32 : i32
    %1 = arith.extui %0 : i1 to i32
    %c0_i32_0 = arith.constant 0 : i32
    %2 = arith.cmpi ne, %1, %c0_i32_0 : i32
    scf.if %2 {
      %c0_30 = arith.constant 0 : index
      %c0_31 = arith.constant 0 : index
      %58 = vector.load %arg2[%c0_30, %c0_31] : memref<64x16xf32, #tpu.memory_space<vmem>>, vector<64x16xf32>
      %c0_32 = arith.constant 0 : index
      %c0_33 = arith.constant 0 : index
      %59 = vector.load %arg3[%c0_32, %c0_33] : memref<1x16xf32, #tpu.memory_space<vmem>>, vector<1x16xf32>
      %c0_34 = arith.constant 0 : index
      %c0_35 = arith.constant 0 : index
      %60 = vector.load %arg4[%c0_34, %c0_35] : memref<1x16xf32, #tpu.memory_space<vmem>>, vector<1x16xf32>
      %cst_36 = arith.constant dense<0.000000e+00> : vector<64xf32>
      %61 = vector.multi_reduction <add>, %58, %cst_36 [1] : vector<64x16xf32> to vector<64xf32>
      %62 = vector.shape_cast %61 : vector<64xf32> to vector<64x1xf32>
      %cst_37 = arith.constant 1.600000e+01 : f32
      %63 = vector.broadcast %cst_37 : f32 to vector<64x1xf32>
      %64 = arith.divf %62, %63 : vector<64x1xf32>
      %65 = vector.broadcast %64 : vector<64x1xf32> to vector<64x16xf32>
      %66 = arith.subf %58, %65 : vector<64x16xf32>
      %67 = arith.mulf %66, %66 : vector<64x16xf32>
      %cst_38 = arith.constant dense<0.000000e+00> : vector<64xf32>
      %68 = vector.multi_reduction <add>, %67, %cst_38 [1] : vector<64x16xf32> to vector<64xf32>
      %69 = vector.shape_cast %68 : vector<64xf32> to vector<64x1xf32>
      %cst_39 = arith.constant 1.600000e+01 : f32
      %70 = vector.broadcast %cst_39 : f32 to vector<64x1xf32>
      %71 = arith.divf %69, %70 : vector<64x1xf32>
      %72 = vector.broadcast %64 : vector<64x1xf32> to vector<64x16xf32>
      %73 = arith.subf %58, %72 : vector<64x16xf32>
      %cst_40 = arith.constant 9.99999974E-6 : f32
      %74 = vector.broadcast %cst_40 : f32 to vector<64x1xf32>
      %75 = arith.addf %71, %74 : vector<64x1xf32>
      %76 = math.rsqrt %75 : vector<64x1xf32>
      %77 = vector.broadcast %76 : vector<64x1xf32> to vector<64x16xf32>
      %78 = arith.mulf %73, %77 : vector<64x16xf32>
      %79 = vector.broadcast %59 : vector<1x16xf32> to vector<64x16xf32>
      %80 = arith.mulf %78, %79 : vector<64x16xf32>
      %81 = vector.broadcast %60 : vector<1x16xf32> to vector<64x16xf32>
      %82 = arith.addf %80, %81 : vector<64x16xf32>
      %83 = arith.truncf %82 : vector<64x16xf32> to vector<64x16xbf16>
      %c0_41 = arith.constant 0 : index
      %c0_42 = arith.constant 0 : index
      %84 = vector.load %arg11[%c0_41, %c0_42] : memref<64x16xbf16, #tpu.memory_space<vmem>>, vector<64x16xbf16>
      tpu.vector_store %arg11[%c0_41, %c0_42], %83 {strides = array<i32>} : memref<64x16xbf16, #tpu.memory_space<vmem>>, vector<64x16xbf16>,
      %cst_43 = arith.constant 0.000000e+00 : f32
      %85 = vector.broadcast %cst_43 : f32 to vector<64x16xf32>
      %c0_44 = arith.constant 0 : index
      %c0_45 = arith.constant 0 : index
      %86 = vector.load %arg10[%c0_44, %c0_45] : memref<64x16xf32, #tpu.memory_space<vmem>>, vector<64x16xf32>
      tpu.vector_store %arg10[%c0_44, %c0_45], %85 {strides = array<i32>} : memref<64x16xf32, #tpu.memory_space<vmem>>, vector<64x16xf32>,
    } else {
    }
    %c0 = arith.constant 0 : index
    %c0_1 = arith.constant 0 : index
    %3 = vector.load %arg11[%c0, %c0_1] : memref<64x16xbf16, #tpu.memory_space<vmem>>, vector<64x16xbf16>
    %c0_2 = arith.constant 0 : index
    %c0_3 = arith.constant 0 : index
    %4 = vector.load %arg5[%c0_2, %c0_3] : memref<16x64xbf16, #tpu.memory_space<vmem>>, vector<16x64xbf16>
    %cst = arith.constant dense<0.000000e+00> : vector<64x64xf32>
    %5 = tpu.matmul %3, %4, %cst {dimension_numbers = #tpu.dot_dimension_numbers<[1], [0], [0], [1], [0, 0, 1, 1], [], []>} : vector<64x16xbf16>, vector<16x64xbf16>, vector<64x64xf32> -> vector<64x64xf32>
    %c0_4 = arith.constant 0 : index
    %c0_5 = arith.constant 0 : index
    %6 = vector.load %arg6[%c0_4, %c0_5] : memref<1x64xf32, #tpu.memory_space<vmem>>, vector<1x64xf32>
    %7 = vector.broadcast %6 : vector<1x64xf32> to vector<64x64xf32>
    %8 = arith.addf %5, %7 : vector<64x64xf32>
    %cst_6 = arith.constant 5.000000e-01 : f32
    %9 = vector.broadcast %cst_6 : f32 to vector<64x64xf32>
    %10 = arith.mulf %9, %8 : vector<64x64xf32>
    %cst_7 = arith.constant 0.707106769 : f32
    %11 = vector.broadcast %cst_7 : f32 to vector<64x64xf32>
    %12 = arith.mulf %8, %11 : vector<64x64xf32>
    %13 = math.absf %12 : vector<64x64xf32>
    %cst_8 = arith.constant 0.327591091 : f32
    %14 = vector.broadcast %cst_8 : f32 to vector<64x64xf32>
    %15 = arith.mulf %14, %13 : vector<64x64xf32>
    %cst_9 = arith.constant 1.000000e+00 : f32
    %16 = vector.broadcast %cst_9 : f32 to vector<64x64xf32>
    %17 = arith.addf %16, %15 : vector<64x64xf32>
    %cst_10 = arith.constant 1.000000e+00 : f32
    %18 = vector.broadcast %cst_10 : f32 to vector<64x64xf32>
    %19 = arith.divf %18, %17 : vector<64x64xf32>
    %cst_11 = arith.constant 1.06140542 : f32
    %20 = vector.broadcast %cst_11 : f32 to vector<64x64xf32>
    %21 = arith.mulf %19, %20 : vector<64x64xf32>
    %cst_12 = arith.constant -1.45315206 : f32
    %22 = vector.broadcast %cst_12 : f32 to vector<64x64xf32>
    %23 = arith.addf %22, %21 : vector<64x64xf32>
    %24 = arith.mulf %19, %23 : vector<64x64xf32>
    %cst_13 = arith.constant 1.42141378 : f32
    %25 = vector.broadcast %cst_13 : f32 to vector<64x64xf32>
    %26 = arith.addf %25, %24 : vector<64x64xf32>
    %27 = arith.mulf %19, %26 : vector<64x64xf32>
    %cst_14 = arith.constant -0.284496725 : f32
    %28 = vector.broadcast %cst_14 : f32 to vector<64x64xf32>
    %29 = arith.addf %28, %27 : vector<64x64xf32>
    %30 = arith.mulf %19, %29 : vector<64x64xf32>
    %cst_15 = arith.constant 0.254829586 : f32
    %31 = vector.broadcast %cst_15 : f32 to vector<64x64xf32>
    %32 = arith.addf %31, %30 : vector<64x64xf32>
    %33 = arith.mulf %19, %32 : vector<64x64xf32>
    %cst_16 = arith.constant 0.000000e+00 : f32
    %34 = vector.broadcast %cst_16 : f32 to vector<64x64xf32>
    %35 = arith.subf %34, %13 : vector<64x64xf32>
    %36 = arith.mulf %35, %13 : vector<64x64xf32>
    %37 = math.exp %36 : vector<64x64xf32>
    %38 = arith.mulf %33, %37 : vector<64x64xf32>
    %cst_17 = arith.constant 1.000000e+00 : f32
    %39 = vector.broadcast %cst_17 : f32 to vector<64x64xf32>
    %40 = arith.subf %39, %38 : vector<64x64xf32>
    %cst_18 = arith.constant 0.000000e+00 : f32
    %41 = vector.broadcast %cst_18 : f32 to vector<64x64xf32>
    %42 = arith.cmpf oge, %12, %41 : vector<64x64xf32>
    %cst_19 = arith.constant 0.000000e+00 : f32
    %43 = vector.broadcast %cst_19 : f32 to vector<64x64xf32>
    %44 = arith.subf %43, %40 : vector<64x64xf32>
    %45 = arith.select %42, %40, %44 : vector<64x64xi1>, vector<64x64xf32>
    %cst_20 = arith.constant 1.000000e+00 : f32
    %46 = vector.broadcast %cst_20 : f32 to vector<64x64xf32>
    %47 = arith.addf %46, %45 : vector<64x64xf32>
    %48 = arith.mulf %10, %47 : vector<64x64xf32>
    %c0_21 = arith.constant 0 : index
    %c0_22 = arith.constant 0 : index
    %49 = vector.load %arg10[%c0_21, %c0_22] : memref<64x16xf32, #tpu.memory_space<vmem>>, vector<64x16xf32>
    %50 = arith.truncf %48 : vector<64x64xf32> to vector<64x64xbf16>
    %c0_23 = arith.constant 0 : index
    %c0_24 = arith.constant 0 : index
    %51 = vector.load %arg7[%c0_23, %c0_24] : memref<64x16xbf16, #tpu.memory_space<vmem>>, vector<64x16xbf16>
    %cst_25 = arith.constant dense<0.000000e+00> : vector<64x16xf32>
    %52 = tpu.matmul %50, %51, %cst_25 {dimension_numbers = #tpu.dot_dimension_numbers<[1], [0], [0], [1], [0, 0, 1, 1], [], []>} : vector<64x64xbf16>, vector<64x16xbf16>, vector<64x16xf32> -> vector<64x16xf32>
    %53 = arith.addf %49, %52 : vector<64x16xf32>
    %c0_26 = arith.constant 0 : index
    %c0_27 = arith.constant 0 : index
    %54 = vector.load %arg10[%c0_26, %c0_27] : memref<64x16xf32, #tpu.memory_space<vmem>>, vector<64x16xf32>
    tpu.vector_store %arg10[%c0_26, %c0_27], %53 {strides = array<i32>} : memref<64x16xf32, #tpu.memory_space<vmem>>, vector<64x16xf32>,
    %c0_i32_28 = arith.constant 0 : i32
    %55 = arith.cmpi eq, %arg1, %c0_i32_28 : i32
    %56 = arith.extui %55 : i1 to i32
    %c0_i32_29 = arith.constant 0 : i32
    %57 = arith.cmpi ne, %56, %c0_i32_29 : i32
    scf.if %57 {
      %c0_30 = arith.constant 0 : index
      %c0_31 = arith.constant 0 : index
      %58 = vector.load %arg2[%c0_30, %c0_31] : memref<64x16xf32, #tpu.memory_space<vmem>>, vector<64x16xf32>
      %c0_32 = arith.constant 0 : index
      %c0_33 = arith.constant 0 : index
      %59 = vector.load %arg10[%c0_32, %c0_33] : memref<64x16xf32, #tpu.memory_space<vmem>>, vector<64x16xf32>
      %60 = arith.addf %58, %59 : vector<64x16xf32>
      %c0_34 = arith.constant 0 : index
      %c0_35 = arith.constant 0 : index
      %61 = vector.load %arg8[%c0_34, %c0_35] : memref<1x16xf32, #tpu.memory_space<vmem>>, vector<1x16xf32>
      %62 = vector.broadcast %61 : vector<1x16xf32> to vector<64x16xf32>
      %63 = arith.addf %60, %62 : vector<64x16xf32>
      %c0_36 = arith.constant 0 : index
      %c0_37 = arith.constant 0 : index
      %64 = vector.load %arg9[%c0_36, %c0_37] : memref<64x16xf32, #tpu.memory_space<vmem>>, vector<64x16xf32>
      tpu.vector_store %arg9[%c0_36, %c0_37], %63 {strides = array<i32>} : memref<64x16xf32, #tpu.memory_space<vmem>>, vector<64x16xf32>,
    } else {
    }
    return
  }
  func.func @transform_0(%arg0: i32, %arg1: i32) -> (i32, i32) {
    %c0_i32 = arith.constant 0 : i32
    %c0_i32_0 = arith.constant 0 : i32
    return %arg0, %c0_i32 : i32, i32
  }
  func.func @transform_1(%arg0: i32, %arg1: i32) -> (i32, i32) {
    %c0_i32 = arith.constant 0 : i32
    %c0_i32_0 = arith.constant 0 : i32
    %c0_i32_1 = arith.constant 0 : i32
    return %c0_i32, %c0_i32_0 : i32, i32
  }
  func.func @transform_2(%arg0: i32, %arg1: i32) -> (i32, i32) {
    %c0_i32 = arith.constant 0 : i32
    %c0_i32_0 = arith.constant 0 : i32
    %c0_i32_1 = arith.constant 0 : i32
    return %c0_i32, %c0_i32_0 : i32, i32
  }
  func.func @transform_3(%arg0: i32, %arg1: i32) -> (i32, i32) {
    %c0_i32 = arith.constant 0 : i32
    %c0_i32_0 = arith.constant 0 : i32
    return %c0_i32, %arg1 : i32, i32
  }
  func.func @transform_4(%arg0: i32, %arg1: i32) -> (i32, i32) {
    %c0_i32 = arith.constant 0 : i32
    %c0_i32_0 = arith.constant 0 : i32
    return %c0_i32, %arg1 : i32, i32
  }
  func.func @transform_5(%arg0: i32, %arg1: i32) -> (i32, i32) {
    %c0_i32 = arith.constant 0 : i32
    %c0_i32_0 = arith.constant 0 : i32
    return %arg1, %c0_i32 : i32, i32
  }
  func.func @transform_6(%arg0: i32, %arg1: i32) -> (i32, i32) {
    %c0_i32 = arith.constant 0 : i32
    %c0_i32_0 = arith.constant 0 : i32
    %c0_i32_1 = arith.constant 0 : i32
    return %c0_i32, %c0_i32_0 : i32, i32
  }
  func.func @transform_7(%arg0: i32, %arg1: i32) -> (i32, i32) {
    %c0_i32 = arith.constant 0 : i32
    %c0_i32_0 = arith.constant 0 : i32
    return %arg0, %c0_i32 : i32, i32
  }
}

module attributes {stable_mosaic.version = 11 : i64} {
  func.func @_matmul_res_kernel(%arg0: i32, %arg1: i32, %arg2: i32, %arg3: memref<64x16xf32, #tpu.memory_space<vmem>>, %arg4: memref<16x16xbf16, #tpu.memory_space<vmem>>, %arg5: memref<1x16xf32, #tpu.memory_space<vmem>>, %arg6: memref<64x16xf32, #tpu.memory_space<vmem>>, %arg7: memref<64x16xf32, #tpu.memory_space<vmem>>, %arg8: memref<64x16xf32, #tpu.memory_space<vmem>>) attributes {dimension_semantics = [#tpu.dimension_semantics<parallel>, #tpu.dimension_semantics<parallel>, #tpu.dimension_semantics<arbitrary>], iteration_bounds = array<i64: 2, 1, 1>, scalar_prefetch = 0 : i64, scratch_operands = 1 : i64, tpu.core_type = #tpu.core_type<tc>, window_params = [{transform_indices = @transform_0, window_bounds = array<i64: 64, 16>}, {transform_indices = @transform_1, window_bounds = array<i64: 16, 16>}, {transform_indices = @transform_2, window_bounds = array<i64: 1, 16>}, {transform_indices = @transform_3, window_bounds = array<i64: 64, 16>}, {transform_indices = @transform_4, window_bounds = array<i64: 64, 16>}]} {
    %c0_i32 = arith.constant 0 : i32
    %0 = arith.cmpi eq, %arg2, %c0_i32 : i32
    %1 = arith.extui %0 : i1 to i32
    %c0_i32_0 = arith.constant 0 : i32
    %2 = arith.cmpi ne, %1, %c0_i32_0 : i32
    scf.if %2 {
      %cst_10 = arith.constant 0.000000e+00 : f32
      %13 = vector.broadcast %cst_10 : f32 to vector<64x16xf32>
      %c0_11 = arith.constant 0 : index
      %c0_12 = arith.constant 0 : index
      %14 = vector.load %arg8[%c0_11, %c0_12] : memref<64x16xf32, #tpu.memory_space<vmem>>, vector<64x16xf32>
      tpu.vector_store %arg8[%c0_11, %c0_12], %13 {strides = array<i32>} : memref<64x16xf32, #tpu.memory_space<vmem>>, vector<64x16xf32>,
    } else {
    }
    %c0 = arith.constant 0 : index
    %c0_1 = arith.constant 0 : index
    %3 = vector.load %arg8[%c0, %c0_1] : memref<64x16xf32, #tpu.memory_space<vmem>>, vector<64x16xf32>
    %c0_2 = arith.constant 0 : index
    %c0_3 = arith.constant 0 : index
    %4 = vector.load %arg3[%c0_2, %c0_3] : memref<64x16xf32, #tpu.memory_space<vmem>>, vector<64x16xf32>
    %5 = arith.truncf %4 : vector<64x16xf32> to vector<64x16xbf16>
    %c0_4 = arith.constant 0 : index
    %c0_5 = arith.constant 0 : index
    %6 = vector.load %arg4[%c0_4, %c0_5] : memref<16x16xbf16, #tpu.memory_space<vmem>>, vector<16x16xbf16>
    %cst = arith.constant dense<0.000000e+00> : vector<64x16xf32>
    %7 = tpu.matmul %5, %6, %cst {dimension_numbers = #tpu.dot_dimension_numbers<[1], [0], [0], [1], [0, 0, 1, 1], [], []>} : vector<64x16xbf16>, vector<16x16xbf16>, vector<64x16xf32> -> vector<64x16xf32>
    %8 = arith.addf %3, %7 : vector<64x16xf32>
    %c0_6 = arith.constant 0 : index
    %c0_7 = arith.constant 0 : index
    %9 = vector.load %arg8[%c0_6, %c0_7] : memref<64x16xf32, #tpu.memory_space<vmem>>, vector<64x16xf32>
    tpu.vector_store %arg8[%c0_6, %c0_7], %8 {strides = array<i32>} : memref<64x16xf32, #tpu.memory_space<vmem>>, vector<64x16xf32>,
    %c0_i32_8 = arith.constant 0 : i32
    %10 = arith.cmpi eq, %arg2, %c0_i32_8 : i32
    %11 = arith.extui %10 : i1 to i32
    %c0_i32_9 = arith.constant 0 : i32
    %12 = arith.cmpi ne, %11, %c0_i32_9 : i32
    scf.if %12 {
      %c0_10 = arith.constant 0 : index
      %c0_11 = arith.constant 0 : index
      %13 = vector.load %arg8[%c0_10, %c0_11] : memref<64x16xf32, #tpu.memory_space<vmem>>, vector<64x16xf32>
      %c0_12 = arith.constant 0 : index
      %c0_13 = arith.constant 0 : index
      %14 = vector.load %arg5[%c0_12, %c0_13] : memref<1x16xf32, #tpu.memory_space<vmem>>, vector<1x16xf32>
      %15 = vector.broadcast %14 : vector<1x16xf32> to vector<64x16xf32>
      %16 = arith.addf %13, %15 : vector<64x16xf32>
      %c0_14 = arith.constant 0 : index
      %c0_15 = arith.constant 0 : index
      %17 = vector.load %arg6[%c0_14, %c0_15] : memref<64x16xf32, #tpu.memory_space<vmem>>, vector<64x16xf32>
      %18 = arith.addf %16, %17 : vector<64x16xf32>
      %c0_16 = arith.constant 0 : index
      %c0_17 = arith.constant 0 : index
      %19 = vector.load %arg7[%c0_16, %c0_17] : memref<64x16xf32, #tpu.memory_space<vmem>>, vector<64x16xf32>
      tpu.vector_store %arg7[%c0_16, %c0_17], %18 {strides = array<i32>} : memref<64x16xf32, #tpu.memory_space<vmem>>, vector<64x16xf32>,
    } else {
    }
    return
  }
  func.func @transform_0(%arg0: i32, %arg1: i32, %arg2: i32) -> (i32, i32) {
    %c0_i32 = arith.constant 0 : i32
    return %arg0, %arg2 : i32, i32
  }
  func.func @transform_1(%arg0: i32, %arg1: i32, %arg2: i32) -> (i32, i32) {
    %c0_i32 = arith.constant 0 : i32
    return %arg2, %arg1 : i32, i32
  }
  func.func @transform_2(%arg0: i32, %arg1: i32, %arg2: i32) -> (i32, i32) {
    %c0_i32 = arith.constant 0 : i32
    %c0_i32_0 = arith.constant 0 : i32
    return %c0_i32, %arg1 : i32, i32
  }
  func.func @transform_3(%arg0: i32, %arg1: i32, %arg2: i32) -> (i32, i32) {
    %c0_i32 = arith.constant 0 : i32
    return %arg0, %arg1 : i32, i32
  }
  func.func @transform_4(%arg0: i32, %arg1: i32, %arg2: i32) -> (i32, i32) {
    %c0_i32 = arith.constant 0 : i32
    return %arg0, %arg1 : i32, i32
  }
}

module attributes {stable_mosaic.version = 11 : i64} {
  func.func @_wattn_mask_kernel(%arg0: i32, %arg1: memref<4x16x48xf32, #tpu.memory_space<vmem>>, %arg2: memref<2x16x16xf32, #tpu.memory_space<vmem>>, %arg3: memref<4x16x16xf32, #tpu.memory_space<vmem>>, %arg4: memref<4x16x16xf32, #tpu.memory_space<vmem>>) attributes {dimension_semantics = [#tpu.dimension_semantics<parallel>], iteration_bounds = array<i64: 2>, scalar_prefetch = 0 : i64, scratch_operands = 0 : i64, tpu.core_type = #tpu.core_type<tc>, window_params = [{transform_indices = @transform_0, window_bounds = array<i64: 4, 16, 48>}, {pipeline_mode = #tpu.pipeline_mode<synchronous>, transform_indices = @transform_1, window_bounds = array<i64: 2, 16, 16>}, {pipeline_mode = #tpu.pipeline_mode<synchronous>, transform_indices = @transform_2, window_bounds = array<i64: 4, 16, 16>}, {transform_indices = @transform_3, window_bounds = array<i64: 4, 16, 16>}]} {
    %c0 = arith.constant 0 : index
    %c0_0 = arith.constant 0 : index
    %c0_1 = arith.constant 0 : index
    %0 = vector.load %arg3[%c0, %c0_0, %c0_1] : memref<4x16x16xf32, #tpu.memory_space<vmem>>, vector<4x16x16xf32>
    %c0_2 = arith.constant 0 : index
    %c0_3 = arith.constant 0 : index
    %c0_4 = arith.constant 0 : index
    %1 = vector.load %arg1[%c0_2, %c0_3, %c0_4] : memref<4x16x48xf32, #tpu.memory_space<vmem>>, vector<4x16x48xf32>
    %2 = vector.extract_strided_slice %1 {offsets = [0, 0, 0], sizes = [4, 16, 8], strides = [1, 1, 1]} : vector<4x16x48xf32> to vector<4x16x8xf32>
    %3 = arith.truncf %2 : vector<4x16x8xf32> to vector<4x16x8xbf16>
    %4 = vector.extract_strided_slice %1 {offsets = [0, 0, 16], sizes = [4, 16, 8], strides = [1, 1, 1]} : vector<4x16x48xf32> to vector<4x16x8xf32>
    %5 = arith.truncf %4 : vector<4x16x8xf32> to vector<4x16x8xbf16>
    %6 = vector.extract_strided_slice %1 {offsets = [0, 0, 32], sizes = [4, 16, 8], strides = [1, 1, 1]} : vector<4x16x48xf32> to vector<4x16x8xf32>
    %7 = arith.truncf %6 : vector<4x16x8xf32> to vector<4x16x8xbf16>
    "tpu.trace_start"() <{level = 10 : i32, message = "wqd,wkd->wqk"}> : () -> ()
    %cst = arith.constant dense<0.000000e+00> : vector<4x16x16xf32>
    %8 = tpu.matmul %3, %5, %cst {dimension_numbers = #tpu.dot_dimension_numbers<[2], [2], [1], [1], [0, 0, 0, 1, 1, 1], [0], [0]>} : vector<4x16x8xbf16>, vector<4x16x8xbf16>, vector<4x16x16xf32> -> vector<4x16x16xf32>
    "tpu.trace_stop"() : () -> ()
    %cst_5 = arith.constant 0.353553385 : f32
    %9 = vector.broadcast %cst_5 : f32 to vector<4x16x16xf32>
    %10 = arith.mulf %8, %9 : vector<4x16x16xf32>
    %c0_6 = arith.constant 0 : index
    %c0_7 = arith.constant 0 : index
    %c0_8 = arith.constant 0 : index
    %11 = vector.load %arg2[%c0_6, %c0_7, %c0_8] : memref<2x16x16xf32, #tpu.memory_space<vmem>>, vector<1x16x16xf32>
    %12 = vector.shape_cast %11 : vector<1x16x16xf32> to vector<16x16xf32>
    %13 = vector.shape_cast %12 : vector<16x16xf32> to vector<1x16x16xf32>
    %14 = vector.broadcast %13 : vector<1x16x16xf32> to vector<4x16x16xf32>
    %15 = arith.addf %10, %14 : vector<4x16x16xf32>
    %16 = arith.addf %15, %0 : vector<4x16x16xf32>
    %cst_9 = arith.constant dense<0xFF800000> : vector<4x16xf32>
    %17 = vector.multi_reduction <maximumf>, %16, %cst_9 [2] : vector<4x16x16xf32> to vector<4x16xf32>
    %18 = vector.shape_cast %17 : vector<4x16xf32> to vector<4x16x1xf32>
    %19 = vector.broadcast %18 : vector<4x16x1xf32> to vector<4x16x16xf32>
    %20 = arith.subf %16, %19 : vector<4x16x16xf32>
    %21 = math.exp %20 : vector<4x16x16xf32>
    %cst_10 = arith.constant dense<0.000000e+00> : vector<4x16xf32>
    %22 = vector.multi_reduction <add>, %21, %cst_10 [2] : vector<4x16x16xf32> to vector<4x16xf32>
    %23 = vector.shape_cast %22 : vector<4x16xf32> to vector<4x16x1xf32>
    %24 = tpu.reciprocal %23 {approx = true} : vector<4x16x1xf32> -> vector<4x16x1xf32>
    %25 = vector.broadcast %24 : vector<4x16x1xf32> to vector<4x16x16xf32>
    %26 = arith.mulf %21, %25 : vector<4x16x16xf32>
    %27 = arith.truncf %26 : vector<4x16x16xf32> to vector<4x16x16xbf16>
    "tpu.trace_start"() <{level = 10 : i32, message = "wqk,wkd->wqd"}> : () -> ()
    %cst_11 = arith.constant dense<0.000000e+00> : vector<4x16x8xf32>
    %28 = tpu.matmul %27, %7, %cst_11 {dimension_numbers = #tpu.dot_dimension_numbers<[2], [1], [1], [2], [0, 0, 0, 1, 1, 2], [0], [0]>} : vector<4x16x16xbf16>, vector<4x16x8xbf16>, vector<4x16x8xf32> -> vector<4x16x8xf32>
    "tpu.trace_stop"() : () -> ()
    %c0_12 = arith.constant 0 : index
    %c0_13 = arith.constant 0 : index
    %c0_14 = arith.constant 0 : index
    %29 = vector.load %arg4[%c0_12, %c0_13, %c0_14] : memref<4x16x16xf32, #tpu.memory_space<vmem>>, vector<4x16x8xf32>
    tpu.vector_store %arg4[%c0_12, %c0_13, %c0_14], %28 {strides = array<i32>} : memref<4x16x16xf32, #tpu.memory_space<vmem>>, vector<4x16x8xf32>,
    %30 = vector.extract_strided_slice %1 {offsets = [0, 0, 8], sizes = [4, 16, 8], strides = [1, 1, 1]} : vector<4x16x48xf32> to vector<4x16x8xf32>
    %31 = arith.truncf %30 : vector<4x16x8xf32> to vector<4x16x8xbf16>
    %32 = vector.extract_strided_slice %1 {offsets = [0, 0, 24], sizes = [4, 16, 8], strides = [1, 1, 1]} : vector<4x16x48xf32> to vector<4x16x8xf32>
    %33 = arith.truncf %32 : vector<4x16x8xf32> to vector<4x16x8xbf16>
    %34 = vector.extract_strided_slice %1 {offsets = [0, 0, 40], sizes = [4, 16, 8], strides = [1, 1, 1]} : vector<4x16x48xf32> to vector<4x16x8xf32>
    %35 = arith.truncf %34 : vector<4x16x8xf32> to vector<4x16x8xbf16>
    "tpu.trace_start"() <{level = 10 : i32, message = "wqd,wkd->wqk"}> : () -> ()
    %cst_15 = arith.constant dense<0.000000e+00> : vector<4x16x16xf32>
    %36 = tpu.matmul %31, %33, %cst_15 {dimension_numbers = #tpu.dot_dimension_numbers<[2], [2], [1], [1], [0, 0, 0, 1, 1, 1], [0], [0]>} : vector<4x16x8xbf16>, vector<4x16x8xbf16>, vector<4x16x16xf32> -> vector<4x16x16xf32>
    "tpu.trace_stop"() : () -> ()
    %cst_16 = arith.constant 0.353553385 : f32
    %37 = vector.broadcast %cst_16 : f32 to vector<4x16x16xf32>
    %38 = arith.mulf %36, %37 : vector<4x16x16xf32>
    %c1 = arith.constant 1 : index
    %c0_17 = arith.constant 0 : index
    %c0_18 = arith.constant 0 : index
    %39 = vector.load %arg2[%c1, %c0_17, %c0_18] : memref<2x16x16xf32, #tpu.memory_space<vmem>>, vector<1x16x16xf32>
    %40 = vector.shape_cast %39 : vector<1x16x16xf32> to vector<16x16xf32>
    %41 = vector.shape_cast %40 : vector<16x16xf32> to vector<1x16x16xf32>
    %42 = vector.broadcast %41 : vector<1x16x16xf32> to vector<4x16x16xf32>
    %43 = arith.addf %38, %42 : vector<4x16x16xf32>
    %44 = arith.addf %43, %0 : vector<4x16x16xf32>
    %cst_19 = arith.constant dense<0xFF800000> : vector<4x16xf32>
    %45 = vector.multi_reduction <maximumf>, %44, %cst_19 [2] : vector<4x16x16xf32> to vector<4x16xf32>
    %46 = vector.shape_cast %45 : vector<4x16xf32> to vector<4x16x1xf32>
    %47 = vector.broadcast %46 : vector<4x16x1xf32> to vector<4x16x16xf32>
    %48 = arith.subf %44, %47 : vector<4x16x16xf32>
    %49 = math.exp %48 : vector<4x16x16xf32>
    %cst_20 = arith.constant dense<0.000000e+00> : vector<4x16xf32>
    %50 = vector.multi_reduction <add>, %49, %cst_20 [2] : vector<4x16x16xf32> to vector<4x16xf32>
    %51 = vector.shape_cast %50 : vector<4x16xf32> to vector<4x16x1xf32>
    %52 = tpu.reciprocal %51 {approx = true} : vector<4x16x1xf32> -> vector<4x16x1xf32>
    %53 = vector.broadcast %52 : vector<4x16x1xf32> to vector<4x16x16xf32>
    %54 = arith.mulf %49, %53 : vector<4x16x16xf32>
    %55 = arith.truncf %54 : vector<4x16x16xf32> to vector<4x16x16xbf16>
    "tpu.trace_start"() <{level = 10 : i32, message = "wqk,wkd->wqd"}> : () -> ()
    %cst_21 = arith.constant dense<0.000000e+00> : vector<4x16x8xf32>
    %56 = tpu.matmul %55, %35, %cst_21 {dimension_numbers = #tpu.dot_dimension_numbers<[2], [1], [1], [2], [0, 0, 0, 1, 1, 2], [0], [0]>} : vector<4x16x16xbf16>, vector<4x16x8xbf16>, vector<4x16x8xf32> -> vector<4x16x8xf32>
    "tpu.trace_stop"() : () -> ()
    %c0_22 = arith.constant 0 : index
    %c0_23 = arith.constant 0 : index
    %c8 = arith.constant 8 : index
    %57 = vector.load %arg4[%c0_22, %c0_23, %c8] : memref<4x16x16xf32, #tpu.memory_space<vmem>>, vector<4x16x8xf32>
    tpu.vector_store %arg4[%c0_22, %c0_23, %c8], %56 {strides = array<i32>} : memref<4x16x16xf32, #tpu.memory_space<vmem>>, vector<4x16x8xf32>,
    return
  }
  func.func @transform_0(%arg0: i32) -> (i32, i32, i32) {
    %c0_i32 = arith.constant 0 : i32
    %c0_i32_0 = arith.constant 0 : i32
    %c0_i32_1 = arith.constant 0 : i32
    return %arg0, %c0_i32, %c0_i32_0 : i32, i32, i32
  }
  func.func @transform_1(%arg0: i32) -> (i32, i32, i32) {
    %c0_i32 = arith.constant 0 : i32
    %c0_i32_0 = arith.constant 0 : i32
    %c0_i32_1 = arith.constant 0 : i32
    %c0_i32_2 = arith.constant 0 : i32
    return %c0_i32, %c0_i32_0, %c0_i32_1 : i32, i32, i32
  }
  func.func @transform_2(%arg0: i32) -> (i32, i32, i32) {
    %c0_i32 = arith.constant 0 : i32
    %c0_i32_0 = arith.constant 0 : i32
    %c0_i32_1 = arith.constant 0 : i32
    %c0_i32_2 = arith.constant 0 : i32
    return %c0_i32, %c0_i32_0, %c0_i32_1 : i32, i32, i32
  }
  func.func @transform_3(%arg0: i32) -> (i32, i32, i32) {
    %c0_i32 = arith.constant 0 : i32
    %c0_i32_0 = arith.constant 0 : i32
    %c0_i32_1 = arith.constant 0 : i32
    return %arg0, %c0_i32, %c0_i32_0 : i32, i32, i32
  }
}

module attributes {stable_mosaic.version = 11 : i64} {
  func.func @_ln_matmul_kernel(%arg0: i32, %arg1: i32, %arg2: memref<16x32xf32, #tpu.memory_space<vmem>>, %arg3: memref<1x32xf32, #tpu.memory_space<vmem>>, %arg4: memref<1x32xf32, #tpu.memory_space<vmem>>, %arg5: memref<32x96xbf16, #tpu.memory_space<vmem>>, %arg6: memref<1x96xf32, #tpu.memory_space<vmem>>, %arg7: memref<16x96xf32, #tpu.memory_space<vmem>>, %arg8: memref<16x32xbf16, #tpu.memory_space<vmem>>) attributes {dimension_semantics = [#tpu.dimension_semantics<parallel>, #tpu.dimension_semantics<arbitrary>], iteration_bounds = array<i64: 2, 1>, scalar_prefetch = 0 : i64, scratch_operands = 1 : i64, tpu.core_type = #tpu.core_type<tc>, window_params = [{transform_indices = @transform_0, window_bounds = array<i64: 16, 32>}, {pipeline_mode = #tpu.pipeline_mode<synchronous>, transform_indices = @transform_1, window_bounds = array<i64: 1, 32>}, {pipeline_mode = #tpu.pipeline_mode<synchronous>, transform_indices = @transform_2, window_bounds = array<i64: 1, 32>}, {transform_indices = @transform_3, window_bounds = array<i64: 32, 96>}, {transform_indices = @transform_4, window_bounds = array<i64: 1, 96>}, {transform_indices = @transform_5, window_bounds = array<i64: 16, 96>}]} {
    %c0_i32 = arith.constant 0 : i32
    %0 = arith.cmpi eq, %arg1, %c0_i32 : i32
    %1 = arith.extui %0 : i1 to i32
    %c0_i32_0 = arith.constant 0 : i32
    %2 = arith.cmpi ne, %1, %c0_i32_0 : i32
    scf.if %2 {
      %c0_8 = arith.constant 0 : index
      %c0_9 = arith.constant 0 : index
      %10 = vector.load %arg2[%c0_8, %c0_9] : memref<16x32xf32, #tpu.memory_space<vmem>>, vector<16x32xf32>
      %c0_10 = arith.constant 0 : index
      %c0_11 = arith.constant 0 : index
      %11 = vector.load %arg3[%c0_10, %c0_11] : memref<1x32xf32, #tpu.memory_space<vmem>>, vector<1x32xf32>
      %c0_12 = arith.constant 0 : index
      %c0_13 = arith.constant 0 : index
      %12 = vector.load %arg4[%c0_12, %c0_13] : memref<1x32xf32, #tpu.memory_space<vmem>>, vector<1x32xf32>
      %cst_14 = arith.constant dense<0.000000e+00> : vector<16xf32>
      %13 = vector.multi_reduction <add>, %10, %cst_14 [1] : vector<16x32xf32> to vector<16xf32>
      %14 = vector.shape_cast %13 : vector<16xf32> to vector<16x1xf32>
      %cst_15 = arith.constant 3.200000e+01 : f32
      %15 = vector.broadcast %cst_15 : f32 to vector<16x1xf32>
      %16 = arith.divf %14, %15 : vector<16x1xf32>
      %17 = vector.broadcast %16 : vector<16x1xf32> to vector<16x32xf32>
      %18 = arith.subf %10, %17 : vector<16x32xf32>
      %19 = arith.mulf %18, %18 : vector<16x32xf32>
      %cst_16 = arith.constant dense<0.000000e+00> : vector<16xf32>
      %20 = vector.multi_reduction <add>, %19, %cst_16 [1] : vector<16x32xf32> to vector<16xf32>
      %21 = vector.shape_cast %20 : vector<16xf32> to vector<16x1xf32>
      %cst_17 = arith.constant 3.200000e+01 : f32
      %22 = vector.broadcast %cst_17 : f32 to vector<16x1xf32>
      %23 = arith.divf %21, %22 : vector<16x1xf32>
      %24 = vector.broadcast %16 : vector<16x1xf32> to vector<16x32xf32>
      %25 = arith.subf %10, %24 : vector<16x32xf32>
      %cst_18 = arith.constant 9.99999974E-6 : f32
      %26 = vector.broadcast %cst_18 : f32 to vector<16x1xf32>
      %27 = arith.addf %23, %26 : vector<16x1xf32>
      %28 = math.rsqrt %27 : vector<16x1xf32>
      %29 = vector.broadcast %28 : vector<16x1xf32> to vector<16x32xf32>
      %30 = arith.mulf %25, %29 : vector<16x32xf32>
      %31 = vector.broadcast %11 : vector<1x32xf32> to vector<16x32xf32>
      %32 = arith.mulf %30, %31 : vector<16x32xf32>
      %33 = vector.broadcast %12 : vector<1x32xf32> to vector<16x32xf32>
      %34 = arith.addf %32, %33 : vector<16x32xf32>
      %35 = arith.truncf %34 : vector<16x32xf32> to vector<16x32xbf16>
      %c0_19 = arith.constant 0 : index
      %c0_20 = arith.constant 0 : index
      %36 = vector.load %arg8[%c0_19, %c0_20] : memref<16x32xbf16, #tpu.memory_space<vmem>>, vector<16x32xbf16>
      tpu.vector_store %arg8[%c0_19, %c0_20], %35 {strides = array<i32>} : memref<16x32xbf16, #tpu.memory_space<vmem>>, vector<16x32xbf16>,
    } else {
    }
    %c0 = arith.constant 0 : index
    %c0_1 = arith.constant 0 : index
    %3 = vector.load %arg8[%c0, %c0_1] : memref<16x32xbf16, #tpu.memory_space<vmem>>, vector<16x32xbf16>
    %c0_2 = arith.constant 0 : index
    %c0_3 = arith.constant 0 : index
    %4 = vector.load %arg5[%c0_2, %c0_3] : memref<32x96xbf16, #tpu.memory_space<vmem>>, vector<32x96xbf16>
    %cst = arith.constant dense<0.000000e+00> : vector<16x96xf32>
    %5 = tpu.matmul %3, %4, %cst {dimension_numbers = #tpu.dot_dimension_numbers<[1], [0], [0], [1], [0, 0, 1, 1], [], []>} : vector<16x32xbf16>, vector<32x96xbf16>, vector<16x96xf32> -> vector<16x96xf32>
    %c0_4 = arith.constant 0 : index
    %c0_5 = arith.constant 0 : index
    %6 = vector.load %arg6[%c0_4, %c0_5] : memref<1x96xf32, #tpu.memory_space<vmem>>, vector<1x96xf32>
    %7 = vector.broadcast %6 : vector<1x96xf32> to vector<16x96xf32>
    %8 = arith.addf %5, %7 : vector<16x96xf32>
    %c0_6 = arith.constant 0 : index
    %c0_7 = arith.constant 0 : index
    %9 = vector.load %arg7[%c0_6, %c0_7] : memref<16x96xf32, #tpu.memory_space<vmem>>, vector<16x96xf32>
    tpu.vector_store %arg7[%c0_6, %c0_7], %8 {strides = array<i32>} : memref<16x96xf32, #tpu.memory_space<vmem>>, vector<16x96xf32>,
    return
  }
  func.func @transform_0(%arg0: i32, %arg1: i32) -> (i32, i32) {
    %c0_i32 = arith.constant 0 : i32
    %c0_i32_0 = arith.constant 0 : i32
    return %arg0, %c0_i32 : i32, i32
  }
  func.func @transform_1(%arg0: i32, %arg1: i32) -> (i32, i32) {
    %c0_i32 = arith.constant 0 : i32
    %c0_i32_0 = arith.constant 0 : i32
    %c0_i32_1 = arith.constant 0 : i32
    return %c0_i32, %c0_i32_0 : i32, i32
  }
  func.func @transform_2(%arg0: i32, %arg1: i32) -> (i32, i32) {
    %c0_i32 = arith.constant 0 : i32
    %c0_i32_0 = arith.constant 0 : i32
    %c0_i32_1 = arith.constant 0 : i32
    return %c0_i32, %c0_i32_0 : i32, i32
  }
  func.func @transform_3(%arg0: i32, %arg1: i32) -> (i32, i32) {
    %c0_i32 = arith.constant 0 : i32
    %c0_i32_0 = arith.constant 0 : i32
    return %c0_i32, %arg1 : i32, i32
  }
  func.func @transform_4(%arg0: i32, %arg1: i32) -> (i32, i32) {
    %c0_i32 = arith.constant 0 : i32
    %c0_i32_0 = arith.constant 0 : i32
    return %c0_i32, %arg1 : i32, i32
  }
  func.func @transform_5(%arg0: i32, %arg1: i32) -> (i32, i32) {
    %c0_i32 = arith.constant 0 : i32
    return %arg0, %arg1 : i32, i32
  }
}

module attributes {stable_mosaic.version = 11 : i64} {
  func.func @_ln_matmul_kernel(%arg0: i32, %arg1: i32, %arg2: memref<16x64xf32, #tpu.memory_space<vmem>>, %arg3: memref<1x64xf32, #tpu.memory_space<vmem>>, %arg4: memref<1x64xf32, #tpu.memory_space<vmem>>, %arg5: memref<64x32xbf16, #tpu.memory_space<vmem>>, %arg6: memref<1x32xf32, #tpu.memory_space<vmem>>, %arg7: memref<16x32xf32, #tpu.memory_space<vmem>>, %arg8: memref<16x64xbf16, #tpu.memory_space<vmem>>) attributes {dimension_semantics = [#tpu.dimension_semantics<parallel>, #tpu.dimension_semantics<arbitrary>], iteration_bounds = array<i64: 2, 1>, scalar_prefetch = 0 : i64, scratch_operands = 1 : i64, tpu.core_type = #tpu.core_type<tc>, window_params = [{transform_indices = @transform_0, window_bounds = array<i64: 16, 64>}, {pipeline_mode = #tpu.pipeline_mode<synchronous>, transform_indices = @transform_1, window_bounds = array<i64: 1, 64>}, {pipeline_mode = #tpu.pipeline_mode<synchronous>, transform_indices = @transform_2, window_bounds = array<i64: 1, 64>}, {transform_indices = @transform_3, window_bounds = array<i64: 64, 32>}, {transform_indices = @transform_4, window_bounds = array<i64: 1, 32>}, {transform_indices = @transform_5, window_bounds = array<i64: 16, 32>}]} {
    %c0_i32 = arith.constant 0 : i32
    %0 = arith.cmpi eq, %arg1, %c0_i32 : i32
    %1 = arith.extui %0 : i1 to i32
    %c0_i32_0 = arith.constant 0 : i32
    %2 = arith.cmpi ne, %1, %c0_i32_0 : i32
    scf.if %2 {
      %c0_8 = arith.constant 0 : index
      %c0_9 = arith.constant 0 : index
      %10 = vector.load %arg2[%c0_8, %c0_9] : memref<16x64xf32, #tpu.memory_space<vmem>>, vector<16x64xf32>
      %c0_10 = arith.constant 0 : index
      %c0_11 = arith.constant 0 : index
      %11 = vector.load %arg3[%c0_10, %c0_11] : memref<1x64xf32, #tpu.memory_space<vmem>>, vector<1x64xf32>
      %c0_12 = arith.constant 0 : index
      %c0_13 = arith.constant 0 : index
      %12 = vector.load %arg4[%c0_12, %c0_13] : memref<1x64xf32, #tpu.memory_space<vmem>>, vector<1x64xf32>
      %cst_14 = arith.constant dense<0.000000e+00> : vector<16xf32>
      %13 = vector.multi_reduction <add>, %10, %cst_14 [1] : vector<16x64xf32> to vector<16xf32>
      %14 = vector.shape_cast %13 : vector<16xf32> to vector<16x1xf32>
      %cst_15 = arith.constant 6.400000e+01 : f32
      %15 = vector.broadcast %cst_15 : f32 to vector<16x1xf32>
      %16 = arith.divf %14, %15 : vector<16x1xf32>
      %17 = vector.broadcast %16 : vector<16x1xf32> to vector<16x64xf32>
      %18 = arith.subf %10, %17 : vector<16x64xf32>
      %19 = arith.mulf %18, %18 : vector<16x64xf32>
      %cst_16 = arith.constant dense<0.000000e+00> : vector<16xf32>
      %20 = vector.multi_reduction <add>, %19, %cst_16 [1] : vector<16x64xf32> to vector<16xf32>
      %21 = vector.shape_cast %20 : vector<16xf32> to vector<16x1xf32>
      %cst_17 = arith.constant 6.400000e+01 : f32
      %22 = vector.broadcast %cst_17 : f32 to vector<16x1xf32>
      %23 = arith.divf %21, %22 : vector<16x1xf32>
      %24 = vector.broadcast %16 : vector<16x1xf32> to vector<16x64xf32>
      %25 = arith.subf %10, %24 : vector<16x64xf32>
      %cst_18 = arith.constant 9.99999974E-6 : f32
      %26 = vector.broadcast %cst_18 : f32 to vector<16x1xf32>
      %27 = arith.addf %23, %26 : vector<16x1xf32>
      %28 = math.rsqrt %27 : vector<16x1xf32>
      %29 = vector.broadcast %28 : vector<16x1xf32> to vector<16x64xf32>
      %30 = arith.mulf %25, %29 : vector<16x64xf32>
      %31 = vector.broadcast %11 : vector<1x64xf32> to vector<16x64xf32>
      %32 = arith.mulf %30, %31 : vector<16x64xf32>
      %33 = vector.broadcast %12 : vector<1x64xf32> to vector<16x64xf32>
      %34 = arith.addf %32, %33 : vector<16x64xf32>
      %35 = arith.truncf %34 : vector<16x64xf32> to vector<16x64xbf16>
      %c0_19 = arith.constant 0 : index
      %c0_20 = arith.constant 0 : index
      %36 = vector.load %arg8[%c0_19, %c0_20] : memref<16x64xbf16, #tpu.memory_space<vmem>>, vector<16x64xbf16>
      tpu.vector_store %arg8[%c0_19, %c0_20], %35 {strides = array<i32>} : memref<16x64xbf16, #tpu.memory_space<vmem>>, vector<16x64xbf16>,
    } else {
    }
    %c0 = arith.constant 0 : index
    %c0_1 = arith.constant 0 : index
    %3 = vector.load %arg8[%c0, %c0_1] : memref<16x64xbf16, #tpu.memory_space<vmem>>, vector<16x64xbf16>
    %c0_2 = arith.constant 0 : index
    %c0_3 = arith.constant 0 : index
    %4 = vector.load %arg5[%c0_2, %c0_3] : memref<64x32xbf16, #tpu.memory_space<vmem>>, vector<64x32xbf16>
    %cst = arith.constant dense<0.000000e+00> : vector<16x32xf32>
    %5 = tpu.matmul %3, %4, %cst {dimension_numbers = #tpu.dot_dimension_numbers<[1], [0], [0], [1], [0, 0, 1, 1], [], []>} : vector<16x64xbf16>, vector<64x32xbf16>, vector<16x32xf32> -> vector<16x32xf32>
    %c0_4 = arith.constant 0 : index
    %c0_5 = arith.constant 0 : index
    %6 = vector.load %arg6[%c0_4, %c0_5] : memref<1x32xf32, #tpu.memory_space<vmem>>, vector<1x32xf32>
    %7 = vector.broadcast %6 : vector<1x32xf32> to vector<16x32xf32>
    %8 = arith.addf %5, %7 : vector<16x32xf32>
    %c0_6 = arith.constant 0 : index
    %c0_7 = arith.constant 0 : index
    %9 = vector.load %arg7[%c0_6, %c0_7] : memref<16x32xf32, #tpu.memory_space<vmem>>, vector<16x32xf32>
    tpu.vector_store %arg7[%c0_6, %c0_7], %8 {strides = array<i32>} : memref<16x32xf32, #tpu.memory_space<vmem>>, vector<16x32xf32>,
    return
  }
  func.func @transform_0(%arg0: i32, %arg1: i32) -> (i32, i32) {
    %c0_i32 = arith.constant 0 : i32
    %c0_i32_0 = arith.constant 0 : i32
    return %arg0, %c0_i32 : i32, i32
  }
  func.func @transform_1(%arg0: i32, %arg1: i32) -> (i32, i32) {
    %c0_i32 = arith.constant 0 : i32
    %c0_i32_0 = arith.constant 0 : i32
    %c0_i32_1 = arith.constant 0 : i32
    return %c0_i32, %c0_i32_0 : i32, i32
  }
  func.func @transform_2(%arg0: i32, %arg1: i32) -> (i32, i32) {
    %c0_i32 = arith.constant 0 : i32
    %c0_i32_0 = arith.constant 0 : i32
    %c0_i32_1 = arith.constant 0 : i32
    return %c0_i32, %c0_i32_0 : i32, i32
  }
  func.func @transform_3(%arg0: i32, %arg1: i32) -> (i32, i32) {
    %c0_i32 = arith.constant 0 : i32
    %c0_i32_0 = arith.constant 0 : i32
    return %c0_i32, %arg1 : i32, i32
  }
  func.func @transform_4(%arg0: i32, %arg1: i32) -> (i32, i32) {
    %c0_i32 = arith.constant 0 : i32
    %c0_i32_0 = arith.constant 0 : i32
    return %c0_i32, %arg1 : i32, i32
  }
  func.func @transform_5(%arg0: i32, %arg1: i32) -> (i32, i32) {
    %c0_i32 = arith.constant 0 : i32
    return %arg0, %arg1 : i32, i32
  }
}

module attributes {stable_mosaic.version = 11 : i64} {
  func.func @_wattn_kernel(%arg0: i32, %arg1: memref<1x16x96xf32, #tpu.memory_space<vmem>>, %arg2: memref<4x16x16xf32, #tpu.memory_space<vmem>>, %arg3: memref<1x16x32xf32, #tpu.memory_space<vmem>>) attributes {dimension_semantics = [#tpu.dimension_semantics<parallel>], iteration_bounds = array<i64: 2>, scalar_prefetch = 0 : i64, scratch_operands = 0 : i64, tpu.core_type = #tpu.core_type<tc>, window_params = [{transform_indices = @transform_0, window_bounds = array<i64: 1, 16, 96>}, {pipeline_mode = #tpu.pipeline_mode<synchronous>, transform_indices = @transform_1, window_bounds = array<i64: 4, 16, 16>}, {transform_indices = @transform_2, window_bounds = array<i64: 1, 16, 32>}]} {
    %c0 = arith.constant 0 : index
    %c0_0 = arith.constant 0 : index
    %c0_1 = arith.constant 0 : index
    %0 = vector.load %arg1[%c0, %c0_0, %c0_1] : memref<1x16x96xf32, #tpu.memory_space<vmem>>, vector<1x16x96xf32>
    %1 = vector.extract_strided_slice %0 {offsets = [0, 0, 0], sizes = [1, 16, 8], strides = [1, 1, 1]} : vector<1x16x96xf32> to vector<1x16x8xf32>
    %2 = arith.truncf %1 : vector<1x16x8xf32> to vector<1x16x8xbf16>
    %3 = vector.extract_strided_slice %0 {offsets = [0, 0, 32], sizes = [1, 16, 8], strides = [1, 1, 1]} : vector<1x16x96xf32> to vector<1x16x8xf32>
    %4 = arith.truncf %3 : vector<1x16x8xf32> to vector<1x16x8xbf16>
    %5 = vector.extract_strided_slice %0 {offsets = [0, 0, 64], sizes = [1, 16, 8], strides = [1, 1, 1]} : vector<1x16x96xf32> to vector<1x16x8xf32>
    %6 = arith.truncf %5 : vector<1x16x8xf32> to vector<1x16x8xbf16>
    "tpu.trace_start"() <{level = 10 : i32, message = "wqd,wkd->wqk"}> : () -> ()
    %cst = arith.constant dense<0.000000e+00> : vector<1x16x16xf32>
    %7 = tpu.matmul %2, %4, %cst {dimension_numbers = #tpu.dot_dimension_numbers<[2], [2], [1], [1], [0, 0, 0, 1, 1, 1], [0], [0]>} : vector<1x16x8xbf16>, vector<1x16x8xbf16>, vector<1x16x16xf32> -> vector<1x16x16xf32>
    "tpu.trace_stop"() : () -> ()
    %cst_2 = arith.constant 0.353553385 : f32
    %8 = vector.broadcast %cst_2 : f32 to vector<1x16x16xf32>
    %9 = arith.mulf %7, %8 : vector<1x16x16xf32>
    %c0_3 = arith.constant 0 : index
    %c0_4 = arith.constant 0 : index
    %c0_5 = arith.constant 0 : index
    %10 = vector.load %arg2[%c0_3, %c0_4, %c0_5] : memref<4x16x16xf32, #tpu.memory_space<vmem>>, vector<1x16x16xf32>
    %11 = vector.shape_cast %10 : vector<1x16x16xf32> to vector<16x16xf32>
    %12 = vector.shape_cast %11 : vector<16x16xf32> to vector<1x16x16xf32>
    %13 = arith.addf %9, %12 : vector<1x16x16xf32>
    %cst_6 = arith.constant dense<0xFF800000> : vector<1x16xf32>
    %14 = vector.multi_reduction <maximumf>, %13, %cst_6 [2] : vector<1x16x16xf32> to vector<1x16xf32>
    %15 = vector.shape_cast %14 : vector<1x16xf32> to vector<1x16x1xf32>
    %16 = vector.broadcast %15 : vector<1x16x1xf32> to vector<1x16x16xf32>
    %17 = arith.subf %13, %16 : vector<1x16x16xf32>
    %18 = math.exp %17 : vector<1x16x16xf32>
    %cst_7 = arith.constant dense<0.000000e+00> : vector<1x16xf32>
    %19 = vector.multi_reduction <add>, %18, %cst_7 [2] : vector<1x16x16xf32> to vector<1x16xf32>
    %20 = vector.shape_cast %19 : vector<1x16xf32> to vector<1x16x1xf32>
    %21 = tpu.reciprocal %20 {approx = true} : vector<1x16x1xf32> -> vector<1x16x1xf32>
    %22 = vector.broadcast %21 : vector<1x16x1xf32> to vector<1x16x16xf32>
    %23 = arith.mulf %18, %22 : vector<1x16x16xf32>
    %24 = arith.truncf %23 : vector<1x16x16xf32> to vector<1x16x16xbf16>
    "tpu.trace_start"() <{level = 10 : i32, message = "wqk,wkd->wqd"}> : () -> ()
    %cst_8 = arith.constant dense<0.000000e+00> : vector<1x16x8xf32>
    %25 = tpu.matmul %24, %6, %cst_8 {dimension_numbers = #tpu.dot_dimension_numbers<[2], [1], [1], [2], [0, 0, 0, 1, 1, 2], [0], [0]>} : vector<1x16x16xbf16>, vector<1x16x8xbf16>, vector<1x16x8xf32> -> vector<1x16x8xf32>
    "tpu.trace_stop"() : () -> ()
    %c0_9 = arith.constant 0 : index
    %c0_10 = arith.constant 0 : index
    %c0_11 = arith.constant 0 : index
    %26 = vector.load %arg3[%c0_9, %c0_10, %c0_11] : memref<1x16x32xf32, #tpu.memory_space<vmem>>, vector<1x16x8xf32>
    tpu.vector_store %arg3[%c0_9, %c0_10, %c0_11], %25 {strides = array<i32>} : memref<1x16x32xf32, #tpu.memory_space<vmem>>, vector<1x16x8xf32>,
    %27 = vector.extract_strided_slice %0 {offsets = [0, 0, 8], sizes = [1, 16, 8], strides = [1, 1, 1]} : vector<1x16x96xf32> to vector<1x16x8xf32>
    %28 = arith.truncf %27 : vector<1x16x8xf32> to vector<1x16x8xbf16>
    %29 = vector.extract_strided_slice %0 {offsets = [0, 0, 40], sizes = [1, 16, 8], strides = [1, 1, 1]} : vector<1x16x96xf32> to vector<1x16x8xf32>
    %30 = arith.truncf %29 : vector<1x16x8xf32> to vector<1x16x8xbf16>
    %31 = vector.extract_strided_slice %0 {offsets = [0, 0, 72], sizes = [1, 16, 8], strides = [1, 1, 1]} : vector<1x16x96xf32> to vector<1x16x8xf32>
    %32 = arith.truncf %31 : vector<1x16x8xf32> to vector<1x16x8xbf16>
    "tpu.trace_start"() <{level = 10 : i32, message = "wqd,wkd->wqk"}> : () -> ()
    %cst_12 = arith.constant dense<0.000000e+00> : vector<1x16x16xf32>
    %33 = tpu.matmul %28, %30, %cst_12 {dimension_numbers = #tpu.dot_dimension_numbers<[2], [2], [1], [1], [0, 0, 0, 1, 1, 1], [0], [0]>} : vector<1x16x8xbf16>, vector<1x16x8xbf16>, vector<1x16x16xf32> -> vector<1x16x16xf32>
    "tpu.trace_stop"() : () -> ()
    %cst_13 = arith.constant 0.353553385 : f32
    %34 = vector.broadcast %cst_13 : f32 to vector<1x16x16xf32>
    %35 = arith.mulf %33, %34 : vector<1x16x16xf32>
    %c1 = arith.constant 1 : index
    %c0_14 = arith.constant 0 : index
    %c0_15 = arith.constant 0 : index
    %36 = vector.load %arg2[%c1, %c0_14, %c0_15] : memref<4x16x16xf32, #tpu.memory_space<vmem>>, vector<1x16x16xf32>
    %37 = vector.shape_cast %36 : vector<1x16x16xf32> to vector<16x16xf32>
    %38 = vector.shape_cast %37 : vector<16x16xf32> to vector<1x16x16xf32>
    %39 = arith.addf %35, %38 : vector<1x16x16xf32>
    %cst_16 = arith.constant dense<0xFF800000> : vector<1x16xf32>
    %40 = vector.multi_reduction <maximumf>, %39, %cst_16 [2] : vector<1x16x16xf32> to vector<1x16xf32>
    %41 = vector.shape_cast %40 : vector<1x16xf32> to vector<1x16x1xf32>
    %42 = vector.broadcast %41 : vector<1x16x1xf32> to vector<1x16x16xf32>
    %43 = arith.subf %39, %42 : vector<1x16x16xf32>
    %44 = math.exp %43 : vector<1x16x16xf32>
    %cst_17 = arith.constant dense<0.000000e+00> : vector<1x16xf32>
    %45 = vector.multi_reduction <add>, %44, %cst_17 [2] : vector<1x16x16xf32> to vector<1x16xf32>
    %46 = vector.shape_cast %45 : vector<1x16xf32> to vector<1x16x1xf32>
    %47 = tpu.reciprocal %46 {approx = true} : vector<1x16x1xf32> -> vector<1x16x1xf32>
    %48 = vector.broadcast %47 : vector<1x16x1xf32> to vector<1x16x16xf32>
    %49 = arith.mulf %44, %48 : vector<1x16x16xf32>
    %50 = arith.truncf %49 : vector<1x16x16xf32> to vector<1x16x16xbf16>
    "tpu.trace_start"() <{level = 10 : i32, message = "wqk,wkd->wqd"}> : () -> ()
    %cst_18 = arith.constant dense<0.000000e+00> : vector<1x16x8xf32>
    %51 = tpu.matmul %50, %32, %cst_18 {dimension_numbers = #tpu.dot_dimension_numbers<[2], [1], [1], [2], [0, 0, 0, 1, 1, 2], [0], [0]>} : vector<1x16x16xbf16>, vector<1x16x8xbf16>, vector<1x16x8xf32> -> vector<1x16x8xf32>
    "tpu.trace_stop"() : () -> ()
    %c0_19 = arith.constant 0 : index
    %c0_20 = arith.constant 0 : index
    %c8 = arith.constant 8 : index
    %52 = vector.load %arg3[%c0_19, %c0_20, %c8] : memref<1x16x32xf32, #tpu.memory_space<vmem>>, vector<1x16x8xf32>
    tpu.vector_store %arg3[%c0_19, %c0_20, %c8], %51 {strides = array<i32>} : memref<1x16x32xf32, #tpu.memory_space<vmem>>, vector<1x16x8xf32>,
    %53 = vector.extract_strided_slice %0 {offsets = [0, 0, 16], sizes = [1, 16, 8], strides = [1, 1, 1]} : vector<1x16x96xf32> to vector<1x16x8xf32>
    %54 = arith.truncf %53 : vector<1x16x8xf32> to vector<1x16x8xbf16>
    %55 = vector.extract_strided_slice %0 {offsets = [0, 0, 48], sizes = [1, 16, 8], strides = [1, 1, 1]} : vector<1x16x96xf32> to vector<1x16x8xf32>
    %56 = arith.truncf %55 : vector<1x16x8xf32> to vector<1x16x8xbf16>
    %57 = vector.extract_strided_slice %0 {offsets = [0, 0, 80], sizes = [1, 16, 8], strides = [1, 1, 1]} : vector<1x16x96xf32> to vector<1x16x8xf32>
    %58 = arith.truncf %57 : vector<1x16x8xf32> to vector<1x16x8xbf16>
    "tpu.trace_start"() <{level = 10 : i32, message = "wqd,wkd->wqk"}> : () -> ()
    %cst_21 = arith.constant dense<0.000000e+00> : vector<1x16x16xf32>
    %59 = tpu.matmul %54, %56, %cst_21 {dimension_numbers = #tpu.dot_dimension_numbers<[2], [2], [1], [1], [0, 0, 0, 1, 1, 1], [0], [0]>} : vector<1x16x8xbf16>, vector<1x16x8xbf16>, vector<1x16x16xf32> -> vector<1x16x16xf32>
    "tpu.trace_stop"() : () -> ()
    %cst_22 = arith.constant 0.353553385 : f32
    %60 = vector.broadcast %cst_22 : f32 to vector<1x16x16xf32>
    %61 = arith.mulf %59, %60 : vector<1x16x16xf32>
    %c2 = arith.constant 2 : index
    %c0_23 = arith.constant 0 : index
    %c0_24 = arith.constant 0 : index
    %62 = vector.load %arg2[%c2, %c0_23, %c0_24] : memref<4x16x16xf32, #tpu.memory_space<vmem>>, vector<1x16x16xf32>
    %63 = vector.shape_cast %62 : vector<1x16x16xf32> to vector<16x16xf32>
    %64 = vector.shape_cast %63 : vector<16x16xf32> to vector<1x16x16xf32>
    %65 = arith.addf %61, %64 : vector<1x16x16xf32>
    %cst_25 = arith.constant dense<0xFF800000> : vector<1x16xf32>
    %66 = vector.multi_reduction <maximumf>, %65, %cst_25 [2] : vector<1x16x16xf32> to vector<1x16xf32>
    %67 = vector.shape_cast %66 : vector<1x16xf32> to vector<1x16x1xf32>
    %68 = vector.broadcast %67 : vector<1x16x1xf32> to vector<1x16x16xf32>
    %69 = arith.subf %65, %68 : vector<1x16x16xf32>
    %70 = math.exp %69 : vector<1x16x16xf32>
    %cst_26 = arith.constant dense<0.000000e+00> : vector<1x16xf32>
    %71 = vector.multi_reduction <add>, %70, %cst_26 [2] : vector<1x16x16xf32> to vector<1x16xf32>
    %72 = vector.shape_cast %71 : vector<1x16xf32> to vector<1x16x1xf32>
    %73 = tpu.reciprocal %72 {approx = true} : vector<1x16x1xf32> -> vector<1x16x1xf32>
    %74 = vector.broadcast %73 : vector<1x16x1xf32> to vector<1x16x16xf32>
    %75 = arith.mulf %70, %74 : vector<1x16x16xf32>
    %76 = arith.truncf %75 : vector<1x16x16xf32> to vector<1x16x16xbf16>
    "tpu.trace_start"() <{level = 10 : i32, message = "wqk,wkd->wqd"}> : () -> ()
    %cst_27 = arith.constant dense<0.000000e+00> : vector<1x16x8xf32>
    %77 = tpu.matmul %76, %58, %cst_27 {dimension_numbers = #tpu.dot_dimension_numbers<[2], [1], [1], [2], [0, 0, 0, 1, 1, 2], [0], [0]>} : vector<1x16x16xbf16>, vector<1x16x8xbf16>, vector<1x16x8xf32> -> vector<1x16x8xf32>
    "tpu.trace_stop"() : () -> ()
    %c0_28 = arith.constant 0 : index
    %c0_29 = arith.constant 0 : index
    %c16 = arith.constant 16 : index
    %78 = vector.load %arg3[%c0_28, %c0_29, %c16] : memref<1x16x32xf32, #tpu.memory_space<vmem>>, vector<1x16x8xf32>
    tpu.vector_store %arg3[%c0_28, %c0_29, %c16], %77 {strides = array<i32>} : memref<1x16x32xf32, #tpu.memory_space<vmem>>, vector<1x16x8xf32>,
    %79 = vector.extract_strided_slice %0 {offsets = [0, 0, 24], sizes = [1, 16, 8], strides = [1, 1, 1]} : vector<1x16x96xf32> to vector<1x16x8xf32>
    %80 = arith.truncf %79 : vector<1x16x8xf32> to vector<1x16x8xbf16>
    %81 = vector.extract_strided_slice %0 {offsets = [0, 0, 56], sizes = [1, 16, 8], strides = [1, 1, 1]} : vector<1x16x96xf32> to vector<1x16x8xf32>
    %82 = arith.truncf %81 : vector<1x16x8xf32> to vector<1x16x8xbf16>
    %83 = vector.extract_strided_slice %0 {offsets = [0, 0, 88], sizes = [1, 16, 8], strides = [1, 1, 1]} : vector<1x16x96xf32> to vector<1x16x8xf32>
    %84 = arith.truncf %83 : vector<1x16x8xf32> to vector<1x16x8xbf16>
    "tpu.trace_start"() <{level = 10 : i32, message = "wqd,wkd->wqk"}> : () -> ()
    %cst_30 = arith.constant dense<0.000000e+00> : vector<1x16x16xf32>
    %85 = tpu.matmul %80, %82, %cst_30 {dimension_numbers = #tpu.dot_dimension_numbers<[2], [2], [1], [1], [0, 0, 0, 1, 1, 1], [0], [0]>} : vector<1x16x8xbf16>, vector<1x16x8xbf16>, vector<1x16x16xf32> -> vector<1x16x16xf32>
    "tpu.trace_stop"() : () -> ()
    %cst_31 = arith.constant 0.353553385 : f32
    %86 = vector.broadcast %cst_31 : f32 to vector<1x16x16xf32>
    %87 = arith.mulf %85, %86 : vector<1x16x16xf32>
    %c3 = arith.constant 3 : index
    %c0_32 = arith.constant 0 : index
    %c0_33 = arith.constant 0 : index
    %88 = vector.load %arg2[%c3, %c0_32, %c0_33] : memref<4x16x16xf32, #tpu.memory_space<vmem>>, vector<1x16x16xf32>
    %89 = vector.shape_cast %88 : vector<1x16x16xf32> to vector<16x16xf32>
    %90 = vector.shape_cast %89 : vector<16x16xf32> to vector<1x16x16xf32>
    %91 = arith.addf %87, %90 : vector<1x16x16xf32>
    %cst_34 = arith.constant dense<0xFF800000> : vector<1x16xf32>
    %92 = vector.multi_reduction <maximumf>, %91, %cst_34 [2] : vector<1x16x16xf32> to vector<1x16xf32>
    %93 = vector.shape_cast %92 : vector<1x16xf32> to vector<1x16x1xf32>
    %94 = vector.broadcast %93 : vector<1x16x1xf32> to vector<1x16x16xf32>
    %95 = arith.subf %91, %94 : vector<1x16x16xf32>
    %96 = math.exp %95 : vector<1x16x16xf32>
    %cst_35 = arith.constant dense<0.000000e+00> : vector<1x16xf32>
    %97 = vector.multi_reduction <add>, %96, %cst_35 [2] : vector<1x16x16xf32> to vector<1x16xf32>
    %98 = vector.shape_cast %97 : vector<1x16xf32> to vector<1x16x1xf32>
    %99 = tpu.reciprocal %98 {approx = true} : vector<1x16x1xf32> -> vector<1x16x1xf32>
    %100 = vector.broadcast %99 : vector<1x16x1xf32> to vector<1x16x16xf32>
    %101 = arith.mulf %96, %100 : vector<1x16x16xf32>
    %102 = arith.truncf %101 : vector<1x16x16xf32> to vector<1x16x16xbf16>
    "tpu.trace_start"() <{level = 10 : i32, message = "wqk,wkd->wqd"}> : () -> ()
    %cst_36 = arith.constant dense<0.000000e+00> : vector<1x16x8xf32>
    %103 = tpu.matmul %102, %84, %cst_36 {dimension_numbers = #tpu.dot_dimension_numbers<[2], [1], [1], [2], [0, 0, 0, 1, 1, 2], [0], [0]>} : vector<1x16x16xbf16>, vector<1x16x8xbf16>, vector<1x16x8xf32> -> vector<1x16x8xf32>
    "tpu.trace_stop"() : () -> ()
    %c0_37 = arith.constant 0 : index
    %c0_38 = arith.constant 0 : index
    %c24 = arith.constant 24 : index
    %104 = vector.load %arg3[%c0_37, %c0_38, %c24] : memref<1x16x32xf32, #tpu.memory_space<vmem>>, vector<1x16x8xf32>
    tpu.vector_store %arg3[%c0_37, %c0_38, %c24], %103 {strides = array<i32>} : memref<1x16x32xf32, #tpu.memory_space<vmem>>, vector<1x16x8xf32>,
    return
  }
  func.func @transform_0(%arg0: i32) -> (i32, i32, i32) {
    %c0_i32 = arith.constant 0 : i32
    %c0_i32_0 = arith.constant 0 : i32
    %c0_i32_1 = arith.constant 0 : i32
    return %arg0, %c0_i32, %c0_i32_0 : i32, i32, i32
  }
  func.func @transform_1(%arg0: i32) -> (i32, i32, i32) {
    %c0_i32 = arith.constant 0 : i32
    %c0_i32_0 = arith.constant 0 : i32
    %c0_i32_1 = arith.constant 0 : i32
    %c0_i32_2 = arith.constant 0 : i32
    return %c0_i32, %c0_i32_0, %c0_i32_1 : i32, i32, i32
  }
  func.func @transform_2(%arg0: i32) -> (i32, i32, i32) {
    %c0_i32 = arith.constant 0 : i32
    %c0_i32_0 = arith.constant 0 : i32
    %c0_i32_1 = arith.constant 0 : i32
    return %arg0, %c0_i32, %c0_i32_0 : i32, i32, i32
  }
}

module attributes {stable_mosaic.version = 11 : i64} {
  func.func @_matmul_res_kernel(%arg0: i32, %arg1: i32, %arg2: i32, %arg3: memref<16x32xf32, #tpu.memory_space<vmem>>, %arg4: memref<32x32xbf16, #tpu.memory_space<vmem>>, %arg5: memref<1x32xf32, #tpu.memory_space<vmem>>, %arg6: memref<16x32xf32, #tpu.memory_space<vmem>>, %arg7: memref<16x32xf32, #tpu.memory_space<vmem>>, %arg8: memref<16x32xf32, #tpu.memory_space<vmem>>) attributes {dimension_semantics = [#tpu.dimension_semantics<parallel>, #tpu.dimension_semantics<parallel>, #tpu.dimension_semantics<arbitrary>], iteration_bounds = array<i64: 2, 1, 1>, scalar_prefetch = 0 : i64, scratch_operands = 1 : i64, tpu.core_type = #tpu.core_type<tc>, window_params = [{transform_indices = @transform_0, window_bounds = array<i64: 16, 32>}, {transform_indices = @transform_1, window_bounds = array<i64: 32, 32>}, {transform_indices = @transform_2, window_bounds = array<i64: 1, 32>}, {transform_indices = @transform_3, window_bounds = array<i64: 16, 32>}, {transform_indices = @transform_4, window_bounds = array<i64: 16, 32>}]} {
    %c0_i32 = arith.constant 0 : i32
    %0 = arith.cmpi eq, %arg2, %c0_i32 : i32
    %1 = arith.extui %0 : i1 to i32
    %c0_i32_0 = arith.constant 0 : i32
    %2 = arith.cmpi ne, %1, %c0_i32_0 : i32
    scf.if %2 {
      %cst_10 = arith.constant 0.000000e+00 : f32
      %13 = vector.broadcast %cst_10 : f32 to vector<16x32xf32>
      %c0_11 = arith.constant 0 : index
      %c0_12 = arith.constant 0 : index
      %14 = vector.load %arg8[%c0_11, %c0_12] : memref<16x32xf32, #tpu.memory_space<vmem>>, vector<16x32xf32>
      tpu.vector_store %arg8[%c0_11, %c0_12], %13 {strides = array<i32>} : memref<16x32xf32, #tpu.memory_space<vmem>>, vector<16x32xf32>,
    } else {
    }
    %c0 = arith.constant 0 : index
    %c0_1 = arith.constant 0 : index
    %3 = vector.load %arg8[%c0, %c0_1] : memref<16x32xf32, #tpu.memory_space<vmem>>, vector<16x32xf32>
    %c0_2 = arith.constant 0 : index
    %c0_3 = arith.constant 0 : index
    %4 = vector.load %arg3[%c0_2, %c0_3] : memref<16x32xf32, #tpu.memory_space<vmem>>, vector<16x32xf32>
    %5 = arith.truncf %4 : vector<16x32xf32> to vector<16x32xbf16>
    %c0_4 = arith.constant 0 : index
    %c0_5 = arith.constant 0 : index
    %6 = vector.load %arg4[%c0_4, %c0_5] : memref<32x32xbf16, #tpu.memory_space<vmem>>, vector<32x32xbf16>
    %cst = arith.constant dense<0.000000e+00> : vector<16x32xf32>
    %7 = tpu.matmul %5, %6, %cst {dimension_numbers = #tpu.dot_dimension_numbers<[1], [0], [0], [1], [0, 0, 1, 1], [], []>} : vector<16x32xbf16>, vector<32x32xbf16>, vector<16x32xf32> -> vector<16x32xf32>
    %8 = arith.addf %3, %7 : vector<16x32xf32>
    %c0_6 = arith.constant 0 : index
    %c0_7 = arith.constant 0 : index
    %9 = vector.load %arg8[%c0_6, %c0_7] : memref<16x32xf32, #tpu.memory_space<vmem>>, vector<16x32xf32>
    tpu.vector_store %arg8[%c0_6, %c0_7], %8 {strides = array<i32>} : memref<16x32xf32, #tpu.memory_space<vmem>>, vector<16x32xf32>,
    %c0_i32_8 = arith.constant 0 : i32
    %10 = arith.cmpi eq, %arg2, %c0_i32_8 : i32
    %11 = arith.extui %10 : i1 to i32
    %c0_i32_9 = arith.constant 0 : i32
    %12 = arith.cmpi ne, %11, %c0_i32_9 : i32
    scf.if %12 {
      %c0_10 = arith.constant 0 : index
      %c0_11 = arith.constant 0 : index
      %13 = vector.load %arg8[%c0_10, %c0_11] : memref<16x32xf32, #tpu.memory_space<vmem>>, vector<16x32xf32>
      %c0_12 = arith.constant 0 : index
      %c0_13 = arith.constant 0 : index
      %14 = vector.load %arg5[%c0_12, %c0_13] : memref<1x32xf32, #tpu.memory_space<vmem>>, vector<1x32xf32>
      %15 = vector.broadcast %14 : vector<1x32xf32> to vector<16x32xf32>
      %16 = arith.addf %13, %15 : vector<16x32xf32>
      %c0_14 = arith.constant 0 : index
      %c0_15 = arith.constant 0 : index
      %17 = vector.load %arg6[%c0_14, %c0_15] : memref<16x32xf32, #tpu.memory_space<vmem>>, vector<16x32xf32>
      %18 = arith.addf %16, %17 : vector<16x32xf32>
      %c0_16 = arith.constant 0 : index
      %c0_17 = arith.constant 0 : index
      %19 = vector.load %arg7[%c0_16, %c0_17] : memref<16x32xf32, #tpu.memory_space<vmem>>, vector<16x32xf32>
      tpu.vector_store %arg7[%c0_16, %c0_17], %18 {strides = array<i32>} : memref<16x32xf32, #tpu.memory_space<vmem>>, vector<16x32xf32>,
    } else {
    }
    return
  }
  func.func @transform_0(%arg0: i32, %arg1: i32, %arg2: i32) -> (i32, i32) {
    %c0_i32 = arith.constant 0 : i32
    return %arg0, %arg2 : i32, i32
  }
  func.func @transform_1(%arg0: i32, %arg1: i32, %arg2: i32) -> (i32, i32) {
    %c0_i32 = arith.constant 0 : i32
    return %arg2, %arg1 : i32, i32
  }
  func.func @transform_2(%arg0: i32, %arg1: i32, %arg2: i32) -> (i32, i32) {
    %c0_i32 = arith.constant 0 : i32
    %c0_i32_0 = arith.constant 0 : i32
    return %c0_i32, %arg1 : i32, i32
  }
  func.func @transform_3(%arg0: i32, %arg1: i32, %arg2: i32) -> (i32, i32) {
    %c0_i32 = arith.constant 0 : i32
    return %arg0, %arg1 : i32, i32
  }
  func.func @transform_4(%arg0: i32, %arg1: i32, %arg2: i32) -> (i32, i32) {
    %c0_i32 = arith.constant 0 : i32
    return %arg0, %arg1 : i32, i32
  }
}

module attributes {stable_mosaic.version = 11 : i64} {
  func.func @_mlp_kernel(%arg0: i32, %arg1: i32, %arg2: memref<16x32xf32, #tpu.memory_space<vmem>>, %arg3: memref<1x32xf32, #tpu.memory_space<vmem>>, %arg4: memref<1x32xf32, #tpu.memory_space<vmem>>, %arg5: memref<32x128xbf16, #tpu.memory_space<vmem>>, %arg6: memref<1x128xf32, #tpu.memory_space<vmem>>, %arg7: memref<128x32xbf16, #tpu.memory_space<vmem>>, %arg8: memref<1x32xf32, #tpu.memory_space<vmem>>, %arg9: memref<16x32xf32, #tpu.memory_space<vmem>>, %arg10: memref<16x32xf32, #tpu.memory_space<vmem>>, %arg11: memref<16x32xbf16, #tpu.memory_space<vmem>>) attributes {dimension_semantics = [#tpu.dimension_semantics<parallel>, #tpu.dimension_semantics<arbitrary>], iteration_bounds = array<i64: 2, 1>, scalar_prefetch = 0 : i64, scratch_operands = 2 : i64, tpu.core_type = #tpu.core_type<tc>, window_params = [{transform_indices = @transform_0, window_bounds = array<i64: 16, 32>}, {pipeline_mode = #tpu.pipeline_mode<synchronous>, transform_indices = @transform_1, window_bounds = array<i64: 1, 32>}, {pipeline_mode = #tpu.pipeline_mode<synchronous>, transform_indices = @transform_2, window_bounds = array<i64: 1, 32>}, {transform_indices = @transform_3, window_bounds = array<i64: 32, 128>}, {transform_indices = @transform_4, window_bounds = array<i64: 1, 128>}, {transform_indices = @transform_5, window_bounds = array<i64: 128, 32>}, {pipeline_mode = #tpu.pipeline_mode<synchronous>, transform_indices = @transform_6, window_bounds = array<i64: 1, 32>}, {transform_indices = @transform_7, window_bounds = array<i64: 16, 32>}]} {
    %c0_i32 = arith.constant 0 : i32
    %0 = arith.cmpi eq, %arg1, %c0_i32 : i32
    %1 = arith.extui %0 : i1 to i32
    %c0_i32_0 = arith.constant 0 : i32
    %2 = arith.cmpi ne, %1, %c0_i32_0 : i32
    scf.if %2 {
      %c0_30 = arith.constant 0 : index
      %c0_31 = arith.constant 0 : index
      %58 = vector.load %arg2[%c0_30, %c0_31] : memref<16x32xf32, #tpu.memory_space<vmem>>, vector<16x32xf32>
      %c0_32 = arith.constant 0 : index
      %c0_33 = arith.constant 0 : index
      %59 = vector.load %arg3[%c0_32, %c0_33] : memref<1x32xf32, #tpu.memory_space<vmem>>, vector<1x32xf32>
      %c0_34 = arith.constant 0 : index
      %c0_35 = arith.constant 0 : index
      %60 = vector.load %arg4[%c0_34, %c0_35] : memref<1x32xf32, #tpu.memory_space<vmem>>, vector<1x32xf32>
      %cst_36 = arith.constant dense<0.000000e+00> : vector<16xf32>
      %61 = vector.multi_reduction <add>, %58, %cst_36 [1] : vector<16x32xf32> to vector<16xf32>
      %62 = vector.shape_cast %61 : vector<16xf32> to vector<16x1xf32>
      %cst_37 = arith.constant 3.200000e+01 : f32
      %63 = vector.broadcast %cst_37 : f32 to vector<16x1xf32>
      %64 = arith.divf %62, %63 : vector<16x1xf32>
      %65 = vector.broadcast %64 : vector<16x1xf32> to vector<16x32xf32>
      %66 = arith.subf %58, %65 : vector<16x32xf32>
      %67 = arith.mulf %66, %66 : vector<16x32xf32>
      %cst_38 = arith.constant dense<0.000000e+00> : vector<16xf32>
      %68 = vector.multi_reduction <add>, %67, %cst_38 [1] : vector<16x32xf32> to vector<16xf32>
      %69 = vector.shape_cast %68 : vector<16xf32> to vector<16x1xf32>
      %cst_39 = arith.constant 3.200000e+01 : f32
      %70 = vector.broadcast %cst_39 : f32 to vector<16x1xf32>
      %71 = arith.divf %69, %70 : vector<16x1xf32>
      %72 = vector.broadcast %64 : vector<16x1xf32> to vector<16x32xf32>
      %73 = arith.subf %58, %72 : vector<16x32xf32>
      %cst_40 = arith.constant 9.99999974E-6 : f32
      %74 = vector.broadcast %cst_40 : f32 to vector<16x1xf32>
      %75 = arith.addf %71, %74 : vector<16x1xf32>
      %76 = math.rsqrt %75 : vector<16x1xf32>
      %77 = vector.broadcast %76 : vector<16x1xf32> to vector<16x32xf32>
      %78 = arith.mulf %73, %77 : vector<16x32xf32>
      %79 = vector.broadcast %59 : vector<1x32xf32> to vector<16x32xf32>
      %80 = arith.mulf %78, %79 : vector<16x32xf32>
      %81 = vector.broadcast %60 : vector<1x32xf32> to vector<16x32xf32>
      %82 = arith.addf %80, %81 : vector<16x32xf32>
      %83 = arith.truncf %82 : vector<16x32xf32> to vector<16x32xbf16>
      %c0_41 = arith.constant 0 : index
      %c0_42 = arith.constant 0 : index
      %84 = vector.load %arg11[%c0_41, %c0_42] : memref<16x32xbf16, #tpu.memory_space<vmem>>, vector<16x32xbf16>
      tpu.vector_store %arg11[%c0_41, %c0_42], %83 {strides = array<i32>} : memref<16x32xbf16, #tpu.memory_space<vmem>>, vector<16x32xbf16>,
      %cst_43 = arith.constant 0.000000e+00 : f32
      %85 = vector.broadcast %cst_43 : f32 to vector<16x32xf32>
      %c0_44 = arith.constant 0 : index
      %c0_45 = arith.constant 0 : index
      %86 = vector.load %arg10[%c0_44, %c0_45] : memref<16x32xf32, #tpu.memory_space<vmem>>, vector<16x32xf32>
      tpu.vector_store %arg10[%c0_44, %c0_45], %85 {strides = array<i32>} : memref<16x32xf32, #tpu.memory_space<vmem>>, vector<16x32xf32>,
    } else {
    }
    %c0 = arith.constant 0 : index
    %c0_1 = arith.constant 0 : index
    %3 = vector.load %arg11[%c0, %c0_1] : memref<16x32xbf16, #tpu.memory_space<vmem>>, vector<16x32xbf16>
    %c0_2 = arith.constant 0 : index
    %c0_3 = arith.constant 0 : index
    %4 = vector.load %arg5[%c0_2, %c0_3] : memref<32x128xbf16, #tpu.memory_space<vmem>>, vector<32x128xbf16>
    %cst = arith.constant dense<0.000000e+00> : vector<16x128xf32>
    %5 = tpu.matmul %3, %4, %cst {dimension_numbers = #tpu.dot_dimension_numbers<[1], [0], [0], [1], [0, 0, 1, 1], [], []>} : vector<16x32xbf16>, vector<32x128xbf16>, vector<16x128xf32> -> vector<16x128xf32>
    %c0_4 = arith.constant 0 : index
    %c0_5 = arith.constant 0 : index
    %6 = vector.load %arg6[%c0_4, %c0_5] : memref<1x128xf32, #tpu.memory_space<vmem>>, vector<1x128xf32>
    %7 = vector.broadcast %6 : vector<1x128xf32> to vector<16x128xf32>
    %8 = arith.addf %5, %7 : vector<16x128xf32>
    %cst_6 = arith.constant 5.000000e-01 : f32
    %9 = vector.broadcast %cst_6 : f32 to vector<16x128xf32>
    %10 = arith.mulf %9, %8 : vector<16x128xf32>
    %cst_7 = arith.constant 0.707106769 : f32
    %11 = vector.broadcast %cst_7 : f32 to vector<16x128xf32>
    %12 = arith.mulf %8, %11 : vector<16x128xf32>
    %13 = math.absf %12 : vector<16x128xf32>
    %cst_8 = arith.constant 0.327591091 : f32
    %14 = vector.broadcast %cst_8 : f32 to vector<16x128xf32>
    %15 = arith.mulf %14, %13 : vector<16x128xf32>
    %cst_9 = arith.constant 1.000000e+00 : f32
    %16 = vector.broadcast %cst_9 : f32 to vector<16x128xf32>
    %17 = arith.addf %16, %15 : vector<16x128xf32>
    %cst_10 = arith.constant 1.000000e+00 : f32
    %18 = vector.broadcast %cst_10 : f32 to vector<16x128xf32>
    %19 = arith.divf %18, %17 : vector<16x128xf32>
    %cst_11 = arith.constant 1.06140542 : f32
    %20 = vector.broadcast %cst_11 : f32 to vector<16x128xf32>
    %21 = arith.mulf %19, %20 : vector<16x128xf32>
    %cst_12 = arith.constant -1.45315206 : f32
    %22 = vector.broadcast %cst_12 : f32 to vector<16x128xf32>
    %23 = arith.addf %22, %21 : vector<16x128xf32>
    %24 = arith.mulf %19, %23 : vector<16x128xf32>
    %cst_13 = arith.constant 1.42141378 : f32
    %25 = vector.broadcast %cst_13 : f32 to vector<16x128xf32>
    %26 = arith.addf %25, %24 : vector<16x128xf32>
    %27 = arith.mulf %19, %26 : vector<16x128xf32>
    %cst_14 = arith.constant -0.284496725 : f32
    %28 = vector.broadcast %cst_14 : f32 to vector<16x128xf32>
    %29 = arith.addf %28, %27 : vector<16x128xf32>
    %30 = arith.mulf %19, %29 : vector<16x128xf32>
    %cst_15 = arith.constant 0.254829586 : f32
    %31 = vector.broadcast %cst_15 : f32 to vector<16x128xf32>
    %32 = arith.addf %31, %30 : vector<16x128xf32>
    %33 = arith.mulf %19, %32 : vector<16x128xf32>
    %cst_16 = arith.constant 0.000000e+00 : f32
    %34 = vector.broadcast %cst_16 : f32 to vector<16x128xf32>
    %35 = arith.subf %34, %13 : vector<16x128xf32>
    %36 = arith.mulf %35, %13 : vector<16x128xf32>
    %37 = math.exp %36 : vector<16x128xf32>
    %38 = arith.mulf %33, %37 : vector<16x128xf32>
    %cst_17 = arith.constant 1.000000e+00 : f32
    %39 = vector.broadcast %cst_17 : f32 to vector<16x128xf32>
    %40 = arith.subf %39, %38 : vector<16x128xf32>
    %cst_18 = arith.constant 0.000000e+00 : f32
    %41 = vector.broadcast %cst_18 : f32 to vector<16x128xf32>
    %42 = arith.cmpf oge, %12, %41 : vector<16x128xf32>
    %cst_19 = arith.constant 0.000000e+00 : f32
    %43 = vector.broadcast %cst_19 : f32 to vector<16x128xf32>
    %44 = arith.subf %43, %40 : vector<16x128xf32>
    %45 = arith.select %42, %40, %44 : vector<16x128xi1>, vector<16x128xf32>
    %cst_20 = arith.constant 1.000000e+00 : f32
    %46 = vector.broadcast %cst_20 : f32 to vector<16x128xf32>
    %47 = arith.addf %46, %45 : vector<16x128xf32>
    %48 = arith.mulf %10, %47 : vector<16x128xf32>
    %c0_21 = arith.constant 0 : index
    %c0_22 = arith.constant 0 : index
    %49 = vector.load %arg10[%c0_21, %c0_22] : memref<16x32xf32, #tpu.memory_space<vmem>>, vector<16x32xf32>
    %50 = arith.truncf %48 : vector<16x128xf32> to vector<16x128xbf16>
    %c0_23 = arith.constant 0 : index
    %c0_24 = arith.constant 0 : index
    %51 = vector.load %arg7[%c0_23, %c0_24] : memref<128x32xbf16, #tpu.memory_space<vmem>>, vector<128x32xbf16>
    %cst_25 = arith.constant dense<0.000000e+00> : vector<16x32xf32>
    %52 = tpu.matmul %50, %51, %cst_25 {dimension_numbers = #tpu.dot_dimension_numbers<[1], [0], [0], [1], [0, 0, 1, 1], [], []>} : vector<16x128xbf16>, vector<128x32xbf16>, vector<16x32xf32> -> vector<16x32xf32>
    %53 = arith.addf %49, %52 : vector<16x32xf32>
    %c0_26 = arith.constant 0 : index
    %c0_27 = arith.constant 0 : index
    %54 = vector.load %arg10[%c0_26, %c0_27] : memref<16x32xf32, #tpu.memory_space<vmem>>, vector<16x32xf32>
    tpu.vector_store %arg10[%c0_26, %c0_27], %53 {strides = array<i32>} : memref<16x32xf32, #tpu.memory_space<vmem>>, vector<16x32xf32>,
    %c0_i32_28 = arith.constant 0 : i32
    %55 = arith.cmpi eq, %arg1, %c0_i32_28 : i32
    %56 = arith.extui %55 : i1 to i32
    %c0_i32_29 = arith.constant 0 : i32
    %57 = arith.cmpi ne, %56, %c0_i32_29 : i32
    scf.if %57 {
      %c0_30 = arith.constant 0 : index
      %c0_31 = arith.constant 0 : index
      %58 = vector.load %arg2[%c0_30, %c0_31] : memref<16x32xf32, #tpu.memory_space<vmem>>, vector<16x32xf32>
      %c0_32 = arith.constant 0 : index
      %c0_33 = arith.constant 0 : index
      %59 = vector.load %arg10[%c0_32, %c0_33] : memref<16x32xf32, #tpu.memory_space<vmem>>, vector<16x32xf32>
      %60 = arith.addf %58, %59 : vector<16x32xf32>
      %c0_34 = arith.constant 0 : index
      %c0_35 = arith.constant 0 : index
      %61 = vector.load %arg8[%c0_34, %c0_35] : memref<1x32xf32, #tpu.memory_space<vmem>>, vector<1x32xf32>
      %62 = vector.broadcast %61 : vector<1x32xf32> to vector<16x32xf32>
      %63 = arith.addf %60, %62 : vector<16x32xf32>
      %c0_36 = arith.constant 0 : index
      %c0_37 = arith.constant 0 : index
      %64 = vector.load %arg9[%c0_36, %c0_37] : memref<16x32xf32, #tpu.memory_space<vmem>>, vector<16x32xf32>
      tpu.vector_store %arg9[%c0_36, %c0_37], %63 {strides = array<i32>} : memref<16x32xf32, #tpu.memory_space<vmem>>, vector<16x32xf32>,
    } else {
    }
    return
  }
  func.func @transform_0(%arg0: i32, %arg1: i32) -> (i32, i32) {
    %c0_i32 = arith.constant 0 : i32
    %c0_i32_0 = arith.constant 0 : i32
    return %arg0, %c0_i32 : i32, i32
  }
  func.func @transform_1(%arg0: i32, %arg1: i32) -> (i32, i32) {
    %c0_i32 = arith.constant 0 : i32
    %c0_i32_0 = arith.constant 0 : i32
    %c0_i32_1 = arith.constant 0 : i32
    return %c0_i32, %c0_i32_0 : i32, i32
  }
  func.func @transform_2(%arg0: i32, %arg1: i32) -> (i32, i32) {
    %c0_i32 = arith.constant 0 : i32
    %c0_i32_0 = arith.constant 0 : i32
    %c0_i32_1 = arith.constant 0 : i32
    return %c0_i32, %c0_i32_0 : i32, i32
  }
  func.func @transform_3(%arg0: i32, %arg1: i32) -> (i32, i32) {
    %c0_i32 = arith.constant 0 : i32
    %c0_i32_0 = arith.constant 0 : i32
    return %c0_i32, %arg1 : i32, i32
  }
  func.func @transform_4(%arg0: i32, %arg1: i32) -> (i32, i32) {
    %c0_i32 = arith.constant 0 : i32
    %c0_i32_0 = arith.constant 0 : i32
    return %c0_i32, %arg1 : i32, i32
  }
  func.func @transform_5(%arg0: i32, %arg1: i32) -> (i32, i32) {
    %c0_i32 = arith.constant 0 : i32
    %c0_i32_0 = arith.constant 0 : i32
    return %arg1, %c0_i32 : i32, i32
  }
  func.func @transform_6(%arg0: i32, %arg1: i32) -> (i32, i32) {
    %c0_i32 = arith.constant 0 : i32
    %c0_i32_0 = arith.constant 0 : i32
    %c0_i32_1 = arith.constant 0 : i32
    return %c0_i32, %c0_i32_0 : i32, i32
  }
  func.func @transform_7(%arg0: i32, %arg1: i32) -> (i32, i32) {
    %c0_i32 = arith.constant 0 : i32
    %c0_i32_0 = arith.constant 0 : i32
    return %arg0, %c0_i32 : i32, i32
  }
}

module attributes {stable_mosaic.version = 11 : i64} {
  func.func @_wattn_mask_kernel(%arg0: i32, %arg1: memref<1x16x96xf32, #tpu.memory_space<vmem>>, %arg2: memref<4x16x16xf32, #tpu.memory_space<vmem>>, %arg3: memref<1x16x16xf32, #tpu.memory_space<vmem>>, %arg4: memref<1x16x32xf32, #tpu.memory_space<vmem>>) attributes {dimension_semantics = [#tpu.dimension_semantics<parallel>], iteration_bounds = array<i64: 2>, scalar_prefetch = 0 : i64, scratch_operands = 0 : i64, tpu.core_type = #tpu.core_type<tc>, window_params = [{transform_indices = @transform_0, window_bounds = array<i64: 1, 16, 96>}, {pipeline_mode = #tpu.pipeline_mode<synchronous>, transform_indices = @transform_1, window_bounds = array<i64: 4, 16, 16>}, {pipeline_mode = #tpu.pipeline_mode<synchronous>, transform_indices = @transform_2, window_bounds = array<i64: 1, 16, 16>}, {transform_indices = @transform_3, window_bounds = array<i64: 1, 16, 32>}]} {
    %c0 = arith.constant 0 : index
    %c0_0 = arith.constant 0 : index
    %c0_1 = arith.constant 0 : index
    %0 = vector.load %arg3[%c0, %c0_0, %c0_1] : memref<1x16x16xf32, #tpu.memory_space<vmem>>, vector<1x16x16xf32>
    %c0_2 = arith.constant 0 : index
    %c0_3 = arith.constant 0 : index
    %c0_4 = arith.constant 0 : index
    %1 = vector.load %arg1[%c0_2, %c0_3, %c0_4] : memref<1x16x96xf32, #tpu.memory_space<vmem>>, vector<1x16x96xf32>
    %2 = vector.extract_strided_slice %1 {offsets = [0, 0, 0], sizes = [1, 16, 8], strides = [1, 1, 1]} : vector<1x16x96xf32> to vector<1x16x8xf32>
    %3 = arith.truncf %2 : vector<1x16x8xf32> to vector<1x16x8xbf16>
    %4 = vector.extract_strided_slice %1 {offsets = [0, 0, 32], sizes = [1, 16, 8], strides = [1, 1, 1]} : vector<1x16x96xf32> to vector<1x16x8xf32>
    %5 = arith.truncf %4 : vector<1x16x8xf32> to vector<1x16x8xbf16>
    %6 = vector.extract_strided_slice %1 {offsets = [0, 0, 64], sizes = [1, 16, 8], strides = [1, 1, 1]} : vector<1x16x96xf32> to vector<1x16x8xf32>
    %7 = arith.truncf %6 : vector<1x16x8xf32> to vector<1x16x8xbf16>
    "tpu.trace_start"() <{level = 10 : i32, message = "wqd,wkd->wqk"}> : () -> ()
    %cst = arith.constant dense<0.000000e+00> : vector<1x16x16xf32>
    %8 = tpu.matmul %3, %5, %cst {dimension_numbers = #tpu.dot_dimension_numbers<[2], [2], [1], [1], [0, 0, 0, 1, 1, 1], [0], [0]>} : vector<1x16x8xbf16>, vector<1x16x8xbf16>, vector<1x16x16xf32> -> vector<1x16x16xf32>
    "tpu.trace_stop"() : () -> ()
    %cst_5 = arith.constant 0.353553385 : f32
    %9 = vector.broadcast %cst_5 : f32 to vector<1x16x16xf32>
    %10 = arith.mulf %8, %9 : vector<1x16x16xf32>
    %c0_6 = arith.constant 0 : index
    %c0_7 = arith.constant 0 : index
    %c0_8 = arith.constant 0 : index
    %11 = vector.load %arg2[%c0_6, %c0_7, %c0_8] : memref<4x16x16xf32, #tpu.memory_space<vmem>>, vector<1x16x16xf32>
    %12 = vector.shape_cast %11 : vector<1x16x16xf32> to vector<16x16xf32>
    %13 = vector.shape_cast %12 : vector<16x16xf32> to vector<1x16x16xf32>
    %14 = arith.addf %10, %13 : vector<1x16x16xf32>
    %15 = arith.addf %14, %0 : vector<1x16x16xf32>
    %cst_9 = arith.constant dense<0xFF800000> : vector<1x16xf32>
    %16 = vector.multi_reduction <maximumf>, %15, %cst_9 [2] : vector<1x16x16xf32> to vector<1x16xf32>
    %17 = vector.shape_cast %16 : vector<1x16xf32> to vector<1x16x1xf32>
    %18 = vector.broadcast %17 : vector<1x16x1xf32> to vector<1x16x16xf32>
    %19 = arith.subf %15, %18 : vector<1x16x16xf32>
    %20 = math.exp %19 : vector<1x16x16xf32>
    %cst_10 = arith.constant dense<0.000000e+00> : vector<1x16xf32>
    %21 = vector.multi_reduction <add>, %20, %cst_10 [2] : vector<1x16x16xf32> to vector<1x16xf32>
    %22 = vector.shape_cast %21 : vector<1x16xf32> to vector<1x16x1xf32>
    %23 = tpu.reciprocal %22 {approx = true} : vector<1x16x1xf32> -> vector<1x16x1xf32>
    %24 = vector.broadcast %23 : vector<1x16x1xf32> to vector<1x16x16xf32>
    %25 = arith.mulf %20, %24 : vector<1x16x16xf32>
    %26 = arith.truncf %25 : vector<1x16x16xf32> to vector<1x16x16xbf16>
    "tpu.trace_start"() <{level = 10 : i32, message = "wqk,wkd->wqd"}> : () -> ()
    %cst_11 = arith.constant dense<0.000000e+00> : vector<1x16x8xf32>
    %27 = tpu.matmul %26, %7, %cst_11 {dimension_numbers = #tpu.dot_dimension_numbers<[2], [1], [1], [2], [0, 0, 0, 1, 1, 2], [0], [0]>} : vector<1x16x16xbf16>, vector<1x16x8xbf16>, vector<1x16x8xf32> -> vector<1x16x8xf32>
    "tpu.trace_stop"() : () -> ()
    %c0_12 = arith.constant 0 : index
    %c0_13 = arith.constant 0 : index
    %c0_14 = arith.constant 0 : index
    %28 = vector.load %arg4[%c0_12, %c0_13, %c0_14] : memref<1x16x32xf32, #tpu.memory_space<vmem>>, vector<1x16x8xf32>
    tpu.vector_store %arg4[%c0_12, %c0_13, %c0_14], %27 {strides = array<i32>} : memref<1x16x32xf32, #tpu.memory_space<vmem>>, vector<1x16x8xf32>,
    %29 = vector.extract_strided_slice %1 {offsets = [0, 0, 8], sizes = [1, 16, 8], strides = [1, 1, 1]} : vector<1x16x96xf32> to vector<1x16x8xf32>
    %30 = arith.truncf %29 : vector<1x16x8xf32> to vector<1x16x8xbf16>
    %31 = vector.extract_strided_slice %1 {offsets = [0, 0, 40], sizes = [1, 16, 8], strides = [1, 1, 1]} : vector<1x16x96xf32> to vector<1x16x8xf32>
    %32 = arith.truncf %31 : vector<1x16x8xf32> to vector<1x16x8xbf16>
    %33 = vector.extract_strided_slice %1 {offsets = [0, 0, 72], sizes = [1, 16, 8], strides = [1, 1, 1]} : vector<1x16x96xf32> to vector<1x16x8xf32>
    %34 = arith.truncf %33 : vector<1x16x8xf32> to vector<1x16x8xbf16>
    "tpu.trace_start"() <{level = 10 : i32, message = "wqd,wkd->wqk"}> : () -> ()
    %cst_15 = arith.constant dense<0.000000e+00> : vector<1x16x16xf32>
    %35 = tpu.matmul %30, %32, %cst_15 {dimension_numbers = #tpu.dot_dimension_numbers<[2], [2], [1], [1], [0, 0, 0, 1, 1, 1], [0], [0]>} : vector<1x16x8xbf16>, vector<1x16x8xbf16>, vector<1x16x16xf32> -> vector<1x16x16xf32>
    "tpu.trace_stop"() : () -> ()
    %cst_16 = arith.constant 0.353553385 : f32
    %36 = vector.broadcast %cst_16 : f32 to vector<1x16x16xf32>
    %37 = arith.mulf %35, %36 : vector<1x16x16xf32>
    %c1 = arith.constant 1 : index
    %c0_17 = arith.constant 0 : index
    %c0_18 = arith.constant 0 : index
    %38 = vector.load %arg2[%c1, %c0_17, %c0_18] : memref<4x16x16xf32, #tpu.memory_space<vmem>>, vector<1x16x16xf32>
    %39 = vector.shape_cast %38 : vector<1x16x16xf32> to vector<16x16xf32>
    %40 = vector.shape_cast %39 : vector<16x16xf32> to vector<1x16x16xf32>
    %41 = arith.addf %37, %40 : vector<1x16x16xf32>
    %42 = arith.addf %41, %0 : vector<1x16x16xf32>
    %cst_19 = arith.constant dense<0xFF800000> : vector<1x16xf32>
    %43 = vector.multi_reduction <maximumf>, %42, %cst_19 [2] : vector<1x16x16xf32> to vector<1x16xf32>
    %44 = vector.shape_cast %43 : vector<1x16xf32> to vector<1x16x1xf32>
    %45 = vector.broadcast %44 : vector<1x16x1xf32> to vector<1x16x16xf32>
    %46 = arith.subf %42, %45 : vector<1x16x16xf32>
    %47 = math.exp %46 : vector<1x16x16xf32>
    %cst_20 = arith.constant dense<0.000000e+00> : vector<1x16xf32>
    %48 = vector.multi_reduction <add>, %47, %cst_20 [2] : vector<1x16x16xf32> to vector<1x16xf32>
    %49 = vector.shape_cast %48 : vector<1x16xf32> to vector<1x16x1xf32>
    %50 = tpu.reciprocal %49 {approx = true} : vector<1x16x1xf32> -> vector<1x16x1xf32>
    %51 = vector.broadcast %50 : vector<1x16x1xf32> to vector<1x16x16xf32>
    %52 = arith.mulf %47, %51 : vector<1x16x16xf32>
    %53 = arith.truncf %52 : vector<1x16x16xf32> to vector<1x16x16xbf16>
    "tpu.trace_start"() <{level = 10 : i32, message = "wqk,wkd->wqd"}> : () -> ()
    %cst_21 = arith.constant dense<0.000000e+00> : vector<1x16x8xf32>
    %54 = tpu.matmul %53, %34, %cst_21 {dimension_numbers = #tpu.dot_dimension_numbers<[2], [1], [1], [2], [0, 0, 0, 1, 1, 2], [0], [0]>} : vector<1x16x16xbf16>, vector<1x16x8xbf16>, vector<1x16x8xf32> -> vector<1x16x8xf32>
    "tpu.trace_stop"() : () -> ()
    %c0_22 = arith.constant 0 : index
    %c0_23 = arith.constant 0 : index
    %c8 = arith.constant 8 : index
    %55 = vector.load %arg4[%c0_22, %c0_23, %c8] : memref<1x16x32xf32, #tpu.memory_space<vmem>>, vector<1x16x8xf32>
    tpu.vector_store %arg4[%c0_22, %c0_23, %c8], %54 {strides = array<i32>} : memref<1x16x32xf32, #tpu.memory_space<vmem>>, vector<1x16x8xf32>,
    %56 = vector.extract_strided_slice %1 {offsets = [0, 0, 16], sizes = [1, 16, 8], strides = [1, 1, 1]} : vector<1x16x96xf32> to vector<1x16x8xf32>
    %57 = arith.truncf %56 : vector<1x16x8xf32> to vector<1x16x8xbf16>
    %58 = vector.extract_strided_slice %1 {offsets = [0, 0, 48], sizes = [1, 16, 8], strides = [1, 1, 1]} : vector<1x16x96xf32> to vector<1x16x8xf32>
    %59 = arith.truncf %58 : vector<1x16x8xf32> to vector<1x16x8xbf16>
    %60 = vector.extract_strided_slice %1 {offsets = [0, 0, 80], sizes = [1, 16, 8], strides = [1, 1, 1]} : vector<1x16x96xf32> to vector<1x16x8xf32>
    %61 = arith.truncf %60 : vector<1x16x8xf32> to vector<1x16x8xbf16>
    "tpu.trace_start"() <{level = 10 : i32, message = "wqd,wkd->wqk"}> : () -> ()
    %cst_24 = arith.constant dense<0.000000e+00> : vector<1x16x16xf32>
    %62 = tpu.matmul %57, %59, %cst_24 {dimension_numbers = #tpu.dot_dimension_numbers<[2], [2], [1], [1], [0, 0, 0, 1, 1, 1], [0], [0]>} : vector<1x16x8xbf16>, vector<1x16x8xbf16>, vector<1x16x16xf32> -> vector<1x16x16xf32>
    "tpu.trace_stop"() : () -> ()
    %cst_25 = arith.constant 0.353553385 : f32
    %63 = vector.broadcast %cst_25 : f32 to vector<1x16x16xf32>
    %64 = arith.mulf %62, %63 : vector<1x16x16xf32>
    %c2 = arith.constant 2 : index
    %c0_26 = arith.constant 0 : index
    %c0_27 = arith.constant 0 : index
    %65 = vector.load %arg2[%c2, %c0_26, %c0_27] : memref<4x16x16xf32, #tpu.memory_space<vmem>>, vector<1x16x16xf32>
    %66 = vector.shape_cast %65 : vector<1x16x16xf32> to vector<16x16xf32>
    %67 = vector.shape_cast %66 : vector<16x16xf32> to vector<1x16x16xf32>
    %68 = arith.addf %64, %67 : vector<1x16x16xf32>
    %69 = arith.addf %68, %0 : vector<1x16x16xf32>
    %cst_28 = arith.constant dense<0xFF800000> : vector<1x16xf32>
    %70 = vector.multi_reduction <maximumf>, %69, %cst_28 [2] : vector<1x16x16xf32> to vector<1x16xf32>
    %71 = vector.shape_cast %70 : vector<1x16xf32> to vector<1x16x1xf32>
    %72 = vector.broadcast %71 : vector<1x16x1xf32> to vector<1x16x16xf32>
    %73 = arith.subf %69, %72 : vector<1x16x16xf32>
    %74 = math.exp %73 : vector<1x16x16xf32>
    %cst_29 = arith.constant dense<0.000000e+00> : vector<1x16xf32>
    %75 = vector.multi_reduction <add>, %74, %cst_29 [2] : vector<1x16x16xf32> to vector<1x16xf32>
    %76 = vector.shape_cast %75 : vector<1x16xf32> to vector<1x16x1xf32>
    %77 = tpu.reciprocal %76 {approx = true} : vector<1x16x1xf32> -> vector<1x16x1xf32>
    %78 = vector.broadcast %77 : vector<1x16x1xf32> to vector<1x16x16xf32>
    %79 = arith.mulf %74, %78 : vector<1x16x16xf32>
    %80 = arith.truncf %79 : vector<1x16x16xf32> to vector<1x16x16xbf16>
    "tpu.trace_start"() <{level = 10 : i32, message = "wqk,wkd->wqd"}> : () -> ()
    %cst_30 = arith.constant dense<0.000000e+00> : vector<1x16x8xf32>
    %81 = tpu.matmul %80, %61, %cst_30 {dimension_numbers = #tpu.dot_dimension_numbers<[2], [1], [1], [2], [0, 0, 0, 1, 1, 2], [0], [0]>} : vector<1x16x16xbf16>, vector<1x16x8xbf16>, vector<1x16x8xf32> -> vector<1x16x8xf32>
    "tpu.trace_stop"() : () -> ()
    %c0_31 = arith.constant 0 : index
    %c0_32 = arith.constant 0 : index
    %c16 = arith.constant 16 : index
    %82 = vector.load %arg4[%c0_31, %c0_32, %c16] : memref<1x16x32xf32, #tpu.memory_space<vmem>>, vector<1x16x8xf32>
    tpu.vector_store %arg4[%c0_31, %c0_32, %c16], %81 {strides = array<i32>} : memref<1x16x32xf32, #tpu.memory_space<vmem>>, vector<1x16x8xf32>,
    %83 = vector.extract_strided_slice %1 {offsets = [0, 0, 24], sizes = [1, 16, 8], strides = [1, 1, 1]} : vector<1x16x96xf32> to vector<1x16x8xf32>
    %84 = arith.truncf %83 : vector<1x16x8xf32> to vector<1x16x8xbf16>
    %85 = vector.extract_strided_slice %1 {offsets = [0, 0, 56], sizes = [1, 16, 8], strides = [1, 1, 1]} : vector<1x16x96xf32> to vector<1x16x8xf32>
    %86 = arith.truncf %85 : vector<1x16x8xf32> to vector<1x16x8xbf16>
    %87 = vector.extract_strided_slice %1 {offsets = [0, 0, 88], sizes = [1, 16, 8], strides = [1, 1, 1]} : vector<1x16x96xf32> to vector<1x16x8xf32>
    %88 = arith.truncf %87 : vector<1x16x8xf32> to vector<1x16x8xbf16>
    "tpu.trace_start"() <{level = 10 : i32, message = "wqd,wkd->wqk"}> : () -> ()
    %cst_33 = arith.constant dense<0.000000e+00> : vector<1x16x16xf32>
    %89 = tpu.matmul %84, %86, %cst_33 {dimension_numbers = #tpu.dot_dimension_numbers<[2], [2], [1], [1], [0, 0, 0, 1, 1, 1], [0], [0]>} : vector<1x16x8xbf16>, vector<1x16x8xbf16>, vector<1x16x16xf32> -> vector<1x16x16xf32>
    "tpu.trace_stop"() : () -> ()
    %cst_34 = arith.constant 0.353553385 : f32
    %90 = vector.broadcast %cst_34 : f32 to vector<1x16x16xf32>
    %91 = arith.mulf %89, %90 : vector<1x16x16xf32>
    %c3 = arith.constant 3 : index
    %c0_35 = arith.constant 0 : index
    %c0_36 = arith.constant 0 : index
    %92 = vector.load %arg2[%c3, %c0_35, %c0_36] : memref<4x16x16xf32, #tpu.memory_space<vmem>>, vector<1x16x16xf32>
    %93 = vector.shape_cast %92 : vector<1x16x16xf32> to vector<16x16xf32>
    %94 = vector.shape_cast %93 : vector<16x16xf32> to vector<1x16x16xf32>
    %95 = arith.addf %91, %94 : vector<1x16x16xf32>
    %96 = arith.addf %95, %0 : vector<1x16x16xf32>
    %cst_37 = arith.constant dense<0xFF800000> : vector<1x16xf32>
    %97 = vector.multi_reduction <maximumf>, %96, %cst_37 [2] : vector<1x16x16xf32> to vector<1x16xf32>
    %98 = vector.shape_cast %97 : vector<1x16xf32> to vector<1x16x1xf32>
    %99 = vector.broadcast %98 : vector<1x16x1xf32> to vector<1x16x16xf32>
    %100 = arith.subf %96, %99 : vector<1x16x16xf32>
    %101 = math.exp %100 : vector<1x16x16xf32>
    %cst_38 = arith.constant dense<0.000000e+00> : vector<1x16xf32>
    %102 = vector.multi_reduction <add>, %101, %cst_38 [2] : vector<1x16x16xf32> to vector<1x16xf32>
    %103 = vector.shape_cast %102 : vector<1x16xf32> to vector<1x16x1xf32>
    %104 = tpu.reciprocal %103 {approx = true} : vector<1x16x1xf32> -> vector<1x16x1xf32>
    %105 = vector.broadcast %104 : vector<1x16x1xf32> to vector<1x16x16xf32>
    %106 = arith.mulf %101, %105 : vector<1x16x16xf32>
    %107 = arith.truncf %106 : vector<1x16x16xf32> to vector<1x16x16xbf16>
    "tpu.trace_start"() <{level = 10 : i32, message = "wqk,wkd->wqd"}> : () -> ()
    %cst_39 = arith.constant dense<0.000000e+00> : vector<1x16x8xf32>
    %108 = tpu.matmul %107, %88, %cst_39 {dimension_numbers = #tpu.dot_dimension_numbers<[2], [1], [1], [2], [0, 0, 0, 1, 1, 2], [0], [0]>} : vector<1x16x16xbf16>, vector<1x16x8xbf16>, vector<1x16x8xf32> -> vector<1x16x8xf32>
    "tpu.trace_stop"() : () -> ()
    %c0_40 = arith.constant 0 : index
    %c0_41 = arith.constant 0 : index
    %c24 = arith.constant 24 : index
    %109 = vector.load %arg4[%c0_40, %c0_41, %c24] : memref<1x16x32xf32, #tpu.memory_space<vmem>>, vector<1x16x8xf32>
    tpu.vector_store %arg4[%c0_40, %c0_41, %c24], %108 {strides = array<i32>} : memref<1x16x32xf32, #tpu.memory_space<vmem>>, vector<1x16x8xf32>,
    return
  }
  func.func @transform_0(%arg0: i32) -> (i32, i32, i32) {
    %c0_i32 = arith.constant 0 : i32
    %c0_i32_0 = arith.constant 0 : i32
    %c0_i32_1 = arith.constant 0 : i32
    return %arg0, %c0_i32, %c0_i32_0 : i32, i32, i32
  }
  func.func @transform_1(%arg0: i32) -> (i32, i32, i32) {
    %c0_i32 = arith.constant 0 : i32
    %c0_i32_0 = arith.constant 0 : i32
    %c0_i32_1 = arith.constant 0 : i32
    %c0_i32_2 = arith.constant 0 : i32
    return %c0_i32, %c0_i32_0, %c0_i32_1 : i32, i32, i32
  }
  func.func @transform_2(%arg0: i32) -> (i32, i32, i32) {
    %c0_i32 = arith.constant 0 : i32
    %c0_i32_0 = arith.constant 0 : i32
    %c0_i32_1 = arith.constant 0 : i32
    %c0_i32_2 = arith.constant 0 : i32
    return %c0_i32, %c0_i32_0, %c0_i32_1 : i32, i32, i32
  }
  func.func @transform_3(%arg0: i32) -> (i32, i32, i32) {
    %c0_i32 = arith.constant 0 : i32
    %c0_i32_0 = arith.constant 0 : i32
    %c0_i32_1 = arith.constant 0 : i32
    return %arg0, %c0_i32, %c0_i32_0 : i32, i32, i32
  }
}

module attributes {stable_mosaic.version = 11 : i64} {
  func.func @_ln_meanpool_kernel(%arg0: i32, %arg1: memref<2x16x32xf32, #tpu.memory_space<vmem>>, %arg2: memref<1x32xf32, #tpu.memory_space<vmem>>, %arg3: memref<1x32xf32, #tpu.memory_space<vmem>>, %arg4: memref<2x32xf32, #tpu.memory_space<vmem>>) attributes {dimension_semantics = [#tpu.dimension_semantics<parallel>], iteration_bounds = array<i64: 1>, scalar_prefetch = 0 : i64, scratch_operands = 0 : i64, tpu.core_type = #tpu.core_type<tc>, window_params = [{transform_indices = @transform_0, window_bounds = array<i64: 2, 16, 32>}, {pipeline_mode = #tpu.pipeline_mode<synchronous>, transform_indices = @transform_1, window_bounds = array<i64: 1, 32>}, {pipeline_mode = #tpu.pipeline_mode<synchronous>, transform_indices = @transform_2, window_bounds = array<i64: 1, 32>}, {transform_indices = @transform_3, window_bounds = array<i64: 2, 32>}]} {
    %c0 = arith.constant 0 : index
    %c0_0 = arith.constant 0 : index
    %c0_1 = arith.constant 0 : index
    %0 = vector.load %arg1[%c0, %c0_0, %c0_1] : memref<2x16x32xf32, #tpu.memory_space<vmem>>, vector<2x16x32xf32>
    %c0_2 = arith.constant 0 : index
    %c0_3 = arith.constant 0 : index
    %1 = vector.load %arg2[%c0_2, %c0_3] : memref<1x32xf32, #tpu.memory_space<vmem>>, vector<1x32xf32>
    %c0_4 = arith.constant 0 : index
    %c0_5 = arith.constant 0 : index
    %2 = vector.load %arg3[%c0_4, %c0_5] : memref<1x32xf32, #tpu.memory_space<vmem>>, vector<1x32xf32>
    %cst = arith.constant dense<0.000000e+00> : vector<2x16xf32>
    %3 = vector.multi_reduction <add>, %0, %cst [2] : vector<2x16x32xf32> to vector<2x16xf32>
    %4 = vector.shape_cast %3 : vector<2x16xf32> to vector<2x16x1xf32>
    %cst_6 = arith.constant 3.200000e+01 : f32
    %5 = vector.broadcast %cst_6 : f32 to vector<2x16x1xf32>
    %6 = arith.divf %4, %5 : vector<2x16x1xf32>
    %7 = vector.broadcast %6 : vector<2x16x1xf32> to vector<2x16x32xf32>
    %8 = arith.subf %0, %7 : vector<2x16x32xf32>
    %9 = arith.mulf %8, %8 : vector<2x16x32xf32>
    %cst_7 = arith.constant dense<0.000000e+00> : vector<2x16xf32>
    %10 = vector.multi_reduction <add>, %9, %cst_7 [2] : vector<2x16x32xf32> to vector<2x16xf32>
    %11 = vector.shape_cast %10 : vector<2x16xf32> to vector<2x16x1xf32>
    %cst_8 = arith.constant 3.200000e+01 : f32
    %12 = vector.broadcast %cst_8 : f32 to vector<2x16x1xf32>
    %13 = arith.divf %11, %12 : vector<2x16x1xf32>
    %14 = vector.broadcast %6 : vector<2x16x1xf32> to vector<2x16x32xf32>
    %15 = arith.subf %0, %14 : vector<2x16x32xf32>
    %cst_9 = arith.constant 9.99999974E-6 : f32
    %16 = vector.broadcast %cst_9 : f32 to vector<2x16x1xf32>
    %17 = arith.addf %13, %16 : vector<2x16x1xf32>
    %18 = math.rsqrt %17 : vector<2x16x1xf32>
    %19 = vector.broadcast %18 : vector<2x16x1xf32> to vector<2x16x32xf32>
    %20 = arith.mulf %15, %19 : vector<2x16x32xf32>
    %21 = vector.shape_cast %1 : vector<1x32xf32> to vector<1x1x32xf32>
    %22 = vector.broadcast %21 : vector<1x1x32xf32> to vector<2x16x32xf32>
    %23 = arith.mulf %20, %22 : vector<2x16x32xf32>
    %24 = vector.shape_cast %2 : vector<1x32xf32> to vector<1x1x32xf32>
    %25 = vector.broadcast %24 : vector<1x1x32xf32> to vector<2x16x32xf32>
    %26 = arith.addf %23, %25 : vector<2x16x32xf32>
    %cst_10 = arith.constant dense<0.000000e+00> : vector<2x32xf32>
    %27 = vector.multi_reduction <add>, %26, %cst_10 [1] : vector<2x16x32xf32> to vector<2x32xf32>
    %cst_11 = arith.constant 1.600000e+01 : f32
    %28 = vector.broadcast %cst_11 : f32 to vector<2x32xf32>
    %29 = arith.divf %27, %28 : vector<2x32xf32>
    %c0_12 = arith.constant 0 : index
    %c0_13 = arith.constant 0 : index
    %30 = vector.load %arg4[%c0_12, %c0_13] : memref<2x32xf32, #tpu.memory_space<vmem>>, vector<2x32xf32>
    tpu.vector_store %arg4[%c0_12, %c0_13], %29 {strides = array<i32>} : memref<2x32xf32, #tpu.memory_space<vmem>>, vector<2x32xf32>,
    return
  }
  func.func @transform_0(%arg0: i32) -> (i32, i32, i32) {
    %c0_i32 = arith.constant 0 : i32
    %c0_i32_0 = arith.constant 0 : i32
    %c0_i32_1 = arith.constant 0 : i32
    return %arg0, %c0_i32, %c0_i32_0 : i32, i32, i32
  }
  func.func @transform_1(%arg0: i32) -> (i32, i32) {
    %c0_i32 = arith.constant 0 : i32
    %c0_i32_0 = arith.constant 0 : i32
    %c0_i32_1 = arith.constant 0 : i32
    return %c0_i32, %c0_i32_0 : i32, i32
  }
  func.func @transform_2(%arg0: i32) -> (i32, i32) {
    %c0_i32 = arith.constant 0 : i32
    %c0_i32_0 = arith.constant 0 : i32
    %c0_i32_1 = arith.constant 0 : i32
    return %c0_i32, %c0_i32_0 : i32, i32
  }
  func.func @transform_3(%arg0: i32) -> (i32, i32) {
    %c0_i32 = arith.constant 0 : i32
    %c0_i32_0 = arith.constant 0 : i32
    return %arg0, %c0_i32 : i32, i32
  }
}

module attributes {stable_mosaic.version = 11 : i64} {
  func.func @_matmul_kernel(%arg0: i32, %arg1: i32, %arg2: i32, %arg3: memref<2x32xf32, #tpu.memory_space<vmem>>, %arg4: memref<32x10xbf16, #tpu.memory_space<vmem>>, %arg5: memref<1x10xf32, #tpu.memory_space<vmem>>, %arg6: memref<2x10xf32, #tpu.memory_space<vmem>>, %arg7: memref<2x10xf32, #tpu.memory_space<vmem>>) attributes {dimension_semantics = [#tpu.dimension_semantics<parallel>, #tpu.dimension_semantics<parallel>, #tpu.dimension_semantics<arbitrary>], iteration_bounds = array<i64: 1, 1, 1>, scalar_prefetch = 0 : i64, scratch_operands = 1 : i64, tpu.core_type = #tpu.core_type<tc>, window_params = [{transform_indices = @transform_0, window_bounds = array<i64: 2, 32>}, {transform_indices = @transform_1, window_bounds = array<i64: 32, 10>}, {transform_indices = @transform_2, window_bounds = array<i64: 1, 10>}, {transform_indices = @transform_3, window_bounds = array<i64: 2, 10>}]} {
    %c0_i32 = arith.constant 0 : i32
    %0 = arith.cmpi eq, %arg2, %c0_i32 : i32
    %1 = arith.extui %0 : i1 to i32
    %c0_i32_0 = arith.constant 0 : i32
    %2 = arith.cmpi ne, %1, %c0_i32_0 : i32
    scf.if %2 {
      %cst_10 = arith.constant 0.000000e+00 : f32
      %13 = vector.broadcast %cst_10 : f32 to vector<2x10xf32>
      %c0_11 = arith.constant 0 : index
      %c0_12 = arith.constant 0 : index
      %14 = vector.load %arg7[%c0_11, %c0_12] : memref<2x10xf32, #tpu.memory_space<vmem>>, vector<2x10xf32>
      tpu.vector_store %arg7[%c0_11, %c0_12], %13 {strides = array<i32>} : memref<2x10xf32, #tpu.memory_space<vmem>>, vector<2x10xf32>,
    } else {
    }
    %c0 = arith.constant 0 : index
    %c0_1 = arith.constant 0 : index
    %3 = vector.load %arg7[%c0, %c0_1] : memref<2x10xf32, #tpu.memory_space<vmem>>, vector<2x10xf32>
    %c0_2 = arith.constant 0 : index
    %c0_3 = arith.constant 0 : index
    %4 = vector.load %arg3[%c0_2, %c0_3] : memref<2x32xf32, #tpu.memory_space<vmem>>, vector<2x32xf32>
    %5 = arith.truncf %4 : vector<2x32xf32> to vector<2x32xbf16>
    %c0_4 = arith.constant 0 : index
    %c0_5 = arith.constant 0 : index
    %6 = vector.load %arg4[%c0_4, %c0_5] : memref<32x10xbf16, #tpu.memory_space<vmem>>, vector<32x10xbf16>
    %cst = arith.constant dense<0.000000e+00> : vector<2x10xf32>
    %7 = tpu.matmul %5, %6, %cst {dimension_numbers = #tpu.dot_dimension_numbers<[1], [0], [0], [1], [0, 0, 1, 1], [], []>} : vector<2x32xbf16>, vector<32x10xbf16>, vector<2x10xf32> -> vector<2x10xf32>
    %8 = arith.addf %3, %7 : vector<2x10xf32>
    %c0_6 = arith.constant 0 : index
    %c0_7 = arith.constant 0 : index
    %9 = vector.load %arg7[%c0_6, %c0_7] : memref<2x10xf32, #tpu.memory_space<vmem>>, vector<2x10xf32>
    tpu.vector_store %arg7[%c0_6, %c0_7], %8 {strides = array<i32>} : memref<2x10xf32, #tpu.memory_space<vmem>>, vector<2x10xf32>,
    %c0_i32_8 = arith.constant 0 : i32
    %10 = arith.cmpi eq, %arg2, %c0_i32_8 : i32
    %11 = arith.extui %10 : i1 to i32
    %c0_i32_9 = arith.constant 0 : i32
    %12 = arith.cmpi ne, %11, %c0_i32_9 : i32
    scf.if %12 {
      %c0_10 = arith.constant 0 : index
      %c0_11 = arith.constant 0 : index
      %13 = vector.load %arg7[%c0_10, %c0_11] : memref<2x10xf32, #tpu.memory_space<vmem>>, vector<2x10xf32>
      %c0_12 = arith.constant 0 : index
      %c0_13 = arith.constant 0 : index
      %14 = vector.load %arg5[%c0_12, %c0_13] : memref<1x10xf32, #tpu.memory_space<vmem>>, vector<1x10xf32>
      %15 = vector.broadcast %14 : vector<1x10xf32> to vector<2x10xf32>
      %16 = arith.addf %13, %15 : vector<2x10xf32>
      %c0_14 = arith.constant 0 : index
      %c0_15 = arith.constant 0 : index
      %17 = vector.load %arg6[%c0_14, %c0_15] : memref<2x10xf32, #tpu.memory_space<vmem>>, vector<2x10xf32>
      tpu.vector_store %arg6[%c0_14, %c0_15], %16 {strides = array<i32>} : memref<2x10xf32, #tpu.memory_space<vmem>>, vector<2x10xf32>,
    } else {
    }
    return
  }
  func.func @transform_0(%arg0: i32, %arg1: i32, %arg2: i32) -> (i32, i32) {
    %c0_i32 = arith.constant 0 : i32
    return %arg0, %arg2 : i32, i32
  }
  func.func @transform_1(%arg0: i32, %arg1: i32, %arg2: i32) -> (i32, i32) {
    %c0_i32 = arith.constant 0 : i32
    return %arg2, %arg1 : i32, i32
  }
  func.func @transform_2(%arg0: i32, %arg1: i32, %arg2: i32) -> (i32, i32) {
    %c0_i32 = arith.constant 0 : i32
    %c0_i32_0 = arith.constant 0 : i32
    return %c0_i32, %arg1 : i32, i32
  }
  func.func @transform_3(%arg0: i32, %arg1: i32, %arg2: i32) -> (i32, i32) {
    %c0_i32 = arith.constant 0 : i32
    return %arg0, %arg1 : i32, i32
  }
}

</mosaic_0001>

<bundles_post_ra>
// kernel: swin_forward.21
= control target key start
LH: loop header
LB: loop body
LE: loop exit
PB: predicated region body
PF: predicated region fallthrough
CT: control target
= control target key end

     0   :  { %s777_s18 = smov 0   ;;  %s779_s19 = smov 0   ;;  %s901_s0 = inlined_call_operand.vmem [shape: f32[128,16], index: 0, kind: input, shape index: {}]   ;;  %s902_s1 = inlined_call_operand.vmem [shape: f32[1,16], index: 1, kind: input, shape index: {}]   ;;  %s903_s2 = inlined_call_operand.vmem [shape: f32[1,16], index: 2, kind: input, shape index: {}]   ;;  %s904_s3 = inlined_call_operand.vmem [shape: bf16[16,48], index: 3, kind: input, shape index: {}]   ;;  %s905_s4 = inlined_call_operand.vmem [shape: f32[1,48], index: 4, kind: input, shape index: {}]   ;;  %s906_s5 = inlined_call_operand.vmem [shape: f32[128,48], index: 5, kind: output, shape index: {}]  }
   0x1   :  { %s781_s20 = smov 0  }
   0x2 LB: > { %s27_s21 = sadd.s32 1, %s741_s19  ;;  %p650_p0 = scmp.ge.s32.totalorder %s745_s20, 1  ;;  %s745_s20 = sphi %s781_s20, %s15_s20   ;;  %s741_s19 = sphi %s779_s19, %s908_s19   ;;  %s737_s18 = sphi %s777_s18, %s907_s18  }
   0x3   : > { %p29_p1 = scmp.ge.s32.totalorder %s27_s21, 2  ;;  %p219_p2 = scmp.lt.s32.totalorder %s745_s20, 3 }
   0x5   : > { %s910_s21 = smov (%p29_p1, %s27_s21), 0  ;;  %p220_p3 = pnand %p650_p0, %p219_p2 }
   0x6   : > { %s651_s22 = sshll.u32 (!%p220_p3), %s737_s18, 3  ;;  %vm294_vm0 = vcmask (!%p220_p3), 130048   ;;  %v706_v56 = vld [vmem:[%s904_s3] sm:$0xff] (!%p220_p3)   ;;  %vm533_vm1 = vcmask (!%p220_p3), 392192  }
   0x7   : > { %223 = sbr.rel (%p220_p3) target bundleno = 575 (0x23f), region = 40  ;;  %p258_p4 = scmp.lt.s32.totalorder (!%p220_p3), %s651_s22, 15  ;;  %670 = vmatprep.subr.bf16.mxu0 (!%p220_p3), %v706_v56  ;;  %680 = vmatprep.subr.bf16.mxu1 (!%p220_p3), %v706_v56 }
   0x8   : > { %671 = vmatpush3.bf16.msra.mxu0 (!%p220_p3), %v706_v56  ;;  %681 = vmatpush3.bf16.msra.mxu1 (!%p220_p3), %v706_v56 }
   0xe   : > { %s912_s22 = smov (!%p258_p4, %s651_s22), 15 }
   0xf   : > { %s652_s23 = sshll.u32 %s912_s22, 3 }
  0x10   : > { %s261_s26 = scalar_lea.vmem %s901_s0, %s652_s23  ;;  %s277_s12 = scalar_lea.vmem %s906_s5, %s652_s23 }
  0x11   : > { %v284_v0 = vld [vmem:[%s261_s26] sm:$0xff]  ;;  %v285_v2 = vld [vmem:[%s261_s26 + $0x8] sm:$0xff]  ;;  %v286_v8 = vld [vmem:[%s261_s26 + $0x10] sm:$0xff] }
  0x12   : > { %v288_v1 = vld [vmem:[%s261_s26 + $0x20] sm:$0xff]  ;;  %v295_v3 = vsel %vm294_vm0, %v284_v0, 0.0  ;;  %v289_v5 = vld [vmem:[%s261_s26 + $0x28] sm:$0xff]  ;;  %v298_v6 = vsel %vm294_vm0, %v285_v2, 0.0  ;;  %v287_v9 = vld [vmem:[%s261_s26 + $0x18] sm:$0xff]  ;;  %v301_v10 = vsel %vm294_vm0, %v286_v8, 0.0 }
  0x13   : > { %v307_v4 = vsel %vm294_vm0, %v288_v1, 0.0  ;;  %296 = vadd.xlane.f32.xlu0 %v295_v3  ;;  %v310_v7 = vsel %vm294_vm0, %v289_v5, 0.0  ;;  %v304_v11 = vsel %vm294_vm0, %v287_v9, 0.0  ;;  %v290_v12 = vld [vmem:[%s261_s26 + $0x30] sm:$0xff]  ;;  %v291_v13 = vld [vmem:[%s261_s26 + $0x38] sm:$0xff] }
  0x14   : > { %308 = vadd.xlane.f32.xlu1 %v307_v4  ;;  %v313_v14 = vsel %vm294_vm0, %v290_v12, 0.0  ;;  %v316_v15 = vsel %vm294_vm0, %v291_v13, 0.0 }
  0x17   : > { %299 = vadd.xlane.f32.xlu0 %v298_v6 }
  0x18   : > { %311 = vadd.xlane.f32.xlu1 %v310_v7 }
  0x1b   : > { %302 = vadd.xlane.f32.xlu0 %v301_v10 }
  0x1c   : > { %305 = vadd.xlane.f32.xlu1 %v304_v11 }
  0x1f   : > { %314 = vadd.xlane.f32.xlu0 %v313_v14 }
  0x20   : > { %317 = vadd.xlane.f32.xlu1 %v316_v15 }
  0xa0   : > { %v297_v16 = vpop.xlane.xlu0 %296 }
  0xa1   : > { %v309_v17 = vpop.xlane.xlu1 %308  ;;  %v320_v18 = vmul.f32 0.0625, %v297_v16 }
  0xa2   : > { %v324_v19 = vmul.f32 0.0625, %v309_v17  ;;  %v655_v17 = vld [vmem:[%s902_s1] ss:$0 sm:$0xff] }
  0xa3   : > { %v811_v20 = vsub.f32 %v284_v0, %v320_v18 }
  0xa4   : > { %v813_v21 = vsub.f32 %v288_v1, %v324_v19  ;;  %v300_v22 = vpop.xlane.xlu0 %299 }
  0xa5   : > { %v312_v23 = vpop.xlane.xlu1 %311  ;;  %v321_v24 = vmul.f32 0.0625, %v300_v22  ;;  %v336_v26 = vmul.f32 %v811_v20, %v811_v20 }
  0xa6   : > { %v325_v25 = vmul.f32 0.0625, %v312_v23  ;;  %v340_v27 = vmul.f32 %v813_v21, %v813_v21 }
  0xa7   : > { %v819_v28 = vsub.f32 %v285_v2, %v321_v24  ;;  %v344_v30 = vsel %vm294_vm0, %v336_v26, 0.0  ;;  %v656_v26 = vld [vmem:[%s903_s2] ss:$0 sm:$0xff] }
  0xa8   : > { %v821_v29 = vsub.f32 %v289_v5, %v325_v25  ;;  %345 = vadd.xlane.f32.xlu0 %v344_v30  ;;  %v303_v31 = vpop.xlane.xlu0 %302  ;;  %v356_v33 = vsel %vm294_vm0, %v340_v27, 0.0 }
  0xa9   : > { %v306_v32 = vpop.xlane.xlu1 %305  ;;  %v322_v34 = vmul.f32 0.0625, %v303_v31  ;;  %v337_v36 = vmul.f32 %v819_v28, %v819_v28 }
  0xaa   : > { %v323_v35 = vmul.f32 0.0625, %v306_v32  ;;  %v341_v37 = vmul.f32 %v821_v29, %v821_v29 }
  0xab   : > { %v829_v38 = vsub.f32 %v286_v8, %v322_v34  ;;  %v347_v40 = vsel %vm294_vm0, %v337_v36, 0.0 }
  0xac   : > { %v831_v39 = vsub.f32 %v287_v9, %v323_v35  ;;  %357 = vadd.xlane.f32.xlu0 %v356_v33  ;;  %348 = vadd.xlane.f32.xlu1 %v347_v40  ;;  %v315_v41 = vpop.xlane.xlu0 %314  ;;  %v359_v43 = vsel %vm294_vm0, %v341_v37, 0.0 }
  0xad   : > { %v318_v42 = vpop.xlane.xlu1 %317  ;;  %v326_v44 = vmul.f32 0.0625, %v315_v41  ;;  %v338_v46 = vmul.f32 %v829_v38, %v829_v38 }
  0xae   : > { %v327_v45 = vmul.f32 0.0625, %v318_v42  ;;  %v339_v47 = vmul.f32 %v831_v39, %v831_v39 }
  0xaf   : > { %v839_v48 = vsub.f32 %v290_v12, %v326_v44  ;;  %v350_v50 = vsel %vm294_vm0, %v338_v46, 0.0 }
  0xb0   : > { %v841_v49 = vsub.f32 %v291_v13, %v327_v45  ;;  %360 = vadd.xlane.f32.xlu1 %v359_v43  ;;  %351 = vadd.xlane.f32.xlu0 %v350_v50  ;;  %v353_v51 = vsel %vm294_vm0, %v339_v47, 0.0 }
  0xb1   : > { %v342_v52 = vmul.f32 %v839_v48, %v839_v48 }
  0xb2   : > { %v343_v53 = vmul.f32 %v841_v49, %v841_v49 }
  0xb3   : > { %v362_v54 = vsel %vm294_vm0, %v342_v52, 0.0 }
  0xb4   : > { %354 = vadd.xlane.f32.xlu1 %v353_v51  ;;  %363 = vadd.xlane.f32.xlu0 %v362_v54  ;;  %v365_v55 = vsel %vm294_vm0, %v343_v53, 0.0 }
  0xb8   : > { %366 = vadd.xlane.f32.xlu1 %v365_v55 }
 0x135   : > { %v346_v57 = vpop.xlane.xlu0 %345 }
 0x136   : > { %v368_v58 = vmul.f32 0.0625, %v346_v57 }
 0x138   : > { %v376_v59 = vadd.f32 1e-05, %v368_v58 }
 0x139   : > { %v349_v60 = vpop.xlane.xlu1 %348  ;;  %v358_v61 = vpop.xlane.xlu0 %357 }
 0x13a   : > { %707 = vrsqrt.f32 %v376_v59  ;;  %v369_v62 = vmul.f32 0.0625, %v349_v60  ;;  %v372_v63 = vmul.f32 0.0625, %v358_v61  ;;  %v657_v59 = vld [vmem:[%s905_s4] ss:$0 sm:$0xff] }
 0x13c   : > { %v377_v0 = vadd.f32 1e-05, %v369_v62  ;;  %v380_v1 = vadd.f32 1e-05, %v372_v63 }
 0x13d   : > { %v361_v2 = vpop.xlane.xlu1 %360  ;;  %v352_v3 = vpop.xlane.xlu0 %351 }
 0x13e   : > { %709 = vrsqrt.f32 %v377_v0  ;;  %v373_v4 = vmul.f32 0.0625, %v361_v2  ;;  %v370_v5 = vmul.f32 0.0625, %v352_v3 }
 0x13f   : > { %711 = vrsqrt.f32 %v380_v1 }
 0x140   : > { %v381_v6 = vadd.f32 1e-05, %v373_v4  ;;  %v378_v7 = vadd.f32 1e-05, %v370_v5 }
 0x141   : > { %v355_v8 = vpop.xlane.xlu1 %354  ;;  %v364_v9 = vpop.xlane.xlu0 %363 }
 0x142   : > { %713 = vrsqrt.f32 %v381_v6  ;;  %v371_v10 = vmul.f32 0.0625, %v355_v8  ;;  %v374_v11 = vmul.f32 0.0625, %v364_v9 }
 0x143   : > { %715 = vrsqrt.f32 %v378_v7 }
 0x144   : > { %v708_v12 = vpop.eup %707  ;;  %v379_v13 = vadd.f32 1e-05, %v371_v10  ;;  %v382_v14 = vadd.f32 1e-05, %v374_v11 }
 0x145   : > { %v392_v15 = vmul.f32 %v708_v12, %v811_v20  ;;  %v367_v16 = vpop.xlane.xlu1 %366 }
 0x146   : > { %717 = vrsqrt.f32 %v379_v13  ;;  %v375_v18 = vmul.f32 0.0625, %v367_v16 }
 0x147   : > { %719 = vrsqrt.f32 %v382_v14  ;;  %v406_v24 = vmul.f32 %v655_v17, %v392_v15 }
 0x148   : > { %v710_v19 = vpop.eup %709  ;;  %v383_v22 = vadd.f32 1e-05, %v375_v18 }
 0x149   : > { %v712_v23 = vpop.eup %711  ;;  %v393_v25 = vmul.f32 %v710_v19, %v819_v28  ;;  %v420_v32 = vadd.f32 %v656_v26, %v406_v24 }
 0x14a   : > { %v396_v20 = vmul.f32 %v712_v23, %v813_v21  ;;  %721 = vrsqrt.f32 %v383_v22 }
 0x14b   : > { %v407_v27 = vmul.f32 %v655_v17, %v393_v25 }
 0x14c   : > { %v714_v30 = vpop.eup %713  ;;  %v410_v34 = vmul.f32 %v655_v17, %v396_v20 }
 0x14d   : > { %v716_v31 = vpop.eup %715  ;;  %v421_v33 = vadd.f32 %v656_v26, %v407_v27  ;;  %v397_v35 = vmul.f32 %v714_v30, %v821_v29 }
 0x14e   : > { %v394_v36 = vmul.f32 %v716_v31, %v829_v38  ;;  %v424_v42 = vadd.f32 %v656_v26, %v410_v34 }
 0x14f   : > { %v428_v37 = vpack.c.bf16 %v421_v33, %v420_v32  ;;  %v411_v40 = vmul.f32 %v655_v17, %v397_v35 }
 0x150   : > { %v718_v28 = vpop.eup %717  ;;  %v408_v21 = vmul.f32 %v655_v17, %v394_v36 }
 0x151   : > { %v720_v41 = vpop.eup %719  ;;  %432 = vst.msk [vmem:[#allocation2] sm:$0xff] %vm294_vm0, %v428_v37  ;;  %v425_v43 = vadd.f32 %v656_v26, %v411_v40  ;;  %v395_v44 = vmul.f32 %v718_v28, %v831_v39 }
 0x152   : > { %v398_v45 = vmul.f32 %v720_v41, %v839_v48  ;;  %v422_v29 = vadd.f32 %v656_v26, %v408_v21 }
 0x153   : > { %v430_v46 = vpack.c.bf16 %v425_v43, %v424_v42  ;;  %v409_v47 = vmul.f32 %v655_v17, %v395_v44 }
 0x154   : > { %v722_v50 = vpop.eup %721  ;;  %v412_v51 = vmul.f32 %v655_v17, %v398_v45 }
 0x155   : > { %434 = vst.msk [vmem:[#allocation2 + $0x10] sm:$0xff] %vm294_vm0, %v430_v46  ;;  %v423_v38 = vadd.f32 %v656_v26, %v409_v47  ;;  %v399_v52 = vmul.f32 %v722_v50, %v841_v49 }
 0x156   : > { %v426_v56 = vadd.f32 %v656_v26, %v412_v51 }
 0x157   : > { %v429_v53 = vpack.c.bf16 %v423_v38, %v422_v29  ;;  %v413_v54 = vmul.f32 %v655_v17, %v399_v52 }
 0x158   : > { %v436_v55 = vld [vmem:[#allocation2] sm:$0xff] }
 0x159   : > { %433 = vst.msk [vmem:[#allocation2 + $0x8] sm:$0xff] %vm294_vm0, %v429_v53  ;;  %v427_v39 = vadd.f32 %v656_v26, %v413_v54  ;;  %672 = vmatprep.mubr.msk.bf16.mxu0 %vm294_vm0, %v436_v55 }
 0x15b   : > { %v431_v48 = vpack.c.bf16 %v427_v39, %v426_v56 }
 0x15c   : > { %v438_v57 = vld [vmem:[#allocation2 + $0x10] sm:$0xff] }
 0x15d   : > { %435 = vst.msk [vmem:[#allocation2 + $0x18] sm:$0xff] %vm294_vm0, %v431_v48  ;;  %676 = vmatprep.mubr.msk.bf16.mxu1 %vm294_vm0, %v438_v57 }
 0x160   : > { %v437_v58 = vld [vmem:[#allocation2 + $0x8] sm:$0xff] }
 0x161   : > { %673 = vmatmul.mubr.msk.bf16.vlgmr.msra.gmra.mrb[0].mxu0 %vm294_vm0, %v437_v58 }
 0x164   : > { %v439_v49 = vld [vmem:[#allocation2 + $0x18] sm:$0xff] }
 0x165   : > { %677 = vmatmul.mubr.msk.bf16.vlgmr.msra.gmra.mrb[0].mxu1 %vm294_vm0, %v439_v49 }
 0x234   : > { %v674_v60 = vpop.f32.mrb[0].mxu0 }
 0x235   : > { %v511_v61 = vadd.f32 %v674_v60, %v657_v59  ;;  %v502_v62 = vpop.f32.mrb[1].mxu0 }
 0x236   : > { %v503_v63 = vadd.f32 %v657_v59, %v502_v62  ;;  %v675_v0 = vpop.f32.mrb[2].mxu0 }
 0x237   : > { %536 = vst.msk [vmem:[%s277_s12 + $0x10] sm:$0xff] %vm533_vm1, %v511_v61  ;;  %v514_v1 = vadd.f32 %v675_v0, %v657_v59  ;;  %v505_v2 = vpop.f32.mrb[3].mxu0 }
 0x238   : > { %534 = vst.msk [vmem:[%s277_s12] sm:$0xff] %vm533_vm1, %v503_v63  ;;  %v506_v3 = vadd.f32 %v657_v59, %v505_v2  ;;  %v678_v4 = vpop.f32.mrb[0].mxu1 }
 0x239   : > { %537 = vst.msk [vmem:[%s277_s12 + $0x18] sm:$0xff] %vm533_vm1, %v514_v1  ;;  %v527_v5 = vadd.f32 %v678_v4, %v657_v59  ;;  %v518_v6 = vpop.f32.mrb[1].mxu1 }
 0x23a   : > { %535 = vst.msk [vmem:[%s277_s12 + $0x8] sm:$0xff] %vm533_vm1, %v506_v3  ;;  %v519_v7 = vadd.f32 %v657_v59, %v518_v6  ;;  %v679_v8 = vpop.f32.mrb[2].mxu1 }
 0x23b   : > { %540 = vst.msk [vmem:[%s277_s12 + $0x30] sm:$0xff] %vm533_vm1, %v527_v5  ;;  %v530_v9 = vadd.f32 %v679_v8, %v657_v59  ;;  %v521_v10 = vpop.f32.mrb[3].mxu1 }
 0x23c   : > { %538 = vst.msk [vmem:[%s277_s12 + $0x20] sm:$0xff] %vm533_vm1, %v519_v7  ;;  %v522_v11 = vadd.f32 %v657_v59, %v521_v10 }
 0x23d   : > { %541 = vst.msk [vmem:[%s277_s12 + $0x38] sm:$0xff] %vm533_vm1, %v530_v9 }
 0x23e   : > { %539 = vst.msk [vmem:[%s277_s12 + $0x28] sm:$0xff] %vm533_vm1, %v522_v11 }
 0x23f PF: > { %s15_s20 = sadd.s32 1, %s745_s20   ;;  %s907_s18 = smov %s741_s19 }
 0x240   : > { %p12_p5 = scmp.ge.s32.totalorder %s15_s20, 4   ;;  %s908_s19 = smov %s910_s21 }
 0x242   :  { %14 = sbr.rel (!%p12_p5) target bundleno = 2 (0x2), region = 80 }

// kernel: swin_forward.20
= control target key start
LH: loop header
LB: loop body
LE: loop exit
PB: predicated region body
PF: predicated region fallthrough
CT: control target
= control target key end

     0   :  { %s826_s18 = smov 0   ;;  %s828_s19 = smov 0   ;;  %s978_s0 = inlined_call_operand.vmem [shape: f32[128,48], index: 0, kind: input, shape index: {}]   ;;  %s979_s1 = inlined_call_operand.vmem [shape: bf16[48,16], index: 1, kind: input, shape index: {}]   ;;  %s980_s2 = inlined_call_operand.vmem [shape: f32[1,16], index: 2, kind: input, shape index: {}]   ;;  %s981_s3 = inlined_call_operand.vmem [shape: f32[1,16], index: 3, kind: input, shape index: {}]   ;;  %s982_s4 = inlined_call_operand.vmem [shape: f32[1,16], index: 4, kind: input, shape index: {}]   ;;  %s983_s5 = inlined_call_operand.vmem [shape: f32[128,16], index: 5, kind: output, shape index: {}]  }
   0x1   :  { %s830_s20 = smov 0  }
   0x2 LB: > { %s27_s21 = sadd.s32 1, %s789_s19  ;;  %p683_p0 = scmp.ge.s32.totalorder %s793_s20, 1  ;;  %s793_s20 = sphi %s830_s20, %s15_s20   ;;  %s789_s19 = sphi %s828_s19, %s985_s19   ;;  %s785_s18 = sphi %s826_s18, %s984_s18  }
   0x3   : > { %p29_p1 = scmp.ge.s32.totalorder %s27_s21, 2  ;;  %p216_p2 = scmp.lt.s32.totalorder %s793_s20, 3 }
   0x5   : > { %s987_s21 = smov (%p29_p1, %s27_s21), 0  ;;  %p217_p3 = pnand %p683_p0, %p216_p2 }
   0x6   : > { %v752_v0 = vld [vmem:[%s979_s1] sm:$0xff] (!%p217_p3)   ;;  %s684_s24 = sshll.u32 (!%p217_p3), %s785_s18, 3  ;;  %v753_v1 = vld [vmem:[%s979_s1 + $0x8] sm:$0xff] (!%p217_p3)   ;;  %vm278_vm0 = vcmask (!%p217_p3), 130048   ;;  %v754_v2 = vld [vmem:[%s979_s1 + $0x10] sm:$0xff] (!%p217_p3)   ;;  %v795_v3 = vmov (!%p217_p3), 0.0  }
   0x7   : > { %220 = sbr.rel (%p217_p3) target bundleno = 576 (0x240), region = 40  ;;  %p253_p4 = scmp.lt.s32.totalorder (!%p217_p3), %s684_s24, 15  ;;  %707 = vmatprep.subr.bf16.mxu0 (!%p217_p3), %v752_v0  ;;  %721 = vmatprep.subr.bf16.mxu1 (!%p217_p3), %v752_v0  ;;  %281 = vst.msk [vmem:[#allocation2 + $0x10] sm:$0xff] (!%p217_p3), %vm278_vm0, %v795_v3  ;;  %279 = vst.msk [vmem:[#allocation2] sm:$0xff] (!%p217_p3), %vm278_vm0, %v795_v3  ;;  %vm331_vm1 = vcmask (!%p217_p3), 392192  }
   0x8   : > { %708 = vmatpush3.bf16.msra.mxu0 (!%p217_p3), %v752_v0  ;;  %724 = vmatpush3.bf16.msra.mxu1 (!%p217_p3), %v752_v0  ;;  %280 = vst.msk [vmem:[#allocation2 + $0x8] sm:$0xff] (!%p217_p3), %vm278_vm0, %v795_v3  ;;  %282 = vst.msk [vmem:[#allocation2 + $0x18] sm:$0xff] (!%p217_p3), %vm278_vm0, %v795_v3  ;;  %v695_v40 = vld [vmem:[%s980_s2] ss:$0 sm:$0xff] (!%p217_p3) }
   0x9   : > { %709 = vmatprep.subr.bf16.mxu0 (!%p217_p3), %v753_v1  ;;  %722 = vmatprep.subr.bf16.mxu1 (!%p217_p3), %v753_v1  ;;  %283 = vst.msk [vmem:[#allocation2 + $0x20] sm:$0xff] (!%p217_p3), %vm278_vm0, %v795_v3  ;;  %284 = vst.msk [vmem:[#allocation2 + $0x28] sm:$0xff] (!%p217_p3), %vm278_vm0, %v795_v3 }
   0xa   : > { %285 = vst.msk [vmem:[#allocation2 + $0x30] sm:$0xff] (!%p217_p3), %vm278_vm0, %v795_v3  ;;  %286 = vst.msk [vmem:[#allocation2 + $0x38] sm:$0xff] (!%p217_p3), %vm278_vm0, %v795_v3 }
   0xc   : > { %710 = vmatpush3.bf16.msra.mxu0 (!%p217_p3), %v753_v1  ;;  %725 = vmatpush3.bf16.msra.mxu1 (!%p217_p3), %v753_v1 }
   0xd   : > { %711 = vmatprep.subr.bf16.mxu0 (!%p217_p3), %v754_v2  ;;  %723 = vmatprep.subr.bf16.mxu1 (!%p217_p3), %v754_v2 }
   0xe   : > { %s989_s24 = smov (!%p253_p4, %s684_s24), 15  ;;  %v289_v16 = vld [vmem:[#allocation2 + $0x10] sm:$0xff]  ;;  %v287_v18 = vld [vmem:[#allocation2] sm:$0xff] }
   0xf   : > { %s685_s29 = sshll.u32 %s989_s24, 3  ;;  %v290_v22 = vld [vmem:[#allocation2 + $0x18] sm:$0xff]  ;;  %v288_v28 = vld [vmem:[#allocation2 + $0x8] sm:$0xff] }
  0x10   : > { %s259_s7 = scalar_lea.vmem %s978_s0, %s685_s29  ;;  %712 = vmatpush3.bf16.msra.mxu0 %v754_v2  ;;  %726 = vmatpush3.bf16.msra.mxu1 %v754_v2  ;;  %v291_v19 = vld [vmem:[#allocation2 + $0x20] sm:$0xff]  ;;  %v292_v29 = vld [vmem:[#allocation2 + $0x28] sm:$0xff]  ;;  %s944_s16 = scalar_lea.vmem %s983_s5, %s685_s29 }
  0x11   : > { %v295_v4 = vld [vmem:[%s259_s7] sm:$0xff]  ;;  %v296_v5 = vld [vmem:[%s259_s7 + $0x8] sm:$0xff]  ;;  %v297_v6 = vld [vmem:[%s259_s7 + $0x10] sm:$0xff] }
  0x12   : > { %v303_v7 = vpack.c.bf16 %v296_v5, %v295_v4  ;;  %v298_v8 = vld [vmem:[%s259_s7 + $0x18] sm:$0xff]  ;;  %v299_v9 = vld [vmem:[%s259_s7 + $0x20] sm:$0xff]  ;;  %v300_v10 = vld [vmem:[%s259_s7 + $0x28] sm:$0xff] }
  0x13   : > { %v305_v11 = vpack.c.bf16 %v300_v10, %v299_v9  ;;  %v301_v12 = vld [vmem:[%s259_s7 + $0x30] sm:$0xff]  ;;  %v302_v13 = vld [vmem:[%s259_s7 + $0x38] sm:$0xff]  ;;  %v304_v14 = vpack.c.bf16 %v298_v8, %v297_v6 }
  0x14   : > { %713 = vmatprep.mubr.msk.bf16.mxu0 %vm331_vm1, %v303_v7  ;;  %v306_v15 = vpack.c.bf16 %v302_v13, %v301_v12  ;;  %v293_v17 = vld [vmem:[#allocation2 + $0x30] sm:$0xff]  ;;  %v294_v23 = vld [vmem:[#allocation2 + $0x38] sm:$0xff] }
  0x15   : > { %717 = vmatprep.mubr.msk.bf16.mxu1 %vm331_vm1, %v305_v11  ;;  %714 = vmatmul.mubr.msk.bf16.vlgmr.msra.gmra.mrb[0].mxu0 %vm331_vm1, %v304_v14 }
  0x16   : > { %718 = vmatmul.mubr.msk.bf16.vlgmr.msra.gmra.mrb[0].mxu1 %vm331_vm1, %v306_v15 }
  0xe8   : > { %v715_v20 = vpop.f32.mrb[0].mxu0 }
  0xe9   : > { %v719_v21 = vpop.f32.mrb[0].mxu1  ;;  %v411_v24 = vadd.f32 %v715_v20, %v289_v16  ;;  %v378_v25 = vpop.f32.mrb[1].mxu0 }
  0xea   : > { %v415_v26 = vadd.f32 %v719_v21, %v293_v17  ;;  %v394_v27 = vpop.f32.mrb[1].mxu1  ;;  %v409_v30 = vadd.f32 %v378_v25, %v287_v18  ;;  %v716_v31 = vpop.f32.mrb[2].mxu0 }
  0xeb   : > { %v413_v32 = vadd.f32 %v394_v27, %v291_v19  ;;  %v720_v33 = vpop.f32.mrb[2].mxu1  ;;  %420 = vst.msk [vmem:[#allocation2 + $0x10] sm:$0xff] %vm278_vm0, %v411_v24  ;;  %v412_v34 = vadd.f32 %v716_v31, %v290_v22  ;;  %v381_v35 = vpop.f32.mrb[3].mxu0 }
  0xec   : > { %424 = vst.msk [vmem:[#allocation2 + $0x30] sm:$0xff] %vm278_vm0, %v415_v26  ;;  %v416_v36 = vadd.f32 %v720_v33, %v294_v23  ;;  %v397_v37 = vpop.f32.mrb[3].mxu1  ;;  %418 = vst.msk [vmem:[#allocation2] sm:$0xff] %vm278_vm0, %v409_v30  ;;  %v410_v38 = vadd.f32 %v381_v35, %v288_v28 }
  0xed   : > { %422 = vst.msk [vmem:[#allocation2 + $0x20] sm:$0xff] %vm278_vm0, %v413_v32  ;;  %v414_v39 = vadd.f32 %v397_v37, %v292_v29  ;;  %421 = vst.msk [vmem:[#allocation2 + $0x18] sm:$0xff] %vm278_vm0, %v412_v34 }
  0xee   : > { %425 = vst.msk [vmem:[#allocation2 + $0x38] sm:$0xff] %vm278_vm0, %v416_v36  ;;  %419 = vst.msk [vmem:[#allocation2 + $0x8] sm:$0xff] %vm278_vm0, %v410_v38 }
  0xef   : > { %423 = vst.msk [vmem:[#allocation2 + $0x28] sm:$0xff] %vm278_vm0, %v414_v39 }
  0xf2   : > { %v431_v41 = vld [vmem:[#allocation2 + $0x10] sm:$0xff] }
  0xf3   : > { %v446_v42 = vadd.f32 %v695_v40, %v431_v41  ;;  %v429_v43 = vld [vmem:[#allocation2] sm:$0xff]  ;;  %v435_v58 = vld [vmem:[#allocation2 + $0x30] sm:$0xff] }
  0xf4   : > { %v433_v44 = vld [vmem:[#allocation2 + $0x20] sm:$0xff]  ;;  %v444_v45 = vadd.f32 %v695_v40, %v429_v43  ;;  %v432_v46 = vld [vmem:[#allocation2 + $0x18] sm:$0xff]  ;;  %v450_v62 = vadd.f32 %v695_v40, %v435_v58 }
  0xf5   : > { %v448_v47 = vadd.f32 %v695_v40, %v433_v44  ;;  %v460_v48 = vsel %vm278_vm0, %v446_v42, 0.0  ;;  %v447_v49 = vadd.f32 %v695_v40, %v432_v46  ;;  %v430_v52 = vld [vmem:[#allocation2 + $0x8] sm:$0xff]  ;;  %v436_v57 = vld [vmem:[#allocation2 + $0x38] sm:$0xff] }
  0xf6   : > { %461 = vadd.xlane.f32.xlu1 %v460_v48  ;;  %v454_v50 = vsel %vm278_vm0, %v444_v45, 0.0  ;;  %v434_v51 = vld [vmem:[#allocation2 + $0x28] sm:$0xff]  ;;  %v445_v56 = vadd.f32 %v695_v40, %v430_v52  ;;  %v451_v60 = vadd.f32 %v695_v40, %v436_v57  ;;  %v472_v0 = vsel %vm278_vm0, %v450_v62, 0.0 }
  0xf7   : > { %455 = vadd.xlane.f32.xlu0 %v454_v50  ;;  %v466_v53 = vsel %vm278_vm0, %v448_v47, 0.0  ;;  %v463_v54 = vsel %vm278_vm0, %v447_v49, 0.0  ;;  %v449_v55 = vadd.f32 %v695_v40, %v434_v51 }
  0xf8   : > { %v457_v61 = vsel %vm278_vm0, %v445_v56, 0.0  ;;  %v475_v63 = vsel %vm278_vm0, %v451_v60, 0.0 }
  0xf9   : > { %v469_v59 = vsel %vm278_vm0, %v449_v55, 0.0 }
  0xfa   : > { %464 = vadd.xlane.f32.xlu1 %v463_v54 }
  0xfb   : > { %467 = vadd.xlane.f32.xlu0 %v466_v53 }
  0xfe   : > { %470 = vadd.xlane.f32.xlu1 %v469_v59 }
  0xff   : > { %458 = vadd.xlane.f32.xlu0 %v457_v61  ;;  %v696_v61 = vld [vmem:[%s981_s3] ss:$0 sm:$0xff] }
 0x102   : > { %476 = vadd.xlane.f32.xlu1 %v475_v63 }
 0x103   : > { %473 = vadd.xlane.f32.xlu0 %v472_v0 }
 0x183   : > { %v462_v1 = vpop.xlane.xlu1 %461 }
 0x184   : > { %v481_v2 = vmul.f32 0.0625, %v462_v1  ;;  %v456_v3 = vpop.xlane.xlu0 %455  ;;  %v697_v1 = vld [vmem:[%s982_s4] ss:$0 sm:$0xff] }
 0x185   : > { %v479_v4 = vmul.f32 0.0625, %v456_v3 }
 0x186   : > { %v892_v5 = vsub.f32 %v446_v42, %v481_v2 }
 0x187   : > { %v894_v6 = vsub.f32 %v444_v45, %v479_v4  ;;  %v465_v7 = vpop.xlane.xlu1 %464 }
 0x188   : > { %v482_v8 = vmul.f32 0.0625, %v465_v7  ;;  %v468_v9 = vpop.xlane.xlu0 %467  ;;  %v497_v10 = vmul.f32 %v892_v5, %v892_v5 }
 0x189   : > { %v483_v11 = vmul.f32 0.0625, %v468_v9  ;;  %v495_v14 = vmul.f32 %v894_v6, %v894_v6 }
 0x18a   : > { %v898_v12 = vsub.f32 %v447_v49, %v482_v8  ;;  %v509_v13 = vsel %vm278_vm0, %v497_v10, 0.0 }
 0x18b   : > { %v903_v15 = vsub.f32 %v448_v47, %v483_v11  ;;  %v471_v16 = vpop.xlane.xlu1 %470  ;;  %510 = vadd.xlane.f32.xlu0 %v509_v13  ;;  %v503_v22 = vsel %vm278_vm0, %v495_v14, 0.0 }
 0x18c   : > { %v484_v17 = vmul.f32 0.0625, %v471_v16  ;;  %v459_v18 = vpop.xlane.xlu0 %458  ;;  %v498_v19 = vmul.f32 %v898_v12, %v898_v12 }
 0x18d   : > { %v480_v20 = vmul.f32 0.0625, %v459_v18  ;;  %v499_v23 = vmul.f32 %v903_v15, %v903_v15 }
 0x18e   : > { %v512_v21 = vsel %vm278_vm0, %v498_v19, 0.0  ;;  %v911_v24 = vsub.f32 %v449_v55, %v484_v17 }
 0x18f   : > { %v913_v25 = vsub.f32 %v445_v56, %v480_v20  ;;  %513 = vadd.xlane.f32.xlu1 %v512_v21  ;;  %v477_v26 = vpop.xlane.xlu1 %476  ;;  %504 = vadd.xlane.f32.xlu0 %v503_v22  ;;  %v515_v31 = vsel %vm278_vm0, %v499_v23, 0.0 }
 0x190   : > { %v486_v27 = vmul.f32 0.0625, %v477_v26  ;;  %v474_v28 = vpop.xlane.xlu0 %473  ;;  %v500_v35 = vmul.f32 %v911_v24, %v911_v24 }
 0x191   : > { %v485_v29 = vmul.f32 0.0625, %v474_v28  ;;  %v496_v30 = vmul.f32 %v913_v25, %v913_v25 }
 0x192   : > { %v918_v32 = vsub.f32 %v451_v60, %v486_v27  ;;  %v518_v37 = vsel %vm278_vm0, %v500_v35, 0.0 }
 0x193   : > { %v920_v33 = vsub.f32 %v450_v62, %v485_v29  ;;  %516 = vadd.xlane.f32.xlu0 %v515_v31  ;;  %v506_v34 = vsel %vm278_vm0, %v496_v30, 0.0 }
 0x194   : > { %507 = vadd.xlane.f32.xlu1 %v506_v34  ;;  %v502_v39 = vmul.f32 %v918_v32, %v918_v32 }
 0x195   : > { %v501_v36 = vmul.f32 %v920_v33, %v920_v33 }
 0x196   : > { %v524_v40 = vsel %vm278_vm0, %v502_v39, 0.0 }
 0x197   : > { %v521_v38 = vsel %vm278_vm0, %v501_v36, 0.0 }
 0x198   : > { %519 = vadd.xlane.f32.xlu1 %v518_v37  ;;  %522 = vadd.xlane.f32.xlu0 %v521_v38 }
 0x19c   : > { %525 = vadd.xlane.f32.xlu1 %v524_v40 }
 0x218   : > { %v511_v41 = vpop.xlane.xlu0 %510 }
 0x219   : > { %v529_v42 = vmul.f32 0.0625, %v511_v41 }
 0x21b   : > { %v537_v43 = vadd.f32 1e-05, %v529_v42 }
 0x21c   : > { %v514_v44 = vpop.xlane.xlu1 %513  ;;  %v505_v45 = vpop.xlane.xlu0 %504 }
 0x21d   : > { %755 = vrsqrt.f32 %v537_v43  ;;  %v530_v46 = vmul.f32 0.0625, %v514_v44  ;;  %v527_v47 = vmul.f32 0.0625, %v505_v45 }
 0x21f   : > { %v538_v48 = vadd.f32 1e-05, %v530_v46  ;;  %v535_v49 = vadd.f32 1e-05, %v527_v47 }
 0x220   : > { %v517_v50 = vpop.xlane.xlu0 %516 }
 0x221   : > { %757 = vrsqrt.f32 %v538_v48  ;;  %v531_v51 = vmul.f32 0.0625, %v517_v50  ;;  %v508_v52 = vpop.xlane.xlu1 %507 }
 0x222   : > { %759 = vrsqrt.f32 %v535_v49  ;;  %v528_v53 = vmul.f32 0.0625, %v508_v52 }
 0x223   : > { %v539_v54 = vadd.f32 1e-05, %v531_v51 }
 0x224   : > { %v536_v55 = vadd.f32 1e-05, %v528_v53 }
 0x225   : > { %761 = vrsqrt.f32 %v539_v54  ;;  %v520_v56 = vpop.xlane.xlu1 %519  ;;  %v523_v57 = vpop.xlane.xlu0 %522 }
 0x226   : > { %763 = vrsqrt.f32 %v536_v55  ;;  %v532_v58 = vmul.f32 0.0625, %v520_v56  ;;  %v533_v59 = vmul.f32 0.0625, %v523_v57 }
 0x227   : > { %v756_v60 = vpop.eup %755 }
 0x228   : > { %v553_v62 = vmul.f32 %v756_v60, %v892_v5  ;;  %v540_v63 = vadd.f32 1e-05, %v532_v58  ;;  %v541_v0 = vadd.f32 1e-05, %v533_v59 }
 0x229   : > { %v526_v2 = vpop.xlane.xlu1 %525 }
 0x22a   : > { %v567_v3 = vmul.f32 %v696_v61, %v553_v62  ;;  %765 = vrsqrt.f32 %v540_v63  ;;  %v534_v4 = vmul.f32 0.0625, %v526_v2 }
 0x22b   : > { %v758_v7 = vpop.eup %757  ;;  %767 = vrsqrt.f32 %v541_v0 }
 0x22c   : > { %v760_v5 = vpop.eup %759  ;;  %v581_v8 = vadd.f32 %v697_v1, %v567_v3  ;;  %v554_v9 = vmul.f32 %v758_v7, %v898_v12  ;;  %v542_v10 = vadd.f32 1e-05, %v534_v4 }
 0x22d   : > { %v551_v11 = vmul.f32 %v760_v5, %v894_v6 }
 0x22e   : > { %589 = vst.msk [vmem:[%s944_s16 + $0x10] sm:$0xff] %vm278_vm0, %v581_v8  ;;  %v568_v13 = vmul.f32 %v696_v61, %v554_v9  ;;  %769 = vrsqrt.f32 %v542_v10 }
 0x22f   : > { %v762_v14 = vpop.eup %761  ;;  %v565_v16 = vmul.f32 %v696_v61, %v551_v11 }
 0x230   : > { %v764_v17 = vpop.eup %763  ;;  %v582_v18 = vadd.f32 %v697_v1, %v568_v13  ;;  %v555_v19 = vmul.f32 %v762_v14, %v903_v15 }
 0x231   : > { %v579_v20 = vadd.f32 %v697_v1, %v565_v16  ;;  %v552_v21 = vmul.f32 %v764_v17, %v913_v25 }
 0x232   : > { %590 = vst.msk [vmem:[%s944_s16 + $0x18] sm:$0xff] %vm278_vm0, %v582_v18  ;;  %v569_v12 = vmul.f32 %v696_v61, %v555_v19 }
 0x233   : > { %587 = vst.msk [vmem:[%s944_s16] sm:$0xff] %vm278_vm0, %v579_v20  ;;  %v566_v6 = vmul.f32 %v696_v61, %v552_v21 }
 0x234   : > { %v766_v22 = vpop.eup %765  ;;  %v583_v23 = vadd.f32 %v697_v1, %v569_v12 }
 0x235   : > { %v768_v26 = vpop.eup %767  ;;  %v580_v27 = vadd.f32 %v697_v1, %v566_v6  ;;  %v556_v28 = vmul.f32 %v766_v22, %v911_v24 }
 0x236   : > { %591 = vst.msk [vmem:[%s944_s16 + $0x20] sm:$0xff] %vm278_vm0, %v583_v23  ;;  %v557_v15 = vmul.f32 %v768_v26, %v920_v33 }
 0x237   : > { %588 = vst.msk [vmem:[%s944_s16 + $0x8] sm:$0xff] %vm278_vm0, %v580_v27  ;;  %v570_v25 = vmul.f32 %v696_v61, %v556_v28 }
 0x238   : > { %v770_v29 = vpop.eup %769  ;;  %v571_v30 = vmul.f32 %v696_v61, %v557_v15 }
 0x239   : > { %v584_v31 = vadd.f32 %v697_v1, %v570_v25  ;;  %v558_v34 = vmul.f32 %v770_v29, %v918_v32 }
 0x23a   : > { %v585_v35 = vadd.f32 %v697_v1, %v571_v30 }
 0x23b   : > { %592 = vst.msk [vmem:[%s944_s16 + $0x28] sm:$0xff] %vm278_vm0, %v584_v31  ;;  %v572_v36 = vmul.f32 %v696_v61, %v558_v34 }
 0x23c   : > { %593 = vst.msk [vmem:[%s944_s16 + $0x30] sm:$0xff] %vm278_vm0, %v585_v35 }
 0x23d   : > { %v586_v37 = vadd.f32 %v697_v1, %v572_v36 }
 0x23f   : > { %594 = vst.msk [vmem:[%s944_s16 + $0x38] sm:$0xff] %vm278_vm0, %v586_v37 }
 0x240 PF: > { %s15_s20 = sadd.s32 1, %s793_s20   ;;  %s984_s18 = smov %s789_s19 }
 0x241   : > { %p12_p5 = scmp.ge.s32.totalorder %s15_s20, 4   ;;  %s985_s19 = smov %s987_s21 }
 0x243   :  { %14 = sbr.rel (!%p12_p5) target bundleno = 2 (0x2), region = 81 }

// kernel: swin_forward.22
= control target key start
LH: loop header
LB: loop body
LE: loop exit
PB: predicated region body
PF: predicated region fallthrough
CT: control target
= control target key end

     0   :  { %s1547_s9 = smov 0   ;;  %s1769_s0 = inlined_call_operand.vmem [shape: f32[8,16,48], index: 0, kind: input, shape index: {}]   ;;  %s1770_s1 = inlined_call_operand.vmem [shape: f32[2,16,16], index: 1, kind: input, shape index: {}]   ;;  %s1771_s2 = inlined_call_operand.vmem [shape: f32[8,16,16], index: 2, kind: output, shape index: {}]  }
   0x1 LB: > { %s1275_s10 = sadd.s32 4294967295, %s1522_s9   ;;  %p1279_p0 = scmp.ge.s32.totalorder %s1522_s9, 1  ;;  %s1522_s9 = sphi %s1547_s9, %s12_s9  }
   0x2   : > { %p114_p1 = scmp.lt.s32.totalorder %s1522_s9, 3 }
   0x4   : > { %p115_p2 = pnand %p1279_p0, %p114_p1 }
   0x5   : > { %s1280_s11 = sshll.u32 (!%p115_p2), %s1275_s10, 2  ;;  %v1524_v0 = vmov (!%p115_p2), 0.0   ;;  %vm1525_vm0 = vmmov (!%p115_p2), 0   ;;  %s1526_s16 = smov (!%p115_p2), 112   ;;  %vm168_vm1 = vcmask (!%p115_p2), 64512   ;;  %v374_v22 = vld [vmem:[%s1770_s1] sm:$0xff] (!%p115_p2) }
   0x6   : > { %118 = sbr.rel (%p115_p2) target bundleno = 1575 (0x627), region = 28  ;;  %p139_p3 = scmp.lt.s32.totalorder (!%p115_p2), %s1280_s11, 7  ;;  %1340 = vmatprep.subr.bf16.mxu0 (!%p115_p2), %v1524_v0  ;;  %1346 = vmatprep.subr.bf16.mxu1 (!%p115_p2), %v1524_v0  ;;  %vm384_vm2 = vcmask (!%p115_p2), 130048   ;;  %v375_v26 = vld [vmem:[%s1770_s1 + $0x8] sm:$0xff] (!%p115_p2)  ;;  %vm1208_vm3 = vcmask (!%p115_p2), 130112  }
   0x7   : > { %1342 = vmatprep.mubr.msk.bf16.mxu0 (!%p115_p2), %vm1525_vm0, %v1524_v0  ;;  %1348 = vmatprep.mubr.msk.bf16.mxu1 (!%p115_p2), %vm1525_vm0, %v1524_v0  ;;  %s1527_s21 = smov (!%p115_p2), 96   ;;  %s1528_s22 = smov (!%p115_p2), 104  }
   0x8   : > { %s1529_s23 = smov (!%p115_p2), 120   ;;  %s1530_s3 = smov (!%p115_p2), 88  }
   0x9   : > { %s1531_s4 = smov (!%p115_p2), 8  }
   0xd   : > { %s1773_s11 = smov (!%p139_p3, %s1280_s11), 7 }
   0xe   : > { %s1306_s12 = sshll.u32 %s1773_s11, 4 }
   0xf   : > { %s143_s15 = scalar_lea.vmem %s1769_s0, %s1306_s12  ;;  %s1692_s26 = scalar_lea.vmem %s1771_s2, %s1306_s12 }
  0x10   : > { %v153_v1 = vld [vmem:[%s143_s15] sm:$0xff]  ;;  %v154_v2 = vld [vmem:[%s143_s15 + $0x8] sm:$0xff]  ;;  %v155_v3 = vld [vmem:[%s143_s15 + $0x10] sm:$0xff] }
  0x11   : > { %v1569_v4 = vpack.c.bf16 %v154_v2, %v153_v1  ;;  %v156_v5 = vld [vmem:[%s143_s15 + $0x18] sm:$0xff]  ;;  %v157_v6 = vld [vmem:[%s143_s15 + $0x20] sm:$0xff]  ;;  %v158_v7 = vld [vmem:[%s143_s15 + $0x28] sm:$0xff] }
  0x12   : > { %v1571_v8 = vpack.c.bf16 %v158_v7, %v157_v6  ;;  %v159_v9 = vld [vmem:[%s143_s15 + $0x30] sm:$0xff]  ;;  %v160_v10 = vld [vmem:[%s143_s15 + $0x38] sm:$0xff]  ;;  %v1574_v11 = vpack.c.bf16 %v156_v5, %v155_v3 }
  0x13   : > { %166 = vrot.lane.b32.xlu0 %v1569_v4, %s1526_s16  ;;  %v1577_v12 = vpack.c.bf16 %v160_v10, %v159_v9 }
  0x14   : > { %267 = vrot.lane.b32.xlu1 %v1571_v8, %s1526_s16 }
  0x17   : > { %217 = vrot.lane.b32.xlu0 %v1574_v11, %s1526_s16 }
  0x18   : > { %317 = vrot.lane.b32.xlu1 %v1577_v12, %s1526_s16 }
  0x85   : > { %v167_v13 = vpop.permute.xlu0 %166 }
  0x86   : > { %v173_v14 = vsel %vm168_vm1, %v167_v13, 0  ;;  %v268_v15 = vpop.permute.xlu1 %267 }
  0x87   : > { %1341 = vmatpush3.bf16.xpose.msra.mxu0 %v173_v14  ;;  %v273_v18 = vsel %vm168_vm1, %v268_v15, 0 }
  0x88   : > { %1352 = vmatprep.subr.bf16.mxu0 %v1524_v0 }
  0x89   : > { %v218_v16 = vpop.permute.xlu0 %217 }
  0x8a   : > { %v223_v17 = vsel %vm168_vm1, %v218_v16, 0  ;;  %v318_v19 = vpop.permute.xlu1 %317 }
  0x8b   : > { %1347 = vmatpush3.bf16.xpose.msra.mxu1 %v223_v17  ;;  %v323_v20 = vsel %vm168_vm1, %v318_v19, 0 }
  0x8c   : > { %1358 = vmatprep.subr.bf16.mxu1 %v1524_v0 }
  0x8e   : > { %1343 = vmatmul.mubr.msk.bf16.vlgmr.msra.gmra.mrb[0].mxu0 %vm168_vm1, %v1569_v4 }
  0x8f   : > { %1353 = vmatpush3.bf16.xpose.msra.mxu0 %v273_v18  ;;  %1354 = vmatprep.mubr.msk.bf16.mxu0 %vm1525_vm0, %v1524_v0 }
  0x90   : > { %1364 = vmatprep.subr.bf16.mxu0 %v1524_v0 }
  0x92   : > { %1349 = vmatmul.mubr.msk.bf16.vlgmr.msra.gmra.mrb[0].mxu1 %vm168_vm1, %v1574_v11 }
  0x93   : > { %1359 = vmatpush3.bf16.xpose.msra.mxu1 %v323_v20  ;;  %1360 = vmatprep.mubr.msk.bf16.mxu1 %vm1525_vm0, %v1524_v0 }
  0x94   : > { %1370 = vmatprep.subr.bf16.mxu1 %v1524_v0 }
  0x96   : > { %1355 = vmatmul.mubr.msk.bf16.vlgmr.msra.gmra.mrb[4].mxu0 %vm168_vm1, %v1571_v8 }
  0x97   : > { %1366 = vmatprep.mubr.msk.bf16.mxu0 %vm1525_vm0, %v1524_v0 }
  0x9a   : > { %1361 = vmatmul.mubr.msk.bf16.vlgmr.msra.gmra.mrb[4].mxu1 %vm168_vm1, %v1577_v12 }
  0x9b   : > { %1372 = vmatprep.mubr.msk.bf16.mxu1 %vm1525_vm0, %v1524_v0 }
 0x161   : > { %v209_v21 = vpop.f32.mrb[0].mxu0 }
 0x162   : > { %v366_v23 = vmul.f32 0.35355338, %v209_v21  ;;  %v1344_v24 = vpop.f32.mrb[1].mxu0 }
 0x163   : > { %v212_v25 = vpop.f32.mrb[2].mxu0 }
 0x164   : > { %v367_v27 = vmul.f32 0.35355338, %v212_v25  ;;  %v1345_v28 = vpop.f32.mrb[3].mxu0  ;;  %v376_v29 = vadd.f32 %v374_v22, %v366_v23 }
 0x165   : > { %v259_v30 = vpop.f32.mrb[0].mxu1 }
 0x166   : > { %v368_v31 = vmul.f32 0.35355338, %v259_v30  ;;  %v1350_v32 = vpop.f32.mrb[1].mxu1  ;;  %v385_v33 = vsel %vm384_vm2, %v376_v29, -inf  ;;  %v377_v34 = vadd.f32 %v375_v26, %v367_v27 }
 0x167   : > { %386 = vmax.xlane.f32.xlu0 %v385_v33  ;;  %v262_v35 = vpop.f32.mrb[2].mxu1 }
 0x168   : > { %v369_v36 = vmul.f32 0.35355338, %v262_v35  ;;  %v1351_v37 = vpop.f32.mrb[3].mxu1  ;;  %v388_v38 = vsel %vm384_vm2, %v377_v34, -inf  ;;  %v378_v39 = vadd.f32 %v374_v22, %v368_v31 }
 0x169   : > { %389 = vmax.xlane.f32.xlu1 %v388_v38  ;;  %v309_v40 = vpop.f32.mrb[4].mxu0 }
 0x16a   : > { %v370_v41 = vmul.f32 0.35355338, %v309_v40  ;;  %v1356_v42 = vpop.f32.mrb[5].mxu0  ;;  %v391_v43 = vsel %vm384_vm2, %v378_v39, -inf  ;;  %v379_v44 = vadd.f32 %v375_v26, %v369_v36 }
 0x16b   : > { %v312_v45 = vpop.f32.mrb[6].mxu0  ;;  %392 = vmax.xlane.f32.xlu0 %v391_v43 }
 0x16c   : > { %v371_v46 = vmul.f32 0.35355338, %v312_v45  ;;  %v1357_v47 = vpop.f32.mrb[7].mxu0  ;;  %v380_v48 = vadd.f32 %v374_v22, %v370_v41  ;;  %v394_v53 = vsel %vm384_vm2, %v379_v44, -inf }
 0x16d   : > { %v359_v49 = vpop.f32.mrb[4].mxu1 }
 0x16e   : > { %v372_v50 = vmul.f32 0.35355338, %v359_v49  ;;  %v1362_v51 = vpop.f32.mrb[5].mxu1  ;;  %v397_v52 = vsel %vm384_vm2, %v380_v48, -inf  ;;  %v381_v54 = vadd.f32 %v375_v26, %v371_v46 }
 0x16f   : > { %398 = vmax.xlane.f32.xlu1 %v397_v52  ;;  %395 = vmax.xlane.f32.xlu0 %v394_v53  ;;  %v362_v55 = vpop.f32.mrb[6].mxu1 }
 0x170   : > { %v373_v56 = vmul.f32 0.35355338, %v362_v55  ;;  %v1363_v57 = vpop.f32.mrb[7].mxu1  ;;  %v382_v58 = vadd.f32 %v374_v22, %v372_v50  ;;  %v400_v59 = vsel %vm384_vm2, %v381_v54, -inf }
 0x172   : > { %v403_v60 = vsel %vm384_vm2, %v382_v58, -inf  ;;  %v383_v61 = vadd.f32 %v375_v26, %v373_v56 }
 0x173   : > { %401 = vmax.xlane.f32.xlu0 %v400_v59  ;;  %404 = vmax.xlane.f32.xlu1 %v403_v60 }
 0x174   : > { %v406_v62 = vsel %vm384_vm2, %v383_v61, -inf }
 0x177   : > { %407 = vmax.xlane.f32.xlu0 %v406_v62 }
 0x184   : > { %477 = vrot.lane.b32.xlu1 %v1569_v4, %s1527_s21 }
 0x188   : > { %571 = vrot.lane.b32.xlu1 %v1571_v8, %s1527_s21 }
 0x18c   : > { %618 = vrot.lane.b32.xlu1 %v1577_v12, %s1527_s21 }
 0x18d   : > { %524 = vrot.lane.b32.xlu0 %v1574_v11, %s1527_s21 }
 0x1f4   : > { %v387_v63 = vpop.xlane.xlu0 %386 }
 0x1f5   : > { %v409_v1 = vsub.f32 %v376_v29, %v387_v63 }
 0x1f6   : > { %v390_v2 = vpop.xlane.xlu1 %389 }
 0x1f7   : > { %v417_v3 = vmul.f32 1.442695, %v409_v1  ;;  %v410_v5 = vsub.f32 %v377_v34, %v390_v2 }
 0x1f8   : > { %v393_v6 = vpop.xlane.xlu0 %392 }
 0x1f9   : > { %1452 = vpow2.f32 %v417_v3  ;;  %v419_v7 = vmul.f32 1.442695, %v410_v5  ;;  %v411_v9 = vsub.f32 %v378_v39, %v393_v6 }
 0x1fb   : > { %1454 = vpow2.f32 %v419_v7  ;;  %v421_v10 = vmul.f32 1.442695, %v411_v9 }
 0x1fc   : > { %v399_v13 = vpop.xlane.xlu1 %398  ;;  %v396_v14 = vpop.xlane.xlu0 %395 }
 0x1fd   : > { %1456 = vpow2.f32 %v421_v10  ;;  %v413_v15 = vsub.f32 %v380_v48, %v399_v13  ;;  %v412_v16 = vsub.f32 %v379_v44, %v396_v14 }
 0x1ff   : > { %v425_v17 = vmul.f32 1.442695, %v413_v15  ;;  %v423_v18 = vmul.f32 1.442695, %v412_v16 }
 0x200   : > { %v405_v19 = vpop.xlane.xlu1 %404  ;;  %v402_v20 = vpop.xlane.xlu0 %401 }
 0x201   : > { %1458 = vpow2.f32 %v425_v17  ;;  %v415_v21 = vsub.f32 %v382_v58, %v405_v19  ;;  %v414_v22 = vsub.f32 %v381_v54, %v402_v20 }
 0x202   : > { %1460 = vpow2.f32 %v423_v18 }
 0x203   : > { %v1623_v23 = vpop.eup %1452  ;;  %v429_v24 = vmul.f32 1.442695, %v415_v21  ;;  %v427_v25 = vmul.f32 1.442695, %v414_v22 }
 0x204   : > { %v408_v26 = vpop.xlane.xlu0 %407  ;;  %v433_v27 = vsel %vm384_vm2, %v1623_v23, 0.0  ;;  %v478_v28 = vpop.permute.xlu1 %477 }
 0x205   : > { %v1455_v29 = vpop.eup %1454  ;;  %1462 = vpow2.f32 %v429_v24  ;;  %v416_v30 = vsub.f32 %v383_v61, %v408_v26  ;;  %434 = vadd.xlane.f32.xlu1 %v433_v27  ;;  %1365 = vmatpush3.bf16.msra.mxu0 %v478_v28 }
 0x206   : > { %1464 = vpow2.f32 %v427_v25  ;;  %v436_v31 = vsel %vm384_vm2, %v1455_v29, 0.0  ;;  %1376 = vmatprep.subr.bf16.mxu0 %v1524_v0 }
 0x207   : > { %v1629_v32 = vpop.eup %1456  ;;  %v431_v33 = vmul.f32 1.442695, %v416_v30  ;;  %437 = vadd.xlane.f32.xlu0 %v436_v31 }
 0x208   : > { %v439_v34 = vsel %vm384_vm2, %v1629_v32, 0.0  ;;  %v525_v35 = vpop.permute.xlu0 %524  ;;  %v572_v46 = vpop.permute.xlu1 %571 }
 0x209   : > { %1466 = vpow2.f32 %v431_v33  ;;  %440 = vadd.xlane.f32.xlu1 %v439_v34  ;;  %1371 = vmatpush3.bf16.msra.mxu1 %v525_v35 }
 0x20a   : > { %1382 = vmatprep.subr.bf16.mxu1 %v1524_v0 }
 0x20b   : > { %v1459_v36 = vpop.eup %1458 }
 0x20c   : > { %v1461_v37 = vpop.eup %1460  ;;  %v445_v38 = vsel %vm384_vm2, %v1459_v36, 0.0  ;;  %v619_v47 = vpop.permute.xlu1 %618 }
 0x20d   : > { %446 = vadd.xlane.f32.xlu1 %v445_v38  ;;  %v442_v39 = vsel %vm384_vm2, %v1461_v37, 0.0 }
 0x20e   : > { %443 = vadd.xlane.f32.xlu0 %v442_v39 }
 0x20f   : > { %v1636_v40 = vpop.eup %1462 }
 0x210   : > { %v1465_v41 = vpop.eup %1464  ;;  %v451_v42 = vsel %vm384_vm2, %v1636_v40, 0.0 }
 0x211   : > { %452 = vadd.xlane.f32.xlu1 %v451_v42  ;;  %v448_v43 = vsel %vm384_vm2, %v1465_v41, 0.0 }
 0x212   : > { %449 = vadd.xlane.f32.xlu0 %v448_v43 }
 0x213   : > { %v1467_v44 = vpop.eup %1466 }
 0x214   : > { %v454_v45 = vsel %vm384_vm2, %v1467_v44, 0.0 }
 0x216   : > { %455 = vadd.xlane.f32.xlu0 %v454_v45 }
 0x222   : > { %726 = vrot.lane.b32.xlu1 %v1574_v11, %s1528_s22 }
 0x226   : > { %777 = vrot.lane.b32.xlu1 %v1571_v8, %s1528_s22 }
 0x22a   : > { %828 = vrot.lane.b32.xlu1 %v1577_v12, %s1528_s22 }
 0x22c   : > { %675 = vrot.lane.b32.xlu0 %v1569_v4, %s1528_s22 }
 0x22e   : > { %826 = vrot.lane.b32.xlu1 %v1577_v12, %s1529_s23 }
 0x230   : > { %673 = vrot.lane.b32.xlu0 %v1569_v4, %s1529_s23 }
 0x234   : > { %724 = vrot.lane.b32.xlu0 %v1574_v11, %s1529_s23 }
 0x238   : > { %775 = vrot.lane.b32.xlu0 %v1571_v8, %s1529_s23 }
 0x292   : > { %v435_v48 = vpop.xlane.xlu1 %434 }
 0x293   : > { %1468 = vrcp.f32 %v435_v48 }
 0x294   : > { %v438_v49 = vpop.xlane.xlu0 %437 }
 0x295   : > { %1470 = vrcp.f32 %v438_v49 }
 0x296   : > { %v441_v50 = vpop.xlane.xlu1 %440 }
 0x297   : > { %1472 = vrcp.f32 %v441_v50  ;;  %v1299_v50 = vld [vmem:[%s1770_s1 + $0x18] sm:$0xff] }
 0x29a   : > { %v447_v51 = vpop.xlane.xlu1 %446 }
 0x29b   : > { %v444_v52 = vpop.xlane.xlu0 %443 }
 0x29c   : > { %1474 = vrcp.f32 %v444_v52 }
 0x29d   : > { %v1469_v53 = vpop.eup %1468  ;;  %1476 = vrcp.f32 %v447_v51 }
 0x29e   : > { %v453_v55 = vpop.xlane.xlu1 %452  ;;  %v465_v57 = vmul.f32 %v1469_v53, %v1623_v23 }
 0x29f   : > { %v1471_v54 = vpop.eup %1470  ;;  %v450_v56 = vpop.xlane.xlu0 %449 }
 0x2a0   : > { %v466_v58 = vmul.f32 %v1471_v54, %v1455_v29  ;;  %1478 = vrcp.f32 %v450_v56 }
 0x2a1   : > { %1480 = vrcp.f32 %v453_v55  ;;  %v1473_v61 = vpop.eup %1472 }
 0x2a2   : > { %v473_v59 = vpack.c.bf16 %v466_v58, %v465_v57  ;;  %v467_v63 = vmul.f32 %v1473_v61, %v1629_v32  ;;  %v727_v10 = vpop.permute.xlu1 %726 }
 0x2a3   : > { %v456_v60 = vpop.xlane.xlu0 %455  ;;  %v732_v22 = vsel %vm168_vm1, %v727_v10, 0 }
 0x2a4   : > { %1482 = vrcp.f32 %v456_v60  ;;  %1367 = vmatmul.mubr.msk.bf16.vlgmr.msra.gmra.mrb[8].mxu0 %vm384_vm2, %v473_v59 }
 0x2a5   : > { %1377 = vmatpush3.bf16.msra.mxu0 %v572_v46  ;;  %1378 = vmatprep.mubr.msk.bf16.mxu0 %vm1525_vm0, %v1524_v0  ;;  %v1298_v46 = vld [vmem:[%s1770_s1 + $0x10] sm:$0xff] }
 0x2a6   : > { %v1475_v62 = vpop.eup %1474  ;;  %1388 = vmatprep.subr.bf16.mxu0 %v1524_v0  ;;  %v778_v21 = vpop.permute.xlu1 %777 }
 0x2a7   : > { %v468_v1 = vmul.f32 %v1475_v62, %v1461_v37  ;;  %v1477_v2 = vpop.eup %1476  ;;  %v676_v6 = vpop.permute.xlu0 %675  ;;  %v783_v23 = vsel %vm168_vm1, %v778_v21, 0 }
 0x2a8   : > { %v469_v7 = vmul.f32 %v1477_v2, %v1459_v36  ;;  %v681_v14 = vsel %vm168_vm1, %v676_v6, 0 }
 0x2a9   : > { %v474_v3 = vpack.c.bf16 %v468_v1, %v467_v63 }
 0x2aa   : > { %v1479_v5 = vpop.eup %1478  ;;  %v829_v25 = vpop.permute.xlu1 %828 }
 0x2ab   : > { %v470_v9 = vmul.f32 %v1479_v5, %v1465_v41  ;;  %1373 = vmatmul.mubr.msk.bf16.vlgmr.msra.gmra.mrb[8].mxu1 %vm384_vm2, %v474_v3  ;;  %v1481_v13 = vpop.eup %1480  ;;  %v674_v19 = vpop.permute.xlu0 %673  ;;  %v834_v26 = vsel %vm168_vm1, %v829_v25, 0 }
 0x2ac   : > { %1383 = vmatpush3.bf16.msra.mxu1 %v619_v47  ;;  %1384 = vmatprep.mubr.msk.bf16.mxu1 %vm1525_vm0, %v1524_v0  ;;  %v471_v17 = vmul.f32 %v1481_v13, %v1636_v40 }
 0x2ad   : > { %v475_v15 = vpack.c.bf16 %v470_v9, %v469_v7  ;;  %1394 = vmatprep.subr.bf16.mxu1 %v1524_v0 }
 0x2ae   : > { %v1483_v16 = vpop.eup %1482  ;;  %v827_v28 = vpop.permute.xlu1 %826 }
 0x2af   : > { %v472_v18 = vmul.f32 %v1483_v16, %v1467_v44  ;;  %1379 = vmatmul.mubr.msk.bf16.vlgmr.msra.gmra.mrb[12].mxu0 %vm384_vm2, %v475_v15  ;;  %v725_v24 = vpop.permute.xlu0 %724 }
 0x2b0   : > { %1389 = vmatpush3.bf16.xpose.msra.mxu0 %v681_v14  ;;  %1390 = vmatprep.mubr.msk.bf16.mxu0 %vm1525_vm0, %v1524_v0 }
 0x2b1   : > { %v476_v20 = vpack.c.bf16 %v472_v18, %v471_v17  ;;  %1400 = vmatprep.subr.bf16.mxu0 %v1524_v0 }
 0x2b3   : > { %1385 = vmatmul.mubr.msk.bf16.vlgmr.msra.gmra.mrb[12].mxu1 %vm384_vm2, %v476_v20  ;;  %v776_v27 = vpop.permute.xlu0 %775 }
 0x2b4   : > { %1396 = vmatprep.mubr.msk.bf16.mxu1 %vm1525_vm0, %v1524_v0 }
 0x2b5   : > { %1395 = vmatpush3.bf16.xpose.msra.mxu1 %v732_v22 }
 0x2b6   : > { %1406 = vmatprep.subr.bf16.mxu1 %v1524_v0 }
 0x2b7   : > { %1391 = vmatmul.mubr.msk.bf16.vlgmr.msra.gmra.mrb[16].mxu0 %vm168_vm1, %v674_v19 }
 0x2b8   : > { %1401 = vmatpush3.bf16.xpose.msra.mxu0 %v783_v23  ;;  %1402 = vmatprep.mubr.msk.bf16.mxu0 %vm1525_vm0, %v1524_v0 }
 0x2b9   : > { %1412 = vmatprep.subr.bf16.mxu0 %v1524_v0 }
 0x2bc   : > { %1397 = vmatmul.mubr.msk.bf16.vlgmr.msra.gmra.mrb[16].mxu1 %vm168_vm1, %v725_v24 }
 0x2bd   : > { %1407 = vmatpush3.bf16.xpose.msra.mxu1 %v834_v26  ;;  %1408 = vmatprep.mubr.msk.bf16.mxu1 %vm1525_vm0, %v1524_v0 }
 0x2be   : > { %1418 = vmatprep.subr.bf16.mxu1 %v1524_v0 }
 0x2bf   : > { %1403 = vmatmul.mubr.msk.bf16.vlgmr.msra.gmra.mrb[20].mxu0 %vm168_vm1, %v776_v27 }
 0x2c0   : > { %1414 = vmatprep.mubr.msk.bf16.mxu0 %vm1525_vm0, %v1524_v0 }
 0x2c4   : > { %1409 = vmatmul.mubr.msk.bf16.vlgmr.msra.gmra.mrb[20].mxu1 %vm168_vm1, %v827_v28 }
 0x2c5   : > { %1420 = vmatprep.mubr.msk.bf16.mxu1 %vm1525_vm0, %v1524_v0 }
 0x377   : > { %v517_v29 = vpop.f32.mrb[8].mxu0 }
 0x378   : > { %665 = vst.msk [vmem:[%s1692_s26] sm:$0xff] %vm168_vm1, %v517_v29  ;;  %v1368_v30 = vpop.f32.mrb[9].mxu0 }
 0x379   : > { %v520_v31 = vpop.f32.mrb[10].mxu0 }
 0x37a   : > { %666 = vst.msk [vmem:[%s1692_s26 + $0x8] sm:$0xff] %vm168_vm1, %v520_v31  ;;  %v1369_v32 = vpop.f32.mrb[11].mxu0 }
 0x37e   : > { %v564_v33 = vpop.f32.mrb[8].mxu1 }
 0x37f   : > { %667 = vst.msk [vmem:[%s1692_s26 + $0x10] sm:$0xff] %vm168_vm1, %v564_v33  ;;  %v1374_v34 = vpop.f32.mrb[9].mxu1 }
 0x380   : > { %v567_v35 = vpop.f32.mrb[10].mxu1 }
 0x381   : > { %668 = vst.msk [vmem:[%s1692_s26 + $0x18] sm:$0xff] %vm168_vm1, %v567_v35  ;;  %v1375_v36 = vpop.f32.mrb[11].mxu1 }
 0x382   : > { %v611_v37 = vpop.f32.mrb[12].mxu0 }
 0x383   : > { %669 = vst.msk [vmem:[%s1692_s26 + $0x20] sm:$0xff] %vm168_vm1, %v611_v37  ;;  %v1380_v38 = vpop.f32.mrb[13].mxu0 }
 0x384   : > { %v614_v39 = vpop.f32.mrb[14].mxu0 }
 0x385   : > { %670 = vst.msk [vmem:[%s1692_s26 + $0x28] sm:$0xff] %vm168_vm1, %v614_v39  ;;  %v1381_v40 = vpop.f32.mrb[15].mxu0 }
 0x386   : > { %v658_v41 = vpop.f32.mrb[12].mxu1 }
 0x387   : > { %671 = vst.msk [vmem:[%s1692_s26 + $0x30] sm:$0xff] %vm168_vm1, %v658_v41  ;;  %v1386_v42 = vpop.f32.mrb[13].mxu1 }
 0x388   : > { %v661_v43 = vpop.f32.mrb[14].mxu1 }
 0x389   : > { %672 = vst.msk [vmem:[%s1692_s26 + $0x38] sm:$0xff] %vm168_vm1, %v661_v43  ;;  %v1387_v44 = vpop.f32.mrb[15].mxu1 }
 0x38a   : > { %v717_v45 = vpop.f32.mrb[16].mxu0 }
 0x38b   : > { %v877_v47 = vmul.f32 0.35355338, %v717_v45  ;;  %v1392_v48 = vpop.f32.mrb[17].mxu0 }
 0x38c   : > { %v720_v49 = vpop.f32.mrb[18].mxu0 }
 0x38d   : > { %v878_v51 = vmul.f32 0.35355338, %v720_v49  ;;  %v1393_v52 = vpop.f32.mrb[19].mxu0  ;;  %v888_v53 = vadd.f32 %v1298_v46, %v877_v47 }
 0x38f   : > { %v768_v54 = vpop.f32.mrb[16].mxu1  ;;  %v896_v55 = vsel %vm384_vm2, %v888_v53, -inf  ;;  %v889_v56 = vadd.f32 %v1299_v50, %v878_v51 }
 0x390   : > { %v879_v57 = vmul.f32 0.35355338, %v768_v54  ;;  %v1398_v58 = vpop.f32.mrb[17].mxu1  ;;  %897 = vmax.xlane.f32.xlu0 %v896_v55 }
 0x391   : > { %v771_v59 = vpop.f32.mrb[18].mxu1  ;;  %v899_v60 = vsel %vm384_vm2, %v889_v56, -inf }
 0x392   : > { %v880_v61 = vmul.f32 0.35355338, %v771_v59  ;;  %v1399_v62 = vpop.f32.mrb[19].mxu1  ;;  %900 = vmax.xlane.f32.xlu1 %v899_v60  ;;  %v819_v63 = vpop.f32.mrb[20].mxu0  ;;  %v890_v1 = vadd.f32 %v1298_v46, %v879_v57 }
 0x393   : > { %v881_v2 = vmul.f32 0.35355338, %v819_v63  ;;  %v1404_v3 = vpop.f32.mrb[21].mxu0 }
 0x394   : > { %v902_v5 = vsel %vm384_vm2, %v890_v1, -inf  ;;  %v822_v6 = vpop.f32.mrb[22].mxu0  ;;  %v891_v7 = vadd.f32 %v1299_v50, %v880_v61 }
 0x395   : > { %903 = vmax.xlane.f32.xlu0 %v902_v5  ;;  %v882_v9 = vmul.f32 0.35355338, %v822_v6  ;;  %v1405_v10 = vpop.f32.mrb[23].mxu0  ;;  %v892_v13 = vadd.f32 %v1298_v46, %v881_v2 }
 0x396   : > { %v905_v18 = vsel %vm384_vm2, %v891_v7, -inf }
 0x397   : > { %v870_v14 = vpop.f32.mrb[20].mxu1  ;;  %v908_v15 = vsel %vm384_vm2, %v892_v13, -inf  ;;  %v893_v19 = vadd.f32 %v1299_v50, %v882_v9 }
 0x398   : > { %v883_v16 = vmul.f32 0.35355338, %v870_v14  ;;  %v1410_v17 = vpop.f32.mrb[21].mxu1  ;;  %909 = vmax.xlane.f32.xlu1 %v908_v15 }
 0x399   : > { %906 = vmax.xlane.f32.xlu0 %v905_v18  ;;  %v873_v20 = vpop.f32.mrb[22].mxu1  ;;  %v911_v25 = vsel %vm384_vm2, %v893_v19, -inf }
 0x39a   : > { %v884_v21 = vmul.f32 0.35355338, %v873_v20  ;;  %v1411_v22 = vpop.f32.mrb[23].mxu1  ;;  %v894_v23 = vadd.f32 %v1298_v46, %v883_v16 }
 0x39c   : > { %v914_v24 = vsel %vm384_vm2, %v894_v23, -inf  ;;  %v895_v26 = vadd.f32 %v1299_v50, %v884_v21 }
 0x39d   : > { %915 = vmax.xlane.f32.xlu1 %v914_v24  ;;  %912 = vmax.xlane.f32.xlu0 %v911_v25 }
 0x39e   : > { %v917_v27 = vsel %vm384_vm2, %v895_v26, -inf }
 0x3a1   : > { %918 = vmax.xlane.f32.xlu0 %v917_v27 }
 0x3ae   : > { %988 = vrot.lane.b32.xlu1 %v1569_v4, %s1530_s3 }
 0x41d   : > { %v898_v28 = vpop.xlane.xlu0 %897 }
 0x41e   : > { %v920_v29 = vsub.f32 %v888_v53, %v898_v28 }
 0x41f   : > { %v901_v30 = vpop.xlane.xlu1 %900 }
 0x420   : > { %v928_v31 = vmul.f32 1.442695, %v920_v29  ;;  %v921_v32 = vsub.f32 %v889_v56, %v901_v30 }
 0x422   : > { %1484 = vpow2.f32 %v928_v31  ;;  %v930_v33 = vmul.f32 1.442695, %v921_v32  ;;  %v904_v34 = vpop.xlane.xlu0 %903 }
 0x423   : > { %v922_v35 = vsub.f32 %v890_v1, %v904_v34 }
 0x424   : > { %1486 = vpow2.f32 %v930_v33 }
 0x425   : > { %v932_v36 = vmul.f32 1.442695, %v922_v35  ;;  %v910_v37 = vpop.xlane.xlu1 %909 }
 0x426   : > { %v924_v38 = vsub.f32 %v892_v13, %v910_v37  ;;  %v907_v39 = vpop.xlane.xlu0 %906 }
 0x427   : > { %1488 = vpow2.f32 %v932_v36  ;;  %v923_v40 = vsub.f32 %v891_v7, %v907_v39 }
 0x428   : > { %v936_v41 = vmul.f32 1.442695, %v924_v38 }
 0x429   : > { %v934_v42 = vmul.f32 1.442695, %v923_v40 }
 0x42a   : > { %1490 = vpow2.f32 %v936_v41  ;;  %v916_v4 = vpop.xlane.xlu1 %915  ;;  %v913_v43 = vpop.xlane.xlu0 %912 }
 0x42b   : > { %1492 = vpow2.f32 %v934_v42  ;;  %v926_v44 = vsub.f32 %v894_v23, %v916_v4  ;;  %v925_v45 = vsub.f32 %v893_v19, %v913_v43 }
 0x42c   : > { %v1485_v46 = vpop.eup %1484 }
 0x42d   : > { %v940_v47 = vmul.f32 1.442695, %v926_v44  ;;  %v938_v48 = vmul.f32 1.442695, %v925_v45  ;;  %v944_v49 = vsel %vm384_vm2, %v1485_v46, 0.0 }
 0x42e   : > { %v1487_v50 = vpop.eup %1486  ;;  %v919_v51 = vpop.xlane.xlu0 %918  ;;  %945 = vadd.xlane.f32.xlu1 %v944_v49 }
 0x42f   : > { %v989_v52 = vpop.permute.xlu1 %988  ;;  %1494 = vpow2.f32 %v940_v47  ;;  %v927_v53 = vsub.f32 %v895_v26, %v919_v51  ;;  %v947_v54 = vsel %vm384_vm2, %v1487_v50, 0.0 }
 0x430   : > { %1413 = vmatpush3.bf16.msra.mxu0 %v989_v52  ;;  %1496 = vpow2.f32 %v938_v48  ;;  %948 = vadd.xlane.f32.xlu0 %v947_v54 }
 0x431   : > { %1424 = vmatprep.subr.bf16.mxu0 %v1524_v0  ;;  %v1489_v55 = vpop.eup %1488  ;;  %v942_v56 = vmul.f32 1.442695, %v927_v53 }
 0x432   : > { %v950_v57 = vsel %vm384_vm2, %v1489_v55, 0.0 }
 0x433   : > { %1498 = vpow2.f32 %v942_v56  ;;  %951 = vadd.xlane.f32.xlu1 %v950_v57 }
 0x434   : > { %v1491_v58 = vpop.eup %1490 }
 0x435   : > { %v1493_v59 = vpop.eup %1492  ;;  %v956_v60 = vsel %vm384_vm2, %v1491_v58, 0.0 }
 0x436   : > { %v953_v61 = vsel %vm384_vm2, %v1493_v59, 0.0 }
 0x437   : > { %957 = vadd.xlane.f32.xlu1 %v956_v60  ;;  %954 = vadd.xlane.f32.xlu0 %v953_v61 }
 0x439   : > { %v1495_v62 = vpop.eup %1494 }
 0x43a   : > { %v1497_v63 = vpop.eup %1496  ;;  %v962_v1 = vsel %vm384_vm2, %v1495_v62, 0.0 }
 0x43b   : > { %963 = vadd.xlane.f32.xlu1 %v962_v1  ;;  %v959_v2 = vsel %vm384_vm2, %v1497_v63, 0.0 }
 0x43c   : > { %960 = vadd.xlane.f32.xlu0 %v959_v2 }
 0x43d   : > { %v1499_v3 = vpop.eup %1498 }
 0x43e   : > { %v965_v5 = vsel %vm384_vm2, %v1499_v3, 0.0 }
 0x440   : > { %966 = vadd.xlane.f32.xlu0 %v965_v5 }
 0x44c   : > { %1082 = vrot.lane.b32.xlu1 %v1571_v8, %s1530_s3 }
 0x450   : > { %1129 = vrot.lane.b32.xlu1 %v1577_v12, %s1530_s3 }
 0x456   : > { %1035 = vrot.lane.b32.xlu0 %v1574_v11, %s1530_s3 }
 0x4bb   : > { %v946_v6 = vpop.xlane.xlu1 %945 }
 0x4bc   : > { %1500 = vrcp.f32 %v946_v6 }
 0x4bd   : > { %v949_v7 = vpop.xlane.xlu0 %948 }
 0x4be   : > { %1502 = vrcp.f32 %v949_v7 }
 0x4c0   : > { %v952_v9 = vpop.xlane.xlu1 %951 }
 0x4c1   : > { %1504 = vrcp.f32 %v952_v9 }
 0x4c4   : > { %v958_v10 = vpop.xlane.xlu1 %957  ;;  %v955_v13 = vpop.xlane.xlu0 %954 }
 0x4c5   : > { %1506 = vrcp.f32 %v955_v13 }
 0x4c6   : > { %v1501_v14 = vpop.eup %1500  ;;  %1508 = vrcp.f32 %v958_v10 }
 0x4c7   : > { %v976_v8 = vmul.f32 %v1501_v14, %v1485_v46 }
 0x4c8   : > { %v1503_v15 = vpop.eup %1502  ;;  %v964_v16 = vpop.xlane.xlu1 %963 }
 0x4c9   : > { %v977_v17 = vmul.f32 %v1503_v15, %v1487_v50  ;;  %v961_v18 = vpop.xlane.xlu0 %960 }
 0x4ca   : > { %1510 = vrcp.f32 %v961_v18 }
 0x4cb   : > { %v984_v12 = vpack.c.bf16 %v977_v17, %v976_v8  ;;  %1512 = vrcp.f32 %v964_v16  ;;  %v1505_v20 = vpop.eup %1504 }
 0x4cc   : > { %v1083_v11 = vpop.permute.xlu1 %1082  ;;  %v978_v22 = vmul.f32 %v1505_v20, %v1489_v55 }
 0x4cd   : > { %v967_v19 = vpop.xlane.xlu0 %966  ;;  %1415 = vmatmul.mubr.msk.bf16.vlgmr.msra.gmra.mrb[24].mxu0 %vm384_vm2, %v984_v12 }
 0x4ce   : > { %1514 = vrcp.f32 %v967_v19  ;;  %1425 = vmatpush3.bf16.msra.mxu0 %v1083_v11  ;;  %1426 = vmatprep.mubr.msk.bf16.mxu0 %vm1525_vm0, %v1524_v0 }
 0x4cf   : > { %v1507_v21 = vpop.eup %1506 }
 0x4d0   : > { %v979_v23 = vmul.f32 %v1507_v21, %v1493_v59  ;;  %v1509_v25 = vpop.eup %1508  ;;  %v1130_v27 = vpop.permute.xlu1 %1129 }
 0x4d1   : > { %v1036_v24 = vpop.permute.xlu0 %1035  ;;  %v980_v29 = vmul.f32 %v1509_v25, %v1491_v58 }
 0x4d2   : > { %1419 = vmatpush3.bf16.msra.mxu1 %v1036_v24  ;;  %v985_v26 = vpack.c.bf16 %v979_v23, %v978_v22 }
 0x4d3   : > { %1430 = vmatprep.subr.bf16.mxu1 %v1524_v0 }
 0x4d4   : > { %v1511_v28 = vpop.eup %1510 }
 0x4d5   : > { %v981_v30 = vmul.f32 %v1511_v28, %v1497_v63  ;;  %1421 = vmatmul.mubr.msk.bf16.vlgmr.msra.gmra.mrb[24].mxu1 %vm384_vm2, %v985_v26  ;;  %v1513_v31 = vpop.eup %1512 }
 0x4d6   : > { %1431 = vmatpush3.bf16.msra.mxu1 %v1130_v27  ;;  %1432 = vmatprep.mubr.msk.bf16.mxu1 %vm1525_vm0, %v1524_v0  ;;  %v982_v34 = vmul.f32 %v1513_v31, %v1495_v62 }
 0x4d7   : > { %v986_v32 = vpack.c.bf16 %v981_v30, %v980_v29 }
 0x4d8   : > { %v1515_v33 = vpop.eup %1514 }
 0x4d9   : > { %v983_v35 = vmul.f32 %v1515_v33, %v1499_v3  ;;  %1427 = vmatmul.mubr.msk.bf16.vlgmr.msra.gmra.mrb[28].mxu0 %vm384_vm2, %v986_v32 }
 0x4db   : > { %v987_v36 = vpack.c.bf16 %v983_v35, %v982_v34 }
 0x4dd   : > { %1433 = vmatmul.mubr.msk.bf16.vlgmr.msra.gmra.mrb[28].mxu1 %vm384_vm2, %v987_v36 }
 0x5a0   : > { %v1028_v37 = vpop.f32.mrb[24].mxu0 }
 0x5a1   : > { %1184 = vrot.lane.b32.xlu0 %v1028_v37, %s1531_s4  ;;  %v1416_v38 = vpop.f32.mrb[25].mxu0 }
 0x5a2   : > { %v1031_v39 = vpop.f32.mrb[26].mxu0 }
 0x5a3   : > { %1186 = vrot.lane.b32.xlu1 %v1031_v39, %s1531_s4  ;;  %v1417_v40 = vpop.f32.mrb[27].mxu0 }
 0x5a8   : > { %v1075_v41 = vpop.f32.mrb[24].mxu1 }
 0x5a9   : > { %1188 = vrot.lane.b32.xlu0 %v1075_v41, %s1531_s4  ;;  %v1422_v42 = vpop.f32.mrb[25].mxu1 }
 0x5aa   : > { %v1078_v0 = vpop.f32.mrb[26].mxu1 }
 0x5ab   : > { %1190 = vrot.lane.b32.xlu1 %v1078_v0, %s1531_s4  ;;  %v1423_v4 = vpop.f32.mrb[27].mxu1 }
 0x5ac   : > { %v1122_v43 = vpop.f32.mrb[28].mxu0 }
 0x5ad   : > { %v1428_v44 = vpop.f32.mrb[29].mxu0  ;;  %1192 = vrot.lane.b32.xlu0 %v1122_v43, %s1531_s4 }
 0x5ae   : > { %v1125_v45 = vpop.f32.mrb[30].mxu0 }
 0x5af   : > { %v1429_v46 = vpop.f32.mrb[31].mxu0  ;;  %1194 = vrot.lane.b32.xlu1 %v1125_v45, %s1531_s4 }
 0x5b0   : > { %v1169_v47 = vpop.f32.mrb[28].mxu1 }
 0x5b1   : > { %1196 = vrot.lane.b32.xlu0 %v1169_v47, %s1531_s4  ;;  %v1434_v48 = vpop.f32.mrb[29].mxu1 }
 0x5b2   : > { %v1172_v49 = vpop.f32.mrb[30].mxu1 }
 0x5b3   : > { %1198 = vrot.lane.b32.xlu1 %v1172_v49, %s1531_s4  ;;  %v1435_v50 = vpop.f32.mrb[31].mxu1 }
 0x613   : > { %v1185_v51 = vpop.permute.xlu0 %1184 }
 0x614   : > { %1209 = vst.msk [vmem:[%s1692_s26] sm:$0xff] %vm1208_vm3, %v1185_v51 }
 0x615   : > { %v1187_v52 = vpop.permute.xlu1 %1186 }
 0x616   : > { %1210 = vst.msk [vmem:[%s1692_s26 + $0x8] sm:$0xff] %vm1208_vm3, %v1187_v52 }
 0x61b   : > { %v1189_v53 = vpop.permute.xlu0 %1188 }
 0x61c   : > { %1211 = vst.msk [vmem:[%s1692_s26 + $0x10] sm:$0xff] %vm1208_vm3, %v1189_v53 }
 0x61d   : > { %v1191_v54 = vpop.permute.xlu1 %1190 }
 0x61e   : > { %1212 = vst.msk [vmem:[%s1692_s26 + $0x18] sm:$0xff] %vm1208_vm3, %v1191_v54 }
 0x61f   : > { %v1193_v55 = vpop.permute.xlu0 %1192 }
 0x620   : > { %1213 = vst.msk [vmem:[%s1692_s26 + $0x20] sm:$0xff] %vm1208_vm3, %v1193_v55 }
 0x621   : > { %v1195_v56 = vpop.permute.xlu1 %1194 }
 0x622   : > { %1214 = vst.msk [vmem:[%s1692_s26 + $0x28] sm:$0xff] %vm1208_vm3, %v1195_v56 }
 0x623   : > { %v1197_v57 = vpop.permute.xlu0 %1196 }
 0x624   : > { %1215 = vst.msk [vmem:[%s1692_s26 + $0x30] sm:$0xff] %vm1208_vm3, %v1197_v57 }
 0x625   : > { %v1199_v58 = vpop.permute.xlu1 %1198 }
 0x626   : > { %1216 = vst.msk [vmem:[%s1692_s26 + $0x38] sm:$0xff] %vm1208_vm3, %v1199_v58 }
 0x627 PF: > { %s12_s9 = sadd.s32 1, %s1522_s9  }
 0x628   : > { %p9_p4 = scmp.ge.s32.totalorder %s12_s9, 4  }
 0x62a   :  { %11 = sbr.rel (!%p9_p4) target bundleno = 1 (0x1), region = 59 }

// kernel: swin_forward.23
= control target key start
LH: loop header
LB: loop body
LE: loop exit
PB: predicated region body
PF: predicated region fallthrough
CT: control target
= control target key end

     0   :  { %s745_s15 = smov 0   ;;  %s747_s16 = smov 0   ;;  %s836_s0 = inlined_call_operand.vmem [shape: f32[128,16], index: 0, kind: input, shape index: {}]   ;;  %s837_s1 = inlined_call_operand.vmem [shape: bf16[16,16], index: 1, kind: input, shape index: {}]   ;;  %s838_s2 = inlined_call_operand.vmem [shape: f32[1,16], index: 2, kind: input, shape index: {}]   ;;  %s839_s3 = inlined_call_operand.vmem [shape: f32[128,16], index: 3, kind: input, shape index: {}]   ;;  %s840_s4 = inlined_call_operand.vmem [shape: f32[128,16], index: 4, kind: output, shape index: {}]  }
   0x1   :  { %s749_s17 = smov 0  }
   0x2 LB: > { %s33_s18 = sadd.s32 1, %s713_s16  ;;  %p637_p0 = scmp.ge.s32.totalorder %s717_s17, 1  ;;  %s717_s17 = sphi %s749_s17, %s14_s17   ;;  %s713_s16 = sphi %s747_s16, %s843_s16   ;;  %s709_s15 = sphi %s745_s15, %s842_s15  }
   0x3   : > { %p35_p1 = scmp.ge.s32.totalorder %s33_s18, 2  ;;  %p229_p2 = scmp.lt.s32.totalorder %s717_s17, 3 }
   0x5   : > { %s845_s18 = smov (%p35_p1, %s33_s18), 0  ;;  %p230_p3 = pnand %p637_p0, %p229_p2 }
   0x6   : > { %v694_v0 = vld [vmem:[%s837_s1] sm:$0xff] (!%p230_p3)   ;;  %s638_s21 = sshll.u32 (!%p230_p3), %s709_s15, 3  ;;  %vm324_vm0 = vcmask (!%p230_p3), 130048   ;;  %v719_v1 = vmov (!%p230_p3), 0.0  }
   0x7   : > { %233 = sbr.rel (%p230_p3) target bundleno = 252 (0xfc), region = 36  ;;  %p766_p4 = scmp.lt.s32.totalorder (!%p230_p3), %s638_s21, 15  ;;  %657 = vmatprep.subr.bf16.mxu0 (!%p230_p3), %v694_v0  ;;  %667 = vmatprep.subr.bf16.mxu1 (!%p230_p3), %v694_v0  ;;  %327 = vst.msk [vmem:[#allocation2 + $0x10] sm:$0xff] (!%p230_p3), %vm324_vm0, %v719_v1  ;;  %325 = vst.msk [vmem:[#allocation2] sm:$0xff] (!%p230_p3), %vm324_vm0, %v719_v1  ;;  %v649_v38 = vld [vmem:[%s838_s2] ss:$0 sm:$0xff] (!%p230_p3) }
   0x8   : > { %326 = vst.msk [vmem:[#allocation2 + $0x8] sm:$0xff] (!%p230_p3), %vm324_vm0, %v719_v1  ;;  %328 = vst.msk [vmem:[#allocation2 + $0x18] sm:$0xff] (!%p230_p3), %vm324_vm0, %v719_v1  ;;  %658 = vmatpush3.bf16.msra.mxu0 (!%p230_p3), %v694_v0  ;;  %668 = vmatpush3.bf16.msra.mxu1 (!%p230_p3), %v694_v0 }
   0x9   : > { %329 = vst.msk [vmem:[#allocation2 + $0x20] sm:$0xff] (!%p230_p3), %vm324_vm0, %v719_v1  ;;  %330 = vst.msk [vmem:[#allocation2 + $0x28] sm:$0xff] (!%p230_p3), %vm324_vm0, %v719_v1 }
   0xa   : > { %331 = vst.msk [vmem:[#allocation2 + $0x30] sm:$0xff] (!%p230_p3), %vm324_vm0, %v719_v1  ;;  %332 = vst.msk [vmem:[#allocation2 + $0x38] sm:$0xff] (!%p230_p3), %vm324_vm0, %v719_v1 }
   0xe   : > { %s847_s21 = smov (!%p766_p4, %s638_s21), 15  ;;  %v335_v14 = vld [vmem:[#allocation2 + $0x10] sm:$0xff]  ;;  %v333_v16 = vld [vmem:[#allocation2] sm:$0xff] }
   0xf   : > { %s780_s23 = sshll.u32 %s847_s21, 3  ;;  %v336_v19 = vld [vmem:[#allocation2 + $0x18] sm:$0xff]  ;;  %v334_v24 = vld [vmem:[#allocation2 + $0x8] sm:$0xff] }
  0x10   : > { %s287_s26 = scalar_lea.vmem %s836_s0, %s780_s23  ;;  %v337_v18 = vld [vmem:[#allocation2 + $0x20] sm:$0xff]  ;;  %v338_v29 = vld [vmem:[#allocation2 + $0x28] sm:$0xff]  ;;  %s308_s29 = scalar_lea.vmem %s839_s3, %s780_s23 }
  0x11   : > { %v341_v2 = vld [vmem:[%s287_s26] sm:$0xff]  ;;  %v342_v3 = vld [vmem:[%s287_s26 + $0x8] sm:$0xff]  ;;  %v343_v8 = vld [vmem:[%s287_s26 + $0x10] sm:$0xff]  ;;  %s809_s8 = scalar_lea.vmem %s840_s4, %s780_s23 }
  0x12   : > { %v349_v4 = vpack.c.bf16 %v342_v3, %v341_v2  ;;  %v345_v5 = vld [vmem:[%s287_s26 + $0x20] sm:$0xff]  ;;  %v346_v6 = vld [vmem:[%s287_s26 + $0x28] sm:$0xff]  ;;  %v344_v9 = vld [vmem:[%s287_s26 + $0x18] sm:$0xff] }
  0x13   : > { %v351_v7 = vpack.c.bf16 %v346_v6, %v345_v5  ;;  %v347_v10 = vld [vmem:[%s287_s26 + $0x30] sm:$0xff]  ;;  %v350_v11 = vpack.c.bf16 %v344_v9, %v343_v8  ;;  %v348_v12 = vld [vmem:[%s287_s26 + $0x38] sm:$0xff]  ;;  %v481_v39 = vld [vmem:[%s308_s29] sm:$0xff] }
  0x14   : > { %659 = vmatprep.mubr.msk.bf16.mxu0 %vm324_vm0, %v349_v4  ;;  %v352_v13 = vpack.c.bf16 %v348_v12, %v347_v10  ;;  %v339_v15 = vld [vmem:[#allocation2 + $0x30] sm:$0xff]  ;;  %v340_v23 = vld [vmem:[#allocation2 + $0x38] sm:$0xff]  ;;  %v482_v43 = vld [vmem:[%s308_s29 + $0x8] sm:$0xff] }
  0x15   : > { %663 = vmatprep.mubr.msk.bf16.mxu1 %vm324_vm0, %v351_v7  ;;  %660 = vmatmul.mubr.msk.bf16.vlgmr.msra.gmra.mrb[0].mxu0 %vm324_vm0, %v350_v11  ;;  %v483_v40 = vld [vmem:[%s308_s29 + $0x10] sm:$0xff]  ;;  %v484_v41 = vld [vmem:[%s308_s29 + $0x18] sm:$0xff]  ;;  %v485_v48 = vld [vmem:[%s308_s29 + $0x20] sm:$0xff] }
  0x16   : > { %664 = vmatmul.mubr.msk.bf16.vlgmr.msra.gmra.mrb[0].mxu1 %vm324_vm0, %v352_v13  ;;  %v487_v44 = vld [vmem:[%s308_s29 + $0x30] sm:$0xff]  ;;  %v488_v53 = vld [vmem:[%s308_s29 + $0x38] sm:$0xff]  ;;  %v486_v59 = vld [vmem:[%s308_s29 + $0x28] sm:$0xff] }
  0xe8   : > { %v661_v17 = vpop.f32.mrb[0].mxu0 }
  0xe9   : > { %v441_v20 = vadd.f32 %v661_v17, %v335_v14  ;;  %v665_v21 = vpop.f32.mrb[0].mxu1  ;;  %v408_v22 = vpop.f32.mrb[1].mxu0 }
  0xea   : > { %v445_v25 = vadd.f32 %v665_v21, %v339_v15  ;;  %v439_v26 = vadd.f32 %v408_v22, %v333_v16  ;;  %v424_v27 = vpop.f32.mrb[1].mxu1  ;;  %v662_v28 = vpop.f32.mrb[2].mxu0 }
  0xeb   : > { %449 = vst.msk [vmem:[#allocation2 + $0x10] sm:$0xff] %vm324_vm0, %v441_v20  ;;  %v443_v30 = vadd.f32 %v424_v27, %v337_v18  ;;  %v442_v31 = vadd.f32 %v662_v28, %v336_v19  ;;  %v666_v32 = vpop.f32.mrb[2].mxu1  ;;  %v411_v33 = vpop.f32.mrb[3].mxu0 }
  0xec   : > { %453 = vst.msk [vmem:[#allocation2 + $0x30] sm:$0xff] %vm324_vm0, %v445_v25  ;;  %447 = vst.msk [vmem:[#allocation2] sm:$0xff] %vm324_vm0, %v439_v26  ;;  %v446_v34 = vadd.f32 %v666_v32, %v340_v23  ;;  %v440_v35 = vadd.f32 %v411_v33, %v334_v24  ;;  %v427_v36 = vpop.f32.mrb[3].mxu1 }
  0xed   : > { %451 = vst.msk [vmem:[#allocation2 + $0x20] sm:$0xff] %vm324_vm0, %v443_v30  ;;  %450 = vst.msk [vmem:[#allocation2 + $0x18] sm:$0xff] %vm324_vm0, %v442_v31  ;;  %v444_v37 = vadd.f32 %v427_v36, %v338_v29 }
  0xee   : > { %454 = vst.msk [vmem:[#allocation2 + $0x38] sm:$0xff] %vm324_vm0, %v446_v34  ;;  %448 = vst.msk [vmem:[#allocation2 + $0x8] sm:$0xff] %vm324_vm0, %v440_v35 }
  0xef   : > { %452 = vst.msk [vmem:[#allocation2 + $0x28] sm:$0xff] %vm324_vm0, %v444_v37 }
  0xf2   : > { %v460_v42 = vld [vmem:[#allocation2 + $0x10] sm:$0xff] }
  0xf3   : > { %v475_v45 = vadd.f32 %v649_v38, %v460_v42  ;;  %v464_v46 = vld [vmem:[#allocation2 + $0x30] sm:$0xff]  ;;  %v458_v47 = vld [vmem:[#allocation2] sm:$0xff] }
  0xf4   : > { %v479_v49 = vadd.f32 %v649_v38, %v464_v46  ;;  %v473_v50 = vadd.f32 %v649_v38, %v458_v47  ;;  %v462_v51 = vld [vmem:[#allocation2 + $0x20] sm:$0xff]  ;;  %v461_v52 = vld [vmem:[#allocation2 + $0x18] sm:$0xff] }
  0xf5   : > { %v491_v54 = vadd.f32 %v483_v40, %v475_v45  ;;  %v477_v55 = vadd.f32 %v649_v38, %v462_v51  ;;  %v476_v56 = vadd.f32 %v649_v38, %v461_v52  ;;  %v465_v57 = vld [vmem:[#allocation2 + $0x38] sm:$0xff]  ;;  %v459_v58 = vld [vmem:[#allocation2 + $0x8] sm:$0xff] }
  0xf6   : > { %v495_v60 = vadd.f32 %v487_v44, %v479_v49  ;;  %v489_v61 = vadd.f32 %v481_v39, %v473_v50  ;;  %v480_v62 = vadd.f32 %v649_v38, %v465_v57  ;;  %v474_v63 = vadd.f32 %v649_v38, %v459_v58  ;;  %v463_v0 = vld [vmem:[#allocation2 + $0x28] sm:$0xff] }
  0xf7   : > { %499 = vst.msk [vmem:[%s809_s8 + $0x10] sm:$0xff] %vm324_vm0, %v491_v54  ;;  %v493_v1 = vadd.f32 %v485_v48, %v477_v55  ;;  %v492_v2 = vadd.f32 %v484_v41, %v476_v56  ;;  %v478_v3 = vadd.f32 %v649_v38, %v463_v0 }
  0xf8   : > { %503 = vst.msk [vmem:[%s809_s8 + $0x30] sm:$0xff] %vm324_vm0, %v495_v60  ;;  %497 = vst.msk [vmem:[%s809_s8] sm:$0xff] %vm324_vm0, %v489_v61  ;;  %v496_v4 = vadd.f32 %v488_v53, %v480_v62  ;;  %v490_v5 = vadd.f32 %v482_v43, %v474_v63 }
  0xf9   : > { %501 = vst.msk [vmem:[%s809_s8 + $0x20] sm:$0xff] %vm324_vm0, %v493_v1  ;;  %500 = vst.msk [vmem:[%s809_s8 + $0x18] sm:$0xff] %vm324_vm0, %v492_v2  ;;  %v494_v6 = vadd.f32 %v486_v59, %v478_v3 }
  0xfa   : > { %504 = vst.msk [vmem:[%s809_s8 + $0x38] sm:$0xff] %vm324_vm0, %v496_v4  ;;  %498 = vst.msk [vmem:[%s809_s8 + $0x8] sm:$0xff] %vm324_vm0, %v490_v5 }
  0xfb   : > { %502 = vst.msk [vmem:[%s809_s8 + $0x28] sm:$0xff] %vm324_vm0, %v494_v6 }
  0xfc PF: > { %s14_s17 = sadd.s32 1, %s717_s17   ;;  %s842_s15 = smov %s713_s16 }
  0xfd   : > { %p11_p5 = scmp.ge.s32.totalorder %s14_s17, 4   ;;  %s843_s16 = smov %s845_s18 }
  0xff   :  { %13 = sbr.rel (!%p11_p5) target bundleno = 2 (0x2), region = 83 }

// kernel: swin_forward.24
= control target key start
LH: loop header
LB: loop body
LE: loop exit
PB: predicated region body
PF: predicated region fallthrough
CT: control target
= control target key end

     0   :  { %s1341_s24 = smov 0   ;;  %s1343_s25 = smov 0   ;;  %s1681_s0 = inlined_call_operand.vmem [shape: f32[128,16], index: 0, kind: input, shape index: {}]   ;;  %s1682_s1 = inlined_call_operand.vmem [shape: f32[1,16], index: 1, kind: input, shape index: {}]   ;;  %s1683_s2 = inlined_call_operand.vmem [shape: f32[1,16], index: 2, kind: input, shape index: {}]   ;;  %s1684_s3 = inlined_call_operand.vmem [shape: bf16[16,64], index: 3, kind: input, shape index: {}]   ;;  %s1685_s4 = inlined_call_operand.vmem [shape: f32[1,64], index: 4, kind: input, shape index: {}]   ;;  %s1686_s5 = inlined_call_operand.vmem [shape: bf16[64,16], index: 5, kind: input, shape index: {}]   ;;  %s1687_s6 = inlined_call_operand.vmem [shape: f32[1,16], index: 6, kind: input, shape index: {}]   ;;  %s1688_s7 = inlined_call_operand.vmem [shape: f32[128,16], index: 7, kind: output, shape index: {}]  }
   0x1   :  { %s1345_s26 = smov 0  }
   0x2 LB: > { %s29_s27 = sadd.s32 1, %s1294_s25  ;;  %p1127_p0 = scmp.ge.s32.totalorder %s1298_s26, 1  ;;  %s1298_s26 = sphi %s1345_s26, %s17_s26   ;;  %s1294_s25 = sphi %s1343_s25, %s1690_s25   ;;  %s1290_s24 = sphi %s1341_s24, %s1689_s24  }
   0x3   : > { %p31_p1 = scmp.ge.s32.totalorder %s29_s27, 2  ;;  %p278_p2 = scmp.lt.s32.totalorder %s1298_s26, 3 }
   0x5   : > { %s1692_s27 = smov (%p31_p1, %s29_s27), 0  ;;  %p279_p3 = pnand %p1127_p0, %p278_p2 }
   0x6   : > { %s1128_s28 = sshll.u32 (!%p279_p3), %s1290_s24, 3  ;;  %vm362_vm0 = vcmask (!%p279_p3), 130048   ;;  %v1223_v56 = vld [vmem:[%s1684_s3] sm:$0xff] (!%p279_p3)   ;;  %vm869_vm5 = vcmask (!%p279_p3), 523264  }
   0x7   : > { %282 = sbr.rel (%p279_p3) target bundleno = 859 (0x35b), region = 48  ;;  %p323_p4 = scmp.lt.s32.totalorder (!%p279_p3), %s1128_s28, 15  ;;  %1164 = vmatprep.subr.bf16.mxu0 (!%p279_p3), %v1223_v56 }
   0x8   : > { %1165 = vmatpush3.bf16.msra.mxu0 (!%p279_p3), %v1223_v56 }
   0xe   : > { %s1694_s28 = smov (!%p323_p4, %s1128_s28), 15 }
   0xf   : > { %s1129_s29 = sshll.u32 %s1694_s28, 3 }
  0x10   : > { %s326_s9 = scalar_lea.vmem %s1681_s0, %s1129_s29  ;;  %s1643_s12 = scalar_lea.vmem %s1688_s7, %s1129_s29 }
  0x11   : > { %v1367_v0 = vld [vmem:[%s326_s9] sm:$0xff]  ;;  %v1369_v1 = vld [vmem:[%s326_s9 + $0x10] sm:$0xff]  ;;  %v1371_v2 = vld [vmem:[%s326_s9 + $0x8] sm:$0xff] }
  0x12   : > { %v363_v3 = vsel %vm362_vm0, %v1367_v0, 0.0  ;;  %v369_v4 = vsel %vm362_vm0, %v1369_v1, 0.0  ;;  %v1377_v5 = vld [vmem:[%s326_s9 + $0x18] sm:$0xff]  ;;  %v366_v6 = vsel %vm362_vm0, %v1371_v2, 0.0  ;;  %v1383_v8 = vld [vmem:[%s326_s9 + $0x20] sm:$0xff]  ;;  %v1385_v9 = vld [vmem:[%s326_s9 + $0x28] sm:$0xff] }
  0x13   : > { %364 = vadd.xlane.f32.xlu0 %v363_v3  ;;  %370 = vadd.xlane.f32.xlu1 %v369_v4  ;;  %v372_v7 = vsel %vm362_vm0, %v1377_v5, 0.0  ;;  %v375_v10 = vsel %vm362_vm0, %v1383_v8, 0.0  ;;  %v378_v11 = vsel %vm362_vm0, %v1385_v9, 0.0  ;;  %v1391_v12 = vld [vmem:[%s326_s9 + $0x30] sm:$0xff]  ;;  %v1393_v13 = vld [vmem:[%s326_s9 + $0x38] sm:$0xff] }
  0x14   : > { %v381_v14 = vsel %vm362_vm0, %v1391_v12, 0.0  ;;  %v384_v15 = vsel %vm362_vm0, %v1393_v13, 0.0 }
  0x17   : > { %367 = vadd.xlane.f32.xlu0 %v366_v6  ;;  %373 = vadd.xlane.f32.xlu1 %v372_v7 }
  0x1b   : > { %376 = vadd.xlane.f32.xlu0 %v375_v10  ;;  %379 = vadd.xlane.f32.xlu1 %v378_v11 }
  0x1f   : > { %382 = vadd.xlane.f32.xlu0 %v381_v14  ;;  %385 = vadd.xlane.f32.xlu1 %v384_v15 }
  0xa0   : > { %v365_v16 = vpop.xlane.xlu0 %364  ;;  %v371_v17 = vpop.xlane.xlu1 %370 }
  0xa1   : > { %v388_v18 = vmul.f32 0.0625, %v365_v16  ;;  %v390_v19 = vmul.f32 0.0625, %v371_v17 }
  0xa3   : > { %v1400_v20 = vsub.f32 %v1367_v0, %v388_v18  ;;  %v1403_v21 = vsub.f32 %v1369_v1, %v390_v19 }
  0xa4   : > { %v368_v22 = vpop.xlane.xlu0 %367  ;;  %v374_v23 = vpop.xlane.xlu1 %373 }
  0xa5   : > { %v389_v24 = vmul.f32 0.0625, %v368_v22  ;;  %v391_v25 = vmul.f32 0.0625, %v374_v23  ;;  %v404_v26 = vmul.f32 %v1400_v20, %v1400_v20  ;;  %v406_v27 = vmul.f32 %v1403_v21, %v1403_v21 }
  0xa7   : > { %v1410_v28 = vsub.f32 %v1371_v2, %v389_v24  ;;  %v1413_v29 = vsub.f32 %v1377_v5, %v391_v25  ;;  %v412_v30 = vsel %vm362_vm0, %v404_v26, 0.0  ;;  %v418_v33 = vsel %vm362_vm0, %v406_v27, 0.0  ;;  %v1132_v27 = vld [vmem:[%s1682_s1] ss:$0 sm:$0xff] }
  0xa8   : > { %413 = vadd.xlane.f32.xlu0 %v412_v30  ;;  %v377_v31 = vpop.xlane.xlu0 %376  ;;  %v380_v32 = vpop.xlane.xlu1 %379 }
  0xa9   : > { %v392_v34 = vmul.f32 0.0625, %v377_v31  ;;  %v393_v35 = vmul.f32 0.0625, %v380_v32  ;;  %v405_v36 = vmul.f32 %v1410_v28, %v1410_v28  ;;  %v407_v37 = vmul.f32 %v1413_v29, %v1413_v29 }
  0xab   : > { %v1422_v38 = vsub.f32 %v1383_v8, %v392_v34  ;;  %v1425_v39 = vsub.f32 %v1385_v9, %v393_v35  ;;  %v415_v40 = vsel %vm362_vm0, %v405_v36, 0.0  ;;  %v421_v43 = vsel %vm362_vm0, %v407_v37, 0.0  ;;  %v1133_v36 = vld [vmem:[%s1683_s2] ss:$0 sm:$0xff] }
  0xac   : > { %419 = vadd.xlane.f32.xlu0 %v418_v33  ;;  %416 = vadd.xlane.f32.xlu1 %v415_v40  ;;  %v383_v41 = vpop.xlane.xlu0 %382  ;;  %v386_v42 = vpop.xlane.xlu1 %385 }
  0xad   : > { %v394_v44 = vmul.f32 0.0625, %v383_v41  ;;  %v395_v45 = vmul.f32 0.0625, %v386_v42  ;;  %v408_v46 = vmul.f32 %v1422_v38, %v1422_v38  ;;  %v409_v47 = vmul.f32 %v1425_v39, %v1425_v39 }
  0xaf   : > { %v1434_v48 = vsub.f32 %v1391_v12, %v394_v44  ;;  %v1437_v49 = vsub.f32 %v1393_v13, %v395_v45  ;;  %v424_v50 = vsel %vm362_vm0, %v408_v46, 0.0  ;;  %v427_v51 = vsel %vm362_vm0, %v409_v47, 0.0 }
  0xb0   : > { %422 = vadd.xlane.f32.xlu1 %v421_v43  ;;  %425 = vadd.xlane.f32.xlu0 %v424_v50 }
  0xb1   : > { %v410_v52 = vmul.f32 %v1434_v48, %v1434_v48  ;;  %v411_v53 = vmul.f32 %v1437_v49, %v1437_v49 }
  0xb3   : > { %v430_v54 = vsel %vm362_vm0, %v410_v52, 0.0  ;;  %v433_v55 = vsel %vm362_vm0, %v411_v53, 0.0 }
  0xb4   : > { %428 = vadd.xlane.f32.xlu1 %v427_v51  ;;  %431 = vadd.xlane.f32.xlu0 %v430_v54 }
  0xb8   : > { %434 = vadd.xlane.f32.xlu1 %v433_v55 }
 0x135   : > { %v414_v57 = vpop.xlane.xlu0 %413 }
 0x136   : > { %v436_v58 = vmul.f32 0.0625, %v414_v57 }
 0x138   : > { %v444_v59 = vadd.f32 1e-05, %v436_v58 }
 0x139   : > { %v417_v60 = vpop.xlane.xlu1 %416  ;;  %v420_v61 = vpop.xlane.xlu0 %419 }
 0x13a   : > { %1228 = vrsqrt.f32 %v444_v59  ;;  %v437_v62 = vmul.f32 0.0625, %v417_v60  ;;  %v438_v63 = vmul.f32 0.0625, %v420_v61 }
 0x13c   : > { %v445_v3 = vadd.f32 1e-05, %v437_v62  ;;  %v446_v4 = vadd.f32 1e-05, %v438_v63 }
 0x13d   : > { %v423_v6 = vpop.xlane.xlu1 %422  ;;  %v426_v7 = vpop.xlane.xlu0 %425 }
 0x13e   : > { %1230 = vrsqrt.f32 %v445_v3  ;;  %v439_v10 = vmul.f32 0.0625, %v423_v6  ;;  %v440_v11 = vmul.f32 0.0625, %v426_v7 }
 0x13f   : > { %1232 = vrsqrt.f32 %v446_v4 }
 0x140   : > { %v447_v14 = vadd.f32 1e-05, %v439_v10  ;;  %v448_v15 = vadd.f32 1e-05, %v440_v11  ;;  %v1225_v10 = vld [vmem:[%s1686_s5 + $0x8] sm:$0xff]   ;;  %v1226_v11 = vld [vmem:[%s1686_s5 + $0x10] sm:$0xff]  }
 0x141   : > { %v429_v16 = vpop.xlane.xlu1 %428  ;;  %v432_v17 = vpop.xlane.xlu0 %431 }
 0x142   : > { %1234 = vrsqrt.f32 %v447_v14  ;;  %v441_v18 = vmul.f32 0.0625, %v429_v16  ;;  %v442_v19 = vmul.f32 0.0625, %v432_v17  ;;  %v1227_v14 = vld [vmem:[%s1686_s5 + $0x18] sm:$0xff]   ;;  %v1134_v16 = vld [vmem:[%s1685_s4] ss:$0 sm:$0xff] }
 0x143   : > { %1236 = vrsqrt.f32 %v448_v15  ;;  %v1300_v15 = vmov 0.0  }
 0x144   : > { %v1229_v22 = vpop.eup %1228  ;;  %v449_v23 = vadd.f32 1e-05, %v441_v18  ;;  %v450_v24 = vadd.f32 1e-05, %v442_v19  ;;  %506 = vst.msk [vmem:[#allocation2 + $0x10] sm:$0xff] %vm362_vm0, %v1300_v15  ;;  %504 = vst.msk [vmem:[#allocation2] sm:$0xff] %vm362_vm0, %v1300_v15 }
 0x145   : > { %v460_v25 = vmul.f32 %v1229_v22, %v1400_v20  ;;  %v435_v26 = vpop.xlane.xlu1 %434  ;;  %505 = vst.msk [vmem:[#allocation2 + $0x8] sm:$0xff] %vm362_vm0, %v1300_v15  ;;  %507 = vst.msk [vmem:[#allocation2 + $0x18] sm:$0xff] %vm362_vm0, %v1300_v15 }
 0x146   : > { %1238 = vrsqrt.f32 %v449_v23  ;;  %v443_v30 = vmul.f32 0.0625, %v435_v26  ;;  %508 = vst.msk [vmem:[#allocation2 + $0x20] sm:$0xff] %vm362_vm0, %v1300_v15  ;;  %509 = vst.msk [vmem:[#allocation2 + $0x28] sm:$0xff] %vm362_vm0, %v1300_v15 }
 0x147   : > { %1240 = vrsqrt.f32 %v450_v24  ;;  %v474_v34 = vmul.f32 %v1132_v27, %v460_v25  ;;  %510 = vst.msk [vmem:[#allocation2 + $0x30] sm:$0xff] %vm362_vm0, %v1300_v15  ;;  %511 = vst.msk [vmem:[#allocation2 + $0x38] sm:$0xff] %vm362_vm0, %v1300_v15 }
 0x148   : > { %v1231_v31 = vpop.eup %1230  ;;  %v451_v32 = vadd.f32 1e-05, %v443_v30 }
 0x149   : > { %v1233_v33 = vpop.eup %1232  ;;  %v461_v35 = vmul.f32 %v1231_v31, %v1410_v28  ;;  %v488_v42 = vadd.f32 %v1133_v36, %v474_v34 }
 0x14a   : > { %v462_v20 = vmul.f32 %v1233_v33, %v1403_v21  ;;  %1242 = vrsqrt.f32 %v451_v32 }
 0x14b   : > { %v475_v37 = vmul.f32 %v1132_v27, %v461_v35 }
 0x14c   : > { %v1235_v40 = vpop.eup %1234  ;;  %v476_v44 = vmul.f32 %v1132_v27, %v462_v20 }
 0x14d   : > { %v1237_v41 = vpop.eup %1236  ;;  %v489_v43 = vadd.f32 %v1133_v36, %v475_v37  ;;  %v463_v45 = vmul.f32 %v1235_v40, %v1413_v29 }
 0x14e   : > { %v464_v46 = vmul.f32 %v1237_v41, %v1422_v38  ;;  %v490_v52 = vadd.f32 %v1133_v36, %v476_v44 }
 0x14f   : > { %v496_v47 = vpack.c.bf16 %v489_v43, %v488_v42  ;;  %v477_v50 = vmul.f32 %v1132_v27, %v463_v45 }
 0x150   : > { %v1239_v28 = vpop.eup %1238  ;;  %v478_v21 = vmul.f32 %v1132_v27, %v464_v46 }
 0x151   : > { %v1241_v51 = vpop.eup %1240  ;;  %500 = vst.msk [vmem:[#allocation3] sm:$0xff] %vm362_vm0, %v496_v47  ;;  %v491_v53 = vadd.f32 %v1133_v36, %v477_v50  ;;  %v465_v54 = vmul.f32 %v1239_v28, %v1425_v39 }
 0x152   : > { %v466_v55 = vmul.f32 %v1241_v51, %v1434_v48  ;;  %v492_v29 = vadd.f32 %v1133_v36, %v478_v21 }
 0x153   : > { %v497_v56 = vpack.c.bf16 %v491_v53, %v490_v52  ;;  %v479_v57 = vmul.f32 %v1132_v27, %v465_v54 }
 0x154   : > { %v1243_v58 = vpop.eup %1242  ;;  %v480_v59 = vmul.f32 %v1132_v27, %v466_v55 }
 0x155   : > { %501 = vst.msk [vmem:[#allocation3 + $0x8] sm:$0xff] %vm362_vm0, %v497_v56  ;;  %v493_v38 = vadd.f32 %v1133_v36, %v479_v57  ;;  %v467_v60 = vmul.f32 %v1243_v58, %v1437_v49  ;;  %v1224_v49 = vld [vmem:[%s1686_s5] sm:$0xff]  }
 0x156   : > { %v494_v3 = vadd.f32 %v1133_v36, %v480_v59  ;;  %1174 = vmatprep.subr.bf16.mxu0 %v1224_v49  ;;  %1190 = vmatprep.subr.bf16.mxu1 %v1224_v49 }
 0x157   : > { %v498_v61 = vpack.c.bf16 %v493_v38, %v492_v29  ;;  %v481_v62 = vmul.f32 %v1132_v27, %v467_v60  ;;  %1194 = vmatpush3.bf16.msra.mxu1 %v1224_v49 }
 0x158   : > { %v512_v63 = vld [vmem:[#allocation3] sm:$0xff]  ;;  %1191 = vmatprep.subr.bf16.mxu1 %v1225_v10 }
 0x159   : > { %502 = vst.msk [vmem:[#allocation3 + $0x10] sm:$0xff] %vm362_vm0, %v498_v61  ;;  %v495_v4 = vadd.f32 %v1133_v36, %v481_v62  ;;  %1166 = vmatprep.mubr.msk.bf16.mxu0 %vm362_vm0, %v512_v63 }
 0x15b   : > { %v499_v39 = vpack.c.bf16 %v495_v4, %v494_v3  ;;  %1195 = vmatpush3.bf16.msra.mxu1 %v1225_v10 }
 0x15c   : > { %v513_v48 = vld [vmem:[#allocation3 + $0x8] sm:$0xff]  ;;  %1192 = vmatprep.subr.bf16.mxu1 %v1226_v11 }
 0x15d   : > { %503 = vst.msk [vmem:[#allocation3 + $0x18] sm:$0xff] %vm362_vm0, %v499_v39  ;;  %1167 = vmatmul.mubr.msk.bf16.vlgmr.msra.gmra.mrb[0].mxu0 %vm362_vm0, %v513_v48 }
 0x15e   : > { %1175 = vmatpush3.bf16.msra.mxu0 %v1224_v49 }
 0x15f   : > { %1176 = vmatprep.subr.bf16.mxu0 %v1225_v10  ;;  %1196 = vmatpush3.bf16.msra.mxu1 %v1226_v11 }
 0x160   : > { %v514_v6 = vld [vmem:[#allocation3 + $0x10] sm:$0xff]  ;;  %1193 = vmatprep.subr.bf16.mxu1 %v1227_v14 }
 0x161   : > { %1170 = vmatprep.mubr.msk.bf16.mxu0 %vm362_vm0, %v514_v6 }
 0x162   : > { %1177 = vmatpush3.bf16.msra.mxu0 %v1225_v10 }
 0x163   : > { %1178 = vmatprep.subr.bf16.mxu0 %v1226_v11  ;;  %1197 = vmatpush3.bf16.msra.mxu1 %v1227_v14 }
 0x164   : > { %v515_v7 = vld [vmem:[#allocation3 + $0x18] sm:$0xff] }
 0x165   : > { %1171 = vmatmul.mubr.msk.bf16.gmra.mrb[4].mxu0 %vm362_vm0, %v515_v7 }
 0x166   : > { %1179 = vmatpush3.bf16.msra.mxu0 %v1226_v11 }
 0x167   : > { %1180 = vmatprep.subr.bf16.mxu0 %v1227_v14 }
 0x16a   : > { %1181 = vmatpush3.bf16.msra.mxu0 %v1227_v14 }
 0x230   : > { %v1168_v17 = vpop.f32.mrb[0].mxu0 }
 0x231   : > { %v587_v18 = vadd.f32 %v1168_v17, %v1134_v16  ;;  %v578_v19 = vpop.f32.mrb[1].mxu0 }
 0x232   : > { %v1495_v22 = vadd.f32 %v1134_v16, %v578_v19  ;;  %v1169_v23 = vpop.f32.mrb[2].mxu0 }
 0x233   : > { %v1497_v24 = vmul.f32 0.70710677, %v587_v18  ;;  %v1499_v25 = vadd.f32 %v1169_v23, %v1134_v16  ;;  %v581_v26 = vpop.f32.mrb[3].mxu0  ;;  %v1539_v3 = vmul.f32 0.5, %v587_v18 }
 0x234   : > { %v1502_v27 = vmul.f32 0.70710677, %v1495_v22  ;;  %v1504_v30 = vadd.f32 %v1134_v16, %v581_v26 }
 0x235   : > { %v627_v31 = vand.u32 2147483647, %v1497_v24  ;;  %v1508_v32 = vmul.f32 0.70710677, %v1499_v25  ;;  %vm787_vm1 = vcmp.ge.f32.partialorder %v1497_v24, 0.0 }
 0x236   : > { %v625_v33 = vand.u32 2147483647, %v1502_v27  ;;  %v1512_v34 = vmul.f32 0.70710677, %v1504_v30  ;;  %vm785_vm2 = vcmp.ge.f32.partialorder %v1502_v27, 0.0 }
 0x237   : > { %v635_v35 = vmul.f32 0.3275911, %v627_v31  ;;  %v628_v36 = vand.u32 2147483647, %v1508_v32  ;;  %v739_v55 = vsub.f32 0.0, %v627_v31  ;;  %vm788_vm3 = vcmp.ge.f32.partialorder %v1508_v32, 0.0 }
 0x238   : > { %v633_v20 = vmul.f32 0.3275911, %v625_v33  ;;  %v626_v37 = vand.u32 2147483647, %v1512_v34  ;;  %v1172_v42 = vpop.f32.mrb[4].mxu0  ;;  %v737_v58 = vsub.f32 0.0, %v625_v33 }
 0x239   : > { %v643_v40 = vadd.f32 1.0, %v635_v35  ;;  %v636_v41 = vmul.f32 0.3275911, %v628_v36  ;;  %v594_v45 = vpop.f32.mrb[5].mxu0  ;;  %v1516_v51 = vadd.f32 %v1172_v42, %v1134_v16  ;;  %v740_v38 = vsub.f32 0.0, %v628_v36 }
 0x23a   : > { %v641_v43 = vadd.f32 1.0, %v633_v20  ;;  %v634_v44 = vmul.f32 0.3275911, %v626_v37  ;;  %v1173_v47 = vpop.f32.mrb[6].mxu0  ;;  %v1518_v52 = vadd.f32 %v1134_v16, %v594_v45  ;;  %v738_v59 = vsub.f32 0.0, %v626_v37 }
 0x23b   : > { %1244 = vrcp.f32 %v643_v40  ;;  %v644_v46 = vadd.f32 1.0, %v636_v41  ;;  %v597_v50 = vpop.f32.mrb[7].mxu0  ;;  %v1520_v53 = vadd.f32 %v1173_v47, %v1134_v16  ;;  %v1523_v21 = vmul.f32 0.70710677, %v1516_v51 }
 0x23c   : > { %1246 = vrcp.f32 %v641_v43  ;;  %v642_v28 = vadd.f32 1.0, %v634_v44  ;;  %v1525_v54 = vadd.f32 %v1134_v16, %v597_v50  ;;  %v1528_v56 = vmul.f32 0.70710677, %v1518_v52 }
 0x23d   : > { %1248 = vrcp.f32 %v644_v46  ;;  %v1531_v57 = vmul.f32 0.70710677, %v1520_v53  ;;  %v631_v29 = vand.u32 2147483647, %v1523_v21  ;;  %v747_v4 = vmul.f32 %v739_v55, %v627_v31 }
 0x23e   : > { %1250 = vrcp.f32 %v642_v28  ;;  %v629_v60 = vand.u32 2147483647, %v1528_v56  ;;  %v1537_v63 = vmul.f32 0.70710677, %v1525_v54  ;;  %v745_v7 = vmul.f32 %v737_v58, %v625_v33 }
 0x23f   : > { %v632_v61 = vand.u32 2147483647, %v1531_v57  ;;  %v639_v62 = vmul.f32 0.3275911, %v631_v29  ;;  %v743_v10 = vsub.f32 0.0, %v631_v29  ;;  %v748_v16 = vmul.f32 %v740_v38, %v628_v36 }
 0x240   : > { %v637_v39 = vmul.f32 0.3275911, %v629_v60  ;;  %v630_v11 = vand.u32 2147483647, %v1537_v63  ;;  %v746_v17 = vmul.f32 %v738_v59, %v626_v37  ;;  %v741_v23 = vsub.f32 0.0, %v629_v60 }
 0x241   : > { %v640_v48 = vmul.f32 0.3275911, %v632_v61  ;;  %v647_v49 = vadd.f32 1.0, %v639_v62  ;;  %v757_v35 = vmul.f32 1.442695, %v747_v4  ;;  %v751_v42 = vmul.f32 %v743_v10, %v631_v29 }
 0x242   : > { %v645_v19 = vadd.f32 1.0, %v637_v39  ;;  %v638_v33 = vmul.f32 0.3275911, %v630_v11  ;;  %v753_v41 = vmul.f32 1.442695, %v745_v7  ;;  %v744_v43 = vsub.f32 0.0, %v632_v61 }
 0x243   : > { %1252 = vrcp.f32 %v647_v49  ;;  %v648_v26 = vadd.f32 1.0, %v640_v48  ;;  %v759_v37 = vmul.f32 1.442695, %v748_v16  ;;  %v755_v50 = vmul.f32 1.442695, %v746_v17 }
 0x244   : > { %1254 = vrcp.f32 %v645_v19  ;;  %v646_v45 = vadd.f32 1.0, %v638_v33  ;;  %v749_v28 = vmul.f32 %v741_v23, %v629_v60  ;;  %v765_v59 = vmul.f32 1.442695, %v751_v42 }
 0x245   : > { %v1541_v6 = vpop.eup %1244  ;;  %1256 = vrcp.f32 %v648_v26  ;;  %v752_v62 = vmul.f32 %v744_v43, %v632_v61  ;;  %v742_v49 = vsub.f32 0.0, %v630_v11  ;;  %v1563_v61 = vmul.f32 0.5, %v1495_v22 }
 0x246   : > { %v1544_v14 = vpop.eup %1246  ;;  %v667_v15 = vmul.f32 1.0614054, %v1541_v6  ;;  %1258 = vpow2.f32 %v757_v35  ;;  %v761_v60 = vmul.f32 1.442695, %v749_v28  ;;  %vm786_vm4 = vcmp.ge.f32.partialorder %v1512_v34, 0.0 }
 0x247   : > { %v665_v18 = vmul.f32 1.0614054, %v1544_v14  ;;  %v1548_v20 = vpop.eup %1248  ;;  %1260 = vrcp.f32 %v646_v45  ;;  %v610_v34 = vmul.f32 0.5, %v1504_v30  ;;  %vm791_vm6 = vcmp.ge.f32.partialorder %v1523_v21, 0.0 }
 0x248   : > { %v675_v31 = vadd.f32 -1.4531521, %v667_v15  ;;  %v668_v36 = vmul.f32 1.0614054, %v1548_v20  ;;  %v1552_v46 = vpop.eup %1250  ;;  %1262 = vpow2.f32 %v753_v41  ;;  %v750_v41 = vmul.f32 %v742_v49, %v630_v11 }
 0x249   : > { %v673_v40 = vadd.f32 -1.4531521, %v665_v18  ;;  %v666_v38 = vmul.f32 1.0614054, %v1552_v46  ;;  %1264 = vpow2.f32 %v759_v37  ;;  %v767_v18 = vmul.f32 1.442695, %v752_v62 }
 0x24a   : > { %v683_v44 = vmul.f32 %v1541_v6, %v675_v31  ;;  %v676_v58 = vadd.f32 -1.4531521, %v668_v36  ;;  %1266 = vpow2.f32 %v755_v50  ;;  %vm789_vm7 = vcmp.ge.f32.partialorder %v1528_v56, 0.0 }
 0x24b   : > { %v681_v47 = vmul.f32 %v1544_v14, %v673_v40  ;;  %v674_v48 = vadd.f32 -1.4531521, %v666_v38  ;;  %1268 = vpow2.f32 %v765_v59  ;;  %vm792_vm8 = vcmp.ge.f32.partialorder %v1531_v57, 0.0 }
 0x24c   : > { %v691_v55 = vadd.f32 1.4214138, %v683_v44  ;;  %v684_v39 = vmul.f32 %v1548_v20, %v676_v58  ;;  %1270 = vpow2.f32 %v761_v60  ;;  %vm790_vm9 = vcmp.ge.f32.partialorder %v1537_v63, 0.0 }
 0x24d   : > { %v689_v29 = vadd.f32 1.4214138, %v681_v47  ;;  %v682_v16 = vmul.f32 %v1552_v46, %v674_v48  ;;  %v1560_v17 = vpop.eup %1252  ;;  %v1577_v47 = vmul.f32 0.5, %v1499_v25  ;;  %1272 = vpow2.f32 %v767_v18 }
 0x24e   : > { %v699_v4 = vmul.f32 %v1541_v6, %v691_v55  ;;  %v692_v15 = vadd.f32 1.4214138, %v684_v39  ;;  %v1565_v23 = vpop.eup %1254  ;;  %v671_v33 = vmul.f32 1.0614054, %v1560_v17  ;;  %v763_v25 = vmul.f32 1.442695, %v750_v41 }
 0x24f   : > { %v697_v7 = vmul.f32 %v1544_v14, %v689_v29  ;;  %v690_v35 = vadd.f32 1.4214138, %v682_v16  ;;  %v669_v42 = vmul.f32 1.0614054, %v1565_v23  ;;  %v1573_v37 = vpop.eup %1256 }
 0x250   : > { %v707_v10 = vadd.f32 -0.28449672, %v699_v4  ;;  %v700_v31 = vmul.f32 %v1548_v20, %v692_v15  ;;  %v679_v36 = vadd.f32 -1.4531521, %v671_v33  ;;  %v1259_v28 = vpop.eup %1258  ;;  %v672_v62 = vmul.f32 1.0614054, %v1573_v37 }
 0x251   : > { %v705_v19 = vadd.f32 -0.28449672, %v697_v7  ;;  %v698_v44 = vmul.f32 %v1552_v46, %v690_v35  ;;  %v677_v50 = vadd.f32 -1.4531521, %v669_v42  ;;  %v1583_v29 = vpop.eup %1260  ;;  %1274 = vpow2.f32 %v763_v25 }
 0x252   : > { %v715_v26 = vmul.f32 %v1541_v6, %v707_v10  ;;  %v708_v43 = vadd.f32 -0.28449672, %v700_v31  ;;  %v687_v38 = vmul.f32 %v1560_v17, %v679_v36  ;;  %v1263_v39 = vpop.eup %1262  ;;  %v680_v15 = vadd.f32 -1.4531521, %v672_v62 }
 0x253   : > { %v713_v40 = vmul.f32 %v1544_v14, %v705_v19  ;;  %v706_v58 = vadd.f32 -0.28449672, %v698_v44  ;;  %v685_v4 = vmul.f32 %v1565_v23, %v677_v50  ;;  %v1265_v49 = vpop.eup %1264  ;;  %v670_v16 = vmul.f32 1.0614054, %v1583_v29 }
 0x254   : > { %v723_v22 = vadd.f32 0.2548296, %v715_v26  ;;  %v716_v55 = vmul.f32 %v1548_v20, %v708_v43  ;;  %v695_v60 = vadd.f32 1.4214138, %v687_v38  ;;  %v688_v41 = vmul.f32 %v1573_v37, %v680_v15 }
 0x255   : > { %v721_v45 = vadd.f32 0.2548296, %v713_v40  ;;  %v693_v19 = vadd.f32 1.4214138, %v685_v4  ;;  %v678_v42 = vadd.f32 -1.4531521, %v670_v16 }
 0x256   : > { %v731_v11 = vmul.f32 %v1541_v6, %v723_v22  ;;  %v724_v7 = vadd.f32 0.2548296, %v716_v55  ;;  %v714_v6 = vmul.f32 %v1552_v46, %v706_v58  ;;  %v703_v35 = vmul.f32 %v1560_v17, %v695_v60 }
 0x257   : > { %v729_v59 = vmul.f32 %v1544_v14, %v721_v45  ;;  %v1267_v14 = vpop.eup %1266  ;;  %v701_v22 = vmul.f32 %v1565_v23, %v693_v19 }
 0x258   : > { %v771_v48 = vmul.f32 %v1259_v28, %v731_v11  ;;  %v732_v26 = vmul.f32 %v1548_v20, %v724_v7  ;;  %v722_v31 = vadd.f32 0.2548296, %v714_v6  ;;  %v1269_v33 = vpop.eup %1268  ;;  %v711_v45 = vadd.f32 -0.28449672, %v703_v35 }
 0x259   : > { %v769_v10 = vmul.f32 %v1263_v39, %v729_v59  ;;  %v1271_v50 = vpop.eup %1270  ;;  %v696_v11 = vadd.f32 1.4214138, %v688_v41  ;;  %v686_v20 = vmul.f32 %v1583_v29, %v678_v42  ;;  %v709_v55 = vadd.f32 -0.28449672, %v701_v22 }
 0x25a   : > { %v779_v18 = vsub.f32 1.0, %v771_v48  ;;  %v772_v44 = vmul.f32 %v1265_v49, %v732_v26  ;;  %v730_v36 = vmul.f32 %v1552_v46, %v722_v31  ;;  %v719_v62 = vmul.f32 %v1560_v17, %v711_v45  ;;  %v1273_v4 = vpop.eup %1272 }
 0x25b   : > { %v777_v40 = vsub.f32 1.0, %v769_v10  ;;  %v704_v46 = vmul.f32 %v1573_v37, %v696_v11  ;;  %v694_v48 = vadd.f32 1.4214138, %v686_v20  ;;  %v717_v15 = vmul.f32 %v1565_v23, %v709_v55 }
 0x25c   : > { %v795_v43 = vsub.f32 0.0, %v779_v18  ;;  %v780_v38 = vsub.f32 1.0, %v772_v44  ;;  %v770_v59 = vmul.f32 %v1267_v14, %v730_v36  ;;  %v727_v49 = vadd.f32 0.2548296, %v719_v62 }
 0x25d   : > { %v793_v28 = vsub.f32 0.0, %v777_v40  ;;  %v712_v24 = vadd.f32 -0.28449672, %v704_v46  ;;  %v702_v10 = vmul.f32 %v1583_v29, %v694_v48  ;;  %v725_v31 = vadd.f32 0.2548296, %v717_v15 }
 0x25e   : > { %v803_v58 = vsel %vm787_vm1, %v779_v18, %v795_v43  ;;  %v796_v6 = vsub.f32 0.0, %v780_v38  ;;  %v778_v60 = vsub.f32 1.0, %v770_v59  ;;  %v735_v14 = vmul.f32 %v1560_v17, %v727_v49 }
 0x25f   : > { %v801_v39 = vsel %vm785_vm2, %v777_v40, %v793_v28  ;;  %v811_v7 = vadd.f32 1.0, %v803_v58  ;;  %v720_v18 = vmul.f32 %v1573_v37, %v712_v24  ;;  %v710_v26 = vadd.f32 -0.28449672, %v702_v10 }
 0x260   : > { %v809_v16 = vadd.f32 1.0, %v801_v39  ;;  %v804_v27 = vsel %vm788_vm3, %v780_v38, %v796_v6  ;;  %v794_v19 = vsub.f32 0.0, %v778_v60  ;;  %v775_v41 = vmul.f32 %v1269_v33, %v735_v14  ;;  %v1275_v33 = vpop.eup %1274  ;;  %v828_v14 = vld [vmem:[#allocation2 + $0x18] sm:$0xff] }
 0x261   : > { %v812_v25 = vadd.f32 1.0, %v804_v27  ;;  %v819_v35 = vmul.f32 %v811_v7, %v1539_v3  ;;  %v728_v43 = vadd.f32 0.2548296, %v720_v18  ;;  %v718_v32 = vmul.f32 %v1583_v29, %v710_v26  ;;  %v826_v18 = vld [vmem:[#allocation2 + $0x8] sm:$0xff] }
 0x262   : > { %v802_v40 = vsel %vm786_vm4, %v778_v60, %v794_v19  ;;  %v817_v44 = vmul.f32 %v809_v16, %v1563_v61  ;;  %v783_v17 = vsub.f32 1.0, %v775_v41  ;;  %v733_v36 = vmul.f32 %v1565_v23, %v725_v31  ;;  %v825_v19 = vld [vmem:[#allocation2] sm:$0xff] }
 0x263   : > { %v820_v42 = vmul.f32 %v812_v25, %v1577_v47  ;;  %v810_v22 = vadd.f32 1.0, %v802_v40  ;;  %v736_v11 = vmul.f32 %v1573_v37, %v728_v43  ;;  %v726_v3 = vadd.f32 0.2548296, %v718_v32  ;;  %v1148_v41 = vld [vmem:[%s1687_s6] ss:$0 sm:$0xff]  ;;  %v831_v43 = vld [vmem:[#allocation2 + $0x30] sm:$0xff] }
 0x264   : > { %v799_v20 = vsub.f32 0.0, %v783_v17  ;;  %v773_v30 = vmul.f32 %v1271_v50, %v733_v36  ;;  %v616_v48 = vmul.f32 0.5, %v1520_v53  ;;  %v613_v60 = vmul.f32 0.5, %v1518_v52  ;;  %v827_v53 = vld [vmem:[#allocation2 + $0x10] sm:$0xff] }
 0x265   : > { %v834_v45 = vpack.c.bf16 %v820_v42, %v819_v35  ;;  %v818_v28 = vmul.f32 %v810_v22, %v610_v34  ;;  %v776_v47 = vmul.f32 %v1273_v4, %v736_v11  ;;  %v734_v58 = vmul.f32 %v1583_v29, %v726_v3 }
 0x266   : > { %v781_v38 = vsub.f32 1.0, %v773_v30  ;;  %v807_v61 = vsel %vm791_vm6, %v783_v17, %v799_v20  ;;  %v615_v29 = vmul.f32 0.5, %v1516_v51  ;;  %v614_v10 = vmul.f32 0.5, %v1525_v54  ;;  %v829_v17 = vld [vmem:[#allocation2 + $0x20] sm:$0xff] }
 0x267   : > { %v833_v55 = vpack.c.bf16 %v818_v28, %v817_v44  ;;  %v784_v59 = vsub.f32 1.0, %v776_v47  ;;  %v774_v23 = vmul.f32 %v1275_v33, %v734_v58  ;;  %v815_v39 = vadd.f32 1.0, %v807_v61 }
 0x268   : > { %v797_v37 = vsub.f32 0.0, %v781_v38 }
 0x269   : > { %1182 = vmatprep.mubr.msk.bf16.mxu0 %vm869_vm5, %v833_v55  ;;  %v800_v62 = vsub.f32 0.0, %v784_v59  ;;  %v782_v50 = vsub.f32 1.0, %v774_v23  ;;  %v823_v56 = vmul.f32 %v815_v39, %v615_v29  ;;  %v830_v55 = vld [vmem:[#allocation2 + $0x28] sm:$0xff] }
 0x26a   : > { %1183 = vmatmul.mubr.msk.bf16.vlgmr.msra.gmra.mrb[8].mxu0 %vm869_vm5, %v834_v45  ;;  %v805_v4 = vsel %vm789_vm7, %v781_v38, %v797_v37 }
 0x26b   : > { %v808_v21 = vsel %vm792_vm8, %v784_v59, %v800_v62  ;;  %v798_v46 = vsub.f32 0.0, %v782_v50  ;;  %v813_v6 = vadd.f32 1.0, %v805_v4 }
 0x26c   : > { %v816_v7 = vadd.f32 1.0, %v808_v21 }
 0x26d   : > { %v806_v49 = vsel %vm790_vm9, %v782_v50, %v798_v46  ;;  %v821_v16 = vmul.f32 %v813_v6, %v613_v60 }
 0x26e   : > { %v824_v24 = vmul.f32 %v816_v7, %v616_v48  ;;  %v814_v15 = vadd.f32 1.0, %v806_v49 }
 0x270   : > { %v836_v57 = vpack.c.bf16 %v824_v24, %v823_v56  ;;  %v822_v27 = vmul.f32 %v814_v15, %v614_v10 }
 0x272   : > { %v835_v51 = vpack.c.bf16 %v822_v27, %v821_v16 }
 0x274   : > { %1186 = vmatprep.mubr.msk.bf16.mxu1 %vm869_vm5, %v835_v51 }
 0x275   : > { %1187 = vmatmul.mubr.msk.bf16.vlgmr.msra.gmra.mrb[0].mxu1 %vm869_vm5, %v836_v57 }
 0x33d   : > { %v1184_v63 = vpop.f32.mrb[8].mxu0 }
 0x33e   : > { %v949_v25 = vadd.f32 %v1184_v63, %v827_v53  ;;  %v916_v52 = vpop.f32.mrb[9].mxu0 }
 0x33f   : > { %v947_v26 = vadd.f32 %v916_v52, %v825_v19  ;;  %v1185_v31 = vpop.f32.mrb[10].mxu0 }
 0x340   : > { %957 = vst.msk [vmem:[#allocation2 + $0x10] sm:$0xff] %vm362_vm0, %v949_v25  ;;  %v950_v54 = vadd.f32 %v1185_v31, %v828_v14  ;;  %v919_v35 = vpop.f32.mrb[11].mxu0 }
 0x341   : > { %955 = vst.msk [vmem:[#allocation2] sm:$0xff] %vm362_vm0, %v947_v26  ;;  %v948_v34 = vadd.f32 %v919_v35, %v826_v18 }
 0x342   : > { %958 = vst.msk [vmem:[#allocation2 + $0x18] sm:$0xff] %vm362_vm0, %v950_v54 }
 0x343   : > { %956 = vst.msk [vmem:[#allocation2 + $0x8] sm:$0xff] %vm362_vm0, %v948_v34 }
 0x347   : > { %v976_v40 = vld [vmem:[#allocation2 + $0x10] sm:$0xff] }
 0x348   : > { %v984_v42 = vadd.f32 %v976_v40, %v1369_v1  ;;  %v974_v22 = vld [vmem:[#allocation2] sm:$0xff]  ;;  %v1188_v11 = vpop.f32.mrb[0].mxu1  ;;  %v832_v1 = vld [vmem:[#allocation2 + $0x38] sm:$0xff] }
 0x349   : > { %v982_v32 = vadd.f32 %v974_v22, %v1367_v0  ;;  %v977_v44 = vld [vmem:[#allocation2 + $0x18] sm:$0xff]  ;;  %v953_v30 = vadd.f32 %v1188_v11, %v831_v43  ;;  %v932_v33 = vpop.f32.mrb[1].mxu1 }
 0x34a   : > { %v999_v36 = vadd.f32 %v1148_v41, %v984_v42  ;;  %v985_v45 = vadd.f32 %v977_v44, %v1377_v5  ;;  %v975_v28 = vld [vmem:[#allocation2 + $0x8] sm:$0xff]  ;;  %v951_v47 = vadd.f32 %v932_v33, %v829_v17  ;;  %v1189_v58 = vpop.f32.mrb[2].mxu1 }
 0x34b   : > { %v997_v3 = vadd.f32 %v1148_v41, %v982_v32  ;;  %v983_v20 = vadd.f32 %v975_v28, %v1371_v2  ;;  %961 = vst.msk [vmem:[#allocation2 + $0x30] sm:$0xff] %vm362_vm0, %v953_v30  ;;  %v954_v5 = vadd.f32 %v1189_v58, %v832_v1  ;;  %v935_v61 = vpop.f32.mrb[3].mxu1 }
 0x34c   : > { %1007 = vst.msk [vmem:[%s1643_s12 + $0x10] sm:$0xff] %vm362_vm0, %v999_v36  ;;  %v1000_v0 = vadd.f32 %v1148_v41, %v985_v45  ;;  %959 = vst.msk [vmem:[#allocation2 + $0x20] sm:$0xff] %vm362_vm0, %v951_v47  ;;  %v952_v2 = vadd.f32 %v935_v61, %v830_v55 }
 0x34d   : > { %1005 = vst.msk [vmem:[%s1643_s12] sm:$0xff] %vm362_vm0, %v997_v3  ;;  %v998_v38 = vadd.f32 %v1148_v41, %v983_v20  ;;  %962 = vst.msk [vmem:[#allocation2 + $0x38] sm:$0xff] %vm362_vm0, %v954_v5 }
 0x34e   : > { %1008 = vst.msk [vmem:[%s1643_s12 + $0x18] sm:$0xff] %vm362_vm0, %v1000_v0  ;;  %960 = vst.msk [vmem:[#allocation2 + $0x28] sm:$0xff] %vm362_vm0, %v952_v2 }
 0x34f   : > { %1006 = vst.msk [vmem:[%s1643_s12 + $0x8] sm:$0xff] %vm362_vm0, %v998_v38 }
 0x352   : > { %v980_v59 = vld [vmem:[#allocation2 + $0x30] sm:$0xff] }
 0x353   : > { %v988_v23 = vadd.f32 %v980_v59, %v1391_v12  ;;  %v978_v37 = vld [vmem:[#allocation2 + $0x20] sm:$0xff] }
 0x354   : > { %v986_v62 = vadd.f32 %v978_v37, %v1383_v8  ;;  %v981_v50 = vld [vmem:[#allocation2 + $0x38] sm:$0xff] }
 0x355   : > { %v1003_v39 = vadd.f32 %v1148_v41, %v988_v23  ;;  %v989_v4 = vadd.f32 %v981_v50, %v1393_v13  ;;  %v979_v29 = vld [vmem:[#allocation2 + $0x28] sm:$0xff] }
 0x356   : > { %v1001_v21 = vadd.f32 %v1148_v41, %v986_v62  ;;  %v987_v46 = vadd.f32 %v979_v29, %v1385_v9 }
 0x357   : > { %1011 = vst.msk [vmem:[%s1643_s12 + $0x30] sm:$0xff] %vm362_vm0, %v1003_v39  ;;  %v1004_v48 = vadd.f32 %v1148_v41, %v989_v4 }
 0x358   : > { %1009 = vst.msk [vmem:[%s1643_s12 + $0x20] sm:$0xff] %vm362_vm0, %v1001_v21  ;;  %v1002_v7 = vadd.f32 %v1148_v41, %v987_v46 }
 0x359   : > { %1012 = vst.msk [vmem:[%s1643_s12 + $0x38] sm:$0xff] %vm362_vm0, %v1004_v48 }
 0x35a   : > { %1010 = vst.msk [vmem:[%s1643_s12 + $0x28] sm:$0xff] %vm362_vm0, %v1002_v7 }
 0x35b PF: > { %s17_s26 = sadd.s32 1, %s1298_s26   ;;  %s1689_s24 = smov %s1294_s25 }
 0x35c   : > { %p14_p5 = scmp.ge.s32.totalorder %s17_s26, 4   ;;  %s1690_s25 = smov %s1692_s27 }
 0x35e   :  { %16 = sbr.rel (!%p14_p5) target bundleno = 2 (0x2), region = 95 }

// kernel: swin_forward.26
= control target key start
LH: loop header
LB: loop body
LE: loop exit
PB: predicated region body
PF: predicated region fallthrough
CT: control target
= control target key end

     0   :  { %s1603_s12 = smov 0   ;;  %s1881_s0 = inlined_call_operand.vmem [shape: f32[8,16,48], index: 0, kind: input, shape index: {}]   ;;  %s1882_s1 = inlined_call_operand.vmem [shape: f32[2,16,16], index: 1, kind: input, shape index: {}]   ;;  %s1883_s2 = inlined_call_operand.vmem [shape: f32[4,16,16], index: 2, kind: input, shape index: {}]   ;;  %s1884_s3 = inlined_call_operand.vmem [shape: f32[8,16,16], index: 3, kind: output, shape index: {}]  }
   0x1 LB: > { %s1326_s13 = sadd.s32 4294967295, %s1573_s12   ;;  %p1330_p0 = scmp.ge.s32.totalorder %s1573_s12, 1  ;;  %s1573_s12 = sphi %s1603_s12, %s13_s12  }
   0x2   : > { %p139_p1 = scmp.lt.s32.totalorder %s1573_s12, 3 }
   0x4   : > { %p140_p2 = pnand %p1330_p0, %p139_p1 }
   0x5   : > { %s1331_s14 = sshll.u32 (!%p140_p2), %s1326_s13, 2  ;;  %v1575_v0 = vmov (!%p140_p2), 0.0   ;;  %vm1576_vm0 = vmmov (!%p140_p2), 0   ;;  %s1577_s19 = smov (!%p140_p2), 112   ;;  %vm203_vm1 = vcmask (!%p140_p2), 64512   ;;  %v409_v22 = vld [vmem:[%s1882_s1] sm:$0xff] (!%p140_p2) }
   0x6   : > { %143 = sbr.rel (%p140_p2) target bundleno = 1579 (0x62b), region = 32  ;;  %p166_p3 = scmp.lt.s32.totalorder (!%p140_p2), %s1331_s14, 7  ;;  %1391 = vmatprep.subr.bf16.mxu0 (!%p140_p2), %v1575_v0  ;;  %1397 = vmatprep.subr.bf16.mxu1 (!%p140_p2), %v1575_v0  ;;  %v410_v26 = vld [vmem:[%s1882_s1 + $0x8] sm:$0xff] (!%p140_p2)  ;;  %v1670_v27 = vld [vmem:[%s1883_s2] sm:$0xff] (!%p140_p2)  ;;  %vm427_vm2 = vcmask (!%p140_p2), 130048   ;;  %v1681_v38 = vld [vmem:[%s1883_s2 + $0x10] sm:$0xff] (!%p140_p2) }
   0x7   : > { %1393 = vmatprep.mubr.msk.bf16.mxu0 (!%p140_p2), %vm1576_vm0, %v1575_v0  ;;  %1399 = vmatprep.mubr.msk.bf16.mxu1 (!%p140_p2), %vm1576_vm0, %v1575_v0  ;;  %v1675_v32 = vld [vmem:[%s1883_s2 + $0x8] sm:$0xff] (!%p140_p2)  ;;  %v1688_v45 = vld [vmem:[%s1883_s2 + $0x18] sm:$0xff] (!%p140_p2)  ;;  %v1695_v52 = vld [vmem:[%s1883_s2 + $0x20] sm:$0xff] (!%p140_p2)  ;;  %s1578_s16 = smov (!%p140_p2), 96   ;;  %s1579_s17 = smov (!%p140_p2), 104   ;;  %vm1259_vm3 = vcmask (!%p140_p2), 130112  }
   0x8   : > { %v1702_v59 = vld [vmem:[%s1883_s2 + $0x28] sm:$0xff] (!%p140_p2)  ;;  %s1581_s24 = smov (!%p140_p2), 88   ;;  %s1582_s25 = smov (!%p140_p2), 8  }
   0xd   : > { %s1886_s14 = smov (!%p166_p3, %s1331_s14), 7 }
   0xe   : > { %s1357_s15 = sshll.u32 %s1886_s14, 4 }
   0xf   : > { %s170_s18 = scalar_lea.vmem %s1881_s0, %s1357_s15  ;;  %s1796_s21 = scalar_lea.vmem %s1884_s3, %s1357_s15 }
  0x10   : > { %v188_v1 = vld [vmem:[%s170_s18] sm:$0xff]  ;;  %v189_v2 = vld [vmem:[%s170_s18 + $0x8] sm:$0xff]  ;;  %v190_v3 = vld [vmem:[%s170_s18 + $0x10] sm:$0xff] }
  0x11   : > { %v1625_v4 = vpack.c.bf16 %v189_v2, %v188_v1  ;;  %v191_v5 = vld [vmem:[%s170_s18 + $0x18] sm:$0xff]  ;;  %v192_v6 = vld [vmem:[%s170_s18 + $0x20] sm:$0xff]  ;;  %v193_v7 = vld [vmem:[%s170_s18 + $0x28] sm:$0xff] }
  0x12   : > { %v1627_v8 = vpack.c.bf16 %v193_v7, %v192_v6  ;;  %v194_v9 = vld [vmem:[%s170_s18 + $0x30] sm:$0xff]  ;;  %v195_v10 = vld [vmem:[%s170_s18 + $0x38] sm:$0xff]  ;;  %v1630_v11 = vpack.c.bf16 %v191_v5, %v190_v3  ;;  %s1580_s18 = smov 120  }
  0x13   : > { %201 = vrot.lane.b32.xlu0 %v1625_v4, %s1577_s19  ;;  %v1633_v12 = vpack.c.bf16 %v195_v10, %v194_v9  ;;  %v1709_v3 = vld [vmem:[%s1883_s2 + $0x30] sm:$0xff] }
  0x14   : > { %302 = vrot.lane.b32.xlu1 %v1627_v8, %s1577_s19 }
  0x17   : > { %252 = vrot.lane.b32.xlu0 %v1630_v11, %s1577_s19 }
  0x18   : > { %352 = vrot.lane.b32.xlu1 %v1633_v12, %s1577_s19 }
  0x85   : > { %v202_v13 = vpop.permute.xlu0 %201 }
  0x86   : > { %v208_v14 = vsel %vm203_vm1, %v202_v13, 0  ;;  %v303_v15 = vpop.permute.xlu1 %302  ;;  %v1716_v13 = vld [vmem:[%s1883_s2 + $0x38] sm:$0xff] }
  0x87   : > { %1392 = vmatpush3.bf16.xpose.msra.mxu0 %v208_v14  ;;  %v308_v18 = vsel %vm203_vm1, %v303_v15, 0 }
  0x88   : > { %1403 = vmatprep.subr.bf16.mxu0 %v1575_v0 }
  0x89   : > { %v253_v16 = vpop.permute.xlu0 %252 }
  0x8a   : > { %v258_v17 = vsel %vm203_vm1, %v253_v16, 0  ;;  %v353_v19 = vpop.permute.xlu1 %352 }
  0x8b   : > { %1398 = vmatpush3.bf16.xpose.msra.mxu1 %v258_v17  ;;  %v358_v20 = vsel %vm203_vm1, %v353_v19, 0 }
  0x8c   : > { %1409 = vmatprep.subr.bf16.mxu1 %v1575_v0 }
  0x8e   : > { %1394 = vmatmul.mubr.msk.bf16.vlgmr.msra.gmra.mrb[0].mxu0 %vm203_vm1, %v1625_v4 }
  0x8f   : > { %1404 = vmatpush3.bf16.xpose.msra.mxu0 %v308_v18  ;;  %1405 = vmatprep.mubr.msk.bf16.mxu0 %vm1576_vm0, %v1575_v0 }
  0x90   : > { %1415 = vmatprep.subr.bf16.mxu0 %v1575_v0 }
  0x92   : > { %1400 = vmatmul.mubr.msk.bf16.vlgmr.msra.gmra.mrb[0].mxu1 %vm203_vm1, %v1630_v11 }
  0x93   : > { %1410 = vmatpush3.bf16.xpose.msra.mxu1 %v358_v20  ;;  %1411 = vmatprep.mubr.msk.bf16.mxu1 %vm1576_vm0, %v1575_v0 }
  0x94   : > { %1421 = vmatprep.subr.bf16.mxu1 %v1575_v0 }
  0x96   : > { %1406 = vmatmul.mubr.msk.bf16.vlgmr.msra.gmra.mrb[4].mxu0 %vm203_vm1, %v1627_v8 }
  0x97   : > { %1417 = vmatprep.mubr.msk.bf16.mxu0 %vm1576_vm0, %v1575_v0 }
  0x9a   : > { %1412 = vmatmul.mubr.msk.bf16.vlgmr.msra.gmra.mrb[4].mxu1 %vm203_vm1, %v1633_v12 }
  0x9b   : > { %1423 = vmatprep.mubr.msk.bf16.mxu1 %vm1576_vm0, %v1575_v0 }
 0x161   : > { %v244_v21 = vpop.f32.mrb[0].mxu0 }
 0x162   : > { %v401_v23 = vmul.f32 0.35355338, %v244_v21  ;;  %v1395_v24 = vpop.f32.mrb[1].mxu0 }
 0x163   : > { %v247_v25 = vpop.f32.mrb[2].mxu0 }
 0x164   : > { %v411_v28 = vadd.f32 %v409_v22, %v401_v23  ;;  %v402_v29 = vmul.f32 0.35355338, %v247_v25  ;;  %v1396_v30 = vpop.f32.mrb[3].mxu0 }
 0x165   : > { %v294_v31 = vpop.f32.mrb[0].mxu1 }
 0x166   : > { %v412_v33 = vadd.f32 %v410_v26, %v402_v29  ;;  %v403_v34 = vmul.f32 0.35355338, %v294_v31  ;;  %v1401_v35 = vpop.f32.mrb[1].mxu1  ;;  %v419_v36 = vadd.f32 %v411_v28, %v1670_v27 }
 0x167   : > { %v297_v37 = vpop.f32.mrb[2].mxu1 }
 0x168   : > { %v413_v39 = vadd.f32 %v409_v22, %v403_v34  ;;  %v404_v40 = vmul.f32 0.35355338, %v297_v37  ;;  %v1402_v41 = vpop.f32.mrb[3].mxu1  ;;  %v428_v42 = vsel %vm427_vm2, %v419_v36, -inf  ;;  %v420_v43 = vadd.f32 %v412_v33, %v1675_v32 }
 0x169   : > { %429 = vmax.xlane.f32.xlu0 %v428_v42  ;;  %v344_v44 = vpop.f32.mrb[4].mxu0 }
 0x16a   : > { %v414_v46 = vadd.f32 %v410_v26, %v404_v40  ;;  %v405_v47 = vmul.f32 0.35355338, %v344_v44  ;;  %v1407_v48 = vpop.f32.mrb[5].mxu0  ;;  %v431_v49 = vsel %vm427_vm2, %v420_v43, -inf  ;;  %v421_v50 = vadd.f32 %v413_v39, %v1681_v38 }
 0x16b   : > { %432 = vmax.xlane.f32.xlu1 %v431_v49  ;;  %v347_v51 = vpop.f32.mrb[6].mxu0 }
 0x16c   : > { %v415_v53 = vadd.f32 %v409_v22, %v405_v47  ;;  %v406_v54 = vmul.f32 0.35355338, %v347_v51  ;;  %v1408_v55 = vpop.f32.mrb[7].mxu0  ;;  %v434_v56 = vsel %vm427_vm2, %v421_v50, -inf  ;;  %v422_v57 = vadd.f32 %v414_v46, %v1688_v45 }
 0x16d   : > { %435 = vmax.xlane.f32.xlu0 %v434_v56  ;;  %v394_v58 = vpop.f32.mrb[4].mxu1 }
 0x16e   : > { %v416_v60 = vadd.f32 %v410_v26, %v406_v54  ;;  %v407_v61 = vmul.f32 0.35355338, %v394_v58  ;;  %v1413_v62 = vpop.f32.mrb[5].mxu1  ;;  %v423_v63 = vadd.f32 %v415_v53, %v1695_v52  ;;  %v437_v2 = vsel %vm427_vm2, %v422_v57, -inf }
 0x16f   : > { %v397_v1 = vpop.f32.mrb[6].mxu1 }
 0x170   : > { %v417_v5 = vadd.f32 %v409_v22, %v407_v61  ;;  %v408_v6 = vmul.f32 0.35355338, %v397_v1  ;;  %v1414_v7 = vpop.f32.mrb[7].mxu1  ;;  %v440_v9 = vsel %vm427_vm2, %v423_v63, -inf  ;;  %v424_v10 = vadd.f32 %v416_v60, %v1702_v59 }
 0x171   : > { %441 = vmax.xlane.f32.xlu1 %v440_v9  ;;  %438 = vmax.xlane.f32.xlu0 %v437_v2 }
 0x172   : > { %v418_v14 = vadd.f32 %v410_v26, %v408_v6  ;;  %v425_v15 = vadd.f32 %v417_v5, %v1709_v3  ;;  %v443_v16 = vsel %vm427_vm2, %v424_v10, -inf }
 0x174   : > { %v446_v17 = vsel %vm427_vm2, %v425_v15, -inf  ;;  %v426_v18 = vadd.f32 %v418_v14, %v1716_v13 }
 0x175   : > { %444 = vmax.xlane.f32.xlu0 %v443_v16  ;;  %447 = vmax.xlane.f32.xlu1 %v446_v17 }
 0x176   : > { %v449_v19 = vsel %vm427_vm2, %v426_v18, -inf }
 0x179   : > { %450 = vmax.xlane.f32.xlu0 %v449_v19 }
 0x186   : > { %520 = vrot.lane.b32.xlu1 %v1625_v4, %s1578_s16 }
 0x18a   : > { %614 = vrot.lane.b32.xlu1 %v1627_v8, %s1578_s16 }
 0x18e   : > { %661 = vrot.lane.b32.xlu1 %v1633_v12, %s1578_s16 }
 0x18f   : > { %567 = vrot.lane.b32.xlu0 %v1630_v11, %s1578_s16 }
 0x1f6   : > { %v430_v20 = vpop.xlane.xlu0 %429 }
 0x1f7   : > { %v452_v21 = vsub.f32 %v419_v36, %v430_v20 }
 0x1f8   : > { %v433_v22 = vpop.xlane.xlu1 %432 }
 0x1f9   : > { %v460_v23 = vmul.f32 1.442695, %v452_v21  ;;  %v453_v24 = vsub.f32 %v420_v43, %v433_v22 }
 0x1fa   : > { %v436_v25 = vpop.xlane.xlu0 %435 }
 0x1fb   : > { %1503 = vpow2.f32 %v460_v23  ;;  %v462_v26 = vmul.f32 1.442695, %v453_v24  ;;  %v454_v28 = vsub.f32 %v421_v50, %v436_v25 }
 0x1fd   : > { %1505 = vpow2.f32 %v462_v26  ;;  %v464_v29 = vmul.f32 1.442695, %v454_v28 }
 0x1fe   : > { %v442_v30 = vpop.xlane.xlu1 %441  ;;  %v439_v31 = vpop.xlane.xlu0 %438 }
 0x1ff   : > { %1507 = vpow2.f32 %v464_v29  ;;  %v456_v33 = vsub.f32 %v423_v63, %v442_v30  ;;  %v455_v34 = vsub.f32 %v422_v57, %v439_v31 }
 0x201   : > { %v468_v35 = vmul.f32 1.442695, %v456_v33  ;;  %v466_v37 = vmul.f32 1.442695, %v455_v34 }
 0x202   : > { %v448_v39 = vpop.xlane.xlu1 %447  ;;  %v445_v40 = vpop.xlane.xlu0 %444 }
 0x203   : > { %1509 = vpow2.f32 %v468_v35  ;;  %v458_v36 = vsub.f32 %v425_v15, %v448_v39  ;;  %v457_v41 = vsub.f32 %v424_v10, %v445_v40 }
 0x204   : > { %1511 = vpow2.f32 %v466_v37 }
 0x205   : > { %v1727_v42 = vpop.eup %1503  ;;  %v472_v43 = vmul.f32 1.442695, %v458_v36  ;;  %v470_v44 = vmul.f32 1.442695, %v457_v41 }
 0x206   : > { %v451_v46 = vpop.xlane.xlu0 %450  ;;  %v476_v47 = vsel %vm427_vm2, %v1727_v42, 0.0  ;;  %v521_v48 = vpop.permute.xlu1 %520 }
 0x207   : > { %v1506_v49 = vpop.eup %1505  ;;  %1513 = vpow2.f32 %v472_v43  ;;  %v459_v50 = vsub.f32 %v426_v18, %v451_v46  ;;  %477 = vadd.xlane.f32.xlu1 %v476_v47  ;;  %1416 = vmatpush3.bf16.msra.mxu0 %v521_v48 }
 0x208   : > { %1515 = vpow2.f32 %v470_v44  ;;  %v479_v51 = vsel %vm427_vm2, %v1506_v49, 0.0  ;;  %1427 = vmatprep.subr.bf16.mxu0 %v1575_v0 }
 0x209   : > { %v1733_v53 = vpop.eup %1507  ;;  %v474_v54 = vmul.f32 1.442695, %v459_v50  ;;  %480 = vadd.xlane.f32.xlu0 %v479_v51 }
 0x20a   : > { %v482_v55 = vsel %vm427_vm2, %v1733_v53, 0.0  ;;  %v568_v56 = vpop.permute.xlu0 %567  ;;  %v615_v7 = vpop.permute.xlu1 %614 }
 0x20b   : > { %1517 = vpow2.f32 %v474_v54  ;;  %483 = vadd.xlane.f32.xlu1 %v482_v55  ;;  %1422 = vmatpush3.bf16.msra.mxu1 %v568_v56 }
 0x20c   : > { %1433 = vmatprep.subr.bf16.mxu1 %v1575_v0 }
 0x20d   : > { %v1510_v57 = vpop.eup %1509 }
 0x20e   : > { %v1512_v58 = vpop.eup %1511  ;;  %v488_v60 = vsel %vm427_vm2, %v1510_v57, 0.0  ;;  %v662_v9 = vpop.permute.xlu1 %661 }
 0x20f   : > { %489 = vadd.xlane.f32.xlu1 %v488_v60  ;;  %v485_v61 = vsel %vm427_vm2, %v1512_v58, 0.0 }
 0x210   : > { %486 = vadd.xlane.f32.xlu0 %v485_v61 }
 0x211   : > { %v1740_v62 = vpop.eup %1513 }
 0x212   : > { %v1516_v63 = vpop.eup %1515  ;;  %v494_v1 = vsel %vm427_vm2, %v1740_v62, 0.0 }
 0x213   : > { %495 = vadd.xlane.f32.xlu1 %v494_v1  ;;  %v491_v2 = vsel %vm427_vm2, %v1516_v63, 0.0 }
 0x214   : > { %492 = vadd.xlane.f32.xlu0 %v491_v2 }
 0x215   : > { %v1518_v5 = vpop.eup %1517 }
 0x216   : > { %v497_v6 = vsel %vm427_vm2, %v1518_v5, 0.0 }
 0x218   : > { %498 = vadd.xlane.f32.xlu0 %v497_v6 }
 0x224   : > { %769 = vrot.lane.b32.xlu1 %v1630_v11, %s1579_s17 }
 0x228   : > { %820 = vrot.lane.b32.xlu1 %v1627_v8, %s1579_s17 }
 0x22c   : > { %871 = vrot.lane.b32.xlu1 %v1633_v12, %s1579_s17 }
 0x22e   : > { %718 = vrot.lane.b32.xlu0 %v1625_v4, %s1579_s17 }
 0x230   : > { %869 = vrot.lane.b32.xlu1 %v1633_v12, %s1580_s18 }
 0x232   : > { %716 = vrot.lane.b32.xlu0 %v1625_v4, %s1580_s18 }
 0x236   : > { %767 = vrot.lane.b32.xlu0 %v1630_v11, %s1580_s18 }
 0x23a   : > { %818 = vrot.lane.b32.xlu0 %v1627_v8, %s1580_s18 }
 0x294   : > { %v478_v10 = vpop.xlane.xlu1 %477 }
 0x295   : > { %1519 = vrcp.f32 %v478_v10 }
 0x296   : > { %v481_v14 = vpop.xlane.xlu0 %480 }
 0x297   : > { %1521 = vrcp.f32 %v481_v14 }
 0x298   : > { %v484_v15 = vpop.xlane.xlu1 %483 }
 0x299   : > { %1523 = vrcp.f32 %v484_v15 }
 0x29c   : > { %v490_v16 = vpop.xlane.xlu1 %489 }
 0x29d   : > { %v487_v17 = vpop.xlane.xlu0 %486 }
 0x29e   : > { %1525 = vrcp.f32 %v487_v17 }
 0x29f   : > { %v1520_v18 = vpop.eup %1519  ;;  %1527 = vrcp.f32 %v490_v16 }
 0x2a0   : > { %v496_v20 = vpop.xlane.xlu1 %495  ;;  %v508_v22 = vmul.f32 %v1520_v18, %v1727_v42 }
 0x2a1   : > { %v1522_v19 = vpop.eup %1521  ;;  %v493_v21 = vpop.xlane.xlu0 %492 }
 0x2a2   : > { %v509_v23 = vmul.f32 %v1522_v19, %v1506_v49  ;;  %1529 = vrcp.f32 %v493_v21  ;;  %v1349_v19 = vld [vmem:[%s1882_s1 + $0x10] sm:$0xff] }
 0x2a3   : > { %1531 = vrcp.f32 %v496_v20  ;;  %v1524_v26 = vpop.eup %1523 }
 0x2a4   : > { %v516_v24 = vpack.c.bf16 %v509_v23, %v508_v22  ;;  %v510_v29 = vmul.f32 %v1524_v26, %v1733_v53  ;;  %v770_v40 = vpop.permute.xlu1 %769  ;;  %v1350_v23 = vld [vmem:[%s1882_s1 + $0x18] sm:$0xff] }
 0x2a5   : > { %v499_v25 = vpop.xlane.xlu0 %498  ;;  %v775_v50 = vsel %vm203_vm1, %v770_v40, 0 }
 0x2a6   : > { %1533 = vrcp.f32 %v499_v25  ;;  %1418 = vmatmul.mubr.msk.bf16.vlgmr.msra.gmra.mrb[8].mxu0 %vm427_vm2, %v516_v24 }
 0x2a7   : > { %1428 = vmatpush3.bf16.msra.mxu0 %v615_v7  ;;  %1429 = vmatprep.mubr.msk.bf16.mxu0 %vm1576_vm0, %v1575_v0 }
 0x2a8   : > { %v1526_v28 = vpop.eup %1525  ;;  %1439 = vmatprep.subr.bf16.mxu0 %v1575_v0  ;;  %v821_v49 = vpop.permute.xlu1 %820 }
 0x2a9   : > { %v511_v30 = vmul.f32 %v1526_v28, %v1512_v58  ;;  %v1528_v31 = vpop.eup %1527  ;;  %v719_v35 = vpop.permute.xlu0 %718  ;;  %v826_v51 = vsel %vm203_vm1, %v821_v49, 0 }
 0x2aa   : > { %v512_v37 = vmul.f32 %v1528_v31, %v1510_v57  ;;  %v724_v41 = vsel %vm203_vm1, %v719_v35, 0 }
 0x2ab   : > { %v517_v33 = vpack.c.bf16 %v511_v30, %v510_v29 }
 0x2ac   : > { %v1530_v34 = vpop.eup %1529  ;;  %v872_v54 = vpop.permute.xlu1 %871 }
 0x2ad   : > { %v513_v39 = vmul.f32 %v1530_v34, %v1516_v63  ;;  %1424 = vmatmul.mubr.msk.bf16.vlgmr.msra.gmra.mrb[8].mxu1 %vm427_vm2, %v517_v33  ;;  %v1532_v36 = vpop.eup %1531  ;;  %v717_v47 = vpop.permute.xlu0 %716  ;;  %v877_v55 = vsel %vm203_vm1, %v872_v54, 0 }
 0x2ae   : > { %1434 = vmatpush3.bf16.msra.mxu1 %v662_v9  ;;  %1435 = vmatprep.mubr.msk.bf16.mxu1 %vm1576_vm0, %v1575_v0  ;;  %v514_v44 = vmul.f32 %v1532_v36, %v1740_v62 }
 0x2af   : > { %v518_v42 = vpack.c.bf16 %v513_v39, %v512_v37  ;;  %1445 = vmatprep.subr.bf16.mxu1 %v1575_v0 }
 0x2b0   : > { %v1534_v43 = vpop.eup %1533  ;;  %v870_v57 = vpop.permute.xlu1 %869 }
 0x2b1   : > { %v515_v46 = vmul.f32 %v1534_v43, %v1518_v5  ;;  %1430 = vmatmul.mubr.msk.bf16.vlgmr.msra.gmra.mrb[12].mxu0 %vm427_vm2, %v518_v42  ;;  %v768_v53 = vpop.permute.xlu0 %767 }
 0x2b2   : > { %1440 = vmatpush3.bf16.xpose.msra.mxu0 %v724_v41  ;;  %1441 = vmatprep.mubr.msk.bf16.mxu0 %vm1576_vm0, %v1575_v0 }
 0x2b3   : > { %v519_v48 = vpack.c.bf16 %v515_v46, %v514_v44  ;;  %1451 = vmatprep.subr.bf16.mxu0 %v1575_v0 }
 0x2b5   : > { %1436 = vmatmul.mubr.msk.bf16.vlgmr.msra.gmra.mrb[12].mxu1 %vm427_vm2, %v519_v48  ;;  %v819_v56 = vpop.permute.xlu0 %818 }
 0x2b6   : > { %1447 = vmatprep.mubr.msk.bf16.mxu1 %vm1576_vm0, %v1575_v0 }
 0x2b7   : > { %1446 = vmatpush3.bf16.xpose.msra.mxu1 %v775_v50 }
 0x2b8   : > { %1457 = vmatprep.subr.bf16.mxu1 %v1575_v0 }
 0x2b9   : > { %1442 = vmatmul.mubr.msk.bf16.vlgmr.msra.gmra.mrb[16].mxu0 %vm203_vm1, %v717_v47 }
 0x2ba   : > { %1452 = vmatpush3.bf16.xpose.msra.mxu0 %v826_v51  ;;  %1453 = vmatprep.mubr.msk.bf16.mxu0 %vm1576_vm0, %v1575_v0 }
 0x2bb   : > { %1463 = vmatprep.subr.bf16.mxu0 %v1575_v0 }
 0x2be   : > { %1448 = vmatmul.mubr.msk.bf16.vlgmr.msra.gmra.mrb[16].mxu1 %vm203_vm1, %v768_v53 }
 0x2bf   : > { %1458 = vmatpush3.bf16.xpose.msra.mxu1 %v877_v55  ;;  %1459 = vmatprep.mubr.msk.bf16.mxu1 %vm1576_vm0, %v1575_v0 }
 0x2c0   : > { %1469 = vmatprep.subr.bf16.mxu1 %v1575_v0 }
 0x2c1   : > { %1454 = vmatmul.mubr.msk.bf16.vlgmr.msra.gmra.mrb[20].mxu0 %vm203_vm1, %v819_v56 }
 0x2c2   : > { %1465 = vmatprep.mubr.msk.bf16.mxu0 %vm1576_vm0, %v1575_v0 }
 0x2c6   : > { %1460 = vmatmul.mubr.msk.bf16.vlgmr.msra.gmra.mrb[20].mxu1 %vm203_vm1, %v870_v57 }
 0x2c7   : > { %1471 = vmatprep.mubr.msk.bf16.mxu1 %vm1576_vm0, %v1575_v0 }
 0x379   : > { %v560_v58 = vpop.f32.mrb[8].mxu0 }
 0x37a   : > { %708 = vst.msk [vmem:[%s1796_s21] sm:$0xff] %vm203_vm1, %v560_v58  ;;  %v1419_v60 = vpop.f32.mrb[9].mxu0 }
 0x37b   : > { %v563_v61 = vpop.f32.mrb[10].mxu0 }
 0x37c   : > { %709 = vst.msk [vmem:[%s1796_s21 + $0x8] sm:$0xff] %vm203_vm1, %v563_v61  ;;  %v1420_v62 = vpop.f32.mrb[11].mxu0 }
 0x380   : > { %v607_v63 = vpop.f32.mrb[8].mxu1 }
 0x381   : > { %710 = vst.msk [vmem:[%s1796_s21 + $0x10] sm:$0xff] %vm203_vm1, %v607_v63  ;;  %v1425_v1 = vpop.f32.mrb[9].mxu1 }
 0x382   : > { %v610_v2 = vpop.f32.mrb[10].mxu1 }
 0x383   : > { %711 = vst.msk [vmem:[%s1796_s21 + $0x18] sm:$0xff] %vm203_vm1, %v610_v2  ;;  %v1426_v5 = vpop.f32.mrb[11].mxu1 }
 0x384   : > { %v654_v6 = vpop.f32.mrb[12].mxu0 }
 0x385   : > { %712 = vst.msk [vmem:[%s1796_s21 + $0x20] sm:$0xff] %vm203_vm1, %v654_v6  ;;  %v1431_v7 = vpop.f32.mrb[13].mxu0 }
 0x386   : > { %v657_v9 = vpop.f32.mrb[14].mxu0 }
 0x387   : > { %713 = vst.msk [vmem:[%s1796_s21 + $0x28] sm:$0xff] %vm203_vm1, %v657_v9  ;;  %v1432_v10 = vpop.f32.mrb[15].mxu0 }
 0x388   : > { %v701_v14 = vpop.f32.mrb[12].mxu1 }
 0x389   : > { %714 = vst.msk [vmem:[%s1796_s21 + $0x30] sm:$0xff] %vm203_vm1, %v701_v14  ;;  %v1437_v15 = vpop.f32.mrb[13].mxu1 }
 0x38a   : > { %v704_v16 = vpop.f32.mrb[14].mxu1 }
 0x38b   : > { %715 = vst.msk [vmem:[%s1796_s21 + $0x38] sm:$0xff] %vm203_vm1, %v704_v16  ;;  %v1438_v17 = vpop.f32.mrb[15].mxu1 }
 0x38c   : > { %v760_v18 = vpop.f32.mrb[16].mxu0 }
 0x38d   : > { %v920_v20 = vmul.f32 0.35355338, %v760_v18  ;;  %v1443_v21 = vpop.f32.mrb[17].mxu0 }
 0x38e   : > { %v763_v22 = vpop.f32.mrb[18].mxu0 }
 0x38f   : > { %v931_v24 = vadd.f32 %v1349_v19, %v920_v20  ;;  %v921_v25 = vmul.f32 0.35355338, %v763_v22  ;;  %v1444_v26 = vpop.f32.mrb[19].mxu0 }
 0x391   : > { %v932_v28 = vadd.f32 %v1350_v23, %v921_v25  ;;  %v811_v29 = vpop.f32.mrb[16].mxu1  ;;  %v939_v30 = vadd.f32 %v931_v24, %v1670_v27 }
 0x392   : > { %v922_v31 = vmul.f32 0.35355338, %v811_v29  ;;  %v1449_v33 = vpop.f32.mrb[17].mxu1 }
 0x393   : > { %v814_v34 = vpop.f32.mrb[18].mxu1  ;;  %v947_v35 = vsel %vm427_vm2, %v939_v30, -inf  ;;  %v940_v37 = vadd.f32 %v932_v28, %v1675_v32 }
 0x394   : > { %v933_v39 = vadd.f32 %v1349_v19, %v922_v31  ;;  %v923_v40 = vmul.f32 0.35355338, %v814_v34  ;;  %v1450_v36 = vpop.f32.mrb[19].mxu1  ;;  %948 = vmax.xlane.f32.xlu0 %v947_v35  ;;  %v862_v41 = vpop.f32.mrb[20].mxu0 }
 0x395   : > { %v924_v42 = vmul.f32 0.35355338, %v862_v41  ;;  %v1455_v43 = vpop.f32.mrb[21].mxu0  ;;  %v950_v44 = vsel %vm427_vm2, %v940_v37, -inf }
 0x396   : > { %v934_v46 = vadd.f32 %v1350_v23, %v923_v40  ;;  %951 = vmax.xlane.f32.xlu1 %v950_v44  ;;  %v865_v47 = vpop.f32.mrb[22].mxu0  ;;  %v941_v27 = vadd.f32 %v933_v39, %v1681_v38 }
 0x397   : > { %v935_v48 = vadd.f32 %v1349_v19, %v924_v42  ;;  %v925_v49 = vmul.f32 0.35355338, %v865_v47  ;;  %v1456_v50 = vpop.f32.mrb[23].mxu0 }
 0x398   : > { %v953_v51 = vsel %vm427_vm2, %v941_v27, -inf  ;;  %v942_v32 = vadd.f32 %v934_v46, %v1688_v45 }
 0x399   : > { %v936_v53 = vadd.f32 %v1350_v23, %v925_v49  ;;  %954 = vmax.xlane.f32.xlu0 %v953_v51  ;;  %v913_v54 = vpop.f32.mrb[20].mxu1  ;;  %v943_v55 = vadd.f32 %v935_v48, %v1695_v52 }
 0x39a   : > { %v926_v56 = vmul.f32 0.35355338, %v913_v54  ;;  %v1461_v57 = vpop.f32.mrb[21].mxu1  ;;  %v956_v63 = vsel %vm427_vm2, %v942_v32, -inf }
 0x39b   : > { %v916_v58 = vpop.f32.mrb[22].mxu1  ;;  %v959_v60 = vsel %vm427_vm2, %v943_v55, -inf  ;;  %v944_v1 = vadd.f32 %v936_v53, %v1702_v59 }
 0x39c   : > { %v937_v61 = vadd.f32 %v1349_v19, %v926_v56  ;;  %v927_v62 = vmul.f32 0.35355338, %v916_v58  ;;  %v1462_v38 = vpop.f32.mrb[23].mxu1  ;;  %960 = vmax.xlane.f32.xlu1 %v959_v60 }
 0x39d   : > { %957 = vmax.xlane.f32.xlu0 %v956_v63  ;;  %v962_v52 = vsel %vm427_vm2, %v944_v1, -inf }
 0x39e   : > { %v938_v45 = vadd.f32 %v1350_v23, %v927_v62  ;;  %v945_v2 = vadd.f32 %v937_v61, %v1709_v3 }
 0x3a0   : > { %v965_v5 = vsel %vm427_vm2, %v945_v2, -inf  ;;  %v946_v6 = vadd.f32 %v938_v45, %v1716_v13 }
 0x3a1   : > { %966 = vmax.xlane.f32.xlu1 %v965_v5  ;;  %963 = vmax.xlane.f32.xlu0 %v962_v52 }
 0x3a2   : > { %v968_v7 = vsel %vm427_vm2, %v946_v6, -inf }
 0x3a5   : > { %969 = vmax.xlane.f32.xlu0 %v968_v7 }
 0x3b2   : > { %1039 = vrot.lane.b32.xlu1 %v1625_v4, %s1581_s24 }
 0x421   : > { %v949_v59 = vpop.xlane.xlu0 %948 }
 0x422   : > { %v971_v9 = vsub.f32 %v939_v30, %v949_v59 }
 0x423   : > { %v952_v10 = vpop.xlane.xlu1 %951 }
 0x424   : > { %v979_v14 = vmul.f32 1.442695, %v971_v9  ;;  %v972_v3 = vsub.f32 %v940_v37, %v952_v10 }
 0x426   : > { %1535 = vpow2.f32 %v979_v14  ;;  %v981_v15 = vmul.f32 1.442695, %v972_v3  ;;  %v955_v16 = vpop.xlane.xlu0 %954 }
 0x427   : > { %v973_v17 = vsub.f32 %v941_v27, %v955_v16 }
 0x428   : > { %1537 = vpow2.f32 %v981_v15 }
 0x429   : > { %v983_v13 = vmul.f32 1.442695, %v973_v17  ;;  %v961_v18 = vpop.xlane.xlu1 %960 }
 0x42a   : > { %v975_v19 = vsub.f32 %v943_v55, %v961_v18  ;;  %v958_v20 = vpop.xlane.xlu0 %957 }
 0x42b   : > { %1539 = vpow2.f32 %v983_v13  ;;  %v974_v21 = vsub.f32 %v942_v32, %v958_v20 }
 0x42c   : > { %v987_v22 = vmul.f32 1.442695, %v975_v19 }
 0x42d   : > { %v985_v23 = vmul.f32 1.442695, %v974_v21 }
 0x42e   : > { %1541 = vpow2.f32 %v987_v22  ;;  %v967_v4 = vpop.xlane.xlu1 %966  ;;  %v964_v24 = vpop.xlane.xlu0 %963 }
 0x42f   : > { %1543 = vpow2.f32 %v985_v23  ;;  %v977_v25 = vsub.f32 %v945_v2, %v967_v4  ;;  %v976_v26 = vsub.f32 %v944_v1, %v964_v24 }
 0x430   : > { %v1536_v28 = vpop.eup %1535 }
 0x431   : > { %v991_v29 = vmul.f32 1.442695, %v977_v25  ;;  %v989_v30 = vmul.f32 1.442695, %v976_v26  ;;  %v995_v31 = vsel %vm427_vm2, %v1536_v28, 0.0 }
 0x432   : > { %v1538_v33 = vpop.eup %1537  ;;  %v970_v34 = vpop.xlane.xlu0 %969  ;;  %996 = vadd.xlane.f32.xlu1 %v995_v31 }
 0x433   : > { %v1040_v35 = vpop.permute.xlu1 %1039  ;;  %1545 = vpow2.f32 %v991_v29  ;;  %v978_v37 = vsub.f32 %v946_v6, %v970_v34  ;;  %v998_v39 = vsel %vm427_vm2, %v1538_v33, 0.0 }
 0x434   : > { %1464 = vmatpush3.bf16.msra.mxu0 %v1040_v35  ;;  %1547 = vpow2.f32 %v989_v30  ;;  %999 = vadd.xlane.f32.xlu0 %v998_v39 }
 0x435   : > { %1475 = vmatprep.subr.bf16.mxu0 %v1575_v0  ;;  %v1540_v40 = vpop.eup %1539  ;;  %v993_v36 = vmul.f32 1.442695, %v978_v37 }
 0x436   : > { %v1001_v41 = vsel %vm427_vm2, %v1540_v40, 0.0 }
 0x437   : > { %1549 = vpow2.f32 %v993_v36  ;;  %1002 = vadd.xlane.f32.xlu1 %v1001_v41 }
 0x438   : > { %v1542_v42 = vpop.eup %1541 }
 0x439   : > { %v1544_v43 = vpop.eup %1543  ;;  %v1007_v44 = vsel %vm427_vm2, %v1542_v42, 0.0 }
 0x43a   : > { %v1004_v46 = vsel %vm427_vm2, %v1544_v43, 0.0 }
 0x43b   : > { %1008 = vadd.xlane.f32.xlu1 %v1007_v44  ;;  %1005 = vadd.xlane.f32.xlu0 %v1004_v46 }
 0x43d   : > { %v1546_v47 = vpop.eup %1545 }
 0x43e   : > { %v1548_v27 = vpop.eup %1547  ;;  %v1013_v48 = vsel %vm427_vm2, %v1546_v47, 0.0 }
 0x43f   : > { %1014 = vadd.xlane.f32.xlu1 %v1013_v48  ;;  %v1010_v49 = vsel %vm427_vm2, %v1548_v27, 0.0 }
 0x440   : > { %1011 = vadd.xlane.f32.xlu0 %v1010_v49 }
 0x441   : > { %v1550_v50 = vpop.eup %1549 }
 0x442   : > { %v1016_v51 = vsel %vm427_vm2, %v1550_v50, 0.0 }
 0x444   : > { %1017 = vadd.xlane.f32.xlu0 %v1016_v51 }
 0x450   : > { %1133 = vrot.lane.b32.xlu1 %v1627_v8, %s1581_s24 }
 0x454   : > { %1180 = vrot.lane.b32.xlu1 %v1633_v12, %s1581_s24 }
 0x45a   : > { %1086 = vrot.lane.b32.xlu0 %v1630_v11, %s1581_s24 }
 0x4bf   : > { %v997_v32 = vpop.xlane.xlu1 %996 }
 0x4c0   : > { %1551 = vrcp.f32 %v997_v32 }
 0x4c1   : > { %v1000_v53 = vpop.xlane.xlu0 %999 }
 0x4c2   : > { %1553 = vrcp.f32 %v1000_v53 }
 0x4c4   : > { %v1003_v54 = vpop.xlane.xlu1 %1002 }
 0x4c5   : > { %1555 = vrcp.f32 %v1003_v54 }
 0x4c8   : > { %v1009_v55 = vpop.xlane.xlu1 %1008  ;;  %v1006_v56 = vpop.xlane.xlu0 %1005 }
 0x4c9   : > { %1557 = vrcp.f32 %v1006_v56 }
 0x4ca   : > { %v1552_v57 = vpop.eup %1551  ;;  %1559 = vrcp.f32 %v1009_v55 }
 0x4cb   : > { %v1027_v8 = vmul.f32 %v1552_v57, %v1536_v28 }
 0x4cc   : > { %v1554_v58 = vpop.eup %1553  ;;  %v1015_v60 = vpop.xlane.xlu1 %1014 }
 0x4cd   : > { %v1028_v61 = vmul.f32 %v1554_v58, %v1538_v33  ;;  %v1012_v62 = vpop.xlane.xlu0 %1011 }
 0x4ce   : > { %1561 = vrcp.f32 %v1012_v62 }
 0x4cf   : > { %v1035_v12 = vpack.c.bf16 %v1028_v61, %v1027_v8  ;;  %1563 = vrcp.f32 %v1015_v60  ;;  %v1556_v63 = vpop.eup %1555 }
 0x4d0   : > { %v1134_v11 = vpop.permute.xlu1 %1133  ;;  %v1029_v45 = vmul.f32 %v1556_v63, %v1540_v40 }
 0x4d1   : > { %v1018_v38 = vpop.xlane.xlu0 %1017  ;;  %1466 = vmatmul.mubr.msk.bf16.vlgmr.msra.gmra.mrb[24].mxu0 %vm427_vm2, %v1035_v12 }
 0x4d2   : > { %1565 = vrcp.f32 %v1018_v38  ;;  %1476 = vmatpush3.bf16.msra.mxu0 %v1134_v11  ;;  %1477 = vmatprep.mubr.msk.bf16.mxu0 %vm1576_vm0, %v1575_v0 }
 0x4d3   : > { %v1558_v1 = vpop.eup %1557 }
 0x4d4   : > { %v1030_v2 = vmul.f32 %v1558_v1, %v1544_v43  ;;  %v1560_v52 = vpop.eup %1559  ;;  %v1181_v7 = vpop.permute.xlu1 %1180 }
 0x4d5   : > { %v1087_v5 = vpop.permute.xlu0 %1086  ;;  %v1031_v9 = vmul.f32 %v1560_v52, %v1542_v42 }
 0x4d6   : > { %1470 = vmatpush3.bf16.msra.mxu1 %v1087_v5  ;;  %v1036_v6 = vpack.c.bf16 %v1030_v2, %v1029_v45 }
 0x4d7   : > { %1481 = vmatprep.subr.bf16.mxu1 %v1575_v0 }
 0x4d8   : > { %v1562_v59 = vpop.eup %1561 }
 0x4d9   : > { %v1032_v10 = vmul.f32 %v1562_v59, %v1548_v27  ;;  %1472 = vmatmul.mubr.msk.bf16.vlgmr.msra.gmra.mrb[24].mxu1 %vm427_vm2, %v1036_v6  ;;  %v1564_v14 = vpop.eup %1563 }
 0x4da   : > { %1482 = vmatpush3.bf16.msra.mxu1 %v1181_v7  ;;  %1483 = vmatprep.mubr.msk.bf16.mxu1 %vm1576_vm0, %v1575_v0  ;;  %v1033_v16 = vmul.f32 %v1564_v14, %v1546_v47 }
 0x4db   : > { %v1037_v3 = vpack.c.bf16 %v1032_v10, %v1031_v9 }
 0x4dc   : > { %v1566_v15 = vpop.eup %1565 }
 0x4dd   : > { %v1034_v17 = vmul.f32 %v1566_v15, %v1550_v50  ;;  %1478 = vmatmul.mubr.msk.bf16.vlgmr.msra.gmra.mrb[28].mxu0 %vm427_vm2, %v1037_v3 }
 0x4df   : > { %v1038_v13 = vpack.c.bf16 %v1034_v17, %v1033_v16 }
 0x4e1   : > { %1484 = vmatmul.mubr.msk.bf16.vlgmr.msra.gmra.mrb[28].mxu1 %vm427_vm2, %v1038_v13 }
 0x5a4   : > { %v1079_v18 = vpop.f32.mrb[24].mxu0 }
 0x5a5   : > { %1235 = vrot.lane.b32.xlu0 %v1079_v18, %s1582_s25  ;;  %v1467_v19 = vpop.f32.mrb[25].mxu0 }
 0x5a6   : > { %v1082_v20 = vpop.f32.mrb[26].mxu0 }
 0x5a7   : > { %1237 = vrot.lane.b32.xlu1 %v1082_v20, %s1582_s25  ;;  %v1468_v21 = vpop.f32.mrb[27].mxu0 }
 0x5ac   : > { %v1126_v22 = vpop.f32.mrb[24].mxu1 }
 0x5ad   : > { %1239 = vrot.lane.b32.xlu0 %v1126_v22, %s1582_s25  ;;  %v1473_v23 = vpop.f32.mrb[25].mxu1 }
 0x5ae   : > { %v1129_v0 = vpop.f32.mrb[26].mxu1 }
 0x5af   : > { %1241 = vrot.lane.b32.xlu1 %v1129_v0, %s1582_s25  ;;  %v1474_v4 = vpop.f32.mrb[27].mxu1 }
 0x5b0   : > { %v1173_v24 = vpop.f32.mrb[28].mxu0 }
 0x5b1   : > { %v1479_v25 = vpop.f32.mrb[29].mxu0  ;;  %1243 = vrot.lane.b32.xlu0 %v1173_v24, %s1582_s25 }
 0x5b2   : > { %v1176_v26 = vpop.f32.mrb[30].mxu0 }
 0x5b3   : > { %v1480_v28 = vpop.f32.mrb[31].mxu0  ;;  %1245 = vrot.lane.b32.xlu1 %v1176_v26, %s1582_s25 }
 0x5b4   : > { %v1220_v29 = vpop.f32.mrb[28].mxu1 }
 0x5b5   : > { %1247 = vrot.lane.b32.xlu0 %v1220_v29, %s1582_s25  ;;  %v1485_v30 = vpop.f32.mrb[29].mxu1 }
 0x5b6   : > { %v1223_v31 = vpop.f32.mrb[30].mxu1 }
 0x5b7   : > { %1249 = vrot.lane.b32.xlu1 %v1223_v31, %s1582_s25  ;;  %v1486_v33 = vpop.f32.mrb[31].mxu1 }
 0x617   : > { %v1236_v34 = vpop.permute.xlu0 %1235 }
 0x618   : > { %1260 = vst.msk [vmem:[%s1796_s21] sm:$0xff] %vm1259_vm3, %v1236_v34 }
 0x619   : > { %v1238_v35 = vpop.permute.xlu1 %1237 }
 0x61a   : > { %1261 = vst.msk [vmem:[%s1796_s21 + $0x8] sm:$0xff] %vm1259_vm3, %v1238_v35 }
 0x61f   : > { %v1240_v37 = vpop.permute.xlu0 %1239 }
 0x620   : > { %1262 = vst.msk [vmem:[%s1796_s21 + $0x10] sm:$0xff] %vm1259_vm3, %v1240_v37 }
 0x621   : > { %v1242_v39 = vpop.permute.xlu1 %1241 }
 0x622   : > { %1263 = vst.msk [vmem:[%s1796_s21 + $0x18] sm:$0xff] %vm1259_vm3, %v1242_v39 }
 0x623   : > { %v1244_v40 = vpop.permute.xlu0 %1243 }
 0x624   : > { %1264 = vst.msk [vmem:[%s1796_s21 + $0x20] sm:$0xff] %vm1259_vm3, %v1244_v40 }
 0x625   : > { %v1246_v36 = vpop.permute.xlu1 %1245 }
 0x626   : > { %1265 = vst.msk [vmem:[%s1796_s21 + $0x28] sm:$0xff] %vm1259_vm3, %v1246_v36 }
 0x627   : > { %v1248_v41 = vpop.permute.xlu0 %1247 }
 0x628   : > { %1266 = vst.msk [vmem:[%s1796_s21 + $0x30] sm:$0xff] %vm1259_vm3, %v1248_v41 }
 0x629   : > { %v1250_v42 = vpop.permute.xlu1 %1249 }
 0x62a   : > { %1267 = vst.msk [vmem:[%s1796_s21 + $0x38] sm:$0xff] %vm1259_vm3, %v1250_v42 }
 0x62b PF: > { %s13_s12 = sadd.s32 1, %s1573_s12  }
 0x62c   : > { %p10_p4 = scmp.ge.s32.totalorder %s13_s12, 4  }
 0x62e   :  { %12 = sbr.rel (!%p10_p4) target bundleno = 1 (0x1), region = 63 }

// kernel: swin_forward.30
= control target key start
LH: loop header
LB: loop body
LE: loop exit
PB: predicated region body
PF: predicated region fallthrough
CT: control target
= control target key end

     0   :  { %s626_s18 = smov 0   ;;  %s628_s19 = smov 0   ;;  %s687_s0 = inlined_call_operand.vmem [shape: f32[32,32], index: 0, kind: input, shape index: {}]   ;;  %s688_s1 = inlined_call_operand.vmem [shape: f32[1,32], index: 1, kind: input, shape index: {}]   ;;  %s689_s2 = inlined_call_operand.vmem [shape: f32[1,32], index: 2, kind: input, shape index: {}]   ;;  %s690_s3 = inlined_call_operand.vmem [shape: bf16[32,96], index: 3, kind: input, shape index: {}]   ;;  %s691_s4 = inlined_call_operand.vmem [shape: f32[1,96], index: 4, kind: input, shape index: {}]   ;;  %s692_s5 = inlined_call_operand.vmem [shape: f32[32,96], index: 5, kind: output, shape index: {}]  }
   0x1   :  { %s630_s20 = smov 0  }
   0x2 LB: > { %s27_s21 = sadd.s32 1, %s588_s19  ;;  %p514_p0 = scmp.ge.s32.totalorder %s592_s20, 1  ;;  %s592_s20 = sphi %s630_s20, %s15_s20   ;;  %s588_s19 = sphi %s628_s19, %s694_s19   ;;  %s584_s18 = sphi %s626_s18, %s693_s18  }
   0x3   : > { %p29_p1 = scmp.ge.s32.totalorder %s27_s21, 2  ;;  %p219_p2 = scmp.lt.s32.totalorder %s592_s20, 3 }
   0x5   : > { %s696_s21 = smov (%p29_p1, %s27_s21), 0  ;;  %p220_p3 = pnand %p514_p0, %p219_p2 }
   0x6   : > { %s515_s22 = sshll.u32 (!%p220_p3), %s584_s18, 1  ;;  %vm288_vm0 = vcmask (!%p220_p3), 261120   ;;  %v564_v14 = vld [vmem:[%s690_s3] sm:$0xff] (!%p220_p3)   ;;  %v594_v15 = vmov (!%p220_p3), 0.0   ;;  %v565_v16 = vld [vmem:[%s690_s3 + $0x8] sm:$0xff] (!%p220_p3)   ;;  %vm595_vm1 = vmmov (!%p220_p3), 0  }
   0x7   : > { %223 = sbr.rel (%p220_p3) target bundleno = 562 (0x232), region = 40  ;;  %p258_p4 = scmp.lt.s32.totalorder (!%p220_p3), %s515_s22, 3  ;;  %530 = vmatprep.subr.bf16.mxu0 (!%p220_p3), %v594_v15  ;;  %534 = vmatprep.mubr.msk.bf16.mxu0 (!%p220_p3), %vm595_vm1, %v594_v15  ;;  %v519_v25 = vld [vmem:[%s688_s1] ss:$0 sm:$0xff] (!%p220_p3)  ;;  %vm403_vm2 = vcmask (!%p220_p3), 785408  }
   0x8   : > { %531 = vmatpush3.bf16.msra.mxu0 (!%p220_p3), %v564_v14  ;;  %v520_v29 = vld [vmem:[%s689_s2] ss:$0 sm:$0xff] (!%p220_p3) }
   0x9   : > { %532 = vmatprep.subr.bf16.mxu0 (!%p220_p3), %v594_v15  ;;  %v521_v35 = vld [vmem:[%s691_s4] ss:$0 sm:$0xff] (!%p220_p3) }
   0xc   : > { %533 = vmatpush3.bf16.msra.mxu0 (!%p220_p3), %v565_v16 }
   0xe   : > { %s698_s22 = smov (!%p258_p4, %s515_s22), 3 }
   0xf   : > { %s516_s23 = sshll.u32 %s698_s22, 3 }
  0x10   : > { %s261_s26 = scalar_lea.vmem %s687_s0, %s516_s23  ;;  %s277_s14 = scalar_lea.vmem %s692_s5, %s516_s23 }
  0x11   : > { %v284_v0 = vld [vmem:[%s261_s26] sm:$0xff]  ;;  %v285_v1 = vld [vmem:[%s261_s26 + $0x8] sm:$0xff] }
  0x12   : > { %v289_v2 = vsel %vm288_vm0, %v284_v0, 0.0  ;;  %v292_v3 = vsel %vm288_vm0, %v285_v1, 0.0 }
  0x13   : > { %290 = vadd.xlane.f32.xlu0 %v289_v2 }
  0x17   : > { %293 = vadd.xlane.f32.xlu0 %v292_v3 }
  0xa0   : > { %v291_v4 = vpop.xlane.xlu0 %290 }
  0xa1   : > { %v296_v5 = vmul.f32 0.03125, %v291_v4 }
  0xa3   : > { %v298_v6 = vsub.f32 %v284_v0, %v296_v5 }
  0xa4   : > { %v294_v7 = vpop.xlane.xlu0 %293 }
  0xa5   : > { %v297_v8 = vmul.f32 0.03125, %v294_v7  ;;  %v300_v9 = vmul.f32 %v298_v6, %v298_v6 }
  0xa7   : > { %v299_v10 = vsub.f32 %v285_v1, %v297_v8  ;;  %v302_v11 = vsel %vm288_vm0, %v300_v9, 0.0 }
  0xa8   : > { %303 = vadd.xlane.f32.xlu1 %v302_v11 }
  0xa9   : > { %v301_v12 = vmul.f32 %v299_v10, %v299_v10 }
  0xab   : > { %v305_v13 = vsel %vm288_vm0, %v301_v12, 0.0 }
  0xac   : > { %306 = vadd.xlane.f32.xlu1 %v305_v13 }
 0x135   : > { %v304_v17 = vpop.xlane.xlu1 %303 }
 0x136   : > { %v308_v18 = vmul.f32 0.03125, %v304_v17 }
 0x138   : > { %v310_v19 = vadd.f32 1e-05, %v308_v18 }
 0x139   : > { %v307_v20 = vpop.xlane.xlu1 %306 }
 0x13a   : > { %566 = vrsqrt.f32 %v310_v19  ;;  %v309_v21 = vmul.f32 0.03125, %v307_v20 }
 0x13c   : > { %v311_v22 = vadd.f32 1e-05, %v309_v21 }
 0x13e   : > { %568 = vrsqrt.f32 %v311_v22 }
 0x144   : > { %v567_v23 = vpop.eup %566 }
 0x145   : > { %v314_v24 = vmul.f32 %v567_v23, %v298_v6 }
 0x147   : > { %v322_v27 = vmul.f32 %v519_v25, %v314_v24 }
 0x148   : > { %v569_v26 = vpop.eup %568 }
 0x149   : > { %v315_v28 = vmul.f32 %v569_v26, %v299_v10  ;;  %v330_v31 = vadd.f32 %v520_v29, %v322_v27 }
 0x14b   : > { %v323_v30 = vmul.f32 %v519_v25, %v315_v28 }
 0x14d   : > { %v331_v32 = vadd.f32 %v520_v29, %v323_v30 }
 0x14f   : > { %v332_v33 = vpack.c.bf16 %v331_v32, %v330_v31 }
 0x151   : > { %333 = vst.msk [vmem:[#allocation2] sm:$0xff] %vm288_vm0, %v332_v33 }
 0x158   : > { %v334_v34 = vld [vmem:[#allocation2] sm:$0xff] }
 0x159   : > { %535 = vmatmul.mubr.msk.bf16.vlgmr.msra.gmra.mrb[0].mxu0 %vm288_vm0, %v334_v34 }
 0x22c   : > { %v396_v36 = vpop.f32.mrb[0].mxu0 }
 0x22d   : > { %v397_v37 = vadd.f32 %v521_v35, %v396_v36  ;;  %v536_v38 = vpop.f32.mrb[1].mxu0 }
 0x22e   : > { %v399_v39 = vpop.f32.mrb[2].mxu0 }
 0x22f   : > { %404 = vst.msk [vmem:[%s277_s14] sm:$0xff] %vm403_vm2, %v397_v37  ;;  %v400_v40 = vadd.f32 %v521_v35, %v399_v39  ;;  %v537_v41 = vpop.f32.mrb[3].mxu0 }
 0x231   : > { %405 = vst.msk [vmem:[%s277_s14 + $0x8] sm:$0xff] %vm403_vm2, %v400_v40 }
 0x232 PF: > { %s15_s20 = sadd.s32 1, %s592_s20   ;;  %s693_s18 = smov %s588_s19 }
 0x233   : > { %p12_p5 = scmp.ge.s32.totalorder %s15_s20, 4   ;;  %s694_s19 = smov %s696_s21 }
 0x235   :  { %14 = sbr.rel (!%p12_p5) target bundleno = 2 (0x2), region = 80 }

// kernel: swin_forward.29
= control target key start
LH: loop header
LB: loop body
LE: loop exit
PB: predicated region body
PF: predicated region fallthrough
CT: control target
= control target key end

     0   :  { %s652_s18 = smov 0   ;;  %s654_s19 = smov 0   ;;  %s719_s0 = inlined_call_operand.vmem [shape: f32[32,64], index: 0, kind: input, shape index: {}]   ;;  %s720_s1 = inlined_call_operand.vmem [shape: f32[1,64], index: 1, kind: input, shape index: {}]   ;;  %s721_s2 = inlined_call_operand.vmem [shape: f32[1,64], index: 2, kind: input, shape index: {}]   ;;  %s722_s3 = inlined_call_operand.vmem [shape: bf16[64,32], index: 3, kind: input, shape index: {}]   ;;  %s723_s4 = inlined_call_operand.vmem [shape: f32[1,32], index: 4, kind: input, shape index: {}]   ;;  %s724_s5 = inlined_call_operand.vmem [shape: f32[32,32], index: 5, kind: output, shape index: {}]  }
   0x1   :  { %s656_s20 = smov 0  }
   0x2 LB: > { %s27_s21 = sadd.s32 1, %s614_s19  ;;  %p530_p0 = scmp.ge.s32.totalorder %s618_s20, 1  ;;  %s618_s20 = sphi %s656_s20, %s15_s20   ;;  %s614_s19 = sphi %s654_s19, %s726_s19   ;;  %s610_s18 = sphi %s652_s18, %s725_s18  }
   0x3   : > { %p29_p1 = scmp.ge.s32.totalorder %s27_s21, 2  ;;  %p219_p2 = scmp.lt.s32.totalorder %s618_s20, 3 }
   0x5   : > { %s728_s21 = smov (%p29_p1, %s27_s21), 0  ;;  %p220_p3 = pnand %p530_p0, %p219_p2 }
   0x6   : > { %s531_s22 = sshll.u32 (!%p220_p3), %s610_s18, 1  ;;  %vm288_vm0 = vcmask (!%p220_p3), 523264   ;;  %v588_v14 = vld [vmem:[%s722_s3] sm:$0xff] (!%p220_p3)   ;;  %v620_v15 = vmov (!%p220_p3), 0.0   ;;  %v589_v16 = vld [vmem:[%s722_s3 + $0x8] sm:$0xff] (!%p220_p3)   ;;  %v590_v17 = vld [vmem:[%s722_s3 + $0x10] sm:$0xff] (!%p220_p3)  }
   0x7   : > { %223 = sbr.rel (%p220_p3) target bundleno = 562 (0x232), region = 40  ;;  %p258_p4 = scmp.lt.s32.totalorder (!%p220_p3), %s531_s22, 3  ;;  %550 = vmatprep.subr.bf16.mxu0 (!%p220_p3), %v620_v15  ;;  %v591_v18 = vld [vmem:[%s722_s3 + $0x18] sm:$0xff] (!%p220_p3)   ;;  %vm621_vm1 = vmmov (!%p220_p3), 0   ;;  %v535_v27 = vld [vmem:[%s720_s1] ss:$0 sm:$0xff] (!%p220_p3) }
   0x8   : > { %551 = vmatpush3.bf16.msra.mxu0 (!%p220_p3), %v588_v14  ;;  %558 = vmatprep.mubr.msk.bf16.mxu0 (!%p220_p3), %vm621_vm1, %v620_v15  ;;  %v536_v31 = vld [vmem:[%s721_s2] ss:$0 sm:$0xff] (!%p220_p3)  ;;  %vm419_vm2 = vcmask (!%p220_p3), 261120  }
   0x9   : > { %552 = vmatprep.subr.bf16.mxu0 (!%p220_p3), %v620_v15  ;;  %v537_v37 = vld [vmem:[%s723_s4] ss:$0 sm:$0xff] (!%p220_p3) }
   0xc   : > { %553 = vmatpush3.bf16.msra.mxu0 (!%p220_p3), %v589_v16 }
   0xd   : > { %554 = vmatprep.subr.bf16.mxu0 (!%p220_p3), %v620_v15 }
   0xe   : > { %s730_s22 = smov (!%p258_p4, %s531_s22), 3 }
   0xf   : > { %s532_s23 = sshll.u32 %s730_s22, 3 }
  0x10   : > { %s261_s26 = scalar_lea.vmem %s719_s0, %s532_s23  ;;  %555 = vmatpush3.bf16.msra.mxu0 %v590_v17  ;;  %s277_s18 = scalar_lea.vmem %s724_s5, %s532_s23 }
  0x11   : > { %v284_v0 = vld [vmem:[%s261_s26] sm:$0xff]  ;;  %v285_v1 = vld [vmem:[%s261_s26 + $0x8] sm:$0xff]  ;;  %556 = vmatprep.subr.bf16.mxu0 %v620_v15 }
  0x12   : > { %v289_v2 = vsel %vm288_vm0, %v284_v0, 0.0  ;;  %v292_v3 = vsel %vm288_vm0, %v285_v1, 0.0 }
  0x13   : > { %290 = vadd.xlane.f32.xlu0 %v289_v2 }
  0x14   : > { %557 = vmatpush3.bf16.msra.mxu0 %v591_v18 }
  0x17   : > { %293 = vadd.xlane.f32.xlu0 %v292_v3 }
  0xa0   : > { %v291_v4 = vpop.xlane.xlu0 %290 }
  0xa1   : > { %v296_v5 = vmul.f32 0.015625, %v291_v4 }
  0xa3   : > { %v298_v6 = vsub.f32 %v284_v0, %v296_v5 }
  0xa4   : > { %v294_v7 = vpop.xlane.xlu0 %293 }
  0xa5   : > { %v297_v8 = vmul.f32 0.015625, %v294_v7  ;;  %v300_v9 = vmul.f32 %v298_v6, %v298_v6 }
  0xa7   : > { %v299_v10 = vsub.f32 %v285_v1, %v297_v8  ;;  %v302_v11 = vsel %vm288_vm0, %v300_v9, 0.0 }
  0xa8   : > { %303 = vadd.xlane.f32.xlu1 %v302_v11 }
  0xa9   : > { %v301_v12 = vmul.f32 %v299_v10, %v299_v10 }
  0xab   : > { %v305_v13 = vsel %vm288_vm0, %v301_v12, 0.0 }
  0xac   : > { %306 = vadd.xlane.f32.xlu1 %v305_v13 }
 0x135   : > { %v304_v19 = vpop.xlane.xlu1 %303 }
 0x136   : > { %v308_v20 = vmul.f32 0.015625, %v304_v19 }
 0x138   : > { %v310_v21 = vadd.f32 1e-05, %v308_v20 }
 0x139   : > { %v307_v22 = vpop.xlane.xlu1 %306 }
 0x13a   : > { %592 = vrsqrt.f32 %v310_v21  ;;  %v309_v23 = vmul.f32 0.015625, %v307_v22 }
 0x13c   : > { %v311_v24 = vadd.f32 1e-05, %v309_v23 }
 0x13e   : > { %594 = vrsqrt.f32 %v311_v24 }
 0x144   : > { %v593_v25 = vpop.eup %592 }
 0x145   : > { %v314_v26 = vmul.f32 %v593_v25, %v298_v6 }
 0x147   : > { %v322_v29 = vmul.f32 %v535_v27, %v314_v26 }
 0x148   : > { %v595_v28 = vpop.eup %594 }
 0x149   : > { %v315_v30 = vmul.f32 %v595_v28, %v299_v10  ;;  %v330_v33 = vadd.f32 %v536_v31, %v322_v29 }
 0x14b   : > { %v323_v32 = vmul.f32 %v535_v27, %v315_v30 }
 0x14d   : > { %v331_v34 = vadd.f32 %v536_v31, %v323_v32 }
 0x14f   : > { %v332_v35 = vpack.c.bf16 %v331_v34, %v330_v33 }
 0x151   : > { %333 = vst.msk [vmem:[#allocation2] sm:$0xff] %vm288_vm0, %v332_v35 }
 0x158   : > { %v334_v36 = vld [vmem:[#allocation2] sm:$0xff] }
 0x159   : > { %559 = vmatmul.mubr.msk.bf16.vlgmr.msra.gmra.mrb[0].mxu0 %vm288_vm0, %v334_v36 }
 0x22c   : > { %v412_v38 = vpop.f32.mrb[0].mxu0 }
 0x22d   : > { %v413_v39 = vadd.f32 %v537_v37, %v412_v38  ;;  %v560_v40 = vpop.f32.mrb[1].mxu0 }
 0x22e   : > { %v415_v41 = vpop.f32.mrb[2].mxu0 }
 0x22f   : > { %420 = vst.msk [vmem:[%s277_s18] sm:$0xff] %vm419_vm2, %v413_v39  ;;  %v416_v42 = vadd.f32 %v537_v37, %v415_v41  ;;  %v561_v43 = vpop.f32.mrb[3].mxu0 }
 0x231   : > { %421 = vst.msk [vmem:[%s277_s18 + $0x8] sm:$0xff] %vm419_vm2, %v416_v42 }
 0x232 PF: > { %s15_s20 = sadd.s32 1, %s618_s20   ;;  %s725_s18 = smov %s614_s19 }
 0x233   : > { %p12_p5 = scmp.ge.s32.totalorder %s15_s20, 4   ;;  %s726_s19 = smov %s728_s21 }
 0x235   :  { %14 = sbr.rel (!%p12_p5) target bundleno = 2 (0x2), region = 80 }

// kernel: swin_forward.32
= control target key start
LH: loop header
LB: loop body
LE: loop exit
PB: predicated region body
PF: predicated region fallthrough
CT: control target
= control target key end

     0   :  { %s652_s15 = smov 0   ;;  %s654_s16 = smov 0   ;;  %s704_s0 = inlined_call_operand.vmem [shape: f32[32,32], index: 0, kind: input, shape index: {}]   ;;  %s705_s1 = inlined_call_operand.vmem [shape: bf16[32,32], index: 1, kind: input, shape index: {}]   ;;  %s706_s2 = inlined_call_operand.vmem [shape: f32[1,32], index: 2, kind: input, shape index: {}]   ;;  %s707_s3 = inlined_call_operand.vmem [shape: f32[32,32], index: 3, kind: input, shape index: {}]   ;;  %s708_s4 = inlined_call_operand.vmem [shape: f32[32,32], index: 4, kind: output, shape index: {}]  }
   0x1   :  { %s656_s17 = smov 0  }
   0x2 LB: > { %s33_s18 = sadd.s32 1, %s619_s16  ;;  %p549_p0 = scmp.ge.s32.totalorder %s623_s17, 1  ;;  %s623_s17 = sphi %s656_s17, %s14_s17   ;;  %s619_s16 = sphi %s654_s16, %s710_s16   ;;  %s615_s15 = sphi %s652_s15, %s709_s15  }
   0x3   : > { %p35_p1 = scmp.ge.s32.totalorder %s33_s18, 2  ;;  %p229_p2 = scmp.lt.s32.totalorder %s623_s17, 3 }
   0x5   : > { %s712_s18 = smov (%p35_p1, %s33_s18), 0  ;;  %p230_p3 = pnand %p549_p0, %p229_p2 }
   0x6   : > { %v599_v0 = vld [vmem:[%s705_s1] sm:$0xff] (!%p230_p3)   ;;  %v625_v1 = vmov (!%p230_p3), 0.0   ;;  %v600_v2 = vld [vmem:[%s705_s1 + $0x8] sm:$0xff] (!%p230_p3)   ;;  %vm626_vm0 = vmmov (!%p230_p3), 0   ;;  %s550_s23 = sshll.u32 (!%p230_p3), %s615_s15, 1  ;;  %vm324_vm1 = vcmask (!%p230_p3), 261120  }
   0x7   : > { %233 = sbr.rel (%p230_p3) target bundleno = 249 (0xf9), region = 36  ;;  %565 = vmatprep.subr.bf16.mxu0 (!%p230_p3), %v625_v1  ;;  %569 = vmatprep.mubr.msk.bf16.mxu0 (!%p230_p3), %vm626_vm0, %v625_v1  ;;  %p281_p4 = scmp.lt.s32.totalorder (!%p230_p3), %s550_s23, 3  ;;  %325 = vst.msk [vmem:[#allocation2] sm:$0xff] (!%p230_p3), %vm324_vm1, %v625_v1  ;;  %326 = vst.msk [vmem:[#allocation2 + $0x8] sm:$0xff] (!%p230_p3), %vm324_vm1, %v625_v1  ;;  %v559_v14 = vld [vmem:[%s706_s2] ss:$0 sm:$0xff] (!%p230_p3) }
   0x8   : > { %566 = vmatpush3.bf16.msra.mxu0 (!%p230_p3), %v599_v0 }
   0x9   : > { %567 = vmatprep.subr.bf16.mxu0 (!%p230_p3), %v625_v1 }
   0xc   : > { %568 = vmatpush3.bf16.msra.mxu0 (!%p230_p3), %v600_v2 }
   0xe   : > { %s714_s23 = smov (!%p281_p4, %s550_s23), 3  ;;  %v327_v6 = vld [vmem:[#allocation2] sm:$0xff]  ;;  %v328_v8 = vld [vmem:[#allocation2 + $0x8] sm:$0xff] }
   0xf   : > { %s551_s24 = sshll.u32 %s714_s23, 3 }
  0x10   : > { %s287_s27 = scalar_lea.vmem %s704_s0, %s551_s24  ;;  %s308_s30 = scalar_lea.vmem %s707_s3, %s551_s24 }
  0x11   : > { %v329_v3 = vld [vmem:[%s287_s27] sm:$0xff]  ;;  %v330_v4 = vld [vmem:[%s287_s27 + $0x8] sm:$0xff]  ;;  %s317_s9 = scalar_lea.vmem %s708_s4, %s551_s24 }
  0x12   : > { %v331_v5 = vpack.c.bf16 %v330_v4, %v329_v3  ;;  %v411_v15 = vld [vmem:[%s308_s30] sm:$0xff]  ;;  %v412_v18 = vld [vmem:[%s308_s30 + $0x8] sm:$0xff] }
  0x14   : > { %570 = vmatmul.mubr.msk.bf16.vlgmr.msra.gmra.mrb[0].mxu0 %vm324_vm1, %v331_v5 }
  0xe7   : > { %v386_v7 = vpop.f32.mrb[0].mxu0 }
  0xe8   : > { %v393_v9 = vadd.f32 %v386_v7, %v327_v6  ;;  %v571_v10 = vpop.f32.mrb[1].mxu0 }
  0xe9   : > { %v389_v11 = vpop.f32.mrb[2].mxu0 }
  0xea   : > { %395 = vst.msk [vmem:[#allocation2] sm:$0xff] %vm324_vm1, %v393_v9  ;;  %v394_v12 = vadd.f32 %v389_v11, %v328_v8  ;;  %v572_v13 = vpop.f32.mrb[3].mxu0 }
  0xec   : > { %396 = vst.msk [vmem:[#allocation2 + $0x8] sm:$0xff] %vm324_vm1, %v394_v12 }
  0xf1   : > { %v400_v16 = vld [vmem:[#allocation2] sm:$0xff] }
  0xf2   : > { %v409_v17 = vadd.f32 %v559_v14, %v400_v16 }
  0xf3   : > { %v401_v19 = vld [vmem:[#allocation2 + $0x8] sm:$0xff] }
  0xf4   : > { %v413_v20 = vadd.f32 %v411_v15, %v409_v17  ;;  %v410_v21 = vadd.f32 %v559_v14, %v401_v19 }
  0xf6   : > { %415 = vst.msk [vmem:[%s317_s9] sm:$0xff] %vm324_vm1, %v413_v20  ;;  %v414_v22 = vadd.f32 %v412_v18, %v410_v21 }
  0xf8   : > { %416 = vst.msk [vmem:[%s317_s9 + $0x8] sm:$0xff] %vm324_vm1, %v414_v22 }
  0xf9 PF: > { %s14_s17 = sadd.s32 1, %s623_s17   ;;  %s709_s15 = smov %s619_s16 }
  0xfa   : > { %p11_p5 = scmp.ge.s32.totalorder %s14_s17, 4   ;;  %s710_s16 = smov %s712_s18 }
  0xfc   :  { %13 = sbr.rel (!%p11_p5) target bundleno = 2 (0x2), region = 83 }

// kernel: swin_forward.31
= control target key start
LH: loop header
LB: loop body
LE: loop exit
PB: predicated region body
PF: predicated region fallthrough
CT: control target
= control target key end

     0   :  { %s936_s9 = smov 0   ;;  %s1062_s0 = inlined_call_operand.vmem [shape: f32[2,16,96], index: 0, kind: input, shape index: {}]   ;;  %s1063_s1 = inlined_call_operand.vmem [shape: f32[4,16,16], index: 1, kind: input, shape index: {}]   ;;  %s1064_s2 = inlined_call_operand.vmem [shape: f32[2,16,32], index: 2, kind: output, shape index: {}]  }
   0x1 LB: > { %s750_s10 = sadd.s32 4294967295, %s903_s9   ;;  %p754_p0 = scmp.ge.s32.totalorder %s903_s9, 1  ;;  %s903_s9 = sphi %s936_s9, %s12_s9  }
   0x2   : > { %p112_p1 = scmp.lt.s32.totalorder %s903_s9, 3 }
   0x4   : > { %p113_p2 = pnand %p754_p0, %p112_p1 }
   0x5   : > { %p134_p3 = scmp.lt.s32.totalorder (!%p113_p2), %s750_s10, 1  ;;  %v905_v0 = vmov (!%p113_p2), 0.0   ;;  %vm906_vm0 = vmmov (!%p113_p2), 0   ;;  %s907_s15 = smov (!%p113_p2), 96   ;;  %vm151_vm1 = vcmask (!%p113_p2), 64512   ;;  %v201_v7 = vld [vmem:[%s1063_s1] sm:$0xff] (!%p113_p2) }
   0x6   : > { %116 = sbr.rel (%p113_p2) target bundleno = 1566 (0x61e), region = 28  ;;  %793 = vmatprep.subr.bf16.mxu0 (!%p113_p2), %v905_v0  ;;  %795 = vmatprep.mubr.msk.bf16.mxu0 (!%p113_p2), %vm906_vm0, %v905_v0  ;;  %vm205_vm2 = vcmask (!%p113_p2), 130048   ;;  %v202_v11 = vld [vmem:[%s1063_s1 + $0x8] sm:$0xff] (!%p113_p2)  ;;  %s908_s20 = smov (!%p113_p2), 64   ;;  %v762_v50 = vld [vmem:[%s1063_s1 + $0x10] sm:$0xff] (!%p113_p2)  ;;  %v763_v54 = vld [vmem:[%s1063_s1 + $0x18] sm:$0xff] (!%p113_p2) }
   0x7   : > { %799 = vmatprep.subr.bf16.mxu1 (!%p113_p2), %v905_v0  ;;  %801 = vmatprep.mubr.msk.bf16.mxu1 (!%p113_p2), %vm906_vm0, %v905_v0  ;;  %s909_s21 = smov (!%p113_p2), 80   ;;  %s910_s22 = smov (!%p113_p2), 88   ;;  %v766_v62 = vld [vmem:[%s1063_s1 + $0x20] sm:$0xff] (!%p113_p2)  ;;  %vm414_vm3 = vcmask (!%p113_p2), 130112   ;;  %vm553_vm4 = vcmask (!%p113_p2), 195712   ;;  %vm692_vm5 = vcmask (!%p113_p2), 261312  }
   0x8   : > { %s911_s23 = smov (!%p113_p2), 120   ;;  %s912_s24 = smov (!%p113_p2), 112  }
   0x9   : > { %s913_s25 = smov (!%p113_p2), 72   ;;  %s914_s26 = smov (!%p113_p2), 104  }
   0xa   : > { %s916_s16 = smov (!%p113_p2), 40   ;;  %s917_s17 = smov (!%p113_p2), 48  }
   0xb   : > { %s918_s18 = smov (!%p113_p2), 8   ;;  %s919_s19 = smov (!%p113_p2), 16  }
   0xd   : > { %s1066_s10 = smov (!%p134_p3, %s750_s10), 1 }
   0xe   : > { %s775_s11 = sshll.u32 %s1066_s10, 4 }
   0xf   : > { %s138_s14 = scalar_lea.vmem %s1062_s0, %s775_s11  ;;  %s1005_s29 = scalar_lea.vmem %s1064_s2, %s775_s11 }
  0x10   : > { %v145_v1 = vld [vmem:[%s138_s14] sm:$0xff]  ;;  %v146_v2 = vld [vmem:[%s138_s14 + $0x8] sm:$0xff] }
  0x11   : > { %v958_v3 = vpack.c.bf16 %v146_v2, %v145_v1 }
  0x13   : > { %149 = vrot.lane.b32.xlu0 %v958_v3, %s907_s15  ;;  %s915_s15 = smov 56  }
  0x85   : > { %v150_v4 = vpop.permute.xlu0 %149 }
  0x86   : > { %v156_v5 = vsel %vm151_vm1, %v150_v4, 0  ;;  %v767_v4 = vld [vmem:[%s1063_s1 + $0x28] sm:$0xff] }
  0x87   : > { %794 = vmatpush3.bf16.xpose.msra.mxu0 %v156_v5 }
  0x88   : > { %811 = vmatprep.subr.bf16.mxu0 %v905_v0 }
  0x8e   : > { %796 = vmatmul.mubr.msk.bf16.vlgmr.msra.gmra.mrb[0].mxu0 %vm151_vm1, %v958_v3 }
  0x8f   : > { %813 = vmatprep.mubr.msk.bf16.mxu0 %vm906_vm0, %v905_v0 }
 0x161   : > { %v192_v6 = vpop.f32.mrb[0].mxu0 }
 0x162   : > { %v199_v8 = vmul.f32 0.35355338, %v192_v6  ;;  %v797_v9 = vpop.f32.mrb[1].mxu0 }
 0x163   : > { %v195_v10 = vpop.f32.mrb[2].mxu0 }
 0x164   : > { %v200_v12 = vmul.f32 0.35355338, %v195_v10  ;;  %v798_v13 = vpop.f32.mrb[3].mxu0  ;;  %v203_v14 = vadd.f32 %v201_v7, %v199_v8 }
 0x166   : > { %v206_v15 = vsel %vm205_vm2, %v203_v14, -inf  ;;  %v204_v16 = vadd.f32 %v202_v11, %v200_v12  ;;  %v770_v12 = vld [vmem:[%s1063_s1 + $0x30] sm:$0xff] }
 0x167   : > { %207 = vmax.xlane.f32.xlu0 %v206_v15 }
 0x168   : > { %v209_v17 = vsel %vm205_vm2, %v204_v16, -inf }
 0x169   : > { %210 = vmax.xlane.f32.xlu1 %v209_v17 }
 0x17a   : > { %229 = vrot.lane.b32.xlu1 %v958_v3, %s908_s20  ;;  %s920_s20 = smov 24  }
 0x17d   : > { %419 = vrot.lane.b32.xlu0 %v958_v3, %s909_s21 }
 0x1f4   : > { %v208_v18 = vpop.xlane.xlu0 %207 }
 0x1f5   : > { %v212_v19 = vsub.f32 %v203_v14, %v208_v18 }
 0x1f6   : > { %v211_v20 = vpop.xlane.xlu1 %210 }
 0x1f7   : > { %v214_v21 = vmul.f32 1.442695, %v212_v19  ;;  %v213_v22 = vsub.f32 %v204_v16, %v211_v20  ;;  %v771_v16 = vld [vmem:[%s1063_s1 + $0x38] sm:$0xff] }
 0x1f8   : > { %v420_v39 = vpop.permute.xlu0 %419 }
 0x1f9   : > { %865 = vpow2.f32 %v214_v21  ;;  %v216_v23 = vmul.f32 1.442695, %v213_v22  ;;  %v425_v41 = vsel %vm151_vm1, %v420_v39, 0 }
 0x1fa   : > { %v230_v24 = vpop.permute.xlu1 %229 }
 0x1fb   : > { %867 = vpow2.f32 %v216_v23  ;;  %800 = vmatpush3.bf16.msra.mxu1 %v230_v24 }
 0x1fc   : > { %805 = vmatprep.subr.bf16.mxu1 %v905_v0 }
 0x203   : > { %v866_v25 = vpop.eup %865 }
 0x204   : > { %v218_v26 = vsel %vm205_vm2, %v866_v25, 0.0 }
 0x205   : > { %v868_v27 = vpop.eup %867  ;;  %219 = vadd.xlane.f32.xlu1 %v218_v26 }
 0x206   : > { %v221_v28 = vsel %vm205_vm2, %v868_v27, 0.0 }
 0x209   : > { %222 = vadd.xlane.f32.xlu1 %v221_v28 }
 0x21a   : > { %280 = vrot.lane.b32.xlu1 %v958_v3, %s910_s22 }
 0x21e   : > { %278 = vrot.lane.b32.xlu1 %v958_v3, %s911_s23 }
 0x222   : > { %417 = vrot.lane.b32.xlu1 %v958_v3, %s912_s24 }
 0x226   : > { %558 = vrot.lane.b32.xlu1 %v958_v3, %s913_s25 }
 0x22a   : > { %556 = vrot.lane.b32.xlu1 %v958_v3, %s914_s26 }
 0x292   : > { %v220_v29 = vpop.xlane.xlu1 %219 }
 0x293   : > { %869 = vrcp.f32 %v220_v29 }
 0x296   : > { %v223_v30 = vpop.xlane.xlu1 %222 }
 0x297   : > { %871 = vrcp.f32 %v223_v30 }
 0x29a   : > { %v281_v33 = vpop.permute.xlu1 %280 }
 0x29b   : > { %v286_v36 = vsel %vm151_vm1, %v281_v33, 0 }
 0x29d   : > { %v870_v31 = vpop.eup %869 }
 0x29e   : > { %v226_v34 = vmul.f32 %v870_v31, %v866_v25  ;;  %v279_v38 = vpop.permute.xlu1 %278 }
 0x2a1   : > { %v872_v32 = vpop.eup %871 }
 0x2a2   : > { %v227_v35 = vmul.f32 %v872_v32, %v868_v27  ;;  %v418_v40 = vpop.permute.xlu1 %417 }
 0x2a4   : > { %v228_v37 = vpack.c.bf16 %v227_v35, %v226_v34 }
 0x2a6   : > { %802 = vmatmul.mubr.msk.bf16.vlgmr.msra.gmra.mrb[0].mxu1 %vm205_vm2, %v228_v37  ;;  %v559_v42 = vpop.permute.xlu1 %558 }
 0x2a7   : > { %806 = vmatpush3.bf16.xpose.msra.mxu1 %v286_v36  ;;  %807 = vmatprep.mubr.msk.bf16.mxu1 %vm906_vm0, %v905_v0  ;;  %v564_v43 = vsel %vm151_vm1, %v559_v42, 0 }
 0x2a8   : > { %817 = vmatprep.subr.bf16.mxu1 %v905_v0 }
 0x2aa   : > { %v557_v44 = vpop.permute.xlu1 %556 }
 0x2ae   : > { %808 = vmatmul.mubr.msk.bf16.vlgmr.msra.gmra.mrb[4].mxu1 %vm151_vm1, %v279_v38 }
 0x2af   : > { %818 = vmatpush3.bf16.xpose.msra.mxu1 %v425_v41  ;;  %819 = vmatprep.mubr.msk.bf16.mxu1 %vm906_vm0, %v905_v0 }
 0x2b0   : > { %829 = vmatprep.subr.bf16.mxu1 %v905_v0 }
 0x2b6   : > { %820 = vmatmul.mubr.msk.bf16.vlgmr.msra.gmra.mrb[8].mxu1 %vm151_vm1, %v418_v40 }
 0x2b7   : > { %830 = vmatpush3.bf16.xpose.msra.mxu1 %v564_v43  ;;  %831 = vmatprep.mubr.msk.bf16.mxu1 %vm906_vm0, %v905_v0 }
 0x2be   : > { %832 = vmatmul.mubr.msk.bf16.vlgmr.msra.gmra.mrb[12].mxu1 %vm151_vm1, %v557_v44 }
 0x379   : > { %v269_v45 = vpop.f32.mrb[0].mxu1 }
 0x37a   : > { %276 = vst.msk [vmem:[%s1005_s29] sm:$0xff] %vm151_vm1, %v269_v45  ;;  %v803_v46 = vpop.f32.mrb[1].mxu1 }
 0x37b   : > { %v272_v47 = vpop.f32.mrb[2].mxu1 }
 0x37c   : > { %277 = vst.msk [vmem:[%s1005_s29 + $0x8] sm:$0xff] %vm151_vm1, %v272_v47  ;;  %v804_v48 = vpop.f32.mrb[3].mxu1 }
 0x381   : > { %v322_v49 = vpop.f32.mrb[4].mxu1 }
 0x382   : > { %v329_v51 = vmul.f32 0.35355338, %v322_v49  ;;  %v809_v52 = vpop.f32.mrb[5].mxu1 }
 0x383   : > { %v325_v53 = vpop.f32.mrb[6].mxu1 }
 0x384   : > { %v330_v55 = vmul.f32 0.35355338, %v325_v53  ;;  %v810_v56 = vpop.f32.mrb[7].mxu1  ;;  %v334_v57 = vadd.f32 %v762_v50, %v329_v51 }
 0x386   : > { %v336_v58 = vsel %vm205_vm2, %v334_v57, -inf  ;;  %v335_v59 = vadd.f32 %v763_v54, %v330_v55 }
 0x387   : > { %337 = vmax.xlane.f32.xlu1 %v336_v58 }
 0x388   : > { %v339_v60 = vsel %vm205_vm2, %v335_v59, -inf }
 0x389   : > { %340 = vmax.xlane.f32.xlu0 %v339_v60  ;;  %v461_v61 = vpop.f32.mrb[8].mxu1 }
 0x38a   : > { %v468_v63 = vmul.f32 0.35355338, %v461_v61  ;;  %v821_v1 = vpop.f32.mrb[9].mxu1 }
 0x38b   : > { %v464_v2 = vpop.f32.mrb[10].mxu1 }
 0x38c   : > { %v469_v5 = vmul.f32 0.35355338, %v464_v2  ;;  %v822_v6 = vpop.f32.mrb[11].mxu1  ;;  %v473_v7 = vadd.f32 %v766_v62, %v468_v63 }
 0x38e   : > { %v475_v8 = vsel %vm205_vm2, %v473_v7, -inf  ;;  %v474_v9 = vadd.f32 %v767_v4, %v469_v5 }
 0x38f   : > { %476 = vmax.xlane.f32.xlu1 %v475_v8 }
 0x390   : > { %v478_v10 = vsel %vm205_vm2, %v474_v9, -inf }
 0x391   : > { %479 = vmax.xlane.f32.xlu0 %v478_v10  ;;  %v600_v11 = vpop.f32.mrb[12].mxu1 }
 0x392   : > { %v607_v13 = vmul.f32 0.35355338, %v600_v11  ;;  %v833_v14 = vpop.f32.mrb[13].mxu1 }
 0x393   : > { %v603_v15 = vpop.f32.mrb[14].mxu1 }
 0x394   : > { %v608_v17 = vmul.f32 0.35355338, %v603_v15  ;;  %v834_v18 = vpop.f32.mrb[15].mxu1  ;;  %v612_v19 = vadd.f32 %v770_v12, %v607_v13 }
 0x396   : > { %v614_v20 = vsel %vm205_vm2, %v612_v19, -inf  ;;  %v613_v21 = vadd.f32 %v771_v16, %v608_v17 }
 0x397   : > { %615 = vmax.xlane.f32.xlu1 %v614_v20 }
 0x398   : > { %v617_v22 = vsel %vm205_vm2, %v613_v21, -inf }
 0x399   : > { %618 = vmax.xlane.f32.xlu0 %v617_v22 }
 0x3a8   : > { %359 = vrot.lane.b32.xlu1 %v958_v3, %s915_s15 }
 0x414   : > { %v338_v23 = vpop.xlane.xlu1 %337 }
 0x415   : > { %v342_v24 = vsub.f32 %v334_v57, %v338_v23 }
 0x416   : > { %v341_v25 = vpop.xlane.xlu0 %340 }
 0x417   : > { %v344_v26 = vmul.f32 1.442695, %v342_v24  ;;  %v343_v27 = vsub.f32 %v335_v59, %v341_v25 }
 0x419   : > { %873 = vpow2.f32 %v344_v26  ;;  %v346_v28 = vmul.f32 1.442695, %v343_v27 }
 0x41b   : > { %875 = vpow2.f32 %v346_v28 }
 0x41c   : > { %v477_v29 = vpop.xlane.xlu1 %476 }
 0x41d   : > { %v481_v30 = vsub.f32 %v473_v7, %v477_v29 }
 0x41e   : > { %v480_v31 = vpop.xlane.xlu0 %479 }
 0x41f   : > { %v483_v32 = vmul.f32 1.442695, %v481_v30  ;;  %v482_v33 = vsub.f32 %v474_v9, %v480_v31 }
 0x421   : > { %877 = vpow2.f32 %v483_v32  ;;  %v485_v34 = vmul.f32 1.442695, %v482_v33 }
 0x423   : > { %v874_v35 = vpop.eup %873  ;;  %879 = vpow2.f32 %v485_v34 }
 0x424   : > { %v616_v36 = vpop.xlane.xlu1 %615  ;;  %v348_v37 = vsel %vm205_vm2, %v874_v35, 0.0 }
 0x425   : > { %v876_v38 = vpop.eup %875  ;;  %v620_v39 = vsub.f32 %v612_v19, %v616_v36  ;;  %349 = vadd.xlane.f32.xlu1 %v348_v37 }
 0x426   : > { %v619_v40 = vpop.xlane.xlu0 %618  ;;  %v351_v41 = vsel %vm205_vm2, %v876_v38, 0.0 }
 0x427   : > { %v622_v42 = vmul.f32 1.442695, %v620_v39  ;;  %v621_v43 = vsub.f32 %v613_v21, %v619_v40  ;;  %352 = vadd.xlane.f32.xlu0 %v351_v41 }
 0x428   : > { %v360_v44 = vpop.permute.xlu1 %359 }
 0x429   : > { %881 = vpow2.f32 %v622_v42  ;;  %v624_v45 = vmul.f32 1.442695, %v621_v43  ;;  %812 = vmatpush3.bf16.msra.mxu0 %v360_v44 }
 0x42a   : > { %823 = vmatprep.subr.bf16.mxu0 %v905_v0 }
 0x42b   : > { %v878_v46 = vpop.eup %877  ;;  %883 = vpow2.f32 %v624_v45 }
 0x42c   : > { %v487_v47 = vsel %vm205_vm2, %v878_v46, 0.0 }
 0x42d   : > { %v880_v48 = vpop.eup %879  ;;  %488 = vadd.xlane.f32.xlu1 %v487_v47 }
 0x42e   : > { %v490_v49 = vsel %vm205_vm2, %v880_v48, 0.0 }
 0x42f   : > { %491 = vadd.xlane.f32.xlu0 %v490_v49 }
 0x433   : > { %v882_v50 = vpop.eup %881 }
 0x434   : > { %v626_v51 = vsel %vm205_vm2, %v882_v50, 0.0 }
 0x435   : > { %v884_v52 = vpop.eup %883  ;;  %627 = vadd.xlane.f32.xlu1 %v626_v51 }
 0x436   : > { %v629_v53 = vsel %vm205_vm2, %v884_v52, 0.0 }
 0x437   : > { %630 = vadd.xlane.f32.xlu0 %v629_v53 }
 0x446   : > { %637 = vrot.lane.b32.xlu1 %v958_v3, %s916_s16 }
 0x44d   : > { %498 = vrot.lane.b32.xlu0 %v958_v3, %s917_s17 }
 0x4b2   : > { %v350_v54 = vpop.xlane.xlu1 %349 }
 0x4b3   : > { %885 = vrcp.f32 %v350_v54 }
 0x4b4   : > { %v353_v55 = vpop.xlane.xlu0 %352 }
 0x4b5   : > { %887 = vrcp.f32 %v353_v55 }
 0x4ba   : > { %v489_v56 = vpop.xlane.xlu1 %488 }
 0x4bb   : > { %889 = vrcp.f32 %v489_v56 }
 0x4bc   : > { %v492_v57 = vpop.xlane.xlu0 %491 }
 0x4bd   : > { %v886_v58 = vpop.eup %885  ;;  %891 = vrcp.f32 %v492_v57 }
 0x4be   : > { %v356_v60 = vmul.f32 %v886_v58, %v874_v35 }
 0x4bf   : > { %v888_v59 = vpop.eup %887 }
 0x4c0   : > { %v357_v61 = vmul.f32 %v888_v59, %v876_v38 }
 0x4c2   : > { %v628_v62 = vpop.xlane.xlu1 %627  ;;  %v358_v63 = vpack.c.bf16 %v357_v61, %v356_v60 }
 0x4c3   : > { %893 = vrcp.f32 %v628_v62 }
 0x4c4   : > { %v631_v1 = vpop.xlane.xlu0 %630  ;;  %814 = vmatmul.mubr.msk.bf16.vlgmr.msra.gmra.mrb[4].mxu0 %vm205_vm2, %v358_v63 }
 0x4c5   : > { %v890_v2 = vpop.eup %889  ;;  %895 = vrcp.f32 %v631_v1  ;;  %825 = vmatprep.mubr.msk.bf16.mxu0 %vm906_vm0, %v905_v0 }
 0x4c6   : > { %v495_v4 = vmul.f32 %v890_v2, %v878_v46  ;;  %v638_v8 = vpop.permute.xlu1 %637 }
 0x4c7   : > { %v892_v3 = vpop.eup %891 }
 0x4c8   : > { %v496_v5 = vmul.f32 %v892_v3, %v880_v48  ;;  %v499_v6 = vpop.permute.xlu0 %498 }
 0x4c9   : > { %824 = vmatpush3.bf16.msra.mxu0 %v499_v6 }
 0x4ca   : > { %v497_v7 = vpack.c.bf16 %v496_v5, %v495_v4  ;;  %835 = vmatprep.subr.bf16.mxu0 %v905_v0 }
 0x4cc   : > { %826 = vmatmul.mubr.msk.bf16.vlgmr.msra.gmra.mrb[8].mxu0 %vm205_vm2, %v497_v7 }
 0x4cd   : > { %v894_v9 = vpop.eup %893  ;;  %836 = vmatpush3.bf16.msra.mxu0 %v638_v8  ;;  %837 = vmatprep.mubr.msk.bf16.mxu0 %vm906_vm0, %v905_v0 }
 0x4ce   : > { %v634_v11 = vmul.f32 %v894_v9, %v882_v50 }
 0x4cf   : > { %v896_v10 = vpop.eup %895 }
 0x4d0   : > { %v635_v12 = vmul.f32 %v896_v10, %v884_v52 }
 0x4d2   : > { %v636_v13 = vpack.c.bf16 %v635_v12, %v634_v11 }
 0x4d4   : > { %838 = vmatmul.mubr.msk.bf16.vlgmr.msra.gmra.mrb[12].mxu0 %vm205_vm2, %v636_v13 }
 0x597   : > { %v399_v14 = vpop.f32.mrb[4].mxu0 }
 0x598   : > { %408 = vrot.lane.b32.xlu1 %v399_v14, %s918_s18  ;;  %v815_v15 = vpop.f32.mrb[5].mxu0 }
 0x599   : > { %v402_v16 = vpop.f32.mrb[6].mxu0 }
 0x59a   : > { %410 = vrot.lane.b32.xlu0 %v402_v16, %s918_s18  ;;  %v816_v17 = vpop.f32.mrb[7].mxu0 }
 0x59f   : > { %v538_v18 = vpop.f32.mrb[8].mxu0 }
 0x5a0   : > { %547 = vrot.lane.b32.xlu1 %v538_v18, %s919_s19  ;;  %v827_v19 = vpop.f32.mrb[9].mxu0 }
 0x5a1   : > { %v541_v0 = vpop.f32.mrb[10].mxu0 }
 0x5a2   : > { %549 = vrot.lane.b32.xlu0 %v541_v0, %s919_s19  ;;  %v828_v20 = vpop.f32.mrb[11].mxu0 }
 0x5a7   : > { %v677_v21 = vpop.f32.mrb[12].mxu0 }
 0x5a8   : > { %686 = vrot.lane.b32.xlu1 %v677_v21, %s920_s20  ;;  %v839_v22 = vpop.f32.mrb[13].mxu0 }
 0x5a9   : > { %v680_v23 = vpop.f32.mrb[14].mxu0 }
 0x5aa   : > { %688 = vrot.lane.b32.xlu0 %v680_v23, %s920_s20  ;;  %v840_v24 = vpop.f32.mrb[15].mxu0 }
 0x60a   : > { %v409_v25 = vpop.permute.xlu1 %408 }
 0x60b   : > { %415 = vst.msk [vmem:[%s1005_s29] sm:$0xff] %vm414_vm3, %v409_v25 }
 0x60c   : > { %v411_v26 = vpop.permute.xlu0 %410 }
 0x60d   : > { %416 = vst.msk [vmem:[%s1005_s29 + $0x8] sm:$0xff] %vm414_vm3, %v411_v26 }
 0x612   : > { %v548_v27 = vpop.permute.xlu1 %547 }
 0x613   : > { %554 = vst.msk [vmem:[%s1005_s29] sm:$0xff] %vm553_vm4, %v548_v27 }
 0x614   : > { %v550_v28 = vpop.permute.xlu0 %549 }
 0x615   : > { %555 = vst.msk [vmem:[%s1005_s29 + $0x8] sm:$0xff] %vm553_vm4, %v550_v28 }
 0x61a   : > { %v687_v29 = vpop.permute.xlu1 %686 }
 0x61b   : > { %693 = vst.msk [vmem:[%s1005_s29] sm:$0xff] %vm692_vm5, %v687_v29 }
 0x61c   : > { %v689_v30 = vpop.permute.xlu0 %688 }
 0x61d   : > { %694 = vst.msk [vmem:[%s1005_s29 + $0x8] sm:$0xff] %vm692_vm5, %v689_v30 }
 0x61e PF: > { %s12_s9 = sadd.s32 1, %s903_s9  }
 0x61f   : > { %p9_p4 = scmp.ge.s32.totalorder %s12_s9, 4  }
 0x621   :  { %11 = sbr.rel (!%p9_p4) target bundleno = 1 (0x1), region = 61 }

// kernel: swin_forward.33
= control target key start
LH: loop header
LB: loop body
LE: loop exit
PB: predicated region body
PF: predicated region fallthrough
CT: control target
= control target key end

     0   :  { %s949_s24 = smov 0   ;;  %s951_s25 = smov 0   ;;  %s1053_s0 = inlined_call_operand.vmem [shape: f32[32,32], index: 0, kind: input, shape index: {}]   ;;  %s1054_s1 = inlined_call_operand.vmem [shape: f32[1,32], index: 1, kind: input, shape index: {}]   ;;  %s1055_s2 = inlined_call_operand.vmem [shape: f32[1,32], index: 2, kind: input, shape index: {}]   ;;  %s1056_s3 = inlined_call_operand.vmem [shape: bf16[32,128], index: 3, kind: input, shape index: {}]   ;;  %s1057_s4 = inlined_call_operand.vmem [shape: f32[1,128], index: 4, kind: input, shape index: {}]   ;;  %s1058_s5 = inlined_call_operand.vmem [shape: bf16[128,32], index: 5, kind: input, shape index: {}]   ;;  %s1059_s6 = inlined_call_operand.vmem [shape: f32[1,32], index: 6, kind: input, shape index: {}]   ;;  %s1060_s7 = inlined_call_operand.vmem [shape: f32[32,32], index: 7, kind: output, shape index: {}]  }
   0x1   :  { %s953_s26 = smov 0  }
   0x2 LB: > { %s29_s27 = sadd.s32 1, %s901_s25  ;;  %p773_p0 = scmp.ge.s32.totalorder %s905_s26, 1  ;;  %s905_s26 = sphi %s953_s26, %s17_s26   ;;  %s901_s25 = sphi %s951_s25, %s1062_s25   ;;  %s897_s24 = sphi %s949_s24, %s1061_s24  }
   0x3   : > { %p31_p1 = scmp.ge.s32.totalorder %s29_s27, 2  ;;  %p278_p2 = scmp.lt.s32.totalorder %s905_s26, 3 }
   0x5   : > { %s1064_s27 = smov (%p31_p1, %s29_s27), 0  ;;  %p279_p3 = pnand %p773_p0, %p278_p2 }
   0x6   : > { %s774_s28 = sshll.u32 (!%p279_p3), %s897_s24, 1  ;;  %vm356_vm0 = vcmask (!%p279_p3), 261120   ;;  %v861_v14 = vld [vmem:[%s1056_s3] sm:$0xff] (!%p279_p3)   ;;  %v907_v15 = vmov (!%p279_p3), 0.0   ;;  %v862_v16 = vld [vmem:[%s1056_s3 + $0x8] sm:$0xff] (!%p279_p3)   ;;  %vm908_vm1 = vmmov (!%p279_p3), 0  }
   0x7   : > { %282 = sbr.rel (%p279_p3) target bundleno = 840 (0x348), region = 48  ;;  %p323_p4 = scmp.lt.s32.totalorder (!%p279_p3), %s774_s28, 3  ;;  %807 = vmatprep.subr.bf16.mxu0 (!%p279_p3), %v907_v15  ;;  %402 = vst.msk [vmem:[#allocation2] sm:$0xff] (!%p279_p3), %vm356_vm0, %v907_v15  ;;  %403 = vst.msk [vmem:[#allocation2 + $0x8] sm:$0xff] (!%p279_p3), %vm356_vm0, %v907_v15  ;;  %815 = vmatprep.subr.bf16.mxu1 (!%p279_p3), %v907_v15  ;;  %v778_v25 = vld [vmem:[%s1054_s1] ss:$0 sm:$0xff] (!%p279_p3) }
   0x8   : > { %808 = vmatpush3.bf16.msra.mxu0 (!%p279_p3), %v861_v14  ;;  %811 = vmatprep.mubr.msk.bf16.mxu0 (!%p279_p3), %vm908_vm1, %v907_v15  ;;  %v779_v29 = vld [vmem:[%s1055_s2] ss:$0 sm:$0xff] (!%p279_p3)  ;;  %v864_v36 = vld [vmem:[%s1058_s5 + $0x8] sm:$0xff] (!%p279_p3)   ;;  %v865_v37 = vld [vmem:[%s1058_s5 + $0x10] sm:$0xff] (!%p279_p3)  }
   0x9   : > { %809 = vmatprep.subr.bf16.mxu0 (!%p279_p3), %v907_v15  ;;  %831 = vmatprep.mubr.msk.bf16.mxu1 (!%p279_p3), %vm908_vm1, %v907_v15  ;;  %v863_v35 = vld [vmem:[%s1058_s5] sm:$0xff] (!%p279_p3)   ;;  %v866_v38 = vld [vmem:[%s1058_s5 + $0x18] sm:$0xff] (!%p279_p3)   ;;  %v868_v40 = vld [vmem:[%s1058_s5 + $0x28] sm:$0xff] (!%p279_p3)  }
   0xa   : > { %816 = vmatpush3.bf16.msra.mxu1 (!%p279_p3), %v863_v35  ;;  %v867_v39 = vld [vmem:[%s1058_s5 + $0x20] sm:$0xff] (!%p279_p3)   ;;  %v869_v41 = vld [vmem:[%s1058_s5 + $0x30] sm:$0xff] (!%p279_p3)   ;;  %v870_v42 = vld [vmem:[%s1058_s5 + $0x38] sm:$0xff] (!%p279_p3)  }
   0xb   : > { %817 = vmatprep.subr.bf16.mxu1 (!%p279_p3), %v907_v15  ;;  %v780_v43 = vld [vmem:[%s1057_s4] ss:$0 sm:$0xff] (!%p279_p3) }
   0xc   : > { %810 = vmatpush3.bf16.msra.mxu0 (!%p279_p3), %v862_v16 }
   0xe   : > { %s1066_s28 = smov (!%p323_p4, %s774_s28), 3  ;;  %818 = vmatpush3.bf16.msra.mxu1 %v864_v36 }
   0xf   : > { %s775_s29 = sshll.u32 %s1066_s28, 3  ;;  %819 = vmatprep.subr.bf16.mxu1 %v907_v15 }
  0x10   : > { %s326_s9 = scalar_lea.vmem %s1053_s0, %s775_s29  ;;  %s345_s22 = scalar_lea.vmem %s1060_s7, %s775_s29 }
  0x11   : > { %v975_v0 = vld [vmem:[%s326_s9] sm:$0xff]  ;;  %v977_v1 = vld [vmem:[%s326_s9 + $0x8] sm:$0xff] }
  0x12   : > { %v357_v2 = vsel %vm356_vm0, %v975_v0, 0.0  ;;  %v360_v3 = vsel %vm356_vm0, %v977_v1, 0.0  ;;  %820 = vmatpush3.bf16.msra.mxu1 %v865_v37 }
  0x13   : > { %358 = vadd.xlane.f32.xlu0 %v357_v2  ;;  %821 = vmatprep.subr.bf16.mxu1 %v907_v15 }
  0x16   : > { %822 = vmatpush3.bf16.msra.mxu1 %v866_v38 }
  0x17   : > { %361 = vadd.xlane.f32.xlu0 %v360_v3  ;;  %823 = vmatprep.subr.bf16.mxu1 %v907_v15 }
  0x1a   : > { %824 = vmatpush3.bf16.msra.mxu1 %v867_v39  ;;  %v527_v39 = vld [vmem:[#allocation2] sm:$0xff] }
  0x1b   : > { %825 = vmatprep.subr.bf16.mxu1 %v907_v15 }
  0x1e   : > { %826 = vmatpush3.bf16.msra.mxu1 %v868_v40 }
  0x1f   : > { %827 = vmatprep.subr.bf16.mxu1 %v907_v15 }
  0x22   : > { %828 = vmatpush3.bf16.msra.mxu1 %v869_v41  ;;  %v528_v41 = vld [vmem:[#allocation2 + $0x8] sm:$0xff] }
  0x23   : > { %829 = vmatprep.subr.bf16.mxu1 %v907_v15 }
  0x26   : > { %830 = vmatpush3.bf16.msra.mxu1 %v870_v42 }
  0xa0   : > { %v359_v4 = vpop.xlane.xlu0 %358 }
  0xa1   : > { %v364_v5 = vmul.f32 0.03125, %v359_v4 }
  0xa3   : > { %v366_v6 = vsub.f32 %v975_v0, %v364_v5 }
  0xa4   : > { %v362_v7 = vpop.xlane.xlu0 %361 }
  0xa5   : > { %v365_v8 = vmul.f32 0.03125, %v362_v7  ;;  %v368_v9 = vmul.f32 %v366_v6, %v366_v6 }
  0xa7   : > { %v367_v10 = vsub.f32 %v977_v1, %v365_v8  ;;  %v370_v11 = vsel %vm356_vm0, %v368_v9, 0.0 }
  0xa8   : > { %371 = vadd.xlane.f32.xlu1 %v370_v11 }
  0xa9   : > { %v369_v12 = vmul.f32 %v367_v10, %v367_v10 }
  0xab   : > { %v373_v13 = vsel %vm356_vm0, %v369_v12, 0.0 }
  0xac   : > { %374 = vadd.xlane.f32.xlu1 %v373_v13 }
 0x135   : > { %v372_v17 = vpop.xlane.xlu1 %371 }
 0x136   : > { %v376_v18 = vmul.f32 0.03125, %v372_v17 }
 0x138   : > { %v378_v19 = vadd.f32 1e-05, %v376_v18 }
 0x139   : > { %v375_v20 = vpop.xlane.xlu1 %374 }
 0x13a   : > { %871 = vrsqrt.f32 %v378_v19  ;;  %v377_v21 = vmul.f32 0.03125, %v375_v20 }
 0x13c   : > { %v379_v22 = vadd.f32 1e-05, %v377_v21 }
 0x13e   : > { %873 = vrsqrt.f32 %v379_v22 }
 0x144   : > { %v872_v23 = vpop.eup %871 }
 0x145   : > { %v382_v24 = vmul.f32 %v872_v23, %v366_v6 }
 0x147   : > { %v390_v27 = vmul.f32 %v778_v25, %v382_v24 }
 0x148   : > { %v874_v26 = vpop.eup %873 }
 0x149   : > { %v383_v28 = vmul.f32 %v874_v26, %v367_v10  ;;  %v398_v31 = vadd.f32 %v779_v29, %v390_v27 }
 0x14b   : > { %v391_v30 = vmul.f32 %v778_v25, %v383_v28 }
 0x14d   : > { %v399_v32 = vadd.f32 %v779_v29, %v391_v30 }
 0x14f   : > { %v400_v33 = vpack.c.bf16 %v399_v32, %v398_v31 }
 0x151   : > { %401 = vst.msk [vmem:[#allocation3] sm:$0xff] %vm356_vm0, %v400_v33 }
 0x158   : > { %v404_v34 = vld [vmem:[#allocation3] sm:$0xff] }
 0x159   : > { %812 = vmatmul.mubr.msk.bf16.vlgmr.msra.gmra.mrb[0].mxu0 %vm356_vm0, %v404_v34 }
 0x22c   : > { %v466_v44 = vpop.f32.mrb[0].mxu0 }
 0x22d   : > { %v467_v45 = vadd.f32 %v780_v43, %v466_v44  ;;  %v813_v46 = vpop.f32.mrb[1].mxu0 }
 0x22e   : > { %v469_v47 = vpop.f32.mrb[2].mxu0 }
 0x22f   : > { %v475_v48 = vmul.f32 0.70710677, %v467_v45  ;;  %v470_v49 = vadd.f32 %v780_v43, %v469_v47  ;;  %v814_v50 = vpop.f32.mrb[3].mxu0  ;;  %v473_v33 = vmul.f32 0.5, %v467_v45 }
 0x231   : > { %v477_v51 = vand.u32 2147483647, %v475_v48  ;;  %v476_v52 = vmul.f32 0.70710677, %v470_v49  ;;  %vm517_vm2 = vcmp.ge.f32.partialorder %v475_v48, 0.0  ;;  %v474_v34 = vmul.f32 0.5, %v470_v49 }
 0x232   : > { %v792_v48 = vld [vmem:[%s1059_s6] ss:$0 sm:$0xff] }
 0x233   : > { %v479_v53 = vmul.f32 0.3275911, %v477_v51  ;;  %v478_v54 = vand.u32 2147483647, %v476_v52  ;;  %v505_v58 = vsub.f32 0.0, %v477_v51  ;;  %vm518_vm3 = vcmp.ge.f32.partialorder %v476_v52, 0.0 }
 0x235   : > { %v481_v55 = vadd.f32 1.0, %v479_v53  ;;  %v480_v56 = vmul.f32 0.3275911, %v478_v54  ;;  %v506_v59 = vsub.f32 0.0, %v478_v54  ;;  %v507_v61 = vmul.f32 %v505_v58, %v477_v51 }
 0x237   : > { %875 = vrcp.f32 %v481_v55  ;;  %v482_v57 = vadd.f32 1.0, %v480_v56  ;;  %v508_v3 = vmul.f32 %v506_v59, %v478_v54  ;;  %v509_v4 = vmul.f32 1.442695, %v507_v61 }
 0x239   : > { %877 = vrcp.f32 %v482_v57  ;;  %v511_v9 = vmul.f32 1.442695, %v508_v3 }
 0x23a   : > { %879 = vpow2.f32 %v509_v4 }
 0x23b   : > { %881 = vpow2.f32 %v511_v9 }
 0x241   : > { %v876_v60 = vpop.eup %875 }
 0x242   : > { %v487_v62 = vmul.f32 1.0614054, %v876_v60 }
 0x243   : > { %v878_v63 = vpop.eup %877 }
 0x244   : > { %v489_v2 = vadd.f32 -1.4531521, %v487_v62  ;;  %v488_v5 = vmul.f32 1.0614054, %v878_v63  ;;  %v880_v20 = vpop.eup %879 }
 0x245   : > { %v882_v24 = vpop.eup %881 }
 0x246   : > { %v491_v6 = vmul.f32 %v876_v60, %v489_v2  ;;  %v490_v7 = vadd.f32 -1.4531521, %v488_v5 }
 0x248   : > { %v493_v8 = vadd.f32 1.4214138, %v491_v6  ;;  %v492_v10 = vmul.f32 %v878_v63, %v490_v7 }
 0x24a   : > { %v495_v11 = vmul.f32 %v876_v60, %v493_v8  ;;  %v494_v12 = vadd.f32 1.4214138, %v492_v10 }
 0x24c   : > { %v497_v13 = vadd.f32 -0.28449672, %v495_v11  ;;  %v496_v14 = vmul.f32 %v878_v63, %v494_v12 }
 0x24e   : > { %v499_v15 = vmul.f32 %v876_v60, %v497_v13  ;;  %v498_v16 = vadd.f32 -0.28449672, %v496_v14 }
 0x250   : > { %v501_v17 = vadd.f32 0.2548296, %v499_v15  ;;  %v500_v18 = vmul.f32 %v878_v63, %v498_v16 }
 0x252   : > { %v503_v19 = vmul.f32 %v876_v60, %v501_v17  ;;  %v502_v21 = vadd.f32 0.2548296, %v500_v18 }
 0x254   : > { %v513_v22 = vmul.f32 %v880_v20, %v503_v19  ;;  %v504_v23 = vmul.f32 %v878_v63, %v502_v21 }
 0x256   : > { %v515_v25 = vsub.f32 1.0, %v513_v22  ;;  %v514_v26 = vmul.f32 %v882_v24, %v504_v23 }
 0x258   : > { %v519_v27 = vsub.f32 0.0, %v515_v25  ;;  %v516_v28 = vsub.f32 1.0, %v514_v26 }
 0x25a   : > { %v521_v29 = vsel %vm517_vm2, %v515_v25, %v519_v27  ;;  %v520_v30 = vsub.f32 0.0, %v516_v28 }
 0x25b   : > { %v523_v31 = vadd.f32 1.0, %v521_v29 }
 0x25c   : > { %v522_v32 = vsel %vm518_vm3, %v516_v28, %v520_v30 }
 0x25d   : > { %v524_v35 = vadd.f32 1.0, %v522_v32  ;;  %v525_v36 = vmul.f32 %v523_v31, %v473_v33 }
 0x25f   : > { %v526_v37 = vmul.f32 %v524_v35, %v474_v34 }
 0x261   : > { %v529_v38 = vpack.c.bf16 %v526_v37, %v525_v36 }
 0x263   : > { %832 = vmatmul.mubr.bf16.vlgmr.msra.gmra.mrb[0].mxu1 %v529_v38 }
 0x336   : > { %v628_v40 = vpop.f32.mrb[0].mxu1 }
 0x337   : > { %v635_v42 = vadd.f32 %v628_v40, %v527_v39  ;;  %v833_v43 = vpop.f32.mrb[1].mxu1 }
 0x338   : > { %v631_v44 = vpop.f32.mrb[2].mxu1 }
 0x339   : > { %637 = vst.msk [vmem:[#allocation2] sm:$0xff] %vm356_vm0, %v635_v42  ;;  %v636_v46 = vadd.f32 %v631_v44, %v528_v41  ;;  %v834_v47 = vpop.f32.mrb[3].mxu1 }
 0x33b   : > { %638 = vst.msk [vmem:[#allocation2 + $0x8] sm:$0xff] %vm356_vm0, %v636_v46 }
 0x340   : > { %v644_v45 = vld [vmem:[#allocation2] sm:$0xff] }
 0x341   : > { %v646_v49 = vadd.f32 %v644_v45, %v975_v0 }
 0x342   : > { %v645_v50 = vld [vmem:[#allocation2 + $0x8] sm:$0xff] }
 0x343   : > { %v655_v51 = vadd.f32 %v792_v48, %v646_v49  ;;  %v647_v52 = vadd.f32 %v645_v50, %v977_v1 }
 0x345   : > { %657 = vst.msk [vmem:[%s345_s22] sm:$0xff] %vm356_vm0, %v655_v51  ;;  %v656_v53 = vadd.f32 %v792_v48, %v647_v52 }
 0x347   : > { %658 = vst.msk [vmem:[%s345_s22 + $0x8] sm:$0xff] %vm356_vm0, %v656_v53 }
 0x348 PF: > { %s17_s26 = sadd.s32 1, %s905_s26   ;;  %s1061_s24 = smov %s901_s25 }
 0x349   : > { %p14_p5 = scmp.ge.s32.totalorder %s17_s26, 4   ;;  %s1062_s25 = smov %s1064_s27 }
 0x34b   :  { %16 = sbr.rel (!%p14_p5) target bundleno = 2 (0x2), region = 95 }

// kernel: swin_forward.35
= control target key start
LH: loop header
LB: loop body
LE: loop exit
PB: predicated region body
PF: predicated region fallthrough
CT: control target
= control target key end

     0   :  { %s978_s12 = smov 0   ;;  %s1122_s0 = inlined_call_operand.vmem [shape: f32[2,16,96], index: 0, kind: input, shape index: {}]   ;;  %s1123_s1 = inlined_call_operand.vmem [shape: f32[4,16,16], index: 1, kind: input, shape index: {}]   ;;  %s1124_s2 = inlined_call_operand.vmem [shape: f32[1,16,16], index: 2, kind: input, shape index: {}]   ;;  %s1125_s3 = inlined_call_operand.vmem [shape: f32[2,16,32], index: 3, kind: output, shape index: {}]  }
   0x1 LB: > { %s787_s13 = sadd.s32 4294967295, %s940_s12   ;;  %p791_p0 = scmp.ge.s32.totalorder %s940_s12, 1  ;;  %s940_s12 = sphi %s978_s12, %s13_s12  }
   0x2   : > { %p137_p1 = scmp.lt.s32.totalorder %s940_s12, 3 }
   0x4   : > { %p138_p2 = pnand %p791_p0, %p137_p1 }
   0x5   : > { %p161_p3 = scmp.lt.s32.totalorder (!%p138_p2), %s787_s13, 1  ;;  %v942_v0 = vmov (!%p138_p2), 0.0   ;;  %vm943_vm0 = vmmov (!%p138_p2), 0   ;;  %s944_s18 = smov (!%p138_p2), 96   ;;  %vm180_vm1 = vcmask (!%p138_p2), 64512   ;;  %v230_v7 = vld [vmem:[%s1123_s1] sm:$0xff] (!%p138_p2) }
   0x6   : > { %141 = sbr.rel (%p138_p2) target bundleno = 1570 (0x622), region = 32  ;;  %830 = vmatprep.subr.bf16.mxu0 (!%p138_p2), %v942_v0  ;;  %832 = vmatprep.mubr.msk.bf16.mxu0 (!%p138_p2), %vm943_vm0, %v942_v0  ;;  %v231_v11 = vld [vmem:[%s1123_s1 + $0x8] sm:$0xff] (!%p138_p2)  ;;  %v1018_v12 = vld [vmem:[%s1124_s2] sm:$0xff] (!%p138_p2)  ;;  %vm236_vm2 = vcmask (!%p138_p2), 130048   ;;  %s945_s27 = smov (!%p138_p2), 64   ;;  %v799_v54 = vld [vmem:[%s1123_s1 + $0x10] sm:$0xff] (!%p138_p2) }
   0x7   : > { %836 = vmatprep.subr.bf16.mxu1 (!%p138_p2), %v942_v0  ;;  %838 = vmatprep.mubr.msk.bf16.mxu1 (!%p138_p2), %vm943_vm0, %v942_v0  ;;  %v1023_v16 = vld [vmem:[%s1124_s2 + $0x8] sm:$0xff] (!%p138_p2)  ;;  %s946_s28 = smov (!%p138_p2), 80   ;;  %s947_s29 = smov (!%p138_p2), 88   ;;  %v800_v58 = vld [vmem:[%s1123_s1 + $0x18] sm:$0xff] (!%p138_p2)  ;;  %vm447_vm3 = vcmask (!%p138_p2), 130112   ;;  %vm588_vm4 = vcmask (!%p138_p2), 195712  }
   0x8   : > { %s948_s30 = smov (!%p138_p2), 120   ;;  %s949_s4 = smov (!%p138_p2), 112   ;;  %vm729_vm5 = vcmask (!%p138_p2), 261312  }
   0x9   : > { %s950_s5 = smov (!%p138_p2), 72   ;;  %s951_s6 = smov (!%p138_p2), 104  }
   0xa   : > { %s952_s23 = smov (!%p138_p2), 56   ;;  %s953_s24 = smov (!%p138_p2), 40  }
   0xb   : > { %s954_s25 = smov (!%p138_p2), 48   ;;  %s955_s26 = smov (!%p138_p2), 8  }
   0xd   : > { %s1127_s13 = smov (!%p161_p3, %s787_s13), 1 }
   0xe   : > { %s812_s14 = sshll.u32 %s1127_s13, 4 }
   0xf   : > { %s165_s17 = scalar_lea.vmem %s1122_s0, %s812_s14  ;;  %s1059_s9 = scalar_lea.vmem %s1125_s3, %s812_s14 }
  0x10   : > { %v174_v1 = vld [vmem:[%s165_s17] sm:$0xff]  ;;  %v175_v2 = vld [vmem:[%s165_s17 + $0x8] sm:$0xff] }
  0x11   : > { %v1000_v3 = vpack.c.bf16 %v175_v2, %v174_v1 }
  0x13   : > { %178 = vrot.lane.b32.xlu0 %v1000_v3, %s944_s18 }
  0x85   : > { %v179_v4 = vpop.permute.xlu0 %178 }
  0x86   : > { %v185_v5 = vsel %vm180_vm1, %v179_v4, 0 }
  0x87   : > { %831 = vmatpush3.bf16.xpose.msra.mxu0 %v185_v5  ;;  %v803_v5 = vld [vmem:[%s1123_s1 + $0x20] sm:$0xff] }
  0x88   : > { %848 = vmatprep.subr.bf16.mxu0 %v942_v0 }
  0x8e   : > { %833 = vmatmul.mubr.msk.bf16.vlgmr.msra.gmra.mrb[0].mxu0 %vm180_vm1, %v1000_v3 }
  0x8f   : > { %850 = vmatprep.mubr.msk.bf16.mxu0 %vm943_vm0, %v942_v0 }
 0x161   : > { %v221_v6 = vpop.f32.mrb[0].mxu0 }
 0x162   : > { %v228_v8 = vmul.f32 0.35355338, %v221_v6  ;;  %v834_v9 = vpop.f32.mrb[1].mxu0 }
 0x163   : > { %v224_v10 = vpop.f32.mrb[2].mxu0 }
 0x164   : > { %v232_v13 = vadd.f32 %v230_v7, %v228_v8  ;;  %v229_v14 = vmul.f32 0.35355338, %v224_v10  ;;  %v835_v15 = vpop.f32.mrb[3].mxu0  ;;  %v804_v10 = vld [vmem:[%s1123_s1 + $0x28] sm:$0xff] }
 0x166   : > { %v233_v17 = vadd.f32 %v231_v11, %v229_v14  ;;  %v234_v18 = vadd.f32 %v232_v13, %v1018_v12 }
 0x168   : > { %v237_v19 = vsel %vm236_vm2, %v234_v18, -inf  ;;  %v235_v20 = vadd.f32 %v233_v17, %v1023_v16 }
 0x169   : > { %238 = vmax.xlane.f32.xlu0 %v237_v19 }
 0x16a   : > { %v240_v21 = vsel %vm236_vm2, %v235_v20, -inf }
 0x16b   : > { %241 = vmax.xlane.f32.xlu1 %v240_v21  ;;  %v807_v21 = vld [vmem:[%s1123_s1 + $0x30] sm:$0xff] }
 0x17c   : > { %260 = vrot.lane.b32.xlu1 %v1000_v3, %s945_s27  ;;  %s956_s27 = smov 16  }
 0x17f   : > { %452 = vrot.lane.b32.xlu0 %v1000_v3, %s946_s28  ;;  %s957_s28 = smov 24  }
 0x1f6   : > { %v239_v22 = vpop.xlane.xlu0 %238 }
 0x1f7   : > { %v243_v23 = vsub.f32 %v234_v18, %v239_v22 }
 0x1f8   : > { %v242_v24 = vpop.xlane.xlu1 %241 }
 0x1f9   : > { %v245_v25 = vmul.f32 1.442695, %v243_v23  ;;  %v244_v26 = vsub.f32 %v235_v20, %v242_v24 }
 0x1fa   : > { %v453_v43 = vpop.permute.xlu0 %452 }
 0x1fb   : > { %902 = vpow2.f32 %v245_v25  ;;  %v247_v27 = vmul.f32 1.442695, %v244_v26  ;;  %v458_v45 = vsel %vm180_vm1, %v453_v43, 0  ;;  %v808_v26 = vld [vmem:[%s1123_s1 + $0x38] sm:$0xff] }
 0x1fc   : > { %v261_v28 = vpop.permute.xlu1 %260 }
 0x1fd   : > { %904 = vpow2.f32 %v247_v27  ;;  %837 = vmatpush3.bf16.msra.mxu1 %v261_v28 }
 0x1fe   : > { %842 = vmatprep.subr.bf16.mxu1 %v942_v0 }
 0x205   : > { %v903_v29 = vpop.eup %902 }
 0x206   : > { %v249_v30 = vsel %vm236_vm2, %v903_v29, 0.0 }
 0x207   : > { %v905_v31 = vpop.eup %904  ;;  %250 = vadd.xlane.f32.xlu1 %v249_v30 }
 0x208   : > { %v252_v32 = vsel %vm236_vm2, %v905_v31, 0.0 }
 0x20b   : > { %253 = vadd.xlane.f32.xlu1 %v252_v32 }
 0x21c   : > { %311 = vrot.lane.b32.xlu1 %v1000_v3, %s947_s29 }
 0x220   : > { %309 = vrot.lane.b32.xlu1 %v1000_v3, %s948_s30 }
 0x224   : > { %450 = vrot.lane.b32.xlu1 %v1000_v3, %s949_s4 }
 0x228   : > { %593 = vrot.lane.b32.xlu1 %v1000_v3, %s950_s5 }
 0x22c   : > { %591 = vrot.lane.b32.xlu1 %v1000_v3, %s951_s6 }
 0x294   : > { %v251_v33 = vpop.xlane.xlu1 %250 }
 0x295   : > { %906 = vrcp.f32 %v251_v33 }
 0x298   : > { %v254_v34 = vpop.xlane.xlu1 %253 }
 0x299   : > { %908 = vrcp.f32 %v254_v34 }
 0x29c   : > { %v312_v37 = vpop.permute.xlu1 %311 }
 0x29d   : > { %v317_v40 = vsel %vm180_vm1, %v312_v37, 0 }
 0x29f   : > { %v907_v35 = vpop.eup %906 }
 0x2a0   : > { %v257_v38 = vmul.f32 %v907_v35, %v903_v29  ;;  %v310_v42 = vpop.permute.xlu1 %309 }
 0x2a3   : > { %v909_v36 = vpop.eup %908 }
 0x2a4   : > { %v258_v39 = vmul.f32 %v909_v36, %v905_v31  ;;  %v451_v44 = vpop.permute.xlu1 %450 }
 0x2a6   : > { %v259_v41 = vpack.c.bf16 %v258_v39, %v257_v38 }
 0x2a8   : > { %839 = vmatmul.mubr.msk.bf16.vlgmr.msra.gmra.mrb[0].mxu1 %vm236_vm2, %v259_v41  ;;  %v594_v46 = vpop.permute.xlu1 %593 }
 0x2a9   : > { %843 = vmatpush3.bf16.xpose.msra.mxu1 %v317_v40  ;;  %844 = vmatprep.mubr.msk.bf16.mxu1 %vm943_vm0, %v942_v0  ;;  %v599_v47 = vsel %vm180_vm1, %v594_v46, 0 }
 0x2aa   : > { %854 = vmatprep.subr.bf16.mxu1 %v942_v0 }
 0x2ac   : > { %v592_v48 = vpop.permute.xlu1 %591 }
 0x2b0   : > { %845 = vmatmul.mubr.msk.bf16.vlgmr.msra.gmra.mrb[4].mxu1 %vm180_vm1, %v310_v42 }
 0x2b1   : > { %855 = vmatpush3.bf16.xpose.msra.mxu1 %v458_v45  ;;  %856 = vmatprep.mubr.msk.bf16.mxu1 %vm943_vm0, %v942_v0 }
 0x2b2   : > { %866 = vmatprep.subr.bf16.mxu1 %v942_v0 }
 0x2b8   : > { %857 = vmatmul.mubr.msk.bf16.vlgmr.msra.gmra.mrb[8].mxu1 %vm180_vm1, %v451_v44 }
 0x2b9   : > { %867 = vmatpush3.bf16.xpose.msra.mxu1 %v599_v47  ;;  %868 = vmatprep.mubr.msk.bf16.mxu1 %vm943_vm0, %v942_v0 }
 0x2c0   : > { %869 = vmatmul.mubr.msk.bf16.vlgmr.msra.gmra.mrb[12].mxu1 %vm180_vm1, %v592_v48 }
 0x37b   : > { %v300_v49 = vpop.f32.mrb[0].mxu1 }
 0x37c   : > { %307 = vst.msk [vmem:[%s1059_s9] sm:$0xff] %vm180_vm1, %v300_v49  ;;  %v840_v50 = vpop.f32.mrb[1].mxu1 }
 0x37d   : > { %v303_v51 = vpop.f32.mrb[2].mxu1 }
 0x37e   : > { %308 = vst.msk [vmem:[%s1059_s9 + $0x8] sm:$0xff] %vm180_vm1, %v303_v51  ;;  %v841_v52 = vpop.f32.mrb[3].mxu1 }
 0x383   : > { %v353_v53 = vpop.f32.mrb[4].mxu1 }
 0x384   : > { %v360_v55 = vmul.f32 0.35355338, %v353_v53  ;;  %v846_v56 = vpop.f32.mrb[5].mxu1 }
 0x385   : > { %v356_v57 = vpop.f32.mrb[6].mxu1 }
 0x386   : > { %v365_v59 = vadd.f32 %v799_v54, %v360_v55  ;;  %v361_v60 = vmul.f32 0.35355338, %v356_v57  ;;  %v847_v61 = vpop.f32.mrb[7].mxu1 }
 0x388   : > { %v366_v62 = vadd.f32 %v800_v58, %v361_v60  ;;  %v367_v63 = vadd.f32 %v365_v59, %v1018_v12 }
 0x38a   : > { %v369_v1 = vsel %vm236_vm2, %v367_v63, -inf  ;;  %v368_v2 = vadd.f32 %v366_v62, %v1023_v16 }
 0x38b   : > { %370 = vmax.xlane.f32.xlu1 %v369_v1  ;;  %v494_v4 = vpop.f32.mrb[8].mxu1 }
 0x38c   : > { %v501_v6 = vmul.f32 0.35355338, %v494_v4  ;;  %v858_v7 = vpop.f32.mrb[9].mxu1  ;;  %v372_v8 = vsel %vm236_vm2, %v368_v2, -inf }
 0x38d   : > { %373 = vmax.xlane.f32.xlu0 %v372_v8  ;;  %v497_v9 = vpop.f32.mrb[10].mxu1 }
 0x38e   : > { %v506_v11 = vadd.f32 %v803_v5, %v501_v6  ;;  %v502_v13 = vmul.f32 0.35355338, %v497_v9  ;;  %v859_v14 = vpop.f32.mrb[11].mxu1 }
 0x390   : > { %v507_v15 = vadd.f32 %v804_v10, %v502_v13  ;;  %v508_v17 = vadd.f32 %v506_v11, %v1018_v12 }
 0x392   : > { %v510_v18 = vsel %vm236_vm2, %v508_v17, -inf  ;;  %v509_v19 = vadd.f32 %v507_v15, %v1023_v16 }
 0x393   : > { %511 = vmax.xlane.f32.xlu1 %v510_v18  ;;  %v635_v20 = vpop.f32.mrb[12].mxu1 }
 0x394   : > { %v642_v22 = vmul.f32 0.35355338, %v635_v20  ;;  %v870_v23 = vpop.f32.mrb[13].mxu1  ;;  %v513_v24 = vsel %vm236_vm2, %v509_v19, -inf }
 0x395   : > { %514 = vmax.xlane.f32.xlu0 %v513_v24  ;;  %v638_v25 = vpop.f32.mrb[14].mxu1 }
 0x396   : > { %v647_v27 = vadd.f32 %v807_v21, %v642_v22  ;;  %v643_v28 = vmul.f32 0.35355338, %v638_v25  ;;  %v871_v29 = vpop.f32.mrb[15].mxu1 }
 0x398   : > { %v648_v30 = vadd.f32 %v808_v26, %v643_v28  ;;  %v649_v31 = vadd.f32 %v647_v27, %v1018_v12 }
 0x39a   : > { %v651_v32 = vsel %vm236_vm2, %v649_v31, -inf  ;;  %v650_v33 = vadd.f32 %v648_v30, %v1023_v16 }
 0x39b   : > { %652 = vmax.xlane.f32.xlu1 %v651_v32 }
 0x39c   : > { %v654_v34 = vsel %vm236_vm2, %v650_v33, -inf }
 0x39d   : > { %655 = vmax.xlane.f32.xlu0 %v654_v34 }
 0x3ac   : > { %392 = vrot.lane.b32.xlu1 %v1000_v3, %s952_s23 }
 0x418   : > { %v371_v35 = vpop.xlane.xlu1 %370 }
 0x419   : > { %v375_v36 = vsub.f32 %v367_v63, %v371_v35 }
 0x41a   : > { %v374_v37 = vpop.xlane.xlu0 %373 }
 0x41b   : > { %v377_v38 = vmul.f32 1.442695, %v375_v36  ;;  %v376_v39 = vsub.f32 %v368_v2, %v374_v37 }
 0x41d   : > { %910 = vpow2.f32 %v377_v38  ;;  %v379_v40 = vmul.f32 1.442695, %v376_v39 }
 0x41f   : > { %912 = vpow2.f32 %v379_v40 }
 0x420   : > { %v512_v12 = vpop.xlane.xlu1 %511 }
 0x421   : > { %v516_v41 = vsub.f32 %v508_v17, %v512_v12 }
 0x422   : > { %v515_v42 = vpop.xlane.xlu0 %514 }
 0x423   : > { %v518_v43 = vmul.f32 1.442695, %v516_v41  ;;  %v517_v16 = vsub.f32 %v509_v19, %v515_v42 }
 0x425   : > { %914 = vpow2.f32 %v518_v43  ;;  %v520_v44 = vmul.f32 1.442695, %v517_v16 }
 0x427   : > { %v911_v45 = vpop.eup %910  ;;  %916 = vpow2.f32 %v520_v44 }
 0x428   : > { %v653_v46 = vpop.xlane.xlu1 %652  ;;  %v381_v47 = vsel %vm236_vm2, %v911_v45, 0.0 }
 0x429   : > { %v913_v48 = vpop.eup %912  ;;  %v657_v49 = vsub.f32 %v649_v31, %v653_v46  ;;  %382 = vadd.xlane.f32.xlu1 %v381_v47 }
 0x42a   : > { %v656_v50 = vpop.xlane.xlu0 %655  ;;  %v384_v51 = vsel %vm236_vm2, %v913_v48, 0.0 }
 0x42b   : > { %v659_v52 = vmul.f32 1.442695, %v657_v49  ;;  %v658_v53 = vsub.f32 %v650_v33, %v656_v50  ;;  %385 = vadd.xlane.f32.xlu0 %v384_v51 }
 0x42c   : > { %v393_v54 = vpop.permute.xlu1 %392 }
 0x42d   : > { %918 = vpow2.f32 %v659_v52  ;;  %v661_v55 = vmul.f32 1.442695, %v658_v53  ;;  %849 = vmatpush3.bf16.msra.mxu0 %v393_v54 }
 0x42e   : > { %860 = vmatprep.subr.bf16.mxu0 %v942_v0 }
 0x42f   : > { %v915_v56 = vpop.eup %914  ;;  %920 = vpow2.f32 %v661_v55 }
 0x430   : > { %v522_v57 = vsel %vm236_vm2, %v915_v56, 0.0 }
 0x431   : > { %v917_v58 = vpop.eup %916  ;;  %523 = vadd.xlane.f32.xlu1 %v522_v57 }
 0x432   : > { %v525_v59 = vsel %vm236_vm2, %v917_v58, 0.0 }
 0x433   : > { %526 = vadd.xlane.f32.xlu0 %v525_v59 }
 0x437   : > { %v919_v60 = vpop.eup %918 }
 0x438   : > { %v663_v61 = vsel %vm236_vm2, %v919_v60, 0.0 }
 0x439   : > { %v921_v62 = vpop.eup %920  ;;  %664 = vadd.xlane.f32.xlu1 %v663_v61 }
 0x43a   : > { %v666_v63 = vsel %vm236_vm2, %v921_v62, 0.0 }
 0x43b   : > { %667 = vadd.xlane.f32.xlu0 %v666_v63 }
 0x44a   : > { %674 = vrot.lane.b32.xlu1 %v1000_v3, %s953_s24 }
 0x451   : > { %533 = vrot.lane.b32.xlu0 %v1000_v3, %s954_s25 }
 0x4b6   : > { %v383_v1 = vpop.xlane.xlu1 %382 }
 0x4b7   : > { %922 = vrcp.f32 %v383_v1 }
 0x4b8   : > { %v386_v2 = vpop.xlane.xlu0 %385 }
 0x4b9   : > { %924 = vrcp.f32 %v386_v2 }
 0x4be   : > { %v524_v4 = vpop.xlane.xlu1 %523 }
 0x4bf   : > { %926 = vrcp.f32 %v524_v4 }
 0x4c0   : > { %v527_v5 = vpop.xlane.xlu0 %526 }
 0x4c1   : > { %v923_v6 = vpop.eup %922  ;;  %928 = vrcp.f32 %v527_v5 }
 0x4c2   : > { %v389_v8 = vmul.f32 %v923_v6, %v911_v45 }
 0x4c3   : > { %v925_v7 = vpop.eup %924 }
 0x4c4   : > { %v390_v9 = vmul.f32 %v925_v7, %v913_v48 }
 0x4c6   : > { %v665_v10 = vpop.xlane.xlu1 %664  ;;  %v391_v11 = vpack.c.bf16 %v390_v9, %v389_v8 }
 0x4c7   : > { %930 = vrcp.f32 %v665_v10 }
 0x4c8   : > { %v668_v13 = vpop.xlane.xlu0 %667  ;;  %851 = vmatmul.mubr.msk.bf16.vlgmr.msra.gmra.mrb[4].mxu0 %vm236_vm2, %v391_v11 }
 0x4c9   : > { %v927_v14 = vpop.eup %926  ;;  %932 = vrcp.f32 %v668_v13  ;;  %862 = vmatprep.mubr.msk.bf16.mxu0 %vm943_vm0, %v942_v0 }
 0x4ca   : > { %v530_v15 = vmul.f32 %v927_v14, %v915_v56  ;;  %v675_v20 = vpop.permute.xlu1 %674 }
 0x4cb   : > { %v929_v3 = vpop.eup %928 }
 0x4cc   : > { %v531_v17 = vmul.f32 %v929_v3, %v917_v58  ;;  %v534_v18 = vpop.permute.xlu0 %533 }
 0x4cd   : > { %861 = vmatpush3.bf16.msra.mxu0 %v534_v18 }
 0x4ce   : > { %v532_v19 = vpack.c.bf16 %v531_v17, %v530_v15  ;;  %872 = vmatprep.subr.bf16.mxu0 %v942_v0 }
 0x4d0   : > { %863 = vmatmul.mubr.msk.bf16.vlgmr.msra.gmra.mrb[8].mxu0 %vm236_vm2, %v532_v19 }
 0x4d1   : > { %v931_v21 = vpop.eup %930  ;;  %873 = vmatpush3.bf16.msra.mxu0 %v675_v20  ;;  %874 = vmatprep.mubr.msk.bf16.mxu0 %vm943_vm0, %v942_v0 }
 0x4d2   : > { %v671_v23 = vmul.f32 %v931_v21, %v919_v60 }
 0x4d3   : > { %v933_v22 = vpop.eup %932 }
 0x4d4   : > { %v672_v24 = vmul.f32 %v933_v22, %v921_v62 }
 0x4d6   : > { %v673_v25 = vpack.c.bf16 %v672_v24, %v671_v23 }
 0x4d8   : > { %875 = vmatmul.mubr.msk.bf16.vlgmr.msra.gmra.mrb[12].mxu0 %vm236_vm2, %v673_v25 }
 0x59b   : > { %v432_v26 = vpop.f32.mrb[4].mxu0 }
 0x59c   : > { %441 = vrot.lane.b32.xlu1 %v432_v26, %s955_s26  ;;  %v852_v27 = vpop.f32.mrb[5].mxu0 }
 0x59d   : > { %v435_v28 = vpop.f32.mrb[6].mxu0 }
 0x59e   : > { %443 = vrot.lane.b32.xlu0 %v435_v28, %s955_s26  ;;  %v853_v29 = vpop.f32.mrb[7].mxu0 }
 0x5a3   : > { %v573_v30 = vpop.f32.mrb[8].mxu0 }
 0x5a4   : > { %582 = vrot.lane.b32.xlu1 %v573_v30, %s956_s27  ;;  %v864_v31 = vpop.f32.mrb[9].mxu0 }
 0x5a5   : > { %v576_v0 = vpop.f32.mrb[10].mxu0 }
 0x5a6   : > { %584 = vrot.lane.b32.xlu0 %v576_v0, %s956_s27  ;;  %v865_v32 = vpop.f32.mrb[11].mxu0 }
 0x5ab   : > { %v714_v33 = vpop.f32.mrb[12].mxu0 }
 0x5ac   : > { %723 = vrot.lane.b32.xlu1 %v714_v33, %s957_s28  ;;  %v876_v34 = vpop.f32.mrb[13].mxu0 }
 0x5ad   : > { %v717_v35 = vpop.f32.mrb[14].mxu0 }
 0x5ae   : > { %725 = vrot.lane.b32.xlu0 %v717_v35, %s957_s28  ;;  %v877_v36 = vpop.f32.mrb[15].mxu0 }
 0x60e   : > { %v442_v37 = vpop.permute.xlu1 %441 }
 0x60f   : > { %448 = vst.msk [vmem:[%s1059_s9] sm:$0xff] %vm447_vm3, %v442_v37 }
 0x610   : > { %v444_v38 = vpop.permute.xlu0 %443 }
 0x611   : > { %449 = vst.msk [vmem:[%s1059_s9 + $0x8] sm:$0xff] %vm447_vm3, %v444_v38 }
 0x616   : > { %v583_v39 = vpop.permute.xlu1 %582 }
 0x617   : > { %589 = vst.msk [vmem:[%s1059_s9] sm:$0xff] %vm588_vm4, %v583_v39 }
 0x618   : > { %v585_v40 = vpop.permute.xlu0 %584 }
 0x619   : > { %590 = vst.msk [vmem:[%s1059_s9 + $0x8] sm:$0xff] %vm588_vm4, %v585_v40 }
 0x61e   : > { %v724_v12 = vpop.permute.xlu1 %723 }
 0x61f   : > { %730 = vst.msk [vmem:[%s1059_s9] sm:$0xff] %vm729_vm5, %v724_v12 }
 0x620   : > { %v726_v41 = vpop.permute.xlu0 %725 }
 0x621   : > { %731 = vst.msk [vmem:[%s1059_s9 + $0x8] sm:$0xff] %vm729_vm5, %v726_v41 }
 0x622 PF: > { %s13_s12 = sadd.s32 1, %s940_s12  }
 0x623   : > { %p10_p4 = scmp.ge.s32.totalorder %s13_s12, 4  }
 0x625   :  { %12 = sbr.rel (!%p10_p4) target bundleno = 1 (0x1), region = 65 }

// kernel: swin_forward.38
= control target key start
LH: loop header
LB: loop body
LE: loop exit
PB: predicated region body
PF: predicated region fallthrough
CT: control target
= control target key end

     0   :  { %vm20_vm0 = vcmask 261120   ;;  %vm117_vm1 = vcmask 1041409   ;;  %vm120_vm2 = vcmask 254976   ;;  %s189_s0 = inlined_call_operand.vmem [shape: f32[2,16,32], index: 0, kind: input, shape index: {}]   ;;  %s190_s1 = inlined_call_operand.vmem [shape: f32[1,32], index: 1, kind: input, shape index: {}]   ;;  %s191_s2 = inlined_call_operand.vmem [shape: f32[1,32], index: 2, kind: input, shape index: {}]   ;;  %s192_s3 = inlined_call_operand.vmem [shape: f32[2,32], index: 3, kind: output, shape index: {}]  }
   0x1   :  { %v14_v0 = vld [vmem:[%s189_s0] sm:$0xff]  ;;  %v16_v1 = vld [vmem:[%s189_s0 + $0x10] sm:$0xff]  ;;  %v15_v2 = vld [vmem:[%s189_s0 + $0x8] sm:$0xff] }
   0x2   :  { %v21_v3 = vsel %vm20_vm0, %v14_v0, 0.0  ;;  %v27_v4 = vsel %vm20_vm0, %v16_v1, 0.0  ;;  %v17_v5 = vld [vmem:[%s189_s0 + $0x18] sm:$0xff]  ;;  %v24_v6 = vsel %vm20_vm0, %v15_v2, 0.0  ;;  %v126_v41 = vld [vmem:[%s190_s1] ss:$0 sm:$0xff] }
   0x3   :  { %22 = vadd.xlane.f32.xlu0 %v21_v3  ;;  %28 = vadd.xlane.f32.xlu1 %v27_v4  ;;  %v30_v7 = vsel %vm20_vm0, %v17_v5, 0.0  ;;  %v127_v45 = vld [vmem:[%s191_s2] ss:$0 sm:$0xff] }
   0x7   :  { %25 = vadd.xlane.f32.xlu0 %v24_v6  ;;  %31 = vadd.xlane.f32.xlu1 %v30_v7 }
  0x90   :  { %v23_v8 = vpop.xlane.xlu0 %22  ;;  %v29_v9 = vpop.xlane.xlu1 %28 }
  0x91   :  { %v34_v10 = vmul.f32 0.03125, %v23_v8  ;;  %v36_v11 = vmul.f32 0.03125, %v29_v9 }
  0x93   :  { %v38_v12 = vsub.f32 %v14_v0, %v34_v10  ;;  %v40_v13 = vsub.f32 %v16_v1, %v36_v11 }
  0x94   :  { %v26_v14 = vpop.xlane.xlu0 %25  ;;  %v32_v15 = vpop.xlane.xlu1 %31 }
  0x95   :  { %v35_v16 = vmul.f32 0.03125, %v26_v14  ;;  %v37_v17 = vmul.f32 0.03125, %v32_v15  ;;  %v42_v18 = vmul.f32 %v38_v12, %v38_v12  ;;  %v44_v19 = vmul.f32 %v40_v13, %v40_v13 }
  0x97   :  { %v39_v20 = vsub.f32 %v15_v2, %v35_v16  ;;  %v41_v21 = vsub.f32 %v17_v5, %v37_v17  ;;  %v46_v22 = vsel %vm20_vm0, %v42_v18, 0.0  ;;  %v52_v23 = vsel %vm20_vm0, %v44_v19, 0.0 }
  0x98   :  { %47 = vadd.xlane.f32.xlu0 %v46_v22 }
  0x99   :  { %v43_v24 = vmul.f32 %v39_v20, %v39_v20  ;;  %v45_v25 = vmul.f32 %v41_v21, %v41_v21 }
  0x9b   :  { %v49_v26 = vsel %vm20_vm0, %v43_v24, 0.0  ;;  %v55_v27 = vsel %vm20_vm0, %v45_v25, 0.0 }
  0x9c   :  { %53 = vadd.xlane.f32.xlu0 %v52_v23  ;;  %50 = vadd.xlane.f32.xlu1 %v49_v26 }
  0xa0   :  { %56 = vadd.xlane.f32.xlu1 %v55_v27 }
 0x125   :  { %v48_v28 = vpop.xlane.xlu0 %47 }
 0x126   :  { %v58_v29 = vmul.f32 0.03125, %v48_v28 }
 0x128   :  { %v62_v30 = vadd.f32 1e-05, %v58_v29 }
 0x129   :  { %v51_v31 = vpop.xlane.xlu1 %50  ;;  %v54_v32 = vpop.xlane.xlu0 %53 }
 0x12a   :  { %128 = vrsqrt.f32 %v62_v30  ;;  %v59_v33 = vmul.f32 0.03125, %v51_v31  ;;  %v60_v34 = vmul.f32 0.03125, %v54_v32 }
 0x12c   :  { %v63_v35 = vadd.f32 1e-05, %v59_v33  ;;  %v64_v36 = vadd.f32 1e-05, %v60_v34 }
 0x12d   :  { %v57_v37 = vpop.xlane.xlu1 %56 }
 0x12e   :  { %130 = vrsqrt.f32 %v63_v35  ;;  %v61_v38 = vmul.f32 0.03125, %v57_v37 }
 0x12f   :  { %132 = vrsqrt.f32 %v64_v36 }
 0x130   :  { %v65_v39 = vadd.f32 1e-05, %v61_v38 }
 0x132   :  { %134 = vrsqrt.f32 %v65_v39 }
 0x134   :  { %v129_v40 = vpop.eup %128 }
 0x135   :  { %v70_v42 = vmul.f32 %v129_v40, %v38_v12 }
 0x137   :  { %v80_v43 = vmul.f32 %v126_v41, %v70_v42 }
 0x138   :  { %v131_v44 = vpop.eup %130 }
 0x139   :  { %v133_v46 = vpop.eup %132  ;;  %v71_v47 = vmul.f32 %v131_v44, %v39_v20  ;;  %v90_v49 = vadd.f32 %v127_v45, %v80_v43 }
 0x13a   :  { %v72_v48 = vmul.f32 %v133_v46, %v40_v13 }
 0x13b   :  { %v81_v50 = vmul.f32 %v126_v41, %v71_v47  ;;  %v94_v55 = vsel %vm20_vm0, %v90_v49, 0.0 }
 0x13c   :  { %v135_v51 = vpop.eup %134  ;;  %v82_v52 = vmul.f32 %v126_v41, %v72_v48 }
 0x13d   :  { %v91_v53 = vadd.f32 %v127_v45, %v81_v50  ;;  %v73_v54 = vmul.f32 %v135_v51, %v41_v21 }
 0x13e   :  { %v92_v57 = vadd.f32 %v127_v45, %v82_v52 }
 0x13f   :  { %v95_v56 = vsel %vm20_vm0, %v91_v53, 0.0  ;;  %v83_v58 = vmul.f32 %v126_v41, %v73_v54 }
 0x140   :  { %v96_v59 = vadd.f32 %v95_v56, %v94_v55  ;;  %v103_v62 = vsel %vm20_vm0, %v92_v57, 0.0 }
 0x141   :  { %v93_v60 = vadd.f32 %v127_v45, %v83_v58 }
 0x142   :  { %v97_v61 = vrot.slane %v96_v59, 4 }
 0x143   :  { %v104_v63 = vsel %vm20_vm0, %v93_v60, 0.0 }
 0x144   :  { %v98_v0 = vadd.f32 %v97_v61, %v96_v59  ;;  %v105_v1 = vadd.f32 %v104_v63, %v103_v62 }
 0x146   :  { %v99_v2 = vrot.slane %v98_v0, 2  ;;  %v106_v3 = vrot.slane %v105_v1, 4 }
 0x148   :  { %v100_v4 = vadd.f32 %v99_v2, %v98_v0  ;;  %v107_v5 = vadd.f32 %v106_v3, %v105_v1 }
 0x14a   :  { %v101_v6 = vrot.slane %v100_v4, 1  ;;  %v108_v7 = vrot.slane %v107_v5, 2 }
 0x14c   :  { %v109_v8 = vadd.f32 %v108_v7, %v107_v5  ;;  %v102_v9 = vadd.f32 %v101_v6, %v100_v4 }
 0x14e   :  { %v110_v10 = vrot.slane %v109_v8, 1  ;;  %v113_v12 = vmul.f32 0.0625, %v102_v9 }
 0x150   :  { %v111_v11 = vadd.f32 %v110_v10, %v109_v8 }
 0x152   :  { %v114_v13 = vmul.f32 0.0625, %v111_v11 }
 0x154   :  { %v118_v14 = vsel %vm117_vm1, %v114_v13, %v113_v12 }
 0x155   :  { %121 = vst.msk [vmem:[%s192_s3] sm:$0x3] %vm120_vm2, %v118_v14 }

// kernel: swin_forward.39
= control target key start
LH: loop header
LB: loop body
LE: loop exit
PB: predicated region body
PF: predicated region fallthrough
CT: control target
= control target key end

     0   :  { %v159_v1 = vmov 0.0   ;;  %vm160_vm0 = vmmov 0   ;;  %vm20_vm1 = vcmask 74752   ;;  %s209_s0 = inlined_call_operand.vmem [shape: f32[2,32], index: 0, kind: input, shape index: {}]   ;;  %s210_s1 = inlined_call_operand.vmem [shape: bf16[32,10], index: 1, kind: input, shape index: {}]   ;;  %s211_s2 = inlined_call_operand.vmem [shape: f32[1,10], index: 2, kind: input, shape index: {}]   ;;  %s212_s3 = inlined_call_operand.hbm [shape: f32[2,10], index: 3, kind: output, shape index: {}]  }
   0x1   :  { %v133_v0 = vld [vmem:[%s210_s1] sm:$0xff]   ;;  %122 = vmatprep.subr.bf16.mxu0 %v159_v1  ;;  %v134_v2 = vld [vmem:[%s210_s1 + $0x8] sm:$0xff]   ;;  %126 = vmatprep.mubr.msk.bf16.mxu0 %vm160_vm0, %v159_v1 }
   0x2   :  { %123 = vmatpush3.bf16.msra.mxu0 %v133_v0  ;;  %v23_v3 = vld [vmem:[%s209_s0] sm:$0x3] }
   0x3   :  { %8 = vsyncpa [#allocation4], 0  ;;  %124 = vmatprep.subr.bf16.mxu0 %v159_v1  ;;  %21 = vst.msk [vmem:[#allocation2] sm:$0x3] %vm20_vm1, %v159_v1  ;;  %v24_v4 = vpack.c.bf16 %v23_v3, %v23_v3  ;;  %vm41_vm2 = vcmask 261120   ;;  %s161_s0 = smov [#allocation3]  }
   0x4   :  { %v118_v11 = vld [vmem:[%s211_s2] ss:$0 sm:$0xff]  ;;  %s107_s19 = sshll.u32 %s161_s0, 4  ;;  %s108_s19 = int_to_ptr.vmem [resolvable:$true] %s107_s19 }
   0x5   :  { %s135_s20 = scalar_lea.vmem %s108_s19, 32  ;;  %p140_p1 = scmp.lt.s32.totalorder %s108_s19, %s108_s19 }
   0x6   :  { %125 = vmatpush3.bf16.msra.mxu0 %v134_v2  ;;  %p136_p0 = scmp.ne.s32.totalorder %s108_s19, %s135_s20  ;;  %p141_p2 = scmp.lt.s32.totalorder %s135_s20, %s135_s20 }
   0x8   :  { %p142_p3 = por %p141_p2, %p140_p1 }
   0x9   :  { %127 = vmatmul.mubr.msk.bf16.vlgmr.msra.gmra.mrb[0].mxu0 %vm41_vm2, %v24_v4 }
   0xa   :  { %v22_v5 = vld [vmem:[#allocation2] sm:$0x3]  ;;  %p143_p4 = pnand %p142_p3, %p136_p0 }
  0xdc   :  { %v79_v6 = vpop.f32.mrb[0].mxu0 }
  0xdd   :  { %v85_v7 = vadd.f32 %v79_v6, %v22_v5  ;;  %v128_v8 = vpop.f32.mrb[1].mxu0 }
  0xde   :  { %v82_v9 = vpop.f32.mrb[2].mxu0 }
  0xdf   :  { %87 = vst.msk [vmem:[#allocation2] sm:$0x3] %vm20_vm1, %v85_v7  ;;  %v129_v10 = vpop.f32.mrb[3].mxu0 }
  0xe6   :  { %v91_v12 = vld [vmem:[#allocation2] sm:$0x3] }
  0xe7   :  { %v99_v13 = vadd.f32 %v118_v11, %v91_v12 }
  0xe9   :  { %100 = vst.msk [vmem:[#allocation3] sm:$0x3] %vm20_vm1, %v99_v13 }
  0xea   :  { %146 = shalt.err (!%p143_p4)
}
  0xeb   :  { %s147_s23 = scalar_lea.hbm %s212_s3, 32 }
  0xec   :  { %p148_p5 = scmp.ne.s32.totalorder %s212_s3, %s147_s23  ;;  %p151_p6 = scmp.lt.u32.totalorder %s147_s23, %s212_s3 }
  0xee   :  { %p153_p7 = pnand %p151_p6, %p148_p5 }
  0xf0   :  { %156 = shalt.err (!%p153_p7)
}
  0xf1   :  { %110 = dma.vmem_to_hbm [thread:$0]  %s108_s19, 32, %s212_s3, [#allocation4]  }
  0xf2   :  { %157 = dma.done.wait [#allocation4], 32  }
  0xf3   :  { %158 = vsyncadd [#allocation4], 4294967264 }
  0xf4   :  { %114 = vsyncpa [#allocation4], 1 }

</bundles_post_ra>
